<compile_context>
chip_gen: v7x
topology: tpu7x:2x2x1
jax: 0.10.0
libtpu: 0.0.40
codegen_flags: <defaults>
</compile_context>

<pallas_src>
import functools

import jax
import jax.numpy as jnp
from jax.experimental import pallas as pl
from jax.experimental.pallas import tpu as pltpu


def _mlp_kernel(x_ref,
                w1_ref, b1_ref,
                w2_ref, b2_ref,
                w3_ref, b3_ref,
                w4_ref, b4_ref,
                o_ref):
    """Fused 4-layer MLP: layer 1 on the VPU (K=3), layers 2-4 on the MXU."""
    x = x_ref[...]            # (block, 3) fp32
    w1 = w1_ref[...]          # (3, 128)   fp32

    # Layer 1: (block,3)@(3,128) as 3 broadcasted FMAs — fp32, on the VPU.
    h = (x[:, 0:1] * w1[0:1, :]
         + x[:, 1:2] * w1[1:2, :]
         + x[:, 2:3] * w1[2:3, :]
         + b1_ref[...])
    h = jnp.maximum(h, 0.0).astype(jnp.bfloat16)

    # Layers 2-4: bf16 MXU matmuls, fp32 accumulation, fp32 bias + ReLU.
    h = jnp.dot(h, w2_ref[...], preferred_element_type=jnp.float32) + b2_ref[...]
    h = jnp.maximum(h, 0.0).astype(jnp.bfloat16)

    h = jnp.dot(h, w3_ref[...], preferred_element_type=jnp.float32) + b3_ref[...]
    h = jnp.maximum(h, 0.0).astype(jnp.bfloat16)

    h = jnp.dot(h, w4_ref[...], preferred_element_type=jnp.float32) + b4_ref[...]
    h = jnp.maximum(h, 0.0)

    o_ref[...] = h.astype(o_ref.dtype)


def _round_up(n, m):
    return ((n + m - 1) // m) * m


def _chip_budget():
    """(max batch tile, vmem_limit_bytes) per TPU generation.

    v7x has 64 MiB VMEM / TensorCore -> cap tile at 512, limit ~52 MiB.
    v5e / v6e have 128 MiB -> allow 1024-row tiles and a 100 MiB limit.
    Falls back to the conservative (v7x) budget if the query is unavailable.
    """
    try:
        vmem_cap = pltpu.get_tpu_info().vmem_capacity_bytes
    except Exception:
        vmem_cap = 64 << 20
    if vmem_cap >= (96 << 20):
        return 1024, 100 << 20
    return 512, 52 << 20


@functools.partial(jax.jit, static_argnames=("block_b", "vmem_limit", "out_dtype"))
def _alpha_to_beta_impl(x, params, block_b, vmem_limit, out_dtype):
    B, D_in = x.shape
    D_out = params["w4"].shape[1]

    # Batch tile: keep small problems small, pad big ones to the tile.
    block = min(block_b, _round_up(B, 8))
    # Guarantee >= 2 grid steps when the batch allows, so v7x's second
    # TensorCore gets work (weights are replicated per-TC VMEM — fine).
    if _round_up(B, block) // block < 2 and B > 8:
        block = _round_up((B + 1) // 2, 8)
    b_pad = _round_up(B, block)
    if b_pad != B:
        x = jnp.pad(x, ((0, b_pad - B), (0, 0)))

    # Layer-1 params stay fp32 (VPU path); big weights go bf16 for the MXU.
    w1 = params["w1"].astype(jnp.float32)
    w2 = params["w2"].astype(jnp.bfloat16)
    w3 = params["w3"].astype(jnp.bfloat16)
    w4 = params["w4"].astype(jnp.bfloat16)
    b1 = params["b1"].astype(jnp.float32)
    b2 = params["b2"].astype(jnp.float32)
    b3 = params["b3"].astype(jnp.float32)
    b4 = params["b4"].astype(jnp.float32)

    def resident(arr):
        # Block index constant across the grid -> single-buffer (no overlap
        # to gain, saves VMEM).
        return pl.BlockSpec(arr.shape, lambda i: (0, 0),
                            pipeline_mode=pl.Buffered(1))

    grid = (b_pad // block,)

    layer_dims = [(3, 128), (128, 512), (512, 1024), (1024, 2048)]
    flops = 2 * b_pad * sum(i * o for i, o in layer_dims)
    bytes_accessed = (
        b_pad * D_in * 4                                   # x (fp32 in HBM)
        + 3 * 128 * 4 + 128 * 4                            # fp32 w1 + b1
        + sum(i * o * 2 + o * 4 for i, o in layer_dims[1:])  # bf16 W + fp32 b
        + b_pad * D_out * jnp.dtype(out_dtype).itemsize    # output
    )

    out = pl.pallas_call(
        _mlp_kernel,
        out_shape=jax.ShapeDtypeStruct((b_pad, D_out), out_dtype),
        grid_spec=pltpu.PrefetchScalarGridSpec(
            num_scalar_prefetch=0,
            grid=grid,
            in_specs=[
                # x tile: tiny DMA, default double buffer is enough.
                pl.BlockSpec((block, D_in), lambda i: (i, 0)),
                resident(w1), resident(b1),
                resident(w2), resident(b2),
                resident(w3), resident(b3),
                resident(w4), resident(b4),
            ],
            out_specs=pl.BlockSpec((block, D_out), lambda i: (i, 0)),
        ),
        compiler_params=pltpu.CompilerParams(
            dimension_semantics=("parallel",),
            vmem_limit_bytes=vmem_limit,
        ),
        cost_estimate=pl.CostEstimate(
            flops=flops, transcendentals=0, bytes_accessed=bytes_accessed),
    )(x, w1, b1, w2, b2, w3, b3, w4, b4)

    return out[:B]


def alpha_to_beta(x, params, block_b=512, out_dtype=jnp.float32):
    """Run the fused AlphaToBeta MLP.

    x: (B, 3) float32
    params: dict with w1..w4 as (in, out) fp32 and b1..b4 as (1, out) fp32
    block_b: requested batch tile (capped per TPU generation)
    out_dtype: fp32 by default (matches the PyTorch module); pass bf16 if the
               consumer tolerates it to halve the streamed output bytes.
    returns: (B, 2048) in out_dtype
    """
    max_block, vmem_limit = _chip_budget()
    return _alpha_to_beta_impl(x, params, min(block_b, max_block),
                               vmem_limit, out_dtype)


def init_params(key):
    """Deterministic parameter init matching nn.Linear shapes.

    PyTorch: linear_k.weight is (out, in), bias is (out,).
    We store W as (in, out) and b as (1, out).
    """
    dims = [(3, 128), (128, 512), (512, 1024), (1024, 2048)]
    params = {}
    for idx, (d_in, d_out) in enumerate(dims, start=1):
        key, kw, kb = jax.random.split(key, 3)
        bound = 1.0 / jnp.sqrt(d_in)  # same scale as PyTorch default init
        params[f"w{idx}"] = jax.random.uniform(
            kw, (d_in, d_out), jnp.float32, minval=-bound, maxval=bound)
        params[f"b{idx}"] = jax.random.uniform(
            kb, (1, d_out), jnp.float32, minval=-bound, maxval=bound)
    return params


def reference_f32(x, params):
    """Pure fp32 reference (matches the PyTorch module)."""
    h = x
    for idx in range(1, 5):
        h = jnp.maximum(h @ params[f"w{idx}"] + params[f"b{idx}"], 0.0)
    return h


def reference_mixed(x, params):
    """Reference mimicking the kernel's math: fp32 layer 1, bf16 MXU layers."""
    h = jnp.maximum(x @ params["w1"] + params["b1"], 0.0)
    for idx in range(2, 5):
        w = params[f"w{idx}"].astype(jnp.bfloat16)
        h = jnp.dot(h.astype(jnp.bfloat16), w,
                    preferred_element_type=jnp.float32) + params[f"b{idx}"]
        h = jnp.maximum(h, 0.0)
    return h


if __name__ == "__main__":
    key = jax.random.PRNGKey(0)
    key, kx = jax.random.split(key)

    B = 8  # small demo batch; large batches use up-to-512/1024-row tiles
    x = jax.random.normal(kx, (B, 3), jnp.float32)
    params = init_params(key)

    out = alpha_to_beta(x, params)
    out = jax.block_until_ready(out)

    assert out.shape == (B, 2048)
    # Tight check against a reference using the same mixed precision.
    assert jnp.allclose(out, reference_mixed(x, params), atol=2e-3, rtol=2e-3)
    # Looser sanity check against the pure fp32 PyTorch-equivalent math.
    assert jnp.allclose(out, reference_f32(x, params), atol=3e-2, rtol=3e-2)

    # Exercise a larger, padded, multi-step-grid batch as well.
    key, kx2 = jax.random.split(key)
    x2 = jax.random.normal(kx2, (300, 3), jnp.float32)
    out2 = jax.block_until_ready(alpha_to_beta(x2, params))
    assert out2.shape == (300, 2048)
    assert jnp.allclose(out2, reference_mixed(x2, params), atol=2e-3, rtol=2e-3)

    print("KERNEL_OK")
</pallas_src>

<mosaic_0001>
module attributes {stable_mosaic.version = 11 : i64} {
  func.func @_mlp_kernel(%arg0: i32, %arg1: memref<8x3xf32, #tpu.memory_space<vmem>>, %arg2: memref<3x128xf32, #tpu.memory_space<vmem>>, %arg3: memref<1x128xf32, #tpu.memory_space<vmem>>, %arg4: memref<128x512xbf16, #tpu.memory_space<vmem>>, %arg5: memref<1x512xf32, #tpu.memory_space<vmem>>, %arg6: memref<512x1024xbf16, #tpu.memory_space<vmem>>, %arg7: memref<1x1024xf32, #tpu.memory_space<vmem>>, %arg8: memref<1024x2048xbf16, #tpu.memory_space<vmem>>, %arg9: memref<1x2048xf32, #tpu.memory_space<vmem>>, %arg10: memref<8x2048xf32, #tpu.memory_space<vmem>>) attributes {dimension_semantics = [#tpu.dimension_semantics<parallel>], iteration_bounds = array<i64: 1>, scalar_prefetch = 0 : i64, scratch_operands = 0 : i64, tpu.core_type = #tpu.core_type<tc>, window_params = [{transform_indices = @transform_0, window_bounds = array<i64: 8, 3>}, {pipeline_mode = #tpu.pipeline_mode<synchronous>, transform_indices = @transform_1, window_bounds = array<i64: 3, 128>}, {pipeline_mode = #tpu.pipeline_mode<synchronous>, transform_indices = @transform_2, window_bounds = array<i64: 1, 128>}, {pipeline_mode = #tpu.pipeline_mode<synchronous>, transform_indices = @transform_3, window_bounds = array<i64: 128, 512>}, {pipeline_mode = #tpu.pipeline_mode<synchronous>, transform_indices = @transform_4, window_bounds = array<i64: 1, 512>}, {pipeline_mode = #tpu.pipeline_mode<synchronous>, transform_indices = @transform_5, window_bounds = array<i64: 512, 1024>}, {pipeline_mode = #tpu.pipeline_mode<synchronous>, transform_indices = @transform_6, window_bounds = array<i64: 1, 1024>}, {pipeline_mode = #tpu.pipeline_mode<synchronous>, transform_indices = @transform_7, window_bounds = array<i64: 1024, 2048>}, {pipeline_mode = #tpu.pipeline_mode<synchronous>, transform_indices = @transform_8, window_bounds = array<i64: 1, 2048>}, {transform_indices = @transform_9, window_bounds = array<i64: 8, 2048>}]} {
    %c0 = arith.constant 0 : index
    %c0_0 = arith.constant 0 : index
    %0 = vector.load %arg1[%c0, %c0_0] : memref<8x3xf32, #tpu.memory_space<vmem>>, vector<8x3xf32>
    %c0_1 = arith.constant 0 : index
    %c0_2 = arith.constant 0 : index
    %1 = vector.load %arg2[%c0_1, %c0_2] : memref<3x128xf32, #tpu.memory_space<vmem>>, vector<3x128xf32>
    %2 = vector.extract_strided_slice %0 {offsets = [0, 0], sizes = [8, 1], strides = [1, 1]} : vector<8x3xf32> to vector<8x1xf32>
    %3 = vector.extract_strided_slice %1 {offsets = [0, 0], sizes = [1, 128], strides = [1, 1]} : vector<3x128xf32> to vector<1x128xf32>
    %4 = vector.broadcast %2 : vector<8x1xf32> to vector<8x128xf32>
    %5 = vector.broadcast %3 : vector<1x128xf32> to vector<8x128xf32>
    %6 = arith.mulf %4, %5 : vector<8x128xf32>
    %7 = vector.extract_strided_slice %0 {offsets = [0, 1], sizes = [8, 1], strides = [1, 1]} : vector<8x3xf32> to vector<8x1xf32>
    %8 = vector.extract_strided_slice %1 {offsets = [1, 0], sizes = [1, 128], strides = [1, 1]} : vector<3x128xf32> to vector<1x128xf32>
    %9 = vector.broadcast %7 : vector<8x1xf32> to vector<8x128xf32>
    %10 = vector.broadcast %8 : vector<1x128xf32> to vector<8x128xf32>
    %11 = arith.mulf %9, %10 : vector<8x128xf32>
    %12 = arith.addf %6, %11 : vector<8x128xf32>
    %13 = vector.extract_strided_slice %0 {offsets = [0, 2], sizes = [8, 1], strides = [1, 1]} : vector<8x3xf32> to vector<8x1xf32>
    %14 = vector.extract_strided_slice %1 {offsets = [2, 0], sizes = [1, 128], strides = [1, 1]} : vector<3x128xf32> to vector<1x128xf32>
    %15 = vector.broadcast %13 : vector<8x1xf32> to vector<8x128xf32>
    %16 = vector.broadcast %14 : vector<1x128xf32> to vector<8x128xf32>
    %17 = arith.mulf %15, %16 : vector<8x128xf32>
    %18 = arith.addf %12, %17 : vector<8x128xf32>
    %c0_3 = arith.constant 0 : index
    %c0_4 = arith.constant 0 : index
    %19 = vector.load %arg3[%c0_3, %c0_4] : memref<1x128xf32, #tpu.memory_space<vmem>>, vector<1x128xf32>
    %20 = vector.broadcast %19 : vector<1x128xf32> to vector<8x128xf32>
    %21 = arith.addf %18, %20 : vector<8x128xf32>
    %cst = arith.constant 0.000000e+00 : f32
    %22 = vector.broadcast %cst : f32 to vector<8x128xf32>
    %23 = arith.maximumf %21, %22 : vector<8x128xf32>
    %24 = arith.truncf %23 : vector<8x128xf32> to vector<8x128xbf16>
    %c0_5 = arith.constant 0 : index
    %c0_6 = arith.constant 0 : index
    %25 = vector.load %arg4[%c0_5, %c0_6] : memref<128x512xbf16, #tpu.memory_space<vmem>>, vector<128x512xbf16>
    %cst_7 = arith.constant dense<0.000000e+00> : vector<8x512xf32>
    %26 = tpu.matmul %24, %25, %cst_7 {dimension_numbers = #tpu.dot_dimension_numbers<[1], [0], [0], [1], [0, 0, 1, 1], [], []>} : vector<8x128xbf16>, vector<128x512xbf16>, vector<8x512xf32> -> vector<8x512xf32>
    %c0_8 = arith.constant 0 : index
    %c0_9 = arith.constant 0 : index
    %27 = vector.load %arg5[%c0_8, %c0_9] : memref<1x512xf32, #tpu.memory_space<vmem>>, vector<1x512xf32>
    %28 = vector.broadcast %27 : vector<1x512xf32> to vector<8x512xf32>
    %29 = arith.addf %26, %28 : vector<8x512xf32>
    %cst_10 = arith.constant 0.000000e+00 : f32
    %30 = vector.broadcast %cst_10 : f32 to vector<8x512xf32>
    %31 = arith.maximumf %29, %30 : vector<8x512xf32>
    %32 = arith.truncf %31 : vector<8x512xf32> to vector<8x512xbf16>
    %c0_11 = arith.constant 0 : index
    %c0_12 = arith.constant 0 : index
    %33 = vector.load %arg6[%c0_11, %c0_12] : memref<512x1024xbf16, #tpu.memory_space<vmem>>, vector<512x1024xbf16>
    %cst_13 = arith.constant dense<0.000000e+00> : vector<8x1024xf32>
    %34 = tpu.matmul %32, %33, %cst_13 {dimension_numbers = #tpu.dot_dimension_numbers<[1], [0], [0], [1], [0, 0, 1, 1], [], []>} : vector<8x512xbf16>, vector<512x1024xbf16>, vector<8x1024xf32> -> vector<8x1024xf32>
    %c0_14 = arith.constant 0 : index
    %c0_15 = arith.constant 0 : index
    %35 = vector.load %arg7[%c0_14, %c0_15] : memref<1x1024xf32, #tpu.memory_space<vmem>>, vector<1x1024xf32>
    %36 = vector.broadcast %35 : vector<1x1024xf32> to vector<8x1024xf32>
    %37 = arith.addf %34, %36 : vector<8x1024xf32>
    %cst_16 = arith.constant 0.000000e+00 : f32
    %38 = vector.broadcast %cst_16 : f32 to vector<8x1024xf32>
    %39 = arith.maximumf %37, %38 : vector<8x1024xf32>
    %40 = arith.truncf %39 : vector<8x1024xf32> to vector<8x1024xbf16>
    %c0_17 = arith.constant 0 : index
    %c0_18 = arith.constant 0 : index
    %41 = vector.load %arg8[%c0_17, %c0_18] : memref<1024x2048xbf16, #tpu.memory_space<vmem>>, vector<1024x2048xbf16>
    %cst_19 = arith.constant dense<0.000000e+00> : vector<8x2048xf32>
    %42 = tpu.matmul %40, %41, %cst_19 {dimension_numbers = #tpu.dot_dimension_numbers<[1], [0], [0], [1], [0, 0, 1, 1], [], []>} : vector<8x1024xbf16>, vector<1024x2048xbf16>, vector<8x2048xf32> -> vector<8x2048xf32>
    %c0_20 = arith.constant 0 : index
    %c0_21 = arith.constant 0 : index
    %43 = vector.load %arg9[%c0_20, %c0_21] : memref<1x2048xf32, #tpu.memory_space<vmem>>, vector<1x2048xf32>
    %44 = vector.broadcast %43 : vector<1x2048xf32> to vector<8x2048xf32>
    %45 = arith.addf %42, %44 : vector<8x2048xf32>
    %cst_22 = arith.constant 0.000000e+00 : f32
    %46 = vector.broadcast %cst_22 : f32 to vector<8x2048xf32>
    %47 = arith.maximumf %45, %46 : vector<8x2048xf32>
    %c0_23 = arith.constant 0 : index
    %c0_24 = arith.constant 0 : index
    %48 = vector.load %arg10[%c0_23, %c0_24] : memref<8x2048xf32, #tpu.memory_space<vmem>>, vector<8x2048xf32>
    tpu.vector_store %arg10[%c0_23, %c0_24], %47 {strides = array<i32>} : memref<8x2048xf32, #tpu.memory_space<vmem>>, vector<8x2048xf32>,
    return
  }
  func.func @transform_0(%arg0: i32) -> (i32, i32) {
    %c0_i32 = arith.constant 0 : i32
    %c0_i32_0 = arith.constant 0 : i32
    return %arg0, %c0_i32 : i32, i32
  }
  func.func @transform_1(%arg0: i32) -> (i32, i32) {
    %c0_i32 = arith.constant 0 : i32
    %c0_i32_0 = arith.constant 0 : i32
    %c0_i32_1 = arith.constant 0 : i32
    return %c0_i32, %c0_i32_0 : i32, i32
  }
  func.func @transform_2(%arg0: i32) -> (i32, i32) {
    %c0_i32 = arith.constant 0 : i32
    %c0_i32_0 = arith.constant 0 : i32
    %c0_i32_1 = arith.constant 0 : i32
    return %c0_i32, %c0_i32_0 : i32, i32
  }
  func.func @transform_3(%arg0: i32) -> (i32, i32) {
    %c0_i32 = arith.constant 0 : i32
    %c0_i32_0 = arith.constant 0 : i32
    %c0_i32_1 = arith.constant 0 : i32
    return %c0_i32, %c0_i32_0 : i32, i32
  }
  func.func @transform_4(%arg0: i32) -> (i32, i32) {
    %c0_i32 = arith.constant 0 : i32
    %c0_i32_0 = arith.constant 0 : i32
    %c0_i32_1 = arith.constant 0 : i32
    return %c0_i32, %c0_i32_0 : i32, i32
  }
  func.func @transform_5(%arg0: i32) -> (i32, i32) {
    %c0_i32 = arith.constant 0 : i32
    %c0_i32_0 = arith.constant 0 : i32
    %c0_i32_1 = arith.constant 0 : i32
    return %c0_i32, %c0_i32_0 : i32, i32
  }
  func.func @transform_6(%arg0: i32) -> (i32, i32) {
    %c0_i32 = arith.constant 0 : i32
    %c0_i32_0 = arith.constant 0 : i32
    %c0_i32_1 = arith.constant 0 : i32
    return %c0_i32, %c0_i32_0 : i32, i32
  }
  func.func @transform_7(%arg0: i32) -> (i32, i32) {
    %c0_i32 = arith.constant 0 : i32
    %c0_i32_0 = arith.constant 0 : i32
    %c0_i32_1 = arith.constant 0 : i32
    return %c0_i32, %c0_i32_0 : i32, i32
  }
  func.func @transform_8(%arg0: i32) -> (i32, i32) {
    %c0_i32 = arith.constant 0 : i32
    %c0_i32_0 = arith.constant 0 : i32
    %c0_i32_1 = arith.constant 0 : i32
    return %c0_i32, %c0_i32_0 : i32, i32
  }
  func.func @transform_9(%arg0: i32) -> (i32, i32) {
    %c0_i32 = arith.constant 0 : i32
    %c0_i32_0 = arith.constant 0 : i32
    return %arg0, %c0_i32 : i32, i32
  }
}

</mosaic_0001>

<bundles_post_ra>
// kernel: _alpha_to_beta_impl.1
= control target key start
LH: loop header
LB: loop body
LE: loop exit
PB: predicated region body
PF: predicated region fallthrough
CT: control target
= control target key end

     0   :  { %v11419_v1 = vmov 0   ;;  %v11420_v2 = vmov 2   ;;  %v11421_v11 = vmov 1   ;;  %s15643_s0 = inlined_call_operand.vmem [shape: f32[8,3], index: 0, kind: input, shape index: {}]   ;;  %s15644_s1 = inlined_call_operand.vmem [shape: f32[3,128], index: 1, kind: input, shape index: {}]   ;;  %s15645_s2 = inlined_call_operand.vmem [shape: f32[1,128], index: 2, kind: input, shape index: {}]   ;;  %s15646_s3 = inlined_call_operand.vmem [shape: bf16[128,512], index: 3, kind: input, shape index: {}]   ;;  %s15647_s4 = inlined_call_operand.vmem [shape: f32[1,512], index: 4, kind: input, shape index: {}]   ;;  %s15648_s5 = inlined_call_operand.vmem [shape: bf16[512,1024], index: 5, kind: input, shape index: {}]   ;;  %s15649_s6 = inlined_call_operand.vmem [shape: f32[1,1024], index: 6, kind: input, shape index: {}]   ;;  %s15650_s7 = inlined_call_operand.vmem [shape: bf16[1024,2048], index: 7, kind: input, shape index: {}]   ;;  %s15651_s8 = inlined_call_operand.vmem [shape: f32[1,2048], index: 8, kind: input, shape index: {}]   ;;  %s15652_s9 = inlined_call_operand.hbm [shape: f32[8,2048], index: 9, kind: output, shape index: {}]  }
   0x1   :  { %v34_v0 = vld [vmem:[%s15643_s0] sm:$0xff]  ;;  %11341 = vset.pattern.permute.xlu0 %v11419_v1  ;;  %11343 = vset.pattern.permute.xlu1 %v11420_v2  ;;  %v11347_v4 = vld [vmem:[%s15646_s3 + $0xc] ss:$16 sps:$4 sm:$0xff]   ;;  %v11350_v6 = vld [vmem:[%s15646_s3 + $0x8] ss:$16 sps:$4 sm:$0xff]  }
   0x2   :  { %v11345_v3 = vld [vmem:[%s15646_s3 + $0x4] ss:$16 sps:$4 sm:$0xff]   ;;  %38 = vperm.xlu0 %11341, %v34_v0   ;;  %57 = vperm.xlu1 %11343, %v34_v0   ;;  %v11349_v5 = vld [vmem:[%s15646_s3] ss:$16 sps:$4 sm:$0xff]   ;;  %v11353_v8 = vld [vmem:[%s15646_s3 + $0x2c] ss:$16 sps:$4 sm:$0xff]  }
   0x3   :  { %290 = vmatprep.subr.bf16.mxu0 %v11345_v3  ;;  %v11351_v7 = vld [vmem:[%s15646_s3 + $0x24] ss:$16 sps:$4 sm:$0xff]   ;;  %322 = vmatprep.mubr.bf16.mxu0 %v11419_v1  ;;  %v11355_v9 = vld [vmem:[%s15646_s3 + $0x20] ss:$16 sps:$4 sm:$0xff]   ;;  %v11356_v10 = vld [vmem:[%s15646_s3 + $0x28] ss:$16 sps:$4 sm:$0xff]  }
   0x4   :  { %331 = vmatprep.subr.bf16.mxu1 %v11347_v4  ;;  %291 = vmatpush1.bf16.msra.mxu0 %v11349_v5  ;;  %v11357_v12 = vld [vmem:[%s15646_s3 + $0x44] ss:$16 sps:$4 sm:$0xff]   ;;  %v11359_v13 = vld [vmem:[%s15646_s3 + $0x4c] ss:$16 sps:$4 sm:$0xff]   ;;  %v11361_v14 = vld [vmem:[%s15646_s3 + $0x40] ss:$16 sps:$4 sm:$0xff]  }
   0x5   :  { %332 = vmatpush1.bf16.msra.mxu1 %v11350_v6  ;;  %292 = vmatprep.subr.bf16.mxu0 %v11351_v7  ;;  %v11362_v15 = vld [vmem:[%s15646_s3 + $0x48] ss:$16 sps:$4 sm:$0xff]   ;;  %v11363_v16 = vld [vmem:[%s15646_s3 + $0x64] ss:$16 sps:$4 sm:$0xff]   ;;  %v11365_v17 = vld [vmem:[%s15646_s3 + $0x6c] ss:$16 sps:$4 sm:$0xff]  }
   0x6   :  { %11342 = vset.pattern.permute.xlu0 %v11421_v11  ;;  %333 = vmatprep.subr.bf16.mxu1 %v11353_v8  ;;  %v11367_v18 = vld [vmem:[%s15646_s3 + $0x60] ss:$16 sps:$4 sm:$0xff]   ;;  %v11368_v19 = vld [vmem:[%s15646_s3 + $0x68] ss:$16 sps:$4 sm:$0xff]   ;;  %v11369_v20 = vld [vmem:[%s15646_s3 + $0x84] ss:$16 sps:$4 sm:$0xff]  }
   0x7   :  { %47 = vperm.xlu0 %11342, %v34_v0   ;;  %363 = vmatprep.mubr.bf16.mxu1 %v11419_v1  ;;  %v11371_v21 = vld [vmem:[%s15646_s3 + $0x8c] ss:$16 sps:$4 sm:$0xff]   ;;  %v11373_v22 = vld [vmem:[%s15646_s3 + $0x80] ss:$16 sps:$4 sm:$0xff]   ;;  %v11374_v23 = vld [vmem:[%s15646_s3 + $0x88] ss:$16 sps:$4 sm:$0xff]  }
   0x8   :  { %293 = vmatpush1.bf16.msra.mxu0 %v11355_v9  ;;  %v11375_v24 = vld [vmem:[%s15646_s3 + $0xa4] ss:$16 sps:$4 sm:$0xff]   ;;  %v11377_v25 = vld [vmem:[%s15646_s3 + $0xac] ss:$16 sps:$4 sm:$0xff]   ;;  %v11379_v26 = vld [vmem:[%s15646_s3 + $0xa0] ss:$16 sps:$4 sm:$0xff]  }
   0x9   :  { %334 = vmatpush1.bf16.msra.mxu1 %v11356_v10  ;;  %294 = vmatprep.subr.bf16.mxu0 %v11357_v12  ;;  %v11380_v27 = vld [vmem:[%s15646_s3 + $0xa8] ss:$16 sps:$4 sm:$0xff]   ;;  %v11381_v28 = vld [vmem:[%s15646_s3 + $0xc4] ss:$16 sps:$4 sm:$0xff]   ;;  %v11383_v29 = vld [vmem:[%s15646_s3 + $0xcc] ss:$16 sps:$4 sm:$0xff]  }
   0xa   :  { %335 = vmatprep.subr.bf16.mxu1 %v11359_v13  ;;  %v380_v30 = vld [vmem:[%s15648_s5] sm:$0xff]  ;;  %v381_v33 = vld [vmem:[%s15648_s5 + $0x8] sm:$0xff] }
   0xb   :  { %11344 = vset.pattern.permute.xlu0 %v11420_v2  ;;  %v384_v31 = vld [vmem:[%s15648_s5 + $0x20] sm:$0xff]  ;;  %v385_v34 = vld [vmem:[%s15648_s5 + $0x28] sm:$0xff] }
   0xc   :  { %295 = vmatpush1.bf16.msra.mxu0 %v11361_v14  ;;  %v9921_v32 = vcombine.low %v380_v30, %v384_v31  ;;  %v11385_v35 = vld [vmem:[%s15646_s3 + $0xc0] ss:$16 sps:$4 sm:$0xff]   ;;  %v9923_v36 = vcombine.low %v381_v33, %v385_v34  ;;  %v11386_v37 = vld [vmem:[%s15646_s3 + $0xc8] ss:$16 sps:$4 sm:$0xff]   ;;  %v11387_v38 = vld [vmem:[%s15646_s3 + $0xe4] ss:$16 sps:$4 sm:$0xff]  }
   0xd   :  { %336 = vmatpush1.bf16.msra.mxu1 %v11362_v15  ;;  %296 = vmatprep.subr.bf16.mxu0 %v11363_v16  ;;  %v11389_v39 = vld [vmem:[%s15646_s3 + $0xec] ss:$16 sps:$4 sm:$0xff]  }
   0xe   :  { %337 = vmatprep.subr.bf16.mxu1 %v11365_v17 }
  0x10   :  { %297 = vmatpush1.bf16.msra.mxu0 %v11367_v18 }
  0x11   :  { %338 = vmatpush1.bf16.msra.mxu1 %v11368_v19  ;;  %298 = vmatprep.subr.bf16.mxu0 %v11369_v20 }
  0x12   :  { %339 = vmatprep.subr.bf16.mxu1 %v11371_v21 }
  0x14   :  { %299 = vmatpush1.bf16.msra.mxu0 %v11373_v22 }
  0x15   :  { %340 = vmatpush1.bf16.msra.mxu1 %v11374_v23  ;;  %300 = vmatprep.subr.bf16.mxu0 %v11375_v24 }
  0x16   :  { %341 = vmatprep.subr.bf16.mxu1 %v11377_v25 }
  0x18   :  { %301 = vmatpush1.bf16.msra.mxu0 %v11379_v26 }
  0x19   :  { %342 = vmatpush1.bf16.msra.mxu1 %v11380_v27  ;;  %302 = vmatprep.subr.bf16.mxu0 %v11381_v28 }
  0x1a   :  { %343 = vmatprep.subr.bf16.mxu1 %v11383_v29 }
  0x1b   :  { %14 = vsyncpa [#allocation3], 0  ;;  %v11391_v40 = vld [vmem:[%s15646_s3 + $0xe0] ss:$16 sps:$4 sm:$0xff]   ;;  %v11392_v41 = vld [vmem:[%s15646_s3 + $0xe8] ss:$16 sps:$4 sm:$0xff]   ;;  %v9922_v42 = vcombine.high %v380_v30, %v384_v31  ;;  %v9924_v43 = vcombine.high %v381_v33, %v385_v34  ;;  %v41_v44 = vlaneseq }
  0x1c   :  { %303 = vmatpush1.bf16.msra.mxu0 %v11385_v35  ;;  %v35_v49 = vld [vmem:[%s15644_s1] sm:$0x7]  ;;  %v389_v1 = vld [vmem:[%s15648_s5 + $0x48] sm:$0xff] }
  0x1d   :  { %344 = vmatpush1.bf16.msra.mxu1 %v11386_v37  ;;  %304 = vmatprep.subr.bf16.mxu0 %v11387_v38  ;;  %v11584_v45 = vshrl.u32 %v41_v44, 7  ;;  %v9888_v60 = vld [vmem:[%s15645_s2] ss:$0 sm:$0xff]  ;;  %v393_v2 = vld [vmem:[%s15648_s5 + $0x68] sm:$0xff] }
  0x1e   :  { %345 = vmatprep.subr.bf16.mxu1 %v11389_v39  ;;  %v388_v63 = vld [vmem:[%s15648_s5 + $0x40] sm:$0xff]  ;;  %v9932_v6 = vcombine.high %v389_v1, %v393_v2  ;;  %v397_v9 = vld [vmem:[%s15648_s5 + $0x88] sm:$0xff]  ;;  %v9931_v12 = vcombine.low %v389_v1, %v393_v2 }
  0x1f   :  { %v11587_v46 = vsub.s32 0, %v11584_v45  ;;  %v11590_v47 = vsub.s32 1, %v11584_v45  ;;  %v11593_v48 = vsub.s32 2, %v11584_v45  ;;  %v392_v0 = vld [vmem:[%s15648_s5 + $0x60] sm:$0xff]  ;;  %v401_v10 = vld [vmem:[%s15648_s5 + $0xa8] sm:$0xff] }
  0x20   :  { %305 = vmatpush1.bf16.msra.mxu0 %v11391_v40  ;;  %v9930_v5 = vcombine.high %v388_v63, %v392_v0  ;;  %v396_v7 = vld [vmem:[%s15648_s5 + $0x80] sm:$0xff]  ;;  %v9929_v11 = vcombine.low %v388_v63, %v392_v0  ;;  %v9940_v14 = vcombine.high %v397_v9, %v401_v10  ;;  %v405_v17 = vld [vmem:[%s15648_s5 + $0xc8] sm:$0xff]  ;;  %v9939_v20 = vcombine.low %v397_v9, %v401_v10 }
  0x21   :  { %346 = vmatpush1.bf16.msra.mxu1 %v11392_v41  ;;  %1958 = vmatprep.subr.bf16.mxu0 %v9922_v42  ;;  %v44_v51 = vrot.slane %v35_v49, %v11587_v46  ;;  %v53_v52 = vrot.slane %v35_v49, %v11590_v47  ;;  %v63_v53 = vrot.slane %v35_v49, %v11593_v48  ;;  %v400_v8 = vld [vmem:[%s15648_s5 + $0xa0] sm:$0xff]  ;;  %v409_v18 = vld [vmem:[%s15648_s5 + $0xe8] sm:$0xff] }
  0x22   :  { %2040 = vmatprep.subr.bf16.mxu1 %v9924_v43  ;;  %v9938_v13 = vcombine.high %v396_v7, %v400_v8  ;;  %v404_v15 = vld [vmem:[%s15648_s5 + $0xc0] sm:$0xff]  ;;  %v9937_v19 = vcombine.low %v396_v7, %v400_v8  ;;  %v9948_v22 = vcombine.high %v405_v17, %v409_v18  ;;  %v413_v25 = vld [vmem:[%s15648_s5 + $0x108] sm:$0xff]  ;;  %v9947_v28 = vcombine.low %v405_v17, %v409_v18 }
  0x23   :  { %v408_v16 = vld [vmem:[%s15648_s5 + $0xe0] sm:$0xff]  ;;  %v417_v26 = vld [vmem:[%s15648_s5 + $0x128] sm:$0xff] }
  0x24   :  { %v9946_v21 = vcombine.high %v404_v15, %v408_v16  ;;  %v412_v23 = vld [vmem:[%s15648_s5 + $0x100] sm:$0xff]  ;;  %v9945_v27 = vcombine.low %v404_v15, %v408_v16  ;;  %v9956_v30 = vcombine.high %v413_v25, %v417_v26  ;;  %v421_v33 = vld [vmem:[%s15648_s5 + $0x148] sm:$0xff] }
  0x25   :  { %v416_v24 = vld [vmem:[%s15648_s5 + $0x120] sm:$0xff]  ;;  %v425_v34 = vld [vmem:[%s15648_s5 + $0x168] sm:$0xff] }
  0x26   :  { %v9954_v29 = vcombine.high %v412_v23, %v416_v24  ;;  %v420_v31 = vld [vmem:[%s15648_s5 + $0x140] sm:$0xff]  ;;  %v9953_v35 = vcombine.low %v412_v23, %v416_v24  ;;  %v9964_v38 = vcombine.high %v421_v33, %v425_v34  ;;  %v429_v41 = vld [vmem:[%s15648_s5 + $0x188] sm:$0xff]  ;;  %v9963_v44 = vcombine.low %v421_v33, %v425_v34 }
  0x27   :  { %v428_v39 = vld [vmem:[%s15648_s5 + $0x180] sm:$0xff]  ;;  %v433_v42 = vld [vmem:[%s15648_s5 + $0x1a8] sm:$0xff] }
  0x28   :  { %v432_v40 = vld [vmem:[%s15648_s5 + $0x1a0] sm:$0xff] }
  0x29   :  { %v9970_v49 = vcombine.high %v428_v39, %v432_v40 }
  0x81   :  { %v39_v50 = vpop.permute.xlu0 %38  ;;  %v58_v54 = vpop.permute.xlu1 %57 }
  0x82   :  { %v45_v56 = vmul.f32 %v44_v51, %v39_v50  ;;  %v64_v58 = vmul.f32 %v63_v53, %v58_v54  ;;  %v9972_v50 = vcombine.high %v429_v41, %v433_v42  ;;  %v436_v51 = vld [vmem:[%s15648_s5 + $0x1c0] sm:$0xff]  ;;  %v437_v53 = vld [vmem:[%s15648_s5 + $0x1c8] sm:$0xff] }
  0x83   :  { %v441_v54 = vld [vmem:[%s15648_s5 + $0x1e8] sm:$0xff] }
  0x84   :  { %v9979_v0 = vcombine.low %v437_v53, %v441_v54 }
  0x86   :  { %v48_v55 = vpop.permute.xlu0 %47 }
  0x87   :  { %v54_v57 = vmul.f32 %v53_v52, %v48_v55  ;;  %v440_v52 = vld [vmem:[%s15648_s5 + $0x1e0] sm:$0xff]  ;;  %v9969_v55 = vcombine.low %v428_v39, %v432_v40 }
  0x88   :  { %v9977_v63 = vcombine.low %v436_v51, %v440_v52 }
  0x89   :  { %v55_v59 = vadd.f32 %v54_v57, %v45_v56  ;;  %v9971_v56 = vcombine.low %v429_v41, %v433_v42  ;;  %v9978_v57 = vcombine.high %v436_v51, %v440_v52  ;;  %v493_v51 = vld [vmem:[%s15648_s5 + $0x388] sm:$0xff] }
  0x8b   :  { %v65_v61 = vadd.f32 %v64_v58, %v55_v59  ;;  %v9980_v58 = vcombine.high %v437_v53, %v441_v54  ;;  %v444_v59 = vld [vmem:[%s15648_s5 + $0x200] sm:$0xff]  ;;  %v497_v53 = vld [vmem:[%s15648_s5 + $0x3a8] sm:$0xff] }
  0x8d   :  { %v73_v62 = vadd.f32 %v9888_v60, %v65_v61  ;;  %v448_v60 = vld [vmem:[%s15648_s5 + $0x220] sm:$0xff]  ;;  %v445_v61 = vld [vmem:[%s15648_s5 + $0x208] sm:$0xff] }
  0x8e   :  { %v9986_v1 = vcombine.high %v444_v59, %v448_v60  ;;  %v9985_v7 = vcombine.low %v444_v59, %v448_v60  ;;  %v501_v59 = vld [vmem:[%s15648_s5 + $0x3c8] sm:$0xff] }
  0x8f   :  { %v74_v3 = vmax.f32 %v73_v62, 0.0  ;;  %v449_v62 = vld [vmem:[%s15648_s5 + $0x228] sm:$0xff] }
  0x90   :  { %v9988_v2 = vcombine.high %v445_v61, %v449_v62  ;;  %v9987_v8 = vcombine.low %v445_v61, %v449_v62  ;;  %v505_v61 = vld [vmem:[%s15648_s5 + $0x3e8] sm:$0xff] }
  0x91   :  { %v75_v4 = vpack.c.bf16 %v74_v3, %v74_v3  ;;  %v452_v3 = vld [vmem:[%s15648_s5 + $0x240] sm:$0xff] }
  0x93   :  { %323 = vmatmul.mubr.bf16.vlgmr.msra.gmra.mrb[0].mxu0 %v75_v4  ;;  %364 = vmatmul.mubr.bf16.vlgmr.msra.gmra.mrb[0].mxu1 %v75_v4  ;;  %v456_v4 = vld [vmem:[%s15648_s5 + $0x260] sm:$0xff] }
  0x94   :  { %1959 = vmatpush1.bf16.msra.mxu0 %v9921_v32  ;;  %2041 = vmatpush1.bf16.msra.mxu1 %v9923_v36  ;;  %v424_v32 = vld [vmem:[%s15648_s5 + $0x160] sm:$0xff]  ;;  %v9955_v36 = vcombine.low %v413_v25, %v417_v26  ;;  %v9994_v9 = vcombine.high %v452_v3, %v456_v4  ;;  %v9993_v15 = vcombine.low %v452_v3, %v456_v4  ;;  %v509_v3 = vld [vmem:[%s15648_s5 + $0x408] sm:$0xff] }
  0x95   :  { %1960 = vmatprep.subr.bf16.mxu0 %v9930_v5  ;;  %2042 = vmatprep.subr.bf16.mxu1 %v9932_v6  ;;  %v9962_v37 = vcombine.high %v420_v31, %v424_v32  ;;  %v9961_v43 = vcombine.low %v420_v31, %v424_v32  ;;  %v453_v5 = vld [vmem:[%s15648_s5 + $0x248] sm:$0xff] }
  0x96   :  { %v457_v6 = vld [vmem:[%s15648_s5 + $0x268] sm:$0xff] }
  0x97   :  { %v9996_v10 = vcombine.high %v453_v5, %v457_v6  ;;  %v9995_v16 = vcombine.low %v453_v5, %v457_v6  ;;  %v513_v5 = vld [vmem:[%s15648_s5 + $0x428] sm:$0xff] }
  0x98   :  { %1961 = vmatpush1.bf16.msra.mxu0 %v9929_v11  ;;  %2043 = vmatpush1.bf16.msra.mxu1 %v9931_v12  ;;  %v460_v11 = vld [vmem:[%s15648_s5 + $0x280] sm:$0xff] }
  0x99   :  { %1962 = vmatprep.subr.bf16.mxu0 %v9938_v13  ;;  %2044 = vmatprep.subr.bf16.mxu1 %v9940_v14  ;;  %v464_v12 = vld [vmem:[%s15648_s5 + $0x2a0] sm:$0xff]  ;;  %v461_v13 = vld [vmem:[%s15648_s5 + $0x288] sm:$0xff] }
  0x9a   :  { %v465_v14 = vld [vmem:[%s15648_s5 + $0x2a8] sm:$0xff]  ;;  %v10002_v17 = vcombine.high %v460_v11, %v464_v12  ;;  %v10001_v23 = vcombine.low %v460_v11, %v464_v12 }
  0x9b   :  { %v10004_v18 = vcombine.high %v461_v13, %v465_v14  ;;  %v10003_v24 = vcombine.low %v461_v13, %v465_v14 }
  0x9c   :  { %1963 = vmatpush1.bf16.msra.mxu0 %v9937_v19  ;;  %2045 = vmatpush1.bf16.msra.mxu1 %v9939_v20  ;;  %v468_v19 = vld [vmem:[%s15648_s5 + $0x2c0] sm:$0xff] }
  0x9d   :  { %1964 = vmatprep.subr.bf16.mxu0 %v9946_v21  ;;  %2046 = vmatprep.subr.bf16.mxu1 %v9948_v22  ;;  %v472_v20 = vld [vmem:[%s15648_s5 + $0x2e0] sm:$0xff]  ;;  %v469_v21 = vld [vmem:[%s15648_s5 + $0x2c8] sm:$0xff] }
  0x9e   :  { %v473_v22 = vld [vmem:[%s15648_s5 + $0x2e8] sm:$0xff]  ;;  %v10010_v25 = vcombine.high %v468_v19, %v472_v20  ;;  %v10009_v31 = vcombine.low %v468_v19, %v472_v20 }
  0x9f   :  { %v10012_v26 = vcombine.high %v469_v21, %v473_v22  ;;  %v10011_v32 = vcombine.low %v469_v21, %v473_v22 }
  0xa0   :  { %1965 = vmatpush1.bf16.msra.mxu0 %v9945_v27  ;;  %2047 = vmatpush1.bf16.msra.mxu1 %v9947_v28  ;;  %v476_v27 = vld [vmem:[%s15648_s5 + $0x300] sm:$0xff] }
  0xa1   :  { %1966 = vmatprep.subr.bf16.mxu0 %v9954_v29  ;;  %2048 = vmatprep.subr.bf16.mxu1 %v9956_v30  ;;  %v480_v28 = vld [vmem:[%s15648_s5 + $0x320] sm:$0xff]  ;;  %v477_v29 = vld [vmem:[%s15648_s5 + $0x308] sm:$0xff] }
  0xa2   :  { %v481_v30 = vld [vmem:[%s15648_s5 + $0x328] sm:$0xff]  ;;  %v10018_v33 = vcombine.high %v476_v27, %v480_v28  ;;  %v10017_v39 = vcombine.low %v476_v27, %v480_v28  ;;  %v516_v27 = vld [vmem:[%s15648_s5 + $0x440] sm:$0xff] }
  0xa3   :  { %v10020_v34 = vcombine.high %v477_v29, %v481_v30  ;;  %v10019_v40 = vcombine.low %v477_v29, %v481_v30  ;;  %v520_v29 = vld [vmem:[%s15648_s5 + $0x460] sm:$0xff]  ;;  %v517_v30 = vld [vmem:[%s15648_s5 + $0x448] sm:$0xff] }
  0xa4   :  { %1967 = vmatpush1.bf16.msra.mxu0 %v9953_v35  ;;  %2049 = vmatpush1.bf16.msra.mxu1 %v9955_v36  ;;  %v484_v35 = vld [vmem:[%s15648_s5 + $0x340] sm:$0xff] }
  0xa5   :  { %1968 = vmatprep.subr.bf16.mxu0 %v9962_v37  ;;  %2050 = vmatprep.subr.bf16.mxu1 %v9964_v38  ;;  %v488_v36 = vld [vmem:[%s15648_s5 + $0x360] sm:$0xff]  ;;  %v485_v37 = vld [vmem:[%s15648_s5 + $0x348] sm:$0xff] }
  0xa6   :  { %v489_v38 = vld [vmem:[%s15648_s5 + $0x368] sm:$0xff]  ;;  %v10026_v41 = vcombine.high %v484_v35, %v488_v36 }
  0xa7   :  { %v10028_v42 = vcombine.high %v485_v37, %v489_v38 }
  0xa8   :  { %1969 = vmatpush1.bf16.msra.mxu0 %v9961_v43  ;;  %2051 = vmatpush1.bf16.msra.mxu1 %v9963_v44  ;;  %v10025_v43 = vcombine.low %v484_v35, %v488_v36  ;;  %v10027_v44 = vcombine.low %v485_v37, %v489_v38  ;;  %v10058_v35 = vcombine.high %v516_v27, %v520_v29  ;;  %v528_v37 = vld [vmem:[%s15648_s5 + $0x4a0] sm:$0xff]  ;;  %v525_v38 = vld [vmem:[%s15648_s5 + $0x488] sm:$0xff] }
  0xa9   :  { %1970 = vmatprep.subr.bf16.mxu0 %v9970_v49  ;;  %2052 = vmatprep.subr.bf16.mxu1 %v9972_v50  ;;  %v492_v49 = vld [vmem:[%s15648_s5 + $0x380] sm:$0xff] }
  0xaa   :  { %v496_v50 = vld [vmem:[%s15648_s5 + $0x3a0] sm:$0xff] }
  0xab   :  { %v10034_v52 = vcombine.high %v492_v49, %v496_v50  ;;  %v10033_v54 = vcombine.low %v492_v49, %v496_v50  ;;  %v532_v49 = vld [vmem:[%s15648_s5 + $0x4c0] sm:$0xff] }
  0xac   :  { %1971 = vmatpush1.bf16.msra.mxu0 %v9969_v55  ;;  %2053 = vmatpush1.bf16.msra.mxu1 %v9971_v56  ;;  %v10035_v55 = vcombine.low %v493_v51, %v497_v53  ;;  %v10036_v56 = vcombine.high %v493_v51, %v497_v53  ;;  %v536_v50 = vld [vmem:[%s15648_s5 + $0x4e0] sm:$0xff]  ;;  %v533_v51 = vld [vmem:[%s15648_s5 + $0x4c8] sm:$0xff] }
  0xad   :  { %1972 = vmatprep.subr.bf16.mxu0 %v9978_v57  ;;  %2054 = vmatprep.subr.bf16.mxu1 %v9980_v58  ;;  %v500_v57 = vld [vmem:[%s15648_s5 + $0x3c0] sm:$0xff] }
  0xae   :  { %v504_v58 = vld [vmem:[%s15648_s5 + $0x3e0] sm:$0xff] }
  0xaf   :  { %v10042_v60 = vcombine.high %v500_v57, %v504_v58  ;;  %v10041_v62 = vcombine.low %v500_v57, %v504_v58  ;;  %v540_v57 = vld [vmem:[%s15648_s5 + $0x500] sm:$0xff] }
  0xb0   :  { %1973 = vmatpush1.bf16.msra.mxu0 %v9977_v63  ;;  %2055 = vmatpush1.bf16.msra.mxu1 %v9979_v0  ;;  %v10043_v63 = vcombine.low %v501_v59, %v505_v61  ;;  %v10044_v0 = vcombine.high %v501_v59, %v505_v61  ;;  %v544_v58 = vld [vmem:[%s15648_s5 + $0x520] sm:$0xff]  ;;  %v541_v59 = vld [vmem:[%s15648_s5 + $0x508] sm:$0xff]  ;;  %v10073_v61 = vcombine.low %v532_v49, %v536_v50 }
  0xb1   :  { %1974 = vmatprep.subr.bf16.mxu0 %v9986_v1  ;;  %2056 = vmatprep.subr.bf16.mxu1 %v9988_v2  ;;  %v508_v1 = vld [vmem:[%s15648_s5 + $0x400] sm:$0xff] }
  0xb2   :  { %v512_v2 = vld [vmem:[%s15648_s5 + $0x420] sm:$0xff] }
  0xb3   :  { %v10050_v4 = vcombine.high %v508_v1, %v512_v2  ;;  %v10049_v6 = vcombine.low %v508_v1, %v512_v2  ;;  %v548_v1 = vld [vmem:[%s15648_s5 + $0x540] sm:$0xff] }
  0xb4   :  { %1975 = vmatpush1.bf16.msra.mxu0 %v9985_v7  ;;  %2057 = vmatpush1.bf16.msra.mxu1 %v9987_v8  ;;  %v10051_v7 = vcombine.low %v509_v3, %v513_v5  ;;  %v10052_v8 = vcombine.high %v509_v3, %v513_v5  ;;  %v552_v2 = vld [vmem:[%s15648_s5 + $0x560] sm:$0xff]  ;;  %v549_v3 = vld [vmem:[%s15648_s5 + $0x548] sm:$0xff]  ;;  %v10081_v5 = vcombine.low %v540_v57, %v544_v58 }
  0xb5   :  { %1976 = vmatprep.subr.bf16.mxu0 %v9994_v9  ;;  %2058 = vmatprep.subr.bf16.mxu1 %v9996_v10  ;;  %v11799_v9 = vld [vmem:[%s15647_s4] sm:$0xf]  ;;  %v11802_v10 = vsub.s32 3, %v11584_v45 }
  0xb6   :  { %v113_v11 = vrot.slane %v11799_v9, %v11587_v46  ;;  %v117_v12 = vrot.slane %v11799_v9, %v11590_v47 }
  0xb7   :  { %v125_v13 = vrot.slane %v11799_v9, %v11802_v10 }
  0xb8   :  { %1977 = vmatpush1.bf16.msra.mxu0 %v9993_v15  ;;  %2059 = vmatpush1.bf16.msra.mxu1 %v9995_v16 }
  0xb9   :  { %1978 = vmatprep.subr.bf16.mxu0 %v10002_v17  ;;  %2060 = vmatprep.subr.bf16.mxu1 %v10004_v18 }
  0xbc   :  { %1979 = vmatpush1.bf16.msra.mxu0 %v10001_v23  ;;  %2061 = vmatpush1.bf16.msra.mxu1 %v10003_v24 }
  0xbd   :  { %1980 = vmatprep.subr.bf16.mxu0 %v10010_v25  ;;  %2062 = vmatprep.subr.bf16.mxu1 %v10012_v26 }
  0xc0   :  { %1981 = vmatpush1.bf16.msra.mxu0 %v10009_v31  ;;  %2063 = vmatpush1.bf16.msra.mxu1 %v10011_v32  ;;  %v521_v31 = vld [vmem:[%s15648_s5 + $0x468] sm:$0xff] }
  0xc1   :  { %1982 = vmatprep.subr.bf16.mxu0 %v10018_v33  ;;  %2064 = vmatprep.subr.bf16.mxu1 %v10020_v34  ;;  %v524_v34 = vld [vmem:[%s15648_s5 + $0x480] sm:$0xff]  ;;  %v10060_v36 = vcombine.high %v517_v30, %v521_v31 }
  0xc2   :  { %v10065_v53 = vcombine.low %v524_v34, %v528_v37 }
  0xc4   :  { %1983 = vmatpush1.bf16.msra.mxu0 %v10017_v39  ;;  %2065 = vmatpush1.bf16.msra.mxu1 %v10019_v40  ;;  %v529_v39 = vld [vmem:[%s15648_s5 + $0x4a8] sm:$0xff] }
  0xc5   :  { %1984 = vmatprep.subr.bf16.mxu0 %v10026_v41  ;;  %2066 = vmatprep.subr.bf16.mxu1 %v10028_v42  ;;  %v10057_v41 = vcombine.low %v516_v27, %v520_v29  ;;  %v10059_v42 = vcombine.low %v517_v30, %v521_v31  ;;  %v576_v29 = vld [vmem:[%s15648_s5 + $0x620] sm:$0xff]  ;;  %v573_v30 = vld [vmem:[%s15648_s5 + $0x608] sm:$0xff] }
  0xc6   :  { %v577_v31 = vld [vmem:[%s15648_s5 + $0x628] sm:$0xff] }
  0xc8   :  { %1985 = vmatpush1.bf16.msra.mxu0 %v10025_v43  ;;  %2067 = vmatpush1.bf16.msra.mxu1 %v10027_v44  ;;  %v10066_v43 = vcombine.high %v524_v34, %v528_v37  ;;  %v10068_v44 = vcombine.high %v525_v38, %v529_v39  ;;  %v10116_v37 = vcombine.high %v573_v30, %v577_v31 }
  0xc9   :  { %1986 = vmatprep.subr.bf16.mxu0 %v10034_v52  ;;  %2068 = vmatprep.subr.bf16.mxu1 %v10036_v56  ;;  %v537_v52 = vld [vmem:[%s15648_s5 + $0x4e8] sm:$0xff] }
  0xca   :  { %v10076_v56 = vcombine.high %v533_v51, %v537_v52 }
  0xcc   :  { %1987 = vmatpush1.bf16.msra.mxu0 %v10033_v54  ;;  %2069 = vmatpush1.bf16.msra.mxu1 %v10035_v55  ;;  %v10067_v54 = vcombine.low %v525_v38, %v529_v39  ;;  %v10074_v55 = vcombine.high %v532_v49, %v536_v50  ;;  %v580_v38 = vld [vmem:[%s15648_s5 + $0x640] sm:$0xff] }
  0xcd   :  { %1988 = vmatprep.subr.bf16.mxu0 %v10042_v60  ;;  %2070 = vmatprep.subr.bf16.mxu1 %v10044_v0  ;;  %v545_v60 = vld [vmem:[%s15648_s5 + $0x528] sm:$0xff]  ;;  %v584_v39 = vld [vmem:[%s15648_s5 + $0x660] sm:$0xff] }
  0xce   :  { %v10084_v0 = vcombine.high %v541_v59, %v545_v60  ;;  %v10122_v49 = vcombine.high %v580_v38, %v584_v39 }
  0xd0   :  { %1989 = vmatpush1.bf16.msra.mxu0 %v10041_v62  ;;  %2071 = vmatpush1.bf16.msra.mxu1 %v10043_v63  ;;  %v10075_v62 = vcombine.low %v533_v51, %v537_v52  ;;  %v10082_v63 = vcombine.high %v540_v57, %v544_v58  ;;  %v588_v51 = vld [vmem:[%s15648_s5 + $0x680] sm:$0xff] }
  0xd1   :  { %1999 = vmatprep.subr.bf16.mxu0 %v10050_v4  ;;  %2081 = vmatprep.subr.bf16.mxu1 %v10052_v8  ;;  %v553_v4 = vld [vmem:[%s15648_s5 + $0x568] sm:$0xff]  ;;  %v592_v52 = vld [vmem:[%s15648_s5 + $0x6a0] sm:$0xff] }
  0xd2   :  { %v10092_v8 = vcombine.high %v549_v3, %v553_v4  ;;  %v10130_v57 = vcombine.high %v588_v51, %v592_v52 }
 0x166   :  { %v324_v14 = vpop.f32.mrb[0].mxu0  ;;  %v11810_v15 = vpop.f32.mrb[0].mxu1 }
 0x167   :  { %v325_v16 = vadd.f32 %v324_v14, %v113_v11  ;;  %v326_v17 = vpop.f32.mrb[1].mxu0  ;;  %v367_v18 = vpop.f32.mrb[1].mxu1  ;;  %v556_v11 = vld [vmem:[%s15648_s5 + $0x580] sm:$0xff]  ;;  %v561_v14 = vld [vmem:[%s15648_s5 + $0x5a8] sm:$0xff] }
 0x168   :  { %v327_v19 = vadd.f32 %v326_v17, %v117_v12  ;;  %v368_v20 = vadd.f32 %v367_v18, %v125_v13  ;;  %v328_v21 = vpop.f32.mrb[2].mxu0  ;;  %v369_v22 = vpop.f32.mrb[2].mxu1  ;;  %v560_v12 = vld [vmem:[%s15648_s5 + $0x5a0] sm:$0xff]  ;;  %v557_v13 = vld [vmem:[%s15648_s5 + $0x588] sm:$0xff]  ;;  %v10091_v17 = vcombine.low %v549_v3, %v553_v4 }
 0x169   :  { %v372_v23 = vmax.f32 %v325_v16, 0.0  ;;  %v329_v24 = vpop.f32.mrb[3].mxu0  ;;  %v370_v25 = vpop.f32.mrb[3].mxu1  ;;  %v10089_v16 = vcombine.low %v548_v1, %v552_v2  ;;  %v10098_v18 = vcombine.high %v556_v11, %v560_v12  ;;  %v568_v21 = vld [vmem:[%s15648_s5 + $0x5e0] sm:$0xff]  ;;  %v565_v22 = vld [vmem:[%s15648_s5 + $0x5c8] sm:$0xff] }
 0x16a   :  { %v373_v26 = vmax.f32 %v327_v19, 0.0  ;;  %v375_v28 = vmax.f32 %v368_v20, 0.0  ;;  %v10100_v19 = vcombine.high %v557_v13, %v561_v14  ;;  %v564_v20 = vld [vmem:[%s15648_s5 + $0x5c0] sm:$0xff]  ;;  %v10097_v24 = vcombine.low %v556_v11, %v560_v12 }
 0x16b   :  { %v11826_v33 = vpack.c.bf16 %v372_v23, %v372_v23  ;;  %v569_v23 = vld [vmem:[%s15648_s5 + $0x5e8] sm:$0xff]  ;;  %v10099_v25 = vcombine.low %v557_v13, %v561_v14  ;;  %v10105_v34 = vcombine.low %v564_v20, %v568_v21  ;;  %v604_v3 = vld [vmem:[%s15648_s5 + $0x700] sm:$0xff] }
 0x16c   :  { %v11824_v32 = vpack.c.bf16 %v373_v26, %v373_v26  ;;  %v11842_v40 = vpack.c.bf16 %v375_v28, %v375_v28  ;;  %v10106_v26 = vcombine.high %v564_v20, %v568_v21  ;;  %v10108_v27 = vcombine.high %v565_v22, %v569_v23  ;;  %v572_v28 = vld [vmem:[%s15648_s5 + $0x600] sm:$0xff] }
 0x16d   :  { %v608_v4 = vld [vmem:[%s15648_s5 + $0x720] sm:$0xff] }
 0x16e   :  { %1990 = vmatprep.mubr.bf16.mxu0 %v11824_v32  ;;  %2072 = vmatprep.mubr.bf16.mxu1 %v11824_v32  ;;  %v10146_v11 = vcombine.high %v604_v3, %v608_v4  ;;  %v612_v13 = vld [vmem:[%s15648_s5 + $0x740] sm:$0xff] }
 0x16f   :  { %1991 = vmatmul.mubr.bf16.vlgmr.msra.gmra.mrb[4].mxu0 %v11826_v33  ;;  %2073 = vmatmul.mubr.bf16.vlgmr.msra.gmra.mrb[4].mxu1 %v11826_v33  ;;  %v616_v14 = vld [vmem:[%s15648_s5 + $0x760] sm:$0xff] }
 0x170   :  { %2000 = vmatpush1.bf16.msra.mxu0 %v10049_v6  ;;  %2082 = vmatpush1.bf16.msra.mxu1 %v10051_v7  ;;  %v10083_v6 = vcombine.low %v541_v59, %v545_v60  ;;  %v10090_v7 = vcombine.high %v548_v1, %v552_v2  ;;  %v596_v59 = vld [vmem:[%s15648_s5 + $0x6c0] sm:$0xff]  ;;  %v10154_v20 = vcombine.high %v612_v13, %v616_v14 }
 0x171   :  { %2031 = vmatprep.mubr.bf16.mxu0 %v11842_v40  ;;  %2113 = vmatprep.mubr.bf16.mxu1 %v11842_v40  ;;  %v600_v60 = vld [vmem:[%s15648_s5 + $0x6e0] sm:$0xff] }
 0x172   :  { %2001 = vmatprep.subr.bf16.mxu0 %v10058_v35  ;;  %2083 = vmatprep.subr.bf16.mxu1 %v10060_v36  ;;  %v10107_v35 = vcombine.low %v565_v22, %v569_v23  ;;  %v10114_v36 = vcombine.high %v572_v28, %v576_v29  ;;  %v10138_v1 = vcombine.high %v596_v59, %v600_v60  ;;  %v620_v22 = vld [vmem:[%s15648_s5 + $0x780] sm:$0xff] }
 0x173   :  { %v624_v23 = vld [vmem:[%s15648_s5 + $0x7a0] sm:$0xff] }
 0x174   :  { %2002 = vmatpush1.bf16.msra.mxu0 %v10057_v41  ;;  %2084 = vmatpush1.bf16.msra.mxu1 %v10059_v42  ;;  %v581_v41 = vld [vmem:[%s15648_s5 + $0x648] sm:$0xff] }
 0x175   :  { %2003 = vmatprep.subr.bf16.mxu0 %v10066_v43  ;;  %2085 = vmatprep.subr.bf16.mxu1 %v10068_v44  ;;  %v585_v42 = vld [vmem:[%s15648_s5 + $0x668] sm:$0xff]  ;;  %v10113_v43 = vcombine.low %v572_v28, %v576_v29  ;;  %v10115_v44 = vcombine.low %v573_v30, %v577_v31  ;;  %v121_v28 = vrot.slane %v11799_v9, %v11593_v48  ;;  %v628_v31 = vld [vmem:[%s15648_s5 + $0x7c0] sm:$0xff] }
 0x176   :  { %v10124_v50 = vcombine.high %v581_v41, %v585_v42  ;;  %v10162_v29 = vcombine.high %v620_v22, %v624_v23  ;;  %v633_v9 = vld [vmem:[%s15648_s5 + $0x7e8] sm:$0xff] }
 0x178   :  { %2004 = vmatpush1.bf16.msra.mxu0 %v10065_v53  ;;  %2086 = vmatpush1.bf16.msra.mxu1 %v10067_v54  ;;  %v589_v53 = vld [vmem:[%s15648_s5 + $0x688] sm:$0xff] }
 0x179   :  { %2005 = vmatprep.subr.bf16.mxu0 %v10074_v55  ;;  %2087 = vmatprep.subr.bf16.mxu1 %v10076_v56  ;;  %v593_v54 = vld [vmem:[%s15648_s5 + $0x6a8] sm:$0xff]  ;;  %v10121_v55 = vcombine.low %v580_v38, %v584_v39  ;;  %v10123_v56 = vcombine.low %v581_v41, %v585_v42  ;;  %v366_v38 = vadd.f32 %v11810_v15, %v121_v28  ;;  %v382_v42 = vld [vmem:[%s15648_s5 + $0x10] sm:$0xff]  ;;  %v387_v15 = vld [vmem:[%s15648_s5 + $0x38] sm:$0xff] }
 0x17a   :  { %v10132_v58 = vcombine.high %v589_v53, %v593_v54  ;;  %v427_v28 = vld [vmem:[%s15648_s5 + $0x178] sm:$0xff] }
 0x17c   :  { %2006 = vmatpush1.bf16.msra.mxu0 %v10073_v61  ;;  %2088 = vmatpush1.bf16.msra.mxu1 %v10075_v62  ;;  %v597_v61 = vld [vmem:[%s15648_s5 + $0x6c8] sm:$0xff] }
 0x17d   :  { %2007 = vmatprep.subr.bf16.mxu0 %v10082_v63  ;;  %2089 = vmatprep.subr.bf16.mxu1 %v10084_v0  ;;  %v601_v62 = vld [vmem:[%s15648_s5 + $0x6e8] sm:$0xff]  ;;  %v10129_v63 = vcombine.low %v588_v51, %v592_v52  ;;  %v10131_v0 = vcombine.low %v589_v53, %v593_v54  ;;  %v374_v51 = vmax.f32 %v366_v38, 0.0  ;;  %v390_v54 = vld [vmem:[%s15648_s5 + $0x50] sm:$0xff] }
 0x17e   :  { %v10140_v2 = vcombine.high %v597_v61, %v601_v62 }
 0x180   :  { %2008 = vmatpush1.bf16.msra.mxu0 %v10081_v5  ;;  %2090 = vmatpush1.bf16.msra.mxu1 %v10083_v6  ;;  %v605_v5 = vld [vmem:[%s15648_s5 + $0x708] sm:$0xff] }
 0x181   :  { %2009 = vmatprep.subr.bf16.mxu0 %v10090_v7  ;;  %2091 = vmatprep.subr.bf16.mxu1 %v10092_v8  ;;  %v609_v6 = vld [vmem:[%s15648_s5 + $0x728] sm:$0xff]  ;;  %v10137_v7 = vcombine.low %v596_v59, %v600_v60  ;;  %v10139_v8 = vcombine.low %v597_v61, %v601_v62  ;;  %v12031_v59 = vpack.c.bf16 %v374_v51, %v374_v51 }
 0x182   :  { %v10148_v12 = vcombine.high %v605_v5, %v609_v6 }
 0x184   :  { %2010 = vmatpush1.bf16.msra.mxu0 %v10089_v16  ;;  %2092 = vmatpush1.bf16.msra.mxu1 %v10091_v17  ;;  %v613_v16 = vld [vmem:[%s15648_s5 + $0x748] sm:$0xff] }
 0x185   :  { %2011 = vmatprep.subr.bf16.mxu0 %v10098_v18  ;;  %2093 = vmatprep.subr.bf16.mxu1 %v10100_v19  ;;  %v617_v17 = vld [vmem:[%s15648_s5 + $0x768] sm:$0xff]  ;;  %v10145_v18 = vcombine.low %v604_v3, %v608_v4  ;;  %v10147_v19 = vcombine.low %v605_v5, %v609_v6 }
 0x186   :  { %v10156_v21 = vcombine.high %v613_v16, %v617_v17 }
 0x188   :  { %2012 = vmatpush1.bf16.msra.mxu0 %v10097_v24  ;;  %2094 = vmatpush1.bf16.msra.mxu1 %v10099_v25  ;;  %v621_v24 = vld [vmem:[%s15648_s5 + $0x788] sm:$0xff] }
 0x189   :  { %2013 = vmatprep.subr.bf16.mxu0 %v10106_v26  ;;  %2095 = vmatprep.subr.bf16.mxu1 %v10108_v27  ;;  %v625_v25 = vld [vmem:[%s15648_s5 + $0x7a8] sm:$0xff]  ;;  %v10153_v26 = vcombine.low %v612_v13, %v616_v14  ;;  %v10155_v27 = vcombine.low %v613_v16, %v617_v17  ;;  %v414_v17 = vld [vmem:[%s15648_s5 + $0x110] sm:$0xff] }
 0x18a   :  { %v10164_v30 = vcombine.high %v621_v24, %v625_v25 }
 0x18c   :  { %2014 = vmatpush1.bf16.msra.mxu0 %v10105_v34  ;;  %2096 = vmatpush1.bf16.msra.mxu1 %v10107_v35  ;;  %v632_v34 = vld [vmem:[%s15648_s5 + $0x7e0] sm:$0xff]  ;;  %v629_v35 = vld [vmem:[%s15648_s5 + $0x7c8] sm:$0xff] }
 0x18d   :  { %2015 = vmatprep.subr.bf16.mxu0 %v10114_v36  ;;  %2097 = vmatprep.subr.bf16.mxu1 %v10116_v37  ;;  %v10161_v36 = vcombine.low %v620_v22, %v624_v23  ;;  %v10163_v37 = vcombine.low %v621_v24, %v625_v25  ;;  %v10170_v39 = vcombine.high %v628_v31, %v632_v34  ;;  %v422_v25 = vld [vmem:[%s15648_s5 + $0x150] sm:$0xff] }
 0x18e   :  { %v10172_v41 = vcombine.high %v629_v35, %v633_v9 }
 0x190   :  { %2016 = vmatpush1.bf16.msra.mxu0 %v10113_v43  ;;  %2098 = vmatpush1.bf16.msra.mxu1 %v10115_v44  ;;  %v386_v43 = vld [vmem:[%s15648_s5 + $0x30] sm:$0xff]  ;;  %v383_v44 = vld [vmem:[%s15648_s5 + $0x18] sm:$0xff] }
 0x191   :  { %2017 = vmatprep.subr.bf16.mxu0 %v10122_v49  ;;  %2099 = vmatprep.subr.bf16.mxu1 %v10124_v50  ;;  %v10169_v49 = vcombine.low %v628_v31, %v632_v34  ;;  %v10171_v50 = vcombine.low %v629_v35, %v633_v9  ;;  %v9926_v52 = vcombine.high %v382_v42, %v386_v43  ;;  %v430_v35 = vld [vmem:[%s15648_s5 + $0x190] sm:$0xff] }
 0x192   :  { %v9928_v53 = vcombine.high %v383_v44, %v387_v15  ;;  %v9927_v60 = vcombine.low %v383_v44, %v387_v15  ;;  %v434_v9 = vld [vmem:[%s15648_s5 + $0x1b0] sm:$0xff]  ;;  %v439_v15 = vld [vmem:[%s15648_s5 + $0x1d8] sm:$0xff] }
 0x193   :  { %v442_v44 = vld [vmem:[%s15648_s5 + $0x1f0] sm:$0xff] }
 0x194   :  { %2018 = vmatpush1.bf16.msra.mxu0 %v10121_v55  ;;  %2100 = vmatpush1.bf16.msra.mxu1 %v10123_v56  ;;  %v394_v55 = vld [vmem:[%s15648_s5 + $0x70] sm:$0xff]  ;;  %v391_v56 = vld [vmem:[%s15648_s5 + $0x58] sm:$0xff] }
 0x195   :  { %2019 = vmatprep.subr.bf16.mxu0 %v10130_v57  ;;  %2101 = vmatprep.subr.bf16.mxu1 %v10132_v58  ;;  %v395_v57 = vld [vmem:[%s15648_s5 + $0x78] sm:$0xff]  ;;  %v9925_v58 = vcombine.low %v382_v42, %v386_v43  ;;  %v9934_v61 = vcombine.high %v390_v54, %v394_v55  ;;  %v9933_v3 = vcombine.low %v390_v54, %v394_v55  ;;  %v438_v43 = vld [vmem:[%s15648_s5 + $0x1d0] sm:$0xff] }
 0x196   :  { %v9936_v62 = vcombine.high %v391_v56, %v395_v57  ;;  %v9935_v4 = vcombine.low %v391_v56, %v395_v57  ;;  %v446_v54 = vld [vmem:[%s15648_s5 + $0x210] sm:$0xff]  ;;  %v447_v56 = vld [vmem:[%s15648_s5 + $0x218] sm:$0xff] }
 0x197   :  { %v450_v55 = vld [vmem:[%s15648_s5 + $0x230] sm:$0xff]  ;;  %v451_v57 = vld [vmem:[%s15648_s5 + $0x238] sm:$0xff] }
 0x198   :  { %2020 = vmatpush1.bf16.msra.mxu0 %v10129_v63  ;;  %2102 = vmatpush1.bf16.msra.mxu1 %v10131_v0  ;;  %v398_v63 = vld [vmem:[%s15648_s5 + $0x90] sm:$0xff] }
 0x199   :  { %2021 = vmatprep.subr.bf16.mxu0 %v10138_v1  ;;  %2103 = vmatprep.subr.bf16.mxu1 %v10140_v2  ;;  %v402_v0 = vld [vmem:[%s15648_s5 + $0xb0] sm:$0xff]  ;;  %v399_v1 = vld [vmem:[%s15648_s5 + $0x98] sm:$0xff] }
 0x19a   :  { %v403_v2 = vld [vmem:[%s15648_s5 + $0xb8] sm:$0xff]  ;;  %v9942_v5 = vcombine.high %v398_v63, %v402_v0 }
 0x19b   :  { %v9944_v6 = vcombine.high %v399_v1, %v403_v2  ;;  %v9943_v13 = vcombine.low %v399_v1, %v403_v2  ;;  %v455_v1 = vld [vmem:[%s15648_s5 + $0x258] sm:$0xff] }
 0x19c   :  { %2022 = vmatpush1.bf16.msra.mxu0 %v10137_v7  ;;  %2104 = vmatpush1.bf16.msra.mxu1 %v10139_v8  ;;  %v406_v7 = vld [vmem:[%s15648_s5 + $0xd0] sm:$0xff]  ;;  %v459_v2 = vld [vmem:[%s15648_s5 + $0x278] sm:$0xff] }
 0x19d   :  { %2023 = vmatprep.subr.bf16.mxu0 %v10146_v11  ;;  %2105 = vmatprep.subr.bf16.mxu1 %v10148_v12  ;;  %v410_v8 = vld [vmem:[%s15648_s5 + $0xf0] sm:$0xff]  ;;  %v407_v11 = vld [vmem:[%s15648_s5 + $0xd8] sm:$0xff]  ;;  %v9941_v12 = vcombine.low %v398_v63, %v402_v0 }
 0x19e   :  { %v9950_v14 = vcombine.high %v406_v7, %v410_v8  ;;  %v454_v63 = vld [vmem:[%s15648_s5 + $0x250] sm:$0xff] }
 0x19f   :  { %v458_v0 = vld [vmem:[%s15648_s5 + $0x270] sm:$0xff] }
 0x1a0   :  { %2024 = vmatpush1.bf16.msra.mxu0 %v10145_v18  ;;  %2106 = vmatpush1.bf16.msra.mxu1 %v10147_v19  ;;  %v418_v18 = vld [vmem:[%s15648_s5 + $0x130] sm:$0xff]  ;;  %v415_v19 = vld [vmem:[%s15648_s5 + $0x118] sm:$0xff] }
 0x1a1   :  { %2025 = vmatprep.subr.bf16.mxu0 %v10154_v20  ;;  %2107 = vmatprep.subr.bf16.mxu1 %v10156_v21  ;;  %v419_v20 = vld [vmem:[%s15648_s5 + $0x138] sm:$0xff]  ;;  %v9949_v21 = vcombine.low %v406_v7, %v410_v8  ;;  %v9958_v23 = vcombine.high %v414_v17, %v418_v18  ;;  %v462_v7 = vld [vmem:[%s15648_s5 + $0x290] sm:$0xff] }
 0x1a2   :  { %v9960_v24 = vcombine.high %v415_v19, %v419_v20  ;;  %v466_v8 = vld [vmem:[%s15648_s5 + $0x2b0] sm:$0xff] }
 0x1a4   :  { %2026 = vmatpush1.bf16.msra.mxu0 %v10153_v26  ;;  %2108 = vmatpush1.bf16.msra.mxu1 %v10155_v27  ;;  %v426_v26 = vld [vmem:[%s15648_s5 + $0x170] sm:$0xff]  ;;  %v423_v27 = vld [vmem:[%s15648_s5 + $0x158] sm:$0xff] }
 0x1a5   :  { %2027 = vmatprep.subr.bf16.mxu0 %v10162_v29  ;;  %2109 = vmatprep.subr.bf16.mxu1 %v10164_v30  ;;  %v9957_v29 = vcombine.low %v414_v17, %v418_v18  ;;  %v9959_v30 = vcombine.low %v415_v19, %v419_v20  ;;  %v9966_v31 = vcombine.high %v422_v25, %v426_v26  ;;  %v470_v17 = vld [vmem:[%s15648_s5 + $0x2d0] sm:$0xff]  ;;  %v471_v19 = vld [vmem:[%s15648_s5 + $0x2d8] sm:$0xff] }
 0x1a6   :  { %v9968_v34 = vcombine.high %v423_v27, %v427_v28  ;;  %v9965_v38 = vcombine.low %v422_v25, %v426_v26  ;;  %v474_v18 = vld [vmem:[%s15648_s5 + $0x2f0] sm:$0xff]  ;;  %v475_v20 = vld [vmem:[%s15648_s5 + $0x2f8] sm:$0xff] }
 0x1a7   :  { %v478_v25 = vld [vmem:[%s15648_s5 + $0x310] sm:$0xff] }
 0x1a8   :  { %2028 = vmatpush1.bf16.msra.mxu0 %v10161_v36  ;;  %2110 = vmatpush1.bf16.msra.mxu1 %v10163_v37  ;;  %v431_v36 = vld [vmem:[%s15648_s5 + $0x198] sm:$0xff]  ;;  %v482_v26 = vld [vmem:[%s15648_s5 + $0x330] sm:$0xff] }
 0x1a9   :  { %2029 = vmatprep.subr.bf16.mxu0 %v10170_v39  ;;  %2111 = vmatprep.subr.bf16.mxu1 %v10172_v41  ;;  %v435_v37 = vld [vmem:[%s15648_s5 + $0x1b8] sm:$0xff]  ;;  %v9967_v39 = vcombine.low %v423_v27, %v427_v28  ;;  %v9974_v41 = vcombine.high %v430_v35, %v434_v9 }
 0x1aa   :  { %v9976_v42 = vcombine.high %v431_v36, %v435_v37  ;;  %v9975_v51 = vcombine.low %v431_v36, %v435_v37  ;;  %v479_v27 = vld [vmem:[%s15648_s5 + $0x318] sm:$0xff] }
 0x1ab   :  { %v483_v28 = vld [vmem:[%s15648_s5 + $0x338] sm:$0xff] }
 0x1ac   :  { %2030 = vmatpush1.bf16.msra.mxu0 %v10169_v49  ;;  %2112 = vmatpush1.bf16.msra.mxu1 %v10171_v50  ;;  %v443_v49 = vld [vmem:[%s15648_s5 + $0x1f8] sm:$0xff]  ;;  %v9973_v50 = vcombine.low %v430_v35, %v434_v9  ;;  %v486_v35 = vld [vmem:[%s15648_s5 + $0x350] sm:$0xff] }
 0x1ad   :  { %2122 = vmatprep.subr.bf16.mxu0 %v9926_v52  ;;  %2204 = vmatprep.subr.bf16.mxu1 %v9928_v53  ;;  %v9982_v52 = vcombine.high %v438_v43, %v442_v44  ;;  %v9984_v53 = vcombine.high %v439_v15, %v443_v49  ;;  %v490_v9 = vld [vmem:[%s15648_s5 + $0x370] sm:$0xff]  ;;  %v487_v36 = vld [vmem:[%s15648_s5 + $0x358] sm:$0xff] }
 0x1ae   :  { %v491_v37 = vld [vmem:[%s15648_s5 + $0x378] sm:$0xff] }
 0x1af   :  { %2032 = vmatmul.mubr.bf16.vlgmr.msra.gmra.mrb[4].mxu0 %v12031_v59  ;;  %2114 = vmatmul.mubr.bf16.vlgmr.msra.gmra.mrb[4].mxu1 %v12031_v59 }
 0x1b0   :  { %2123 = vmatpush1.bf16.msra.mxu0 %v9925_v58  ;;  %2154 = vmatprep.mubr.bf16.mxu0 %v11824_v32  ;;  %v9981_v58 = vcombine.low %v438_v43, %v442_v44  ;;  %v494_v43 = vld [vmem:[%s15648_s5 + $0x390] sm:$0xff] }
 0x1b1   :  { %2205 = vmatpush1.bf16.msra.mxu1 %v9927_v60  ;;  %2236 = vmatprep.mubr.bf16.mxu1 %v11824_v32  ;;  %v411_v32 = vld [vmem:[%s15648_s5 + $0xf8] sm:$0xff]  ;;  %v9983_v60 = vcombine.low %v439_v15, %v443_v49  ;;  %v498_v44 = vld [vmem:[%s15648_s5 + $0x3b0] sm:$0xff] }
 0x1b2   :  { %2124 = vmatprep.subr.bf16.mxu0 %v9934_v61  ;;  %2206 = vmatprep.subr.bf16.mxu1 %v9936_v62  ;;  %v9952_v16 = vcombine.high %v407_v11, %v411_v32  ;;  %v9951_v22 = vcombine.low %v407_v11, %v411_v32  ;;  %v9990_v61 = vcombine.high %v446_v54, %v450_v55  ;;  %v463_v11 = vld [vmem:[%s15648_s5 + $0x298] sm:$0xff] }
 0x1b3   :  { %v9992_v62 = vcombine.high %v447_v56, %v451_v57  ;;  %v467_v32 = vld [vmem:[%s15648_s5 + $0x2b8] sm:$0xff] }
 0x1b4   :  { %2125 = vmatpush1.bf16.msra.mxu0 %v9933_v3  ;;  %v9989_v3 = vcombine.low %v446_v54, %v450_v55  ;;  %v495_v15 = vld [vmem:[%s15648_s5 + $0x398] sm:$0xff]  ;;  %v502_v54 = vld [vmem:[%s15648_s5 + $0x3d0] sm:$0xff] }
 0x1b5   :  { %2207 = vmatpush1.bf16.msra.mxu1 %v9935_v4  ;;  %2126 = vmatprep.subr.bf16.mxu0 %v9942_v5  ;;  %v9991_v4 = vcombine.low %v447_v56, %v451_v57  ;;  %v9998_v5 = vcombine.high %v454_v63, %v458_v0  ;;  %v499_v49 = vld [vmem:[%s15648_s5 + $0x3b8] sm:$0xff]  ;;  %v506_v55 = vld [vmem:[%s15648_s5 + $0x3f0] sm:$0xff] }
 0x1b6   :  { %2208 = vmatprep.subr.bf16.mxu1 %v9944_v6  ;;  %v10000_v6 = vcombine.high %v455_v1, %v459_v2  ;;  %v503_v56 = vld [vmem:[%s15648_s5 + $0x3d8] sm:$0xff] }
 0x1b7   :  { %v507_v57 = vld [vmem:[%s15648_s5 + $0x3f8] sm:$0xff] }
 0x1b8   :  { %2127 = vmatpush1.bf16.msra.mxu0 %v9941_v12  ;;  %v9997_v12 = vcombine.low %v454_v63, %v458_v0  ;;  %v510_v63 = vld [vmem:[%s15648_s5 + $0x410] sm:$0xff] }
 0x1b9   :  { %2209 = vmatpush1.bf16.msra.mxu1 %v9943_v13  ;;  %2128 = vmatprep.subr.bf16.mxu0 %v9950_v14  ;;  %v9999_v13 = vcombine.low %v455_v1, %v459_v2  ;;  %v10006_v14 = vcombine.high %v462_v7, %v466_v8  ;;  %v514_v0 = vld [vmem:[%s15648_s5 + $0x430] sm:$0xff]  ;;  %v511_v1 = vld [vmem:[%s15648_s5 + $0x418] sm:$0xff] }
 0x1ba   :  { %2210 = vmatprep.subr.bf16.mxu1 %v9952_v16  ;;  %v10008_v16 = vcombine.high %v463_v11, %v467_v32  ;;  %v515_v2 = vld [vmem:[%s15648_s5 + $0x438] sm:$0xff] }
 0x1bc   :  { %2129 = vmatpush1.bf16.msra.mxu0 %v9949_v21  ;;  %v10005_v21 = vcombine.low %v462_v7, %v466_v8  ;;  %v518_v7 = vld [vmem:[%s15648_s5 + $0x450] sm:$0xff] }
 0x1bd   :  { %2211 = vmatpush1.bf16.msra.mxu1 %v9951_v22  ;;  %2130 = vmatprep.subr.bf16.mxu0 %v9958_v23  ;;  %v10007_v22 = vcombine.low %v463_v11, %v467_v32  ;;  %v10014_v23 = vcombine.high %v470_v17, %v474_v18  ;;  %v522_v8 = vld [vmem:[%s15648_s5 + $0x470] sm:$0xff]  ;;  %v10053_v11 = vcombine.low %v510_v63, %v514_v0  ;;  %v519_v32 = vld [vmem:[%s15648_s5 + $0x458] sm:$0xff] }
 0x1be   :  { %2212 = vmatprep.subr.bf16.mxu1 %v9960_v24  ;;  %v10016_v24 = vcombine.high %v471_v19, %v475_v20 }
 0x1c0   :  { %2131 = vmatpush1.bf16.msra.mxu0 %v9957_v29  ;;  %v10013_v29 = vcombine.low %v470_v17, %v474_v18  ;;  %v530_v17 = vld [vmem:[%s15648_s5 + $0x4b0] sm:$0xff] }
 0x1c1   :  { %2213 = vmatpush1.bf16.msra.mxu1 %v9959_v30  ;;  %2132 = vmatprep.subr.bf16.mxu0 %v9966_v31  ;;  %v10015_v30 = vcombine.low %v471_v19, %v475_v20  ;;  %v10022_v31 = vcombine.high %v478_v25, %v482_v26  ;;  %v527_v19 = vld [vmem:[%s15648_s5 + $0x498] sm:$0xff] }
 0x1c2   :  { %2214 = vmatprep.subr.bf16.mxu1 %v9968_v34  ;;  %v10024_v34 = vcombine.high %v479_v27, %v483_v28  ;;  %v531_v20 = vld [vmem:[%s15648_s5 + $0x4b8] sm:$0xff] }
 0x1c4   :  { %2133 = vmatpush1.bf16.msra.mxu0 %v9965_v38  ;;  %v10021_v38 = vcombine.low %v478_v25, %v482_v26  ;;  %v534_v25 = vld [vmem:[%s15648_s5 + $0x4d0] sm:$0xff] }
 0x1c5   :  { %2215 = vmatpush1.bf16.msra.mxu1 %v9967_v39  ;;  %2134 = vmatprep.subr.bf16.mxu0 %v9974_v41  ;;  %v10023_v39 = vcombine.low %v479_v27, %v483_v28  ;;  %v10030_v41 = vcombine.high %v486_v35, %v490_v9  ;;  %v538_v26 = vld [vmem:[%s15648_s5 + $0x4f0] sm:$0xff]  ;;  %v539_v27 = vld [vmem:[%s15648_s5 + $0x4f8] sm:$0xff]  ;;  %v10071_v28 = vcombine.low %v527_v19, %v531_v20 }
 0x1c6   :  { %2216 = vmatprep.subr.bf16.mxu1 %v9976_v42  ;;  %v10032_v42 = vcombine.high %v487_v36, %v491_v37 }
 0x1c8   :  { %2135 = vmatpush1.bf16.msra.mxu0 %v9973_v50  ;;  %v10029_v50 = vcombine.low %v486_v35, %v490_v9  ;;  %v543_v35 = vld [vmem:[%s15648_s5 + $0x518] sm:$0xff] }
 0x1c9   :  { %2217 = vmatpush1.bf16.msra.mxu1 %v9975_v51  ;;  %2136 = vmatprep.subr.bf16.mxu0 %v9982_v52  ;;  %v10031_v51 = vcombine.low %v487_v36, %v491_v37  ;;  %v10038_v52 = vcombine.high %v494_v43, %v498_v44  ;;  %v547_v9 = vld [vmem:[%s15648_s5 + $0x538] sm:$0xff]  ;;  %v10077_v36 = vcombine.low %v534_v25, %v538_v26 }
 0x1ca   :  { %2218 = vmatprep.subr.bf16.mxu1 %v9984_v53  ;;  %v10040_v53 = vcombine.high %v495_v15, %v499_v49 }
 0x1cc   :  { %2137 = vmatpush1.bf16.msra.mxu0 %v9981_v58  ;;  %v10037_v58 = vcombine.low %v494_v43, %v498_v44  ;;  %v551_v43 = vld [vmem:[%s15648_s5 + $0x558] sm:$0xff] }
 0x1cd   :  { %2219 = vmatpush1.bf16.msra.mxu1 %v9983_v60  ;;  %2138 = vmatprep.subr.bf16.mxu0 %v9990_v61  ;;  %v10039_v60 = vcombine.low %v495_v15, %v499_v49  ;;  %v10046_v61 = vcombine.high %v502_v54, %v506_v55  ;;  %v555_v44 = vld [vmem:[%s15648_s5 + $0x578] sm:$0xff]  ;;  %v10087_v49 = vcombine.low %v543_v35, %v547_v9 }
 0x1ce   :  { %2220 = vmatprep.subr.bf16.mxu1 %v9992_v62  ;;  %v10048_v62 = vcombine.high %v503_v56, %v507_v57 }
 0x1d0   :  { %2139 = vmatpush1.bf16.msra.mxu0 %v9989_v3  ;;  %v10045_v3 = vcombine.low %v502_v54, %v506_v55  ;;  %v559_v54 = vld [vmem:[%s15648_s5 + $0x598] sm:$0xff] }
 0x1d1   :  { %2221 = vmatpush1.bf16.msra.mxu1 %v9991_v4  ;;  %2140 = vmatprep.subr.bf16.mxu0 %v9998_v5  ;;  %v10047_v4 = vcombine.low %v503_v56, %v507_v57  ;;  %v10054_v5 = vcombine.high %v510_v63, %v514_v0  ;;  %v563_v55 = vld [vmem:[%s15648_s5 + $0x5b8] sm:$0xff]  ;;  %v10095_v57 = vcombine.low %v551_v43, %v555_v44 }
 0x1d2   :  { %2222 = vmatprep.subr.bf16.mxu1 %v10000_v6  ;;  %v10056_v6 = vcombine.high %v511_v1, %v515_v2  ;;  %v567_v63 = vld [vmem:[%s15648_s5 + $0x5d8] sm:$0xff] }
 0x1d3   :  { %v571_v0 = vld [vmem:[%s15648_s5 + $0x5f8] sm:$0xff] }
 0x1d4   :  { %2141 = vmatpush1.bf16.msra.mxu0 %v9997_v12  ;;  %v523_v12 = vld [vmem:[%s15648_s5 + $0x478] sm:$0xff] }
 0x1d5   :  { %2223 = vmatpush1.bf16.msra.mxu1 %v9999_v13  ;;  %2142 = vmatprep.subr.bf16.mxu0 %v10006_v14  ;;  %v10055_v13 = vcombine.low %v511_v1, %v515_v2  ;;  %v10062_v14 = vcombine.high %v518_v7, %v522_v8  ;;  %v10064_v18 = vcombine.high %v519_v32, %v523_v12 }
 0x1d6   :  { %2224 = vmatprep.subr.bf16.mxu1 %v10008_v16  ;;  %v526_v16 = vld [vmem:[%s15648_s5 + $0x490] sm:$0xff]  ;;  %v10103_v2 = vcombine.low %v559_v54, %v563_v55 }
 0x1d8   :  { %2143 = vmatpush1.bf16.msra.mxu0 %v10005_v21  ;;  %v10061_v21 = vcombine.low %v518_v7, %v522_v8  ;;  %v575_v7 = vld [vmem:[%s15648_s5 + $0x618] sm:$0xff] }
 0x1d9   :  { %2225 = vmatpush1.bf16.msra.mxu1 %v10007_v22  ;;  %2144 = vmatprep.subr.bf16.mxu0 %v10014_v23  ;;  %v10063_v22 = vcombine.low %v519_v32, %v523_v12  ;;  %v10070_v23 = vcombine.high %v526_v16, %v530_v17  ;;  %v579_v8 = vld [vmem:[%s15648_s5 + $0x638] sm:$0xff]  ;;  %v10111_v32 = vcombine.low %v567_v63, %v571_v0 }
 0x1da   :  { %2226 = vmatprep.subr.bf16.mxu1 %v10016_v24  ;;  %v10072_v24 = vcombine.high %v527_v19, %v531_v20  ;;  %v10119_v20 = vcombine.low %v575_v7, %v579_v8 }
 0x1dc   :  { %2145 = vmatpush1.bf16.msra.mxu0 %v10013_v29  ;;  %v10078_v29 = vcombine.high %v534_v25, %v538_v26  ;;  %v591_v25 = vld [vmem:[%s15648_s5 + $0x698] sm:$0xff] }
 0x1dd   :  { %2227 = vmatpush1.bf16.msra.mxu1 %v10015_v30  ;;  %2146 = vmatprep.subr.bf16.mxu0 %v10022_v31  ;;  %v542_v31 = vld [vmem:[%s15648_s5 + $0x510] sm:$0xff]  ;;  %v595_v26 = vld [vmem:[%s15648_s5 + $0x6b8] sm:$0xff] }
 0x1de   :  { %2228 = vmatprep.subr.bf16.mxu1 %v10024_v34  ;;  %v546_v34 = vld [vmem:[%s15648_s5 + $0x530] sm:$0xff] }
 0x1df   :  { %v10085_v15 = vcombine.low %v542_v31, %v546_v34 }
 0x1e0   :  { %2147 = vmatpush1.bf16.msra.mxu0 %v10021_v38  ;;  %v10086_v38 = vcombine.high %v542_v31, %v546_v34  ;;  %v599_v31 = vld [vmem:[%s15648_s5 + $0x6d8] sm:$0xff] }
 0x1e1   :  { %2229 = vmatpush1.bf16.msra.mxu1 %v10023_v39  ;;  %2148 = vmatprep.subr.bf16.mxu0 %v10030_v41  ;;  %v10088_v39 = vcombine.high %v543_v35, %v547_v9  ;;  %v550_v41 = vld [vmem:[%s15648_s5 + $0x550] sm:$0xff]  ;;  %v603_v34 = vld [vmem:[%s15648_s5 + $0x6f8] sm:$0xff]  ;;  %v10135_v9 = vcombine.low %v591_v25, %v595_v26 }
 0x1e2   :  { %2230 = vmatprep.subr.bf16.mxu1 %v10032_v42  ;;  %v554_v42 = vld [vmem:[%s15648_s5 + $0x570] sm:$0xff] }
 0x1e3   :  { %v10093_v56 = vcombine.low %v550_v41, %v554_v42 }
 0x1e4   :  { %2149 = vmatpush1.bf16.msra.mxu0 %v10029_v50  ;;  %v10094_v50 = vcombine.high %v550_v41, %v554_v42  ;;  %v607_v41 = vld [vmem:[%s15648_s5 + $0x718] sm:$0xff] }
 0x1e5   :  { %2231 = vmatpush1.bf16.msra.mxu1 %v10031_v51  ;;  %2150 = vmatprep.subr.bf16.mxu0 %v10038_v52  ;;  %v10096_v51 = vcombine.high %v551_v43, %v555_v44  ;;  %v558_v52 = vld [vmem:[%s15648_s5 + $0x590] sm:$0xff]  ;;  %v611_v42 = vld [vmem:[%s15648_s5 + $0x738] sm:$0xff]  ;;  %v10143_v44 = vcombine.low %v599_v31, %v603_v34 }
 0x1e6   :  { %2232 = vmatprep.subr.bf16.mxu1 %v10040_v53  ;;  %v562_v53 = vld [vmem:[%s15648_s5 + $0x5b0] sm:$0xff] }
 0x1e7   :  { %v10101_v1 = vcombine.low %v558_v52, %v562_v53 }
 0x1e8   :  { %2151 = vmatpush1.bf16.msra.mxu0 %v10037_v58  ;;  %v10102_v58 = vcombine.high %v558_v52, %v562_v53  ;;  %v615_v52 = vld [vmem:[%s15648_s5 + $0x758] sm:$0xff] }
 0x1e9   :  { %2233 = vmatpush1.bf16.msra.mxu1 %v10039_v60  ;;  %2152 = vmatprep.subr.bf16.mxu0 %v10046_v61  ;;  %v10104_v60 = vcombine.high %v559_v54, %v563_v55  ;;  %v566_v61 = vld [vmem:[%s15648_s5 + $0x5d0] sm:$0xff]  ;;  %v619_v53 = vld [vmem:[%s15648_s5 + $0x778] sm:$0xff]  ;;  %v10151_v55 = vcombine.low %v607_v41, %v611_v42 }
 0x1ea   :  { %2234 = vmatprep.subr.bf16.mxu1 %v10048_v62  ;;  %v570_v62 = vld [vmem:[%s15648_s5 + $0x5f0] sm:$0xff] }
 0x1ec   :  { %2153 = vmatpush1.bf16.msra.mxu0 %v10045_v3  ;;  %v10110_v3 = vcombine.high %v566_v61, %v570_v62 }
 0x1ed   :  { %2235 = vmatpush1.bf16.msra.mxu1 %v10047_v4  ;;  %2163 = vmatprep.subr.bf16.mxu0 %v10054_v5  ;;  %v10112_v4 = vcombine.high %v567_v63, %v571_v0  ;;  %v574_v5 = vld [vmem:[%s15648_s5 + $0x610] sm:$0xff]  ;;  %v10159_v0 = vcombine.low %v615_v52, %v619_v53 }
 0x1ee   :  { %2245 = vmatprep.subr.bf16.mxu1 %v10056_v6  ;;  %v578_v6 = vld [vmem:[%s15648_s5 + $0x630] sm:$0xff] }
 0x1ef   :  { %2155 = vmatmul.mubr.bf16.vlgmr.msra.gmra.mrb[8].mxu0 %v11826_v33  ;;  %v10118_v12 = vcombine.high %v574_v5, %v578_v6  ;;  %v10117_v19 = vcombine.low %v574_v5, %v578_v6  ;;  %v631_v5 = vld [vmem:[%s15648_s5 + $0x7d8] sm:$0xff] }
 0x1f0   :  { %2237 = vmatmul.mubr.bf16.vlgmr.msra.gmra.mrb[8].mxu1 %v11826_v33  ;;  %2164 = vmatpush1.bf16.msra.mxu0 %v10053_v11  ;;  %v535_v33 = vld [vmem:[%s15648_s5 + $0x4d8] sm:$0xff]  ;;  %v10109_v11 = vcombine.low %v566_v61, %v570_v62 }
 0x1f1   :  { %2195 = vmatprep.mubr.bf16.mxu0 %v11842_v40  ;;  %2246 = vmatpush1.bf16.msra.mxu1 %v10055_v13  ;;  %v10080_v30 = vcombine.high %v535_v33, %v539_v27  ;;  %v10079_v37 = vcombine.low %v535_v33, %v539_v27  ;;  %v10120_v13 = vcombine.high %v575_v7, %v579_v8  ;;  %v623_v61 = vld [vmem:[%s15648_s5 + $0x798] sm:$0xff] }
 0x1f2   :  { %2277 = vmatprep.mubr.bf16.mxu1 %v11842_v40  ;;  %2165 = vmatprep.subr.bf16.mxu0 %v10062_v14  ;;  %v10069_v40 = vcombine.low %v526_v16, %v530_v17  ;;  %v582_v14 = vld [vmem:[%s15648_s5 + $0x650] sm:$0xff]  ;;  %v583_v17 = vld [vmem:[%s15648_s5 + $0x658] sm:$0xff] }
 0x1f3   :  { %2247 = vmatprep.subr.bf16.mxu1 %v10064_v18  ;;  %v586_v16 = vld [vmem:[%s15648_s5 + $0x670] sm:$0xff]  ;;  %v587_v18 = vld [vmem:[%s15648_s5 + $0x678] sm:$0xff] }
 0x1f4   :  { %2166 = vmatpush1.bf16.msra.mxu0 %v10061_v21  ;;  %v10126_v21 = vcombine.high %v582_v14, %v586_v16  ;;  %v10125_v33 = vcombine.low %v582_v14, %v586_v16  ;;  %v10127_v27 = vcombine.low %v583_v17, %v587_v18  ;;  %v627_v62 = vld [vmem:[%s15648_s5 + $0x7b8] sm:$0xff]  ;;  %v2303_v14 = vld [vmem:[%s15650_s7 + $0x8] sm:$0xff] }
 0x1f5   :  { %2248 = vmatpush1.bf16.msra.mxu1 %v10063_v22  ;;  %2167 = vmatprep.subr.bf16.mxu0 %v10070_v23  ;;  %v10128_v22 = vcombine.high %v583_v17, %v587_v18  ;;  %v590_v23 = vld [vmem:[%s15648_s5 + $0x690] sm:$0xff]  ;;  %v635_v6 = vld [vmem:[%s15648_s5 + $0x7f8] sm:$0xff]  ;;  %v10167_v8 = vcombine.low %v623_v61, %v627_v62  ;;  %v2311_v16 = vld [vmem:[%s15650_s7 + $0x48] sm:$0xff] }
 0x1f6   :  { %2249 = vmatprep.subr.bf16.mxu1 %v10072_v24  ;;  %v594_v24 = vld [vmem:[%s15648_s5 + $0x6b0] sm:$0xff]  ;;  %v10175_v18 = vcombine.low %v631_v5, %v635_v6 }
 0x1f7   :  { %v10133_v35 = vcombine.low %v590_v23, %v594_v24 }
 0x1f8   :  { %2168 = vmatpush1.bf16.msra.mxu0 %v10069_v40  ;;  %v10134_v40 = vcombine.high %v590_v23, %v594_v24  ;;  %v2319_v23 = vld [vmem:[%s15650_s7 + $0x88] sm:$0xff] }
 0x1f9   :  { %2250 = vmatpush1.bf16.msra.mxu1 %v10071_v28  ;;  %2169 = vmatprep.subr.bf16.mxu0 %v10078_v29  ;;  %v10136_v28 = vcombine.high %v591_v25, %v595_v26  ;;  %v598_v29 = vld [vmem:[%s15648_s5 + $0x6d0] sm:$0xff]  ;;  %v2327_v24 = vld [vmem:[%s15650_s7 + $0xc8] sm:$0xff]  ;;  %v10179_v26 = vcombine.low %v2303_v14, %v2311_v16 }
 0x1fa   :  { %2251 = vmatprep.subr.bf16.mxu1 %v10080_v30  ;;  %v602_v30 = vld [vmem:[%s15648_s5 + $0x6f0] sm:$0xff] }
 0x1fb   :  { %v10141_v43 = vcombine.low %v598_v29, %v602_v30 }
 0x1fc   :  { %2170 = vmatpush1.bf16.msra.mxu0 %v10077_v36  ;;  %v10142_v36 = vcombine.high %v598_v29, %v602_v30  ;;  %v2335_v29 = vld [vmem:[%s15650_s7 + $0x108] sm:$0xff] }
 0x1fd   :  { %2252 = vmatpush1.bf16.msra.mxu1 %v10079_v37  ;;  %2171 = vmatprep.subr.bf16.mxu0 %v10086_v38  ;;  %v10144_v37 = vcombine.high %v599_v31, %v603_v34  ;;  %v606_v38 = vld [vmem:[%s15648_s5 + $0x710] sm:$0xff]  ;;  %v2343_v30 = vld [vmem:[%s15650_s7 + $0x148] sm:$0xff]  ;;  %v10195_v34 = vcombine.low %v2319_v23, %v2327_v24 }
 0x1fe   :  { %2253 = vmatprep.subr.bf16.mxu1 %v10088_v39  ;;  %v610_v39 = vld [vmem:[%s15648_s5 + $0x730] sm:$0xff] }
 0x1ff   :  { %v10149_v54 = vcombine.low %v606_v38, %v610_v39 }
 0x200   :  { %2172 = vmatpush1.bf16.msra.mxu0 %v10085_v15  ;;  %v10150_v15 = vcombine.high %v606_v38, %v610_v39  ;;  %v2359_v38 = vld [vmem:[%s15650_s7 + $0x1c8] sm:$0xff] }
 0x201   :  { %2254 = vmatpush1.bf16.msra.mxu1 %v10087_v49  ;;  %2173 = vmatprep.subr.bf16.mxu0 %v10094_v50  ;;  %v10152_v49 = vcombine.high %v607_v41, %v611_v42  ;;  %v614_v50 = vld [vmem:[%s15648_s5 + $0x750] sm:$0xff]  ;;  %v10211_v41 = vcombine.low %v2335_v29, %v2343_v30 }
 0x202   :  { %2255 = vmatprep.subr.bf16.mxu1 %v10096_v51  ;;  %v618_v51 = vld [vmem:[%s15648_s5 + $0x770] sm:$0xff] }
 0x203   :  { %v10157_v63 = vcombine.low %v614_v50, %v618_v51 }
 0x204   :  { %2174 = vmatpush1.bf16.msra.mxu0 %v10093_v56  ;;  %v10158_v56 = vcombine.high %v614_v50, %v618_v51  ;;  %v2375_v50 = vld [vmem:[%s15650_s7 + $0x248] sm:$0xff] }
 0x205   :  { %2256 = vmatpush1.bf16.msra.mxu1 %v10095_v57  ;;  %2175 = vmatprep.subr.bf16.mxu0 %v10102_v58  ;;  %v10160_v57 = vcombine.high %v615_v52, %v619_v53  ;;  %v622_v58 = vld [vmem:[%s15648_s5 + $0x790] sm:$0xff] }
 0x206   :  { %2257 = vmatprep.subr.bf16.mxu1 %v10104_v60  ;;  %v626_v60 = vld [vmem:[%s15648_s5 + $0x7b0] sm:$0xff] }
 0x207   :  { %v10165_v7 = vcombine.low %v622_v58, %v626_v60 }
 0x208   :  { %2176 = vmatpush1.bf16.msra.mxu0 %v10101_v1  ;;  %v10166_v1 = vcombine.high %v622_v58, %v626_v60  ;;  %v2391_v58 = vld [vmem:[%s15650_s7 + $0x2c8] sm:$0xff] }
 0x209   :  { %2258 = vmatpush1.bf16.msra.mxu1 %v10103_v2  ;;  %2177 = vmatprep.subr.bf16.mxu0 %v10110_v3  ;;  %v10168_v2 = vcombine.high %v623_v61, %v627_v62  ;;  %v630_v3 = vld [vmem:[%s15648_s5 + $0x7d0] sm:$0xff] }
 0x20a   :  { %2259 = vmatprep.subr.bf16.mxu1 %v10112_v4  ;;  %v634_v4 = vld [vmem:[%s15648_s5 + $0x7f0] sm:$0xff] }
 0x20b   :  { %v10173_v17 = vcombine.low %v630_v3, %v634_v4 }
 0x20c   :  { %2178 = vmatpush1.bf16.msra.mxu0 %v10109_v11  ;;  %v10174_v11 = vcombine.high %v630_v3, %v634_v4  ;;  %v2407_v3 = vld [vmem:[%s15650_s7 + $0x348] sm:$0xff] }
 0x20d   :  { %2260 = vmatpush1.bf16.msra.mxu1 %v10111_v32  ;;  %2179 = vmatprep.subr.bf16.mxu0 %v10118_v12  ;;  %v10176_v32 = vcombine.high %v631_v5, %v635_v6  ;;  %v2302_v12 = vld [vmem:[%s15650_s7] sm:$0xff] }
 0x20e   :  { %2261 = vmatprep.subr.bf16.mxu1 %v10120_v13  ;;  %v2310_v13 = vld [vmem:[%s15650_s7 + $0x40] sm:$0xff] }
 0x20f   :  { %v10177_v25 = vcombine.low %v2302_v12, %v2310_v13 }
 0x210   :  { %2180 = vmatpush1.bf16.msra.mxu0 %v10117_v19  ;;  %v10178_v19 = vcombine.high %v2302_v12, %v2310_v13  ;;  %v2423_v12 = vld [vmem:[%s15650_s7 + $0x3c8] sm:$0xff] }
 0x211   :  { %2262 = vmatpush1.bf16.msra.mxu1 %v10119_v20  ;;  %2181 = vmatprep.subr.bf16.mxu0 %v10126_v21  ;;  %v10180_v20 = vcombine.high %v2303_v14, %v2311_v16  ;;  %v2318_v21 = vld [vmem:[%s15650_s7 + $0x80] sm:$0xff] }
 0x212   :  { %2263 = vmatprep.subr.bf16.mxu1 %v10128_v22  ;;  %v2326_v22 = vld [vmem:[%s15650_s7 + $0xc0] sm:$0xff] }
 0x213   :  { %v10193_v31 = vcombine.low %v2318_v21, %v2326_v22 }
 0x214   :  { %2182 = vmatpush1.bf16.msra.mxu0 %v10125_v33  ;;  %v10194_v33 = vcombine.high %v2318_v21, %v2326_v22  ;;  %v2439_v21 = vld [vmem:[%s15650_s7 + $0x448] sm:$0xff] }
 0x215   :  { %2264 = vmatpush1.bf16.msra.mxu1 %v10127_v27  ;;  %2183 = vmatprep.subr.bf16.mxu0 %v10134_v40  ;;  %v10196_v27 = vcombine.high %v2319_v23, %v2327_v24  ;;  %v2334_v40 = vld [vmem:[%s15650_s7 + $0x100] sm:$0xff] }
 0x216   :  { %2265 = vmatprep.subr.bf16.mxu1 %v10136_v28  ;;  %v2342_v28 = vld [vmem:[%s15650_s7 + $0x140] sm:$0xff] }
 0x217   :  { %v10209_v39 = vcombine.low %v2334_v40, %v2342_v28 }
 0x218   :  { %2184 = vmatpush1.bf16.msra.mxu0 %v10133_v35  ;;  %v10210_v35 = vcombine.high %v2334_v40, %v2342_v28  ;;  %v2455_v40 = vld [vmem:[%s15650_s7 + $0x4c8] sm:$0xff] }
 0x219   :  { %2266 = vmatpush1.bf16.msra.mxu1 %v10135_v9  ;;  %2185 = vmatprep.subr.bf16.mxu0 %v10142_v36  ;;  %v10212_v9 = vcombine.high %v2335_v29, %v2343_v30  ;;  %v2350_v36 = vld [vmem:[%s15650_s7 + $0x180] sm:$0xff] }
 0x21a   :  { %2267 = vmatprep.subr.bf16.mxu1 %v10144_v37  ;;  %v2358_v37 = vld [vmem:[%s15650_s7 + $0x1c0] sm:$0xff] }
 0x21b   :  { %v10226_v42 = vcombine.high %v2350_v36, %v2358_v37  ;;  %v10225_v51 = vcombine.low %v2350_v36, %v2358_v37  ;;  %v2471_v36 = vld [vmem:[%s15650_s7 + $0x548] sm:$0xff] }
 0x21c   :  { %2186 = vmatpush1.bf16.msra.mxu0 %v10141_v43 }
 0x21d   :  { %2268 = vmatpush1.bf16.msra.mxu1 %v10143_v44  ;;  %2187 = vmatprep.subr.bf16.mxu0 %v10150_v15  ;;  %v2366_v44 = vld [vmem:[%s15650_s7 + $0x200] sm:$0xff] }
 0x21e   :  { %2269 = vmatprep.subr.bf16.mxu1 %v10152_v49  ;;  %v2374_v15 = vld [vmem:[%s15650_s7 + $0x240] sm:$0xff]  ;;  %v2367_v49 = vld [vmem:[%s15650_s7 + $0x208] sm:$0xff] }
 0x21f   :  { %v10242_v53 = vcombine.high %v2366_v44, %v2374_v15  ;;  %v10241_v60 = vcombine.low %v2366_v44, %v2374_v15  ;;  %v10243_v61 = vcombine.low %v2367_v49, %v2375_v50  ;;  %v2487_v44 = vld [vmem:[%s15650_s7 + $0x5c8] sm:$0xff] }
 0x220   :  { %2188 = vmatpush1.bf16.msra.mxu0 %v10149_v54  ;;  %v10244_v54 = vcombine.high %v2367_v49, %v2375_v50 }
 0x221   :  { %2270 = vmatpush1.bf16.msra.mxu1 %v10151_v55  ;;  %2189 = vmatprep.subr.bf16.mxu0 %v10158_v56  ;;  %v2382_v55 = vld [vmem:[%s15650_s7 + $0x280] sm:$0xff] }
 0x222   :  { %2271 = vmatprep.subr.bf16.mxu1 %v10160_v57  ;;  %v2390_v56 = vld [vmem:[%s15650_s7 + $0x2c0] sm:$0xff]  ;;  %v2383_v57 = vld [vmem:[%s15650_s7 + $0x288] sm:$0xff] }
 0x223   :  { %v10258_v62 = vcombine.high %v2382_v55, %v2390_v56  ;;  %v10257_v4 = vcombine.low %v2382_v55, %v2390_v56  ;;  %v10259_v5 = vcombine.low %v2383_v57, %v2391_v58  ;;  %v2503_v55 = vld [vmem:[%s15650_s7 + $0x648] sm:$0xff] }
 0x224   :  { %2190 = vmatpush1.bf16.msra.mxu0 %v10157_v63  ;;  %v10260_v63 = vcombine.high %v2383_v57, %v2391_v58 }
 0x225   :  { %2272 = vmatpush1.bf16.msra.mxu1 %v10159_v0  ;;  %2191 = vmatprep.subr.bf16.mxu0 %v10166_v1  ;;  %v2398_v0 = vld [vmem:[%s15650_s7 + $0x300] sm:$0xff] }
 0x226   :  { %2273 = vmatprep.subr.bf16.mxu1 %v10168_v2  ;;  %v2406_v1 = vld [vmem:[%s15650_s7 + $0x340] sm:$0xff]  ;;  %v2399_v2 = vld [vmem:[%s15650_s7 + $0x308] sm:$0xff] }
 0x227   :  { %v10274_v6 = vcombine.high %v2398_v0, %v2406_v1  ;;  %v10273_v13 = vcombine.low %v2398_v0, %v2406_v1  ;;  %v10275_v14 = vcombine.low %v2399_v2, %v2407_v3  ;;  %v2519_v0 = vld [vmem:[%s15650_s7 + $0x6c8] sm:$0xff] }
 0x228   :  { %2192 = vmatpush1.bf16.msra.mxu0 %v10165_v7  ;;  %v10276_v7 = vcombine.high %v2399_v2, %v2407_v3 }
 0x229   :  { %2274 = vmatpush1.bf16.msra.mxu1 %v10167_v8  ;;  %2193 = vmatprep.subr.bf16.mxu0 %v10174_v11  ;;  %v2414_v8 = vld [vmem:[%s15650_s7 + $0x380] sm:$0xff] }
 0x22a   :  { %2275 = vmatprep.subr.bf16.mxu1 %v10176_v32  ;;  %v2422_v11 = vld [vmem:[%s15650_s7 + $0x3c0] sm:$0xff]  ;;  %v2415_v32 = vld [vmem:[%s15650_s7 + $0x388] sm:$0xff] }
 0x22b   :  { %v10290_v16 = vcombine.high %v2414_v8, %v2422_v11  ;;  %v10289_v22 = vcombine.low %v2414_v8, %v2422_v11  ;;  %v10291_v23 = vcombine.low %v2415_v32, %v2423_v12  ;;  %v2535_v8 = vld [vmem:[%s15650_s7 + $0x748] sm:$0xff] }
 0x22c   :  { %2194 = vmatpush1.bf16.msra.mxu0 %v10173_v17  ;;  %v10292_v17 = vcombine.high %v2415_v32, %v2423_v12 }
 0x22d   :  { %2276 = vmatpush1.bf16.msra.mxu1 %v10175_v18  ;;  %8530 = vmatprep.subr.bf16.mxu0 %v10178_v19  ;;  %v2430_v18 = vld [vmem:[%s15650_s7 + $0x400] sm:$0xff] }
 0x22e   :  { %8694 = vmatprep.subr.bf16.mxu1 %v10180_v20  ;;  %v2438_v19 = vld [vmem:[%s15650_s7 + $0x440] sm:$0xff]  ;;  %v2431_v20 = vld [vmem:[%s15650_s7 + $0x408] sm:$0xff] }
 0x22f   :  { %2196 = vmatmul.mubr.bf16.vlgmr.msra.gmra.mrb[8].mxu0 %v12031_v59  ;;  %v10306_v24 = vcombine.high %v2430_v18, %v2438_v19  ;;  %v10305_v28 = vcombine.low %v2430_v18, %v2438_v19  ;;  %v10307_v29 = vcombine.low %v2431_v20, %v2439_v21  ;;  %v2551_v18 = vld [vmem:[%s15650_s7 + $0x7c8] sm:$0xff] }
 0x230   :  { %2278 = vmatmul.mubr.bf16.vlgmr.msra.gmra.mrb[8].mxu1 %v12031_v59  ;;  %8531 = vmatpush1.bf16.msra.mxu0 %v10177_v25  ;;  %v2351_v59 = vld [vmem:[%s15650_s7 + $0x188] sm:$0xff]  ;;  %v10308_v25 = vcombine.high %v2431_v20, %v2439_v21 }
 0x231   :  { %8695 = vmatpush1.bf16.msra.mxu1 %v10179_v26  ;;  %8532 = vmatprep.subr.bf16.mxu0 %v10194_v33  ;;  %v10228_v43 = vcombine.high %v2351_v59, %v2359_v38  ;;  %v10227_v52 = vcombine.low %v2351_v59, %v2359_v38  ;;  %v2446_v26 = vld [vmem:[%s15650_s7 + $0x480] sm:$0xff] }
 0x232   :  { %8696 = vmatprep.subr.bf16.mxu1 %v10196_v27  ;;  %v2454_v33 = vld [vmem:[%s15650_s7 + $0x4c0] sm:$0xff]  ;;  %v2447_v27 = vld [vmem:[%s15650_s7 + $0x488] sm:$0xff] }
 0x233   :  { %v10322_v30 = vcombine.high %v2446_v26, %v2454_v33  ;;  %v10321_v37 = vcombine.low %v2446_v26, %v2454_v33  ;;  %v10323_v59 = vcombine.low %v2447_v27, %v2455_v40  ;;  %v2567_v26 = vld [vmem:[%s15650_s7 + $0x848] sm:$0xff] }
 0x234   :  { %8533 = vmatpush1.bf16.msra.mxu0 %v10193_v31  ;;  %v10324_v31 = vcombine.high %v2447_v27, %v2455_v40 }
 0x235   :  { %8697 = vmatpush1.bf16.msra.mxu1 %v10195_v34  ;;  %8534 = vmatprep.subr.bf16.mxu0 %v10210_v35  ;;  %v2462_v34 = vld [vmem:[%s15650_s7 + $0x500] sm:$0xff] }
 0x236   :  { %8698 = vmatprep.subr.bf16.mxu1 %v10212_v9  ;;  %v2470_v35 = vld [vmem:[%s15650_s7 + $0x540] sm:$0xff]  ;;  %v2463_v9 = vld [vmem:[%s15650_s7 + $0x508] sm:$0xff] }
 0x237   :  { %v10338_v38 = vcombine.high %v2462_v34, %v2470_v35  ;;  %v10337_v15 = vcombine.low %v2462_v34, %v2470_v35  ;;  %v10339_v49 = vcombine.low %v2463_v9, %v2471_v36 }
 0x238   :  { %8535 = vmatpush1.bf16.msra.mxu0 %v10209_v39  ;;  %v10340_v39 = vcombine.high %v2463_v9, %v2471_v36 }
 0x239   :  { %8699 = vmatpush1.bf16.msra.mxu1 %v10211_v41  ;;  %8536 = vmatprep.subr.bf16.mxu0 %v10226_v42  ;;  %v2478_v41 = vld [vmem:[%s15650_s7 + $0x580] sm:$0xff] }
 0x23a   :  { %8700 = vmatprep.subr.bf16.mxu1 %v10228_v43  ;;  %v2486_v42 = vld [vmem:[%s15650_s7 + $0x5c0] sm:$0xff]  ;;  %v2479_v43 = vld [vmem:[%s15650_s7 + $0x588] sm:$0xff] }
 0x23b   :  { %v10354_v50 = vcombine.high %v2478_v41, %v2486_v42  ;;  %v10353_v56 = vcombine.low %v2478_v41, %v2486_v42  ;;  %v10355_v57 = vcombine.low %v2479_v43, %v2487_v44 }
 0x23c   :  { %8537 = vmatpush1.bf16.msra.mxu0 %v10225_v51  ;;  %v10356_v51 = vcombine.high %v2479_v43, %v2487_v44 }
 0x23d   :  { %8701 = vmatpush1.bf16.msra.mxu1 %v10227_v52  ;;  %8538 = vmatprep.subr.bf16.mxu0 %v10242_v53  ;;  %v2494_v52 = vld [vmem:[%s15650_s7 + $0x600] sm:$0xff] }
 0x23e   :  { %8702 = vmatprep.subr.bf16.mxu1 %v10244_v54  ;;  %v2502_v53 = vld [vmem:[%s15650_s7 + $0x640] sm:$0xff]  ;;  %v2495_v54 = vld [vmem:[%s15650_s7 + $0x608] sm:$0xff] }
 0x23f   :  { %v10370_v58 = vcombine.high %v2494_v52, %v2502_v53  ;;  %v10369_v1 = vcombine.low %v2494_v52, %v2502_v53  ;;  %v10371_v2 = vcombine.low %v2495_v54, %v2503_v55  ;;  %v2582_v52 = vld [vmem:[%s15650_s7 + $0x8c0] sm:$0xff]  ;;  %v2575_v53 = vld [vmem:[%s15650_s7 + $0x888] sm:$0xff] }
 0x240   :  { %8539 = vmatpush1.bf16.msra.mxu0 %v10241_v60  ;;  %v10372_v60 = vcombine.high %v2495_v54, %v2503_v55  ;;  %v2583_v54 = vld [vmem:[%s15650_s7 + $0x8c8] sm:$0xff] }
 0x241   :  { %8703 = vmatpush1.bf16.msra.mxu1 %v10243_v61  ;;  %8540 = vmatprep.subr.bf16.mxu0 %v10258_v62  ;;  %v2510_v61 = vld [vmem:[%s15650_s7 + $0x680] sm:$0xff] }
 0x242   :  { %8704 = vmatprep.subr.bf16.mxu1 %v10260_v63  ;;  %v2518_v62 = vld [vmem:[%s15650_s7 + $0x6c0] sm:$0xff]  ;;  %v2511_v63 = vld [vmem:[%s15650_s7 + $0x688] sm:$0xff] }
 0x243   :  { %v10386_v3 = vcombine.high %v2510_v61, %v2518_v62  ;;  %v10385_v11 = vcombine.low %v2510_v61, %v2518_v62  ;;  %v10387_v32 = vcombine.low %v2511_v63, %v2519_v0  ;;  %v10452_v62 = vcombine.high %v2575_v53, %v2583_v54 }
 0x244   :  { %8541 = vmatpush1.bf16.msra.mxu0 %v10257_v4  ;;  %v10388_v4 = vcombine.high %v2511_v63, %v2519_v0  ;;  %v2598_v63 = vld [vmem:[%s15650_s7 + $0x940] sm:$0xff]  ;;  %v2591_v0 = vld [vmem:[%s15650_s7 + $0x908] sm:$0xff] }
 0x245   :  { %8705 = vmatpush1.bf16.msra.mxu1 %v10259_v5  ;;  %8542 = vmatprep.subr.bf16.mxu0 %v10274_v6  ;;  %v2526_v5 = vld [vmem:[%s15650_s7 + $0x700] sm:$0xff] }
 0x246   :  { %8706 = vmatprep.subr.bf16.mxu1 %v10276_v7  ;;  %v2534_v6 = vld [vmem:[%s15650_s7 + $0x740] sm:$0xff]  ;;  %v2527_v7 = vld [vmem:[%s15650_s7 + $0x708] sm:$0xff] }
 0x247   :  { %v10402_v12 = vcombine.high %v2526_v5, %v2534_v6  ;;  %v10401_v19 = vcombine.low %v2526_v5, %v2534_v6  ;;  %v10403_v20 = vcombine.low %v2527_v7, %v2535_v8 }
 0x248   :  { %8543 = vmatpush1.bf16.msra.mxu0 %v10273_v13  ;;  %v10404_v13 = vcombine.high %v2527_v7, %v2535_v8  ;;  %v2606_v7 = vld [vmem:[%s15650_s7 + $0x980] sm:$0xff] }
 0x249   :  { %8707 = vmatpush1.bf16.msra.mxu1 %v10275_v14  ;;  %8544 = vmatprep.subr.bf16.mxu0 %v10290_v16  ;;  %v2542_v14 = vld [vmem:[%s15650_s7 + $0x780] sm:$0xff] }
 0x24a   :  { %8708 = vmatprep.subr.bf16.mxu1 %v10292_v17  ;;  %v2550_v16 = vld [vmem:[%s15650_s7 + $0x7c0] sm:$0xff]  ;;  %v2543_v17 = vld [vmem:[%s15650_s7 + $0x788] sm:$0xff] }
 0x24b   :  { %v10418_v21 = vcombine.high %v2542_v14, %v2550_v16  ;;  %v10417_v33 = vcombine.low %v2542_v14, %v2550_v16  ;;  %v10419_v27 = vcombine.low %v2543_v17, %v2551_v18  ;;  %v2614_v8 = vld [vmem:[%s15650_s7 + $0x9c0] sm:$0xff] }
 0x24c   :  { %8545 = vmatpush1.bf16.msra.mxu0 %v10289_v22  ;;  %v10420_v22 = vcombine.high %v2543_v17, %v2551_v18  ;;  %v10482_v14 = vcombine.high %v2606_v7, %v2614_v8  ;;  %v2622_v17 = vld [vmem:[%s15650_s7 + $0xa00] sm:$0xff] }
 0x24d   :  { %8709 = vmatpush1.bf16.msra.mxu1 %v10291_v23  ;;  %8546 = vmatprep.subr.bf16.mxu0 %v10306_v24  ;;  %v2558_v23 = vld [vmem:[%s15650_s7 + $0x800] sm:$0xff] }
 0x24e   :  { %8710 = vmatprep.subr.bf16.mxu1 %v10308_v25  ;;  %v2566_v24 = vld [vmem:[%s15650_s7 + $0x840] sm:$0xff]  ;;  %v2559_v25 = vld [vmem:[%s15650_s7 + $0x808] sm:$0xff] }
 0x24f   :  { %v10434_v40 = vcombine.high %v2558_v23, %v2566_v24  ;;  %v2630_v18 = vld [vmem:[%s15650_s7 + $0xa40] sm:$0xff] }
 0x250   :  { %8547 = vmatpush1.bf16.msra.mxu0 %v10305_v28  ;;  %v10436_v28 = vcombine.high %v2559_v25, %v2567_v26 }
 0x251   :  { %8711 = vmatpush1.bf16.msra.mxu1 %v10307_v29  ;;  %8548 = vmatprep.subr.bf16.mxu0 %v10322_v30  ;;  %v12610_v29 = vld [vmem:[%s15649_s6] sm:$0xff] }
 0x252   :  { %8712 = vmatprep.subr.bf16.mxu1 %v10324_v31  ;;  %v641_v30 = vrot.slane %v12610_v29, %v11587_v46  ;;  %v645_v31 = vrot.slane %v12610_v29, %v11590_v47  ;;  %v653_v34 = vrot.slane %v12610_v29, %v11802_v10 }
 0x254   :  { %8549 = vmatpush1.bf16.msra.mxu0 %v10321_v37 }
 0x255   :  { %8713 = vmatpush1.bf16.msra.mxu1 %v10323_v59  ;;  %8550 = vmatprep.subr.bf16.mxu0 %v10338_v38 }
 0x256   :  { %8714 = vmatprep.subr.bf16.mxu1 %v10340_v39 }
 0x258   :  { %8551 = vmatpush1.bf16.msra.mxu0 %v10337_v15 }
 0x259   :  { %8715 = vmatpush1.bf16.msra.mxu1 %v10339_v49  ;;  %8552 = vmatprep.subr.bf16.mxu0 %v10354_v50  ;;  %v2574_v50 = vld [vmem:[%s15650_s7 + $0x880] sm:$0xff] }
 0x25a   :  { %8716 = vmatprep.subr.bf16.mxu1 %v10356_v51  ;;  %v10450_v61 = vcombine.high %v2574_v50, %v2582_v52 }
 0x25c   :  { %8553 = vmatpush1.bf16.msra.mxu0 %v10353_v56  ;;  %v10433_v56 = vcombine.low %v2558_v23, %v2566_v24  ;;  %v10498_v23 = vcombine.high %v2622_v17, %v2630_v18 }
 0x25d   :  { %8717 = vmatpush1.bf16.msra.mxu1 %v10355_v57  ;;  %8554 = vmatprep.subr.bf16.mxu0 %v10370_v58  ;;  %v10435_v57 = vcombine.low %v2559_v25, %v2567_v26  ;;  %v2638_v25 = vld [vmem:[%s15650_s7 + $0xa80] sm:$0xff] }
 0x25e   :  { %8718 = vmatprep.subr.bf16.mxu1 %v10372_v60  ;;  %v2590_v60 = vld [vmem:[%s15650_s7 + $0x900] sm:$0xff] }
 0x25f   :  { %v10466_v5 = vcombine.high %v2590_v60, %v2598_v63  ;;  %v2646_v26 = vld [vmem:[%s15650_s7 + $0xac0] sm:$0xff] }
 0x260   :  { %8555 = vmatpush1.bf16.msra.mxu0 %v10369_v1  ;;  %v2599_v1 = vld [vmem:[%s15650_s7 + $0x948] sm:$0xff] }
 0x261   :  { %8719 = vmatpush1.bf16.msra.mxu1 %v10371_v2  ;;  %8556 = vmatprep.subr.bf16.mxu0 %v10386_v3  ;;  %v10449_v3 = vcombine.low %v2574_v50, %v2582_v52  ;;  %v10468_v6 = vcombine.high %v2591_v0, %v2599_v1 }
 0x262   :  { %8720 = vmatprep.subr.bf16.mxu1 %v10388_v4  ;;  %v10451_v4 = vcombine.low %v2575_v53, %v2583_v54  ;;  %v2686_v53 = vld [vmem:[%s15650_s7 + $0xc00] sm:$0xff] }
 0x263   :  { %v2694_v54 = vld [vmem:[%s15650_s7 + $0xc40] sm:$0xff] }
 0x264   :  { %8557 = vmatpush1.bf16.msra.mxu0 %v10385_v11  ;;  %v2607_v11 = vld [vmem:[%s15650_s7 + $0x988] sm:$0xff] }
 0x265   :  { %8721 = vmatpush1.bf16.msra.mxu1 %v10387_v32  ;;  %8558 = vmatprep.subr.bf16.mxu0 %v10402_v12  ;;  %v2615_v32 = vld [vmem:[%s15650_s7 + $0x9c8] sm:$0xff]  ;;  %v10465_v12 = vcombine.low %v2590_v60, %v2598_v63 }
 0x266   :  { %8722 = vmatprep.subr.bf16.mxu1 %v10404_v13  ;;  %v10467_v13 = vcombine.low %v2591_v0, %v2599_v1  ;;  %v10484_v16 = vcombine.high %v2607_v11, %v2615_v32  ;;  %v2702_v0 = vld [vmem:[%s15650_s7 + $0xc80] sm:$0xff] }
 0x267   :  { %v2710_v1 = vld [vmem:[%s15650_s7 + $0xcc0] sm:$0xff] }
 0x268   :  { %8559 = vmatpush1.bf16.msra.mxu0 %v10401_v19  ;;  %v2623_v19 = vld [vmem:[%s15650_s7 + $0xa08] sm:$0xff] }
 0x269   :  { %8723 = vmatpush1.bf16.msra.mxu1 %v10403_v20  ;;  %8560 = vmatprep.subr.bf16.mxu0 %v10418_v21  ;;  %v2631_v20 = vld [vmem:[%s15650_s7 + $0xa48] sm:$0xff]  ;;  %v10481_v21 = vcombine.low %v2606_v7, %v2614_v8  ;;  %v10578_v7 = vcombine.high %v2702_v0, %v2710_v1 }
 0x26a   :  { %8724 = vmatprep.subr.bf16.mxu1 %v10420_v22  ;;  %v10483_v22 = vcombine.low %v2607_v11, %v2615_v32  ;;  %v10500_v24 = vcombine.high %v2623_v19, %v2631_v20  ;;  %v2718_v11 = vld [vmem:[%s15650_s7 + $0xd00] sm:$0xff] }
 0x26b   :  { %v2726_v32 = vld [vmem:[%s15650_s7 + $0xd40] sm:$0xff] }
 0x26c   :  { %8561 = vmatpush1.bf16.msra.mxu0 %v10417_v33  ;;  %v2639_v33 = vld [vmem:[%s15650_s7 + $0xa88] sm:$0xff] }
 0x26d   :  { %8725 = vmatpush1.bf16.msra.mxu1 %v10419_v27  ;;  %8571 = vmatprep.subr.bf16.mxu0 %v10434_v40  ;;  %v2647_v27 = vld [vmem:[%s15650_s7 + $0xac8] sm:$0xff]  ;;  %v10497_v40 = vcombine.low %v2622_v17, %v2630_v18  ;;  %v10594_v17 = vcombine.high %v2718_v11, %v2726_v32 }
 0x26e   :  { %8735 = vmatprep.subr.bf16.mxu1 %v10436_v28  ;;  %v10499_v28 = vcombine.low %v2623_v19, %v2631_v20  ;;  %v2734_v19 = vld [vmem:[%s15650_s7 + $0xd80] sm:$0xff] }
 0x26f   :  { %v2742_v20 = vld [vmem:[%s15650_s7 + $0xdc0] sm:$0xff] }
 0x282   :  { %v2033_v35 = vpop.f32.mrb[4].mxu0  ;;  %v12618_v9 = vpop.f32.mrb[4].mxu1 }
 0x283   :  { %v11201_v36 = vadd.f32 %v2033_v35, %v641_v30  ;;  %v2035_v37 = vpop.f32.mrb[5].mxu0  ;;  %v2117_v59 = vpop.f32.mrb[5].mxu1  ;;  %v10514_v30 = vcombine.high %v2638_v25, %v2646_v26  ;;  %v2662_v35 = vld [vmem:[%s15650_s7 + $0xb40] sm:$0xff] }
 0x284   :  { %v11202_v38 = vadd.f32 %v2035_v37, %v645_v31  ;;  %v11204_v39 = vadd.f32 %v2117_v59, %v653_v34  ;;  %v2037_v41 = vpop.f32.mrb[6].mxu0  ;;  %v2119_v42 = vpop.f32.mrb[6].mxu1  ;;  %v10516_v31 = vcombine.high %v2639_v33, %v2647_v27  ;;  %v2654_v34 = vld [vmem:[%s15650_s7 + $0xb00] sm:$0xff]  ;;  %v2663_v37 = vld [vmem:[%s15650_s7 + $0xb48] sm:$0xff]  ;;  %v10513_v59 = vcombine.low %v2638_v25, %v2646_v26 }
 0x285   :  { %v2286_v43 = vmax.f32 %v11201_v36, 0.0  ;;  %v2038_v44 = vpop.f32.mrb[7].mxu0  ;;  %v2120_v15 = vpop.f32.mrb[7].mxu1  ;;  %v2655_v36 = vld [vmem:[%s15650_s7 + $0xb08] sm:$0xff]  ;;  %v2670_v42 = vld [vmem:[%s15650_s7 + $0xb80] sm:$0xff]  ;;  %v10610_v25 = vcombine.high %v2734_v19, %v2742_v20 }
 0x286   :  { %v2287_v49 = vmax.f32 %v11202_v38, 0.0  ;;  %v2289_v51 = vmax.f32 %v11204_v39, 0.0  ;;  %v10515_v38 = vcombine.low %v2639_v33, %v2647_v27  ;;  %v10530_v39 = vcombine.high %v2654_v34, %v2662_v35  ;;  %v2671_v44 = vld [vmem:[%s15650_s7 + $0xb88] sm:$0xff]  ;;  %v2750_v33 = vld [vmem:[%s15650_s7 + $0xe00] sm:$0xff] }
 0x287   :  { %v12634_v58 = vpack.c.bf16 %v2286_v43, %v2286_v43  ;;  %v10532_v41 = vcombine.high %v2655_v36, %v2663_v37  ;;  %v2678_v43 = vld [vmem:[%s15650_s7 + $0xbc0] sm:$0xff]  ;;  %v2679_v15 = vld [vmem:[%s15650_s7 + $0xbc8] sm:$0xff]  ;;  %v10531_v50 = vcombine.low %v2655_v36, %v2663_v37 }
 0x288   :  { %v12632_v55 = vpack.c.bf16 %v2287_v49, %v2287_v49  ;;  %v12650_v2 = vpack.c.bf16 %v2289_v51, %v2289_v51  ;;  %v10529_v49 = vcombine.low %v2654_v34, %v2662_v35  ;;  %v10546_v51 = vcombine.high %v2670_v42, %v2678_v43  ;;  %v2758_v27 = vld [vmem:[%s15650_s7 + $0xe40] sm:$0xff] }
 0x289   :  { %v10548_v52 = vcombine.high %v2671_v44, %v2679_v15  ;;  %v10545_v60 = vcombine.low %v2670_v42, %v2678_v43  ;;  %v10626_v34 = vcombine.high %v2750_v33, %v2758_v27  ;;  %v2766_v36 = vld [vmem:[%s15650_s7 + $0xe80] sm:$0xff] }
 0x28a   :  { %8562 = vmatprep.mubr.bf16.mxu0 %v12632_v55  ;;  %8726 = vmatprep.mubr.bf16.mxu1 %v12632_v55  ;;  %v2774_v37 = vld [vmem:[%s15650_s7 + $0xec0] sm:$0xff] }
 0x28b   :  { %8563 = vmatmul.mubr.bf16.vlgmr.msra.gmra.mrb[12].mxu0 %v12634_v58  ;;  %8727 = vmatmul.mubr.bf16.vlgmr.msra.gmra.mrb[12].mxu1 %v12634_v58  ;;  %v10642_v42 = vcombine.high %v2766_v36, %v2774_v37 }
 0x28c   :  { %8572 = vmatpush1.bf16.msra.mxu0 %v10433_v56  ;;  %8736 = vmatpush1.bf16.msra.mxu1 %v10435_v57  ;;  %v2687_v56 = vld [vmem:[%s15650_s7 + $0xc08] sm:$0xff] }
 0x28d   :  { %8603 = vmatprep.mubr.bf16.mxu0 %v12650_v2  ;;  %8767 = vmatprep.mubr.bf16.mxu1 %v12650_v2  ;;  %v2695_v57 = vld [vmem:[%s15650_s7 + $0xc48] sm:$0xff] }
 0x28e   :  { %8573 = vmatprep.subr.bf16.mxu0 %v10450_v61  ;;  %8737 = vmatprep.subr.bf16.mxu1 %v10452_v62  ;;  %v10547_v61 = vcombine.low %v2671_v44, %v2679_v15  ;;  %v10562_v62 = vcombine.high %v2686_v53, %v2694_v54  ;;  %v10564_v63 = vcombine.high %v2687_v56, %v2695_v57  ;;  %v2782_v44 = vld [vmem:[%s15650_s7 + $0xf00] sm:$0xff] }
 0x28f   :  { %v2790_v15 = vld [vmem:[%s15650_s7 + $0xf40] sm:$0xff] }
 0x290   :  { %8574 = vmatpush1.bf16.msra.mxu0 %v10449_v3  ;;  %8738 = vmatpush1.bf16.msra.mxu1 %v10451_v4  ;;  %v2703_v3 = vld [vmem:[%s15650_s7 + $0xc88] sm:$0xff] }
 0x291   :  { %8575 = vmatprep.subr.bf16.mxu0 %v10466_v5  ;;  %8739 = vmatprep.subr.bf16.mxu1 %v10468_v6  ;;  %v2711_v4 = vld [vmem:[%s15650_s7 + $0xcc8] sm:$0xff]  ;;  %v10561_v5 = vcombine.low %v2686_v53, %v2694_v54  ;;  %v10563_v6 = vcombine.low %v2687_v56, %v2695_v57  ;;  %v649_v53 = vrot.slane %v12610_v29, %v11593_v48  ;;  %v2798_v57 = vld [vmem:[%s15650_s7 + $0xf80] sm:$0xff] }
 0x292   :  { %v10580_v8 = vcombine.high %v2703_v3, %v2711_v4  ;;  %v10658_v54 = vcombine.high %v2782_v44, %v2790_v15 }
 0x294   :  { %8576 = vmatpush1.bf16.msra.mxu0 %v10465_v12  ;;  %8740 = vmatpush1.bf16.msra.mxu1 %v10467_v13  ;;  %v2719_v12 = vld [vmem:[%s15650_s7 + $0xd08] sm:$0xff] }
 0x295   :  { %8577 = vmatprep.subr.bf16.mxu0 %v10482_v14  ;;  %8741 = vmatprep.subr.bf16.mxu1 %v10484_v16  ;;  %v2727_v13 = vld [vmem:[%s15650_s7 + $0xd48] sm:$0xff]  ;;  %v10577_v14 = vcombine.low %v2702_v0, %v2710_v1  ;;  %v10579_v16 = vcombine.low %v2703_v3, %v2711_v4  ;;  %v11203_v1 = vadd.f32 %v12618_v9, %v649_v53  ;;  %v2902_v53 = vld [vmem:[%s15650_s7 + $0x12c0] sm:$0xff] }
 0x296   :  { %v10596_v18 = vcombine.high %v2719_v12, %v2727_v13  ;;  %v2823_v9 = vld [vmem:[%s15650_s7 + $0x1048] sm:$0xff] }
 0x298   :  { %8578 = vmatpush1.bf16.msra.mxu0 %v10481_v21  ;;  %8742 = vmatpush1.bf16.msra.mxu1 %v10483_v22  ;;  %v2735_v21 = vld [vmem:[%s15650_s7 + $0xd88] sm:$0xff] }
 0x299   :  { %8579 = vmatprep.subr.bf16.mxu0 %v10498_v23  ;;  %8743 = vmatprep.subr.bf16.mxu1 %v10500_v24  ;;  %v2743_v22 = vld [vmem:[%s15650_s7 + $0xdc8] sm:$0xff]  ;;  %v10593_v23 = vcombine.low %v2718_v11, %v2726_v32  ;;  %v10595_v24 = vcombine.low %v2719_v12, %v2727_v13  ;;  %v2288_v32 = vmax.f32 %v11203_v1, 0.0 }
 0x29a   :  { %v10612_v26 = vcombine.high %v2735_v21, %v2743_v22  ;;  %v2911_v1 = vld [vmem:[%s15650_s7 + $0x1308] sm:$0xff] }
 0x29c   :  { %8580 = vmatpush1.bf16.msra.mxu0 %v10497_v40  ;;  %8744 = vmatpush1.bf16.msra.mxu1 %v10499_v28  ;;  %v2751_v40 = vld [vmem:[%s15650_s7 + $0xe08] sm:$0xff] }
 0x29d   :  { %8581 = vmatprep.subr.bf16.mxu0 %v10514_v30  ;;  %8745 = vmatprep.subr.bf16.mxu1 %v10516_v31  ;;  %v2759_v28 = vld [vmem:[%s15650_s7 + $0xe48] sm:$0xff]  ;;  %v10609_v30 = vcombine.low %v2734_v19, %v2742_v20  ;;  %v10611_v31 = vcombine.low %v2735_v21, %v2743_v22  ;;  %v12839_v21 = vpack.c.bf16 %v2288_v32, %v2288_v32 }
 0x29e   :  { %v10628_v35 = vcombine.high %v2751_v40, %v2759_v28  ;;  %v2935_v32 = vld [vmem:[%s15650_s7 + $0x13c8] sm:$0xff] }
 0x2a0   :  { %8582 = vmatpush1.bf16.msra.mxu0 %v10513_v59  ;;  %8746 = vmatpush1.bf16.msra.mxu1 %v10515_v38  ;;  %v2767_v59 = vld [vmem:[%s15650_s7 + $0xe88] sm:$0xff] }
 0x2a1   :  { %8583 = vmatprep.subr.bf16.mxu0 %v10530_v39  ;;  %8747 = vmatprep.subr.bf16.mxu1 %v10532_v41  ;;  %v2775_v38 = vld [vmem:[%s15650_s7 + $0xec8] sm:$0xff]  ;;  %v10625_v39 = vcombine.low %v2750_v33, %v2758_v27  ;;  %v10627_v41 = vcombine.low %v2751_v40, %v2759_v28 }
 0x2a2   :  { %v10644_v43 = vcombine.high %v2767_v59, %v2775_v38  ;;  %v2855_v33 = vld [vmem:[%s15650_s7 + $0x1148] sm:$0xff] }
 0x2a4   :  { %8584 = vmatpush1.bf16.msra.mxu0 %v10529_v49  ;;  %8748 = vmatpush1.bf16.msra.mxu1 %v10531_v50  ;;  %v2783_v49 = vld [vmem:[%s15650_s7 + $0xf08] sm:$0xff] }
 0x2a5   :  { %8585 = vmatprep.subr.bf16.mxu0 %v10546_v51  ;;  %8749 = vmatprep.subr.bf16.mxu1 %v10548_v52  ;;  %v2791_v50 = vld [vmem:[%s15650_s7 + $0xf48] sm:$0xff]  ;;  %v10641_v51 = vcombine.low %v2766_v36, %v2774_v37  ;;  %v10643_v52 = vcombine.low %v2767_v59, %v2775_v38 }
 0x2a6   :  { %v10660_v56 = vcombine.high %v2783_v49, %v2791_v50  ;;  %v10659_v0 = vcombine.low %v2783_v49, %v2791_v50  ;;  %v2871_v36 = vld [vmem:[%s15650_s7 + $0x11c8] sm:$0xff] }
 0x2a8   :  { %8586 = vmatpush1.bf16.msra.mxu0 %v10545_v60  ;;  %8750 = vmatpush1.bf16.msra.mxu1 %v10547_v61  ;;  %v2806_v60 = vld [vmem:[%s15650_s7 + $0xfc0] sm:$0xff]  ;;  %v2799_v61 = vld [vmem:[%s15650_s7 + $0xf88] sm:$0xff] }
 0x2a9   :  { %8587 = vmatprep.subr.bf16.mxu0 %v10562_v62  ;;  %8751 = vmatprep.subr.bf16.mxu1 %v10564_v63  ;;  %v2807_v62 = vld [vmem:[%s15650_s7 + $0xfc8] sm:$0xff]  ;;  %v10657_v63 = vcombine.low %v2782_v44, %v2790_v15  ;;  %v10674_v3 = vcombine.high %v2798_v57, %v2806_v60 }
 0x2aa   :  { %v10676_v4 = vcombine.high %v2799_v61, %v2807_v62  ;;  %v10675_v11 = vcombine.low %v2799_v61, %v2807_v62  ;;  %v2887_v44 = vld [vmem:[%s15650_s7 + $0x1248] sm:$0xff] }
 0x2ac   :  { %8588 = vmatpush1.bf16.msra.mxu0 %v10561_v5  ;;  %8752 = vmatpush1.bf16.msra.mxu1 %v10563_v6  ;;  %v2814_v5 = vld [vmem:[%s15650_s7 + $0x1000] sm:$0xff] }
 0x2ad   :  { %8589 = vmatprep.subr.bf16.mxu0 %v10578_v7  ;;  %8753 = vmatprep.subr.bf16.mxu1 %v10580_v8  ;;  %v2822_v6 = vld [vmem:[%s15650_s7 + $0x1040] sm:$0xff]  ;;  %v2815_v7 = vld [vmem:[%s15650_s7 + $0x1008] sm:$0xff]  ;;  %v10673_v8 = vcombine.low %v2798_v57, %v2806_v60 }
 0x2ae   :  { %v10690_v12 = vcombine.high %v2814_v5, %v2822_v6  ;;  %v10692_v13 = vcombine.high %v2815_v7, %v2823_v9  ;;  %v10689_v19 = vcombine.low %v2814_v5, %v2822_v6  ;;  %v10691_v20 = vcombine.low %v2815_v7, %v2823_v9  ;;  %v2926_v9 = vld [vmem:[%s15650_s7 + $0x1380] sm:$0xff] }
 0x2b0   :  { %8590 = vmatpush1.bf16.msra.mxu0 %v10577_v14  ;;  %8754 = vmatpush1.bf16.msra.mxu1 %v10579_v16  ;;  %v2830_v14 = vld [vmem:[%s15650_s7 + $0x1080] sm:$0xff] }
 0x2b1   :  { %8591 = vmatprep.subr.bf16.mxu0 %v10594_v17  ;;  %8755 = vmatprep.subr.bf16.mxu1 %v10596_v18  ;;  %v2838_v16 = vld [vmem:[%s15650_s7 + $0x10c0] sm:$0xff]  ;;  %v2831_v17 = vld [vmem:[%s15650_s7 + $0x1088] sm:$0xff] }
 0x2b2   :  { %v2839_v18 = vld [vmem:[%s15650_s7 + $0x10c8] sm:$0xff]  ;;  %v10706_v22 = vcombine.high %v2830_v14, %v2838_v16  ;;  %v10705_v27 = vcombine.low %v2830_v14, %v2838_v16 }
 0x2b3   :  { %v10707_v40 = vcombine.low %v2831_v17, %v2839_v18 }
 0x2b4   :  { %8592 = vmatpush1.bf16.msra.mxu0 %v10593_v23  ;;  %8756 = vmatpush1.bf16.msra.mxu1 %v10595_v24  ;;  %v10708_v23 = vcombine.high %v2831_v17, %v2839_v18  ;;  %v2846_v24 = vld [vmem:[%s15650_s7 + $0x1100] sm:$0xff] }
 0x2b5   :  { %8593 = vmatprep.subr.bf16.mxu0 %v10610_v25  ;;  %8757 = vmatprep.subr.bf16.mxu1 %v10612_v26  ;;  %v2854_v25 = vld [vmem:[%s15650_s7 + $0x1140] sm:$0xff]  ;;  %v2847_v26 = vld [vmem:[%s15650_s7 + $0x1108] sm:$0xff] }
 0x2b6   :  { %v10722_v28 = vcombine.high %v2846_v24, %v2854_v25  ;;  %v10721_v37 = vcombine.low %v2846_v24, %v2854_v25  ;;  %v10723_v59 = vcombine.low %v2847_v26, %v2855_v33  ;;  %v2942_v17 = vld [vmem:[%s15650_s7 + $0x1400] sm:$0xff] }
 0x2b7   :  { %v2950_v18 = vld [vmem:[%s15650_s7 + $0x1440] sm:$0xff] }
 0x2b8   :  { %8594 = vmatpush1.bf16.msra.mxu0 %v10609_v30  ;;  %8758 = vmatpush1.bf16.msra.mxu1 %v10611_v31  ;;  %v10724_v30 = vcombine.high %v2847_v26, %v2855_v33  ;;  %v2862_v31 = vld [vmem:[%s15650_s7 + $0x1180] sm:$0xff]  ;;  %v10818_v24 = vcombine.high %v2942_v17, %v2950_v18 }
 0x2b9   :  { %8595 = vmatprep.subr.bf16.mxu0 %v10626_v34  ;;  %8759 = vmatprep.subr.bf16.mxu1 %v10628_v35  ;;  %v2870_v34 = vld [vmem:[%s15650_s7 + $0x11c0] sm:$0xff]  ;;  %v2863_v35 = vld [vmem:[%s15650_s7 + $0x1188] sm:$0xff] }
 0x2ba   :  { %v10738_v38 = vcombine.high %v2862_v31, %v2870_v34  ;;  %v10737_v15 = vcombine.low %v2862_v31, %v2870_v34  ;;  %v10739_v49 = vcombine.low %v2863_v35, %v2871_v36  ;;  %v2958_v26 = vld [vmem:[%s15650_s7 + $0x1480] sm:$0xff] }
 0x2bb   :  { %v2966_v33 = vld [vmem:[%s15650_s7 + $0x14c0] sm:$0xff] }
 0x2bc   :  { %8596 = vmatpush1.bf16.msra.mxu0 %v10625_v39  ;;  %8760 = vmatpush1.bf16.msra.mxu1 %v10627_v41  ;;  %v10740_v39 = vcombine.high %v2863_v35, %v2871_v36  ;;  %v2878_v41 = vld [vmem:[%s15650_s7 + $0x1200] sm:$0xff]  ;;  %v10834_v31 = vcombine.high %v2958_v26, %v2966_v33 }
 0x2bd   :  { %8597 = vmatprep.subr.bf16.mxu0 %v10642_v42  ;;  %8761 = vmatprep.subr.bf16.mxu1 %v10644_v43  ;;  %v2886_v42 = vld [vmem:[%s15650_s7 + $0x1240] sm:$0xff]  ;;  %v2879_v43 = vld [vmem:[%s15650_s7 + $0x1208] sm:$0xff] }
 0x2be   :  { %v10754_v50 = vcombine.high %v2878_v41, %v2886_v42  ;;  %v10753_v57 = vcombine.low %v2878_v41, %v2886_v42  ;;  %v10755_v60 = vcombine.low %v2879_v43, %v2887_v44  ;;  %v2974_v35 = vld [vmem:[%s15650_s7 + $0x1500] sm:$0xff] }
 0x2bf   :  { %v2982_v36 = vld [vmem:[%s15650_s7 + $0x1540] sm:$0xff] }
 0x2c0   :  { %8598 = vmatpush1.bf16.msra.mxu0 %v10641_v51  ;;  %8762 = vmatpush1.bf16.msra.mxu1 %v10643_v52  ;;  %v10756_v51 = vcombine.high %v2879_v43, %v2887_v44  ;;  %v2894_v52 = vld [vmem:[%s15650_s7 + $0x1280] sm:$0xff]  ;;  %v10850_v41 = vcombine.high %v2974_v35, %v2982_v36 }
 0x2c1   :  { %8599 = vmatprep.subr.bf16.mxu0 %v10658_v54  ;;  %8763 = vmatprep.subr.bf16.mxu1 %v10660_v56  ;;  %v2895_v54 = vld [vmem:[%s15650_s7 + $0x1288] sm:$0xff]  ;;  %v10770_v61 = vcombine.high %v2894_v52, %v2902_v53  ;;  %v2990_v43 = vld [vmem:[%s15650_s7 + $0x1580] sm:$0xff] }
 0x2c2   :  { %v2903_v56 = vld [vmem:[%s15650_s7 + $0x12c8] sm:$0xff]  ;;  %v2998_v44 = vld [vmem:[%s15650_s7 + $0x15c0] sm:$0xff] }
 0x2c3   :  { %v10772_v62 = vcombine.high %v2895_v54, %v2903_v56  ;;  %v10771_v5 = vcombine.low %v2895_v54, %v2903_v56  ;;  %v3006_v54 = vld [vmem:[%s15650_s7 + $0x1600] sm:$0xff] }
 0x2c4   :  { %8600 = vmatpush1.bf16.msra.mxu0 %v10657_v63  ;;  %8764 = vmatpush1.bf16.msra.mxu1 %v10659_v0  ;;  %v2910_v63 = vld [vmem:[%s15650_s7 + $0x1300] sm:$0xff] }
 0x2c5   :  { %8601 = vmatprep.subr.bf16.mxu0 %v10674_v3  ;;  %8765 = vmatprep.subr.bf16.mxu1 %v10676_v4  ;;  %v2918_v0 = vld [vmem:[%s15650_s7 + $0x1340] sm:$0xff]  ;;  %v2919_v3 = vld [vmem:[%s15650_s7 + $0x1348] sm:$0xff]  ;;  %v10769_v4 = vcombine.low %v2894_v52, %v2902_v53  ;;  %v10866_v52 = vcombine.high %v2990_v43, %v2998_v44 }
 0x2c6   :  { %v10786_v6 = vcombine.high %v2910_v63, %v2918_v0  ;;  %v10788_v7 = vcombine.high %v2911_v1, %v2919_v3  ;;  %v3014_v56 = vld [vmem:[%s15650_s7 + $0x1640] sm:$0xff] }
 0x2c8   :  { %8602 = vmatpush1.bf16.msra.mxu0 %v10673_v8  ;;  %8766 = vmatpush1.bf16.msra.mxu1 %v10675_v11  ;;  %v2934_v8 = vld [vmem:[%s15650_s7 + $0x13c0] sm:$0xff]  ;;  %v2927_v11 = vld [vmem:[%s15650_s7 + $0x1388] sm:$0xff] }
 0x2c9   :  { %8612 = vmatprep.subr.bf16.mxu0 %v10690_v12  ;;  %8776 = vmatprep.subr.bf16.mxu1 %v10692_v13  ;;  %v10785_v12 = vcombine.low %v2910_v63, %v2918_v0  ;;  %v10787_v13 = vcombine.low %v2911_v1, %v2919_v3  ;;  %v10802_v14 = vcombine.high %v2926_v9, %v2934_v8  ;;  %v3022_v1 = vld [vmem:[%s15650_s7 + $0x1680] sm:$0xff] }
 0x2ca   :  { %v10804_v16 = vcombine.high %v2927_v11, %v2935_v32  ;;  %v10882_v63 = vcombine.high %v3006_v54, %v3014_v56  ;;  %v3030_v3 = vld [vmem:[%s15650_s7 + $0x16c0] sm:$0xff] }
 0x2cb   :  { %8604 = vmatmul.mubr.bf16.vlgmr.msra.gmra.mrb[12].mxu0 %v12839_v21  ;;  %8768 = vmatmul.mubr.bf16.vlgmr.msra.gmra.mrb[12].mxu1 %v12839_v21 }
 0x2cc   :  { %8613 = vmatpush1.bf16.msra.mxu0 %v10689_v19  ;;  %8777 = vmatpush1.bf16.msra.mxu1 %v10691_v20  ;;  %v2943_v19 = vld [vmem:[%s15650_s7 + $0x1408] sm:$0xff] }
 0x2cd   :  { %8614 = vmatprep.subr.bf16.mxu0 %v10706_v22  ;;  %8778 = vmatprep.subr.bf16.mxu1 %v10708_v23  ;;  %v2951_v20 = vld [vmem:[%s15650_s7 + $0x1448] sm:$0xff]  ;;  %v10801_v22 = vcombine.low %v2926_v9, %v2934_v8  ;;  %v10803_v23 = vcombine.low %v2927_v11, %v2935_v32  ;;  %v10898_v9 = vcombine.high %v3022_v1, %v3030_v3  ;;  %v3038_v11 = vld [vmem:[%s15650_s7 + $0x1700] sm:$0xff] }
 0x2ce   :  { %v10820_v25 = vcombine.high %v2943_v19, %v2951_v20  ;;  %v3046_v32 = vld [vmem:[%s15650_s7 + $0x1740] sm:$0xff] }
 0x2d0   :  { %8615 = vmatpush1.bf16.msra.mxu0 %v10705_v27  ;;  %8779 = vmatpush1.bf16.msra.mxu1 %v10707_v40  ;;  %v2959_v27 = vld [vmem:[%s15650_s7 + $0x1488] sm:$0xff] }
 0x2d1   :  { %8616 = vmatprep.subr.bf16.mxu0 %v10722_v28  ;;  %8780 = vmatprep.subr.bf16.mxu1 %v10724_v30  ;;  %v2967_v40 = vld [vmem:[%s15650_s7 + $0x14c8] sm:$0xff]  ;;  %v10817_v28 = vcombine.low %v2942_v17, %v2950_v18  ;;  %v10819_v30 = vcombine.low %v2943_v19, %v2951_v20  ;;  %v13003_v18 = vsub.s32 5, %v11584_v45  ;;  %v10914_v19 = vcombine.high %v3038_v11, %v3046_v32 }
 0x2d2   :  { %v10836_v34 = vcombine.high %v2959_v27, %v2967_v40 }
 0x2d4   :  { %8617 = vmatpush1.bf16.msra.mxu0 %v10721_v37  ;;  %8781 = vmatpush1.bf16.msra.mxu1 %v10723_v59  ;;  %v2975_v37 = vld [vmem:[%s15650_s7 + $0x1508] sm:$0xff] }
 0x2d5   :  { %8618 = vmatprep.subr.bf16.mxu0 %v10738_v38  ;;  %8782 = vmatprep.subr.bf16.mxu1 %v10740_v39  ;;  %v2983_v59 = vld [vmem:[%s15650_s7 + $0x1548] sm:$0xff]  ;;  %v10833_v38 = vcombine.low %v2958_v26, %v2966_v33  ;;  %v10835_v39 = vcombine.low %v2959_v27, %v2967_v40  ;;  %v10913_v27 = vcombine.low %v3038_v11, %v3046_v32  ;;  %v3110_v11 = vld [vmem:[%s15650_s7 + $0x1940] sm:$0xff] }
 0x2d6   :  { %v10852_v42 = vcombine.high %v2975_v37, %v2983_v59  ;;  %v3063_v26 = vld [vmem:[%s15650_s7 + $0x17c8] sm:$0xff] }
 0x2d7   :  { %v3103_v32 = vld [vmem:[%s15650_s7 + $0x1908] sm:$0xff] }
 0x2d8   :  { %8619 = vmatpush1.bf16.msra.mxu0 %v10737_v15  ;;  %8783 = vmatpush1.bf16.msra.mxu1 %v10739_v49  ;;  %v2991_v15 = vld [vmem:[%s15650_s7 + $0x1588] sm:$0xff] }
 0x2d9   :  { %8620 = vmatprep.subr.bf16.mxu0 %v10754_v50  ;;  %8784 = vmatprep.subr.bf16.mxu1 %v10756_v51  ;;  %v2999_v49 = vld [vmem:[%s15650_s7 + $0x15c8] sm:$0xff]  ;;  %v10849_v50 = vcombine.low %v2974_v35, %v2982_v36  ;;  %v10851_v51 = vcombine.low %v2975_v37, %v2983_v59  ;;  %v3070_v35 = vld [vmem:[%s15650_s7 + $0x1800] sm:$0xff] }
 0x2da   :  { %v10868_v53 = vcombine.high %v2991_v15, %v2999_v49  ;;  %v3078_v37 = vld [vmem:[%s15650_s7 + $0x1840] sm:$0xff]  ;;  %v3071_v59 = vld [vmem:[%s15650_s7 + $0x1808] sm:$0xff] }
 0x2dc   :  { %8621 = vmatpush1.bf16.msra.mxu0 %v10753_v57  ;;  %8785 = vmatpush1.bf16.msra.mxu1 %v10755_v60  ;;  %v3007_v57 = vld [vmem:[%s15650_s7 + $0x1608] sm:$0xff] }
 0x2dd   :  { %8622 = vmatprep.subr.bf16.mxu0 %v10770_v61  ;;  %8786 = vmatprep.subr.bf16.mxu1 %v10772_v62  ;;  %v3015_v60 = vld [vmem:[%s15650_s7 + $0x1648] sm:$0xff]  ;;  %v10865_v61 = vcombine.low %v2990_v43, %v2998_v44  ;;  %v10867_v62 = vcombine.low %v2991_v15, %v2999_v49 }
 0x2de   :  { %v10884_v0 = vcombine.high %v3007_v57, %v3015_v60 }
 0x2e0   :  { %8623 = vmatpush1.bf16.msra.mxu0 %v10769_v4  ;;  %8787 = vmatpush1.bf16.msra.mxu1 %v10771_v5  ;;  %v3023_v4 = vld [vmem:[%s15650_s7 + $0x1688] sm:$0xff] }
 0x2e1   :  { %8624 = vmatprep.subr.bf16.mxu0 %v10786_v6  ;;  %8788 = vmatprep.subr.bf16.mxu1 %v10788_v7  ;;  %v3031_v5 = vld [vmem:[%s15650_s7 + $0x16c8] sm:$0xff]  ;;  %v10881_v6 = vcombine.low %v3006_v54, %v3014_v56  ;;  %v10883_v7 = vcombine.low %v3007_v57, %v3015_v60  ;;  %v10946_v54 = vcombine.high %v3070_v35, %v3078_v37 }
 0x2e2   :  { %v10900_v8 = vcombine.high %v3023_v4, %v3031_v5  ;;  %v10899_v17 = vcombine.low %v3023_v4, %v3031_v5  ;;  %v10945_v4 = vcombine.low %v3070_v35, %v3078_v37  ;;  %v3143_v35 = vld [vmem:[%s15650_s7 + $0x1a48] sm:$0xff] }
 0x2e4   :  { %8625 = vmatpush1.bf16.msra.mxu0 %v10785_v12  ;;  %8789 = vmatpush1.bf16.msra.mxu1 %v10787_v13  ;;  %v3039_v12 = vld [vmem:[%s15650_s7 + $0x1708] sm:$0xff] }
 0x2e5   :  { %8626 = vmatprep.subr.bf16.mxu0 %v10802_v14  ;;  %8790 = vmatprep.subr.bf16.mxu1 %v10804_v16  ;;  %v3047_v13 = vld [vmem:[%s15650_s7 + $0x1748] sm:$0xff]  ;;  %v13000_v14 = vsub.s32 4, %v11584_v45  ;;  %v10897_v16 = vcombine.low %v3022_v1, %v3030_v3 }
 0x2e6   :  { %v10916_v20 = vcombine.high %v3039_v12, %v3047_v13  ;;  %v10915_v40 = vcombine.low %v3039_v12, %v3047_v13  ;;  %v3095_v1 = vld [vmem:[%s15650_s7 + $0x18c8] sm:$0xff] }
 0x2e7   :  { %v657_v33 = vrot.slane %v12610_v29, %v13000_v14  ;;  %v3111_v12 = vld [vmem:[%s15650_s7 + $0x1948] sm:$0xff] }
 0x2e8   :  { %8627 = vmatpush1.bf16.msra.mxu0 %v10801_v22  ;;  %8791 = vmatpush1.bf16.msra.mxu1 %v10803_v23  ;;  %v13006_v22 = vsub.s32 7, %v11584_v45  ;;  %v3054_v23 = vld [vmem:[%s15650_s7 + $0x1780] sm:$0xff] }
 0x2e9   :  { %8628 = vmatprep.subr.bf16.mxu0 %v10818_v24  ;;  %8792 = vmatprep.subr.bf16.mxu1 %v10820_v25  ;;  %v3062_v24 = vld [vmem:[%s15650_s7 + $0x17c0] sm:$0xff]  ;;  %v3055_v25 = vld [vmem:[%s15650_s7 + $0x1788] sm:$0xff] }
 0x2ea   :  { %v10929_v15 = vcombine.low %v3054_v23, %v3062_v24  ;;  %v10931_v49 = vcombine.low %v3055_v25, %v3063_v26 }
 0x2ec   :  { %8629 = vmatpush1.bf16.msra.mxu0 %v10817_v28  ;;  %8793 = vmatpush1.bf16.msra.mxu1 %v10819_v30  ;;  %v661_v28 = vrot.slane %v12610_v29, %v13003_v18  ;;  %v669_v30 = vrot.slane %v12610_v29, %v13006_v22 }
 0x2ed   :  { %8630 = vmatprep.subr.bf16.mxu0 %v10834_v31  ;;  %8794 = vmatprep.subr.bf16.mxu1 %v10836_v34  ;;  %v10930_v31 = vcombine.high %v3054_v23, %v3062_v24  ;;  %v10932_v34 = vcombine.high %v3055_v25, %v3063_v26  ;;  %v3118_v23 = vld [vmem:[%s15650_s7 + $0x1980] sm:$0xff]  ;;  %v3119_v25 = vld [vmem:[%s15650_s7 + $0x1988] sm:$0xff] }
 0x2ee   :  { %v3126_v24 = vld [vmem:[%s15650_s7 + $0x19c0] sm:$0xff]  ;;  %v3127_v26 = vld [vmem:[%s15650_s7 + $0x19c8] sm:$0xff] }
 0x2ef   :  { %v10995_v37 = vcombine.low %v3119_v25, %v3127_v26 }
 0x2f0   :  { %8631 = vmatpush1.bf16.msra.mxu0 %v10833_v38  ;;  %8795 = vmatpush1.bf16.msra.mxu1 %v10835_v39  ;;  %v3079_v38 = vld [vmem:[%s15650_s7 + $0x1848] sm:$0xff] }
 0x2f1   :  { %8632 = vmatprep.subr.bf16.mxu0 %v10850_v41  ;;  %8796 = vmatprep.subr.bf16.mxu1 %v10852_v42  ;;  %v10948_v56 = vcombine.high %v3071_v59, %v3079_v38  ;;  %v10947_v5 = vcombine.low %v3071_v59, %v3079_v38 }
 0x2f4   :  { %8633 = vmatpush1.bf16.msra.mxu0 %v10849_v50  ;;  %8797 = vmatpush1.bf16.msra.mxu1 %v10851_v51 }
 0x2f5   :  { %8634 = vmatprep.subr.bf16.mxu0 %v10866_v52  ;;  %8798 = vmatprep.subr.bf16.mxu1 %v10868_v53 }
 0x2f8   :  { %8635 = vmatpush1.bf16.msra.mxu0 %v10865_v61  ;;  %8799 = vmatpush1.bf16.msra.mxu1 %v10867_v62  ;;  %v3086_v61 = vld [vmem:[%s15650_s7 + $0x1880] sm:$0xff] }
 0x2f9   :  { %8636 = vmatprep.subr.bf16.mxu0 %v10882_v63  ;;  %8800 = vmatprep.subr.bf16.mxu1 %v10884_v0  ;;  %v3094_v63 = vld [vmem:[%s15650_s7 + $0x18c0] sm:$0xff]  ;;  %v3087_v0 = vld [vmem:[%s15650_s7 + $0x1888] sm:$0xff] }
 0x2fc   :  { %8637 = vmatpush1.bf16.msra.mxu0 %v10881_v6  ;;  %8801 = vmatpush1.bf16.msra.mxu1 %v10883_v7  ;;  %v3102_v7 = vld [vmem:[%s15650_s7 + $0x1900] sm:$0xff] }
 0x2fd   :  { %8638 = vmatprep.subr.bf16.mxu0 %v10898_v9  ;;  %8802 = vmatprep.subr.bf16.mxu1 %v10900_v8  ;;  %v10962_v9 = vcombine.high %v3086_v61, %v3094_v63  ;;  %v10964_v8 = vcombine.high %v3087_v0, %v3095_v1 }
 0x300   :  { %8639 = vmatpush1.bf16.msra.mxu0 %v10897_v16  ;;  %8803 = vmatpush1.bf16.msra.mxu1 %v10899_v17  ;;  %v10961_v16 = vcombine.low %v3086_v61, %v3094_v63  ;;  %v10963_v17 = vcombine.low %v3087_v0, %v3095_v1  ;;  %v3190_v63 = vld [vmem:[%s15650_s7 + $0x1bc0] sm:$0xff]  ;;  %v3183_v0 = vld [vmem:[%s15650_s7 + $0x1b88] sm:$0xff] }
 0x301   :  { %8640 = vmatprep.subr.bf16.mxu0 %v10914_v19  ;;  %8804 = vmatprep.subr.bf16.mxu1 %v10916_v20  ;;  %v10978_v19 = vcombine.high %v3102_v7, %v3110_v11  ;;  %v10980_v20 = vcombine.high %v3103_v32, %v3111_v12  ;;  %v3191_v1 = vld [vmem:[%s15650_s7 + $0x1bc8] sm:$0xff] }
 0x302   :  { %v2197_v36 = vpop.f32.mrb[8].mxu0 }
 0x303   :  { %v11205_v29 = vadd.f32 %v2197_v36, %v657_v33  ;;  %v13038_v39 = vpop.f32.mrb[8].mxu1  ;;  %v2199_v41 = vpop.f32.mrb[9].mxu0  ;;  %v10977_v33 = vcombine.low %v3102_v7, %v3110_v11  ;;  %v10993_v36 = vcombine.low %v3118_v23, %v3126_v24  ;;  %v3206_v11 = vld [vmem:[%s15650_s7 + $0x1c40] sm:$0xff] }
 0x304   :  { %v11206_v42 = vadd.f32 %v2199_v41, %v661_v28  ;;  %v2281_v43 = vpop.f32.mrb[9].mxu1  ;;  %8641 = vmatpush1.bf16.msra.mxu0 %v10913_v27  ;;  %8805 = vmatpush1.bf16.msra.mxu1 %v10915_v40  ;;  %v2201_v44 = vpop.f32.mrb[10].mxu0  ;;  %v10979_v27 = vcombine.low %v3103_v32, %v3111_v12  ;;  %v10994_v40 = vcombine.high %v3118_v23, %v3126_v24  ;;  %v3158_v41 = vld [vmem:[%s15650_s7 + $0x1ac0] sm:$0xff]  ;;  %v3199_v32 = vld [vmem:[%s15650_s7 + $0x1c08] sm:$0xff] }
 0x305   :  { %v2290_v50 = vmax.f32 %v11205_v29, 0.0  ;;  %v11208_v51 = vadd.f32 %v2281_v43, %v669_v30  ;;  %v2283_v52 = vpop.f32.mrb[10].mxu1  ;;  %v2202_v53 = vpop.f32.mrb[11].mxu0  ;;  %8642 = vmatprep.subr.bf16.mxu0 %v10930_v31  ;;  %8806 = vmatprep.subr.bf16.mxu1 %v10932_v34  ;;  %v10996_v28 = vcombine.high %v3119_v25, %v3127_v26  ;;  %v3134_v30 = vld [vmem:[%s15650_s7 + $0x1a00] sm:$0xff]  ;;  %v3135_v34 = vld [vmem:[%s15650_s7 + $0x1a08] sm:$0xff] }
 0x306   :  { %v2291_v57 = vmax.f32 %v11206_v42, 0.0  ;;  %v2284_v60 = vpop.f32.mrb[11].mxu1  ;;  %v3142_v31 = vld [vmem:[%s15650_s7 + $0x1a40] sm:$0xff]  ;;  %v11012_v38 = vcombine.high %v3135_v34, %v3143_v35  ;;  %v3151_v42 = vld [vmem:[%s15650_s7 + $0x1a88] sm:$0xff] }
 0x307   :  { %v2293_v62 = vmax.f32 %v11208_v51, 0.0  ;;  %v13054_v6 = vpack.c.bf16 %v2290_v50, %v2290_v50  ;;  %v11010_v59 = vcombine.high %v3134_v30, %v3142_v31  ;;  %v3150_v29 = vld [vmem:[%s15650_s7 + $0x1a80] sm:$0xff]  ;;  %v3159_v43 = vld [vmem:[%s15650_s7 + $0x1ac8] sm:$0xff]  ;;  %v11009_v44 = vcombine.low %v3134_v30, %v3142_v31 }
 0x308   :  { %v13052_v3 = vpack.c.bf16 %v2291_v57, %v2291_v57  ;;  %8643 = vmatpush1.bf16.msra.mxu0 %v10929_v15  ;;  %8807 = vmatpush1.bf16.msra.mxu1 %v10931_v49  ;;  %v11011_v15 = vcombine.low %v3135_v34, %v3143_v35  ;;  %v11026_v49 = vcombine.high %v3150_v29, %v3158_v41  ;;  %v3166_v51 = vld [vmem:[%s15650_s7 + $0x1b00] sm:$0xff]  ;;  %v3167_v53 = vld [vmem:[%s15650_s7 + $0x1b08] sm:$0xff] }
 0x309   :  { %8653 = vmatprep.subr.bf16.mxu0 %v10946_v54  ;;  %8817 = vmatprep.subr.bf16.mxu1 %v10948_v56  ;;  %v13070_v13 = vpack.c.bf16 %v2293_v62, %v2293_v62  ;;  %v11028_v50 = vcombine.high %v3151_v42, %v3159_v43  ;;  %v3174_v52 = vld [vmem:[%s15650_s7 + $0x1b40] sm:$0xff]  ;;  %v3175_v54 = vld [vmem:[%s15650_s7 + $0x1b48] sm:$0xff]  ;;  %v11025_v56 = vcombine.low %v3150_v29, %v3158_v41 }
 0x30a   :  { %8644 = vmatprep.mubr.bf16.mxu0 %v13052_v3  ;;  %8808 = vmatprep.mubr.bf16.mxu1 %v13052_v3  ;;  %v11027_v57 = vcombine.low %v3151_v42, %v3159_v43  ;;  %v11042_v60 = vcombine.high %v3166_v51, %v3174_v52  ;;  %v11044_v61 = vcombine.high %v3167_v53, %v3175_v54  ;;  %v3182_v62 = vld [vmem:[%s15650_s7 + $0x1b80] sm:$0xff]  ;;  %v3207_v12 = vld [vmem:[%s15650_s7 + $0x1c48] sm:$0xff] }
 0x30b   :  { %8645 = vmatmul.mubr.bf16.vlgmr.msra.gmra.mrb[12].mxu0 %v13054_v6  ;;  %8809 = vmatmul.mubr.bf16.vlgmr.msra.gmra.mrb[12].mxu1 %v13054_v6  ;;  %v11058_v7 = vcombine.high %v3182_v62, %v3190_v63  ;;  %v3214_v23 = vld [vmem:[%s15650_s7 + $0x1c80] sm:$0xff]  ;;  %v3215_v25 = vld [vmem:[%s15650_s7 + $0x1c88] sm:$0xff] }
 0x30c   :  { %8654 = vmatpush1.bf16.msra.mxu0 %v10945_v4  ;;  %8818 = vmatpush1.bf16.msra.mxu1 %v10947_v5  ;;  %v11041_v4 = vcombine.low %v3166_v51, %v3174_v52  ;;  %v11043_v5 = vcombine.low %v3167_v53, %v3175_v54  ;;  %v3222_v24 = vld [vmem:[%s15650_s7 + $0x1cc0] sm:$0xff]  ;;  %v3223_v26 = vld [vmem:[%s15650_s7 + $0x1cc8] sm:$0xff] }
 0x30d   :  { %8685 = vmatprep.mubr.bf16.mxu0 %v13070_v13  ;;  %8849 = vmatprep.mubr.bf16.mxu1 %v13070_v13  ;;  %v3230_v30 = vld [vmem:[%s15650_s7 + $0x1d00] sm:$0xff]  ;;  %v3231_v34 = vld [vmem:[%s15650_s7 + $0x1d08] sm:$0xff] }
 0x30e   :  { %8655 = vmatprep.subr.bf16.mxu0 %v10962_v9  ;;  %8819 = vmatprep.subr.bf16.mxu1 %v10964_v8  ;;  %v11060_v9 = vcombine.high %v3183_v0, %v3191_v1  ;;  %v3198_v8 = vld [vmem:[%s15650_s7 + $0x1c00] sm:$0xff]  ;;  %v3239_v35 = vld [vmem:[%s15650_s7 + $0x1d48] sm:$0xff] }
 0x30f   :  { %v3238_v31 = vld [vmem:[%s15650_s7 + $0x1d40] sm:$0xff]  ;;  %v3247_v42 = vld [vmem:[%s15650_s7 + $0x1d88] sm:$0xff] }
 0x310   :  { %8656 = vmatpush1.bf16.msra.mxu0 %v10961_v16  ;;  %8820 = vmatpush1.bf16.msra.mxu1 %v10963_v17  ;;  %v11057_v16 = vcombine.low %v3182_v62, %v3190_v63  ;;  %v11059_v17 = vcombine.low %v3183_v0, %v3191_v1  ;;  %v3246_v29 = vld [vmem:[%s15650_s7 + $0x1d80] sm:$0xff]  ;;  %v3255_v43 = vld [vmem:[%s15650_s7 + $0x1dc8] sm:$0xff] }
 0x311   :  { %8657 = vmatprep.subr.bf16.mxu0 %v10978_v19  ;;  %8821 = vmatprep.subr.bf16.mxu1 %v10980_v20  ;;  %v11074_v19 = vcombine.high %v3198_v8, %v3206_v11  ;;  %v11076_v20 = vcombine.high %v3199_v32, %v3207_v12  ;;  %v3254_v41 = vld [vmem:[%s15650_s7 + $0x1dc0] sm:$0xff]  ;;  %v3263_v53 = vld [vmem:[%s15650_s7 + $0x1e08] sm:$0xff] }
 0x312   :  { %v3262_v51 = vld [vmem:[%s15650_s7 + $0x1e00] sm:$0xff]  ;;  %v3271_v54 = vld [vmem:[%s15650_s7 + $0x1e48] sm:$0xff] }
 0x313   :  { %v3270_v52 = vld [vmem:[%s15650_s7 + $0x1e40] sm:$0xff]  ;;  %v3279_v0 = vld [vmem:[%s15650_s7 + $0x1e88] sm:$0xff] }
 0x314   :  { %8658 = vmatpush1.bf16.msra.mxu0 %v10977_v33  ;;  %8822 = vmatpush1.bf16.msra.mxu1 %v10979_v27  ;;  %v11073_v33 = vcombine.low %v3198_v8, %v3206_v11  ;;  %v11075_v27 = vcombine.low %v3199_v32, %v3207_v12  ;;  %v3278_v62 = vld [vmem:[%s15650_s7 + $0x1e80] sm:$0xff]  ;;  %v3287_v1 = vld [vmem:[%s15650_s7 + $0x1ec8] sm:$0xff] }
 0x315   :  { %8659 = vmatprep.subr.bf16.mxu0 %v10994_v40  ;;  %8823 = vmatprep.subr.bf16.mxu1 %v10996_v28  ;;  %v11090_v40 = vcombine.high %v3214_v23, %v3222_v24  ;;  %v11092_v28 = vcombine.high %v3215_v25, %v3223_v26  ;;  %v3286_v63 = vld [vmem:[%s15650_s7 + $0x1ec0] sm:$0xff]  ;;  %v11156_v8 = vcombine.high %v3279_v0, %v3287_v1  ;;  %v3295_v12 = vld [vmem:[%s15650_s7 + $0x1f08] sm:$0xff] }
 0x316   :  { %v3294_v11 = vld [vmem:[%s15650_s7 + $0x1f00] sm:$0xff] }
 0x317   :  { %v3302_v32 = vld [vmem:[%s15650_s7 + $0x1f40] sm:$0xff] }
 0x318   :  { %8660 = vmatpush1.bf16.msra.mxu0 %v10993_v36  ;;  %8824 = vmatpush1.bf16.msra.mxu1 %v10995_v37  ;;  %v11089_v36 = vcombine.low %v3214_v23, %v3222_v24  ;;  %v11091_v37 = vcombine.low %v3215_v25, %v3223_v26  ;;  %v11170_v23 = vcombine.high %v3294_v11, %v3302_v32  ;;  %v3310_v25 = vld [vmem:[%s15650_s7 + $0x1f80] sm:$0xff] }
 0x319   :  { %8661 = vmatprep.subr.bf16.mxu0 %v11010_v59  ;;  %8825 = vmatprep.subr.bf16.mxu1 %v11012_v38  ;;  %v11106_v59 = vcombine.high %v3230_v30, %v3238_v31  ;;  %v11108_v38 = vcombine.high %v3231_v34, %v3239_v35  ;;  %v3318_v26 = vld [vmem:[%s15650_s7 + $0x1fc0] sm:$0xff] }
 0x31c   :  { %8662 = vmatpush1.bf16.msra.mxu0 %v11009_v44  ;;  %8826 = vmatpush1.bf16.msra.mxu1 %v11011_v15  ;;  %v11105_v44 = vcombine.low %v3230_v30, %v3238_v31  ;;  %v11107_v15 = vcombine.low %v3231_v34, %v3239_v35  ;;  %v11186_v31 = vcombine.high %v3310_v25, %v3318_v26  ;;  %v2304_v35 = vld [vmem:[%s15650_s7 + $0x10] sm:$0xff] }
 0x31d   :  { %8663 = vmatprep.subr.bf16.mxu0 %v11026_v49  ;;  %8827 = vmatprep.subr.bf16.mxu1 %v11028_v50  ;;  %v11122_v49 = vcombine.high %v3246_v29, %v3254_v41  ;;  %v11124_v50 = vcombine.high %v3247_v42, %v3255_v43 }
 0x320   :  { %8664 = vmatpush1.bf16.msra.mxu0 %v11025_v56  ;;  %8828 = vmatpush1.bf16.msra.mxu1 %v11027_v57  ;;  %v11121_v56 = vcombine.low %v3246_v29, %v3254_v41  ;;  %v11123_v57 = vcombine.low %v3247_v42, %v3255_v43  ;;  %v2320_v43 = vld [vmem:[%s15650_s7 + $0x90] sm:$0xff] }
 0x321   :  { %8665 = vmatprep.subr.bf16.mxu0 %v11042_v60  ;;  %8829 = vmatprep.subr.bf16.mxu1 %v11044_v61  ;;  %v11138_v60 = vcombine.high %v3262_v51, %v3270_v52  ;;  %v11140_v61 = vcombine.high %v3263_v53, %v3271_v54 }
 0x324   :  { %8666 = vmatpush1.bf16.msra.mxu0 %v11041_v4  ;;  %8830 = vmatpush1.bf16.msra.mxu1 %v11043_v5  ;;  %v11137_v4 = vcombine.low %v3262_v51, %v3270_v52  ;;  %v11139_v5 = vcombine.low %v3263_v53, %v3271_v54 }
 0x325   :  { %8667 = vmatprep.subr.bf16.mxu0 %v11058_v7  ;;  %8831 = vmatprep.subr.bf16.mxu1 %v11060_v9  ;;  %v13209_v7 = vsub.s32 6, %v11584_v45  ;;  %v11154_v9 = vcombine.high %v3278_v62, %v3286_v63  ;;  %v3303_v45 = vld [vmem:[%s15650_s7 + $0x1f48] sm:$0xff] }
 0x326   :  { %v11172_v24 = vcombine.high %v3295_v12, %v3303_v45 }
 0x328   :  { %8668 = vmatpush1.bf16.msra.mxu0 %v11057_v16  ;;  %8832 = vmatpush1.bf16.msra.mxu1 %v11059_v17  ;;  %v11153_v16 = vcombine.low %v3278_v62, %v3286_v63  ;;  %v11155_v17 = vcombine.low %v3279_v0, %v3287_v1 }
 0x329   :  { %8669 = vmatprep.subr.bf16.mxu0 %v11074_v19  ;;  %8833 = vmatprep.subr.bf16.mxu1 %v11076_v20  ;;  %v11393_v19 = vld [vmem:[%s15649_s6] sm:$0xff] }
 0x32a   :  { %v665_v20 = vrot.slane %v11393_v19, %v13209_v7  ;;  %v2369_v19 = vld [vmem:[%s15650_s7 + $0x218] sm:$0xff] }
 0x32c   :  { %8670 = vmatpush1.bf16.msra.mxu0 %v11073_v33  ;;  %8834 = vmatpush1.bf16.msra.mxu1 %v11075_v27  ;;  %v3311_v33 = vld [vmem:[%s15650_s7 + $0x1f88] sm:$0xff]  ;;  %v11207_v30 = vadd.f32 %v13038_v39, %v665_v20  ;;  %v2313_v39 = vld [vmem:[%s15650_s7 + $0x58] sm:$0xff] }
 0x32d   :  { %8671 = vmatprep.subr.bf16.mxu0 %v11090_v40  ;;  %8835 = vmatprep.subr.bf16.mxu1 %v11092_v28  ;;  %v3319_v27 = vld [vmem:[%s15650_s7 + $0x1fc8] sm:$0xff]  ;;  %v11169_v40 = vcombine.low %v3294_v11, %v3302_v32  ;;  %v11171_v28 = vcombine.low %v3295_v12, %v3303_v45  ;;  %v2377_v20 = vld [vmem:[%s15650_s7 + $0x258] sm:$0xff] }
 0x32e   :  { %v11188_v34 = vcombine.high %v3311_v33, %v3319_v27  ;;  %v2292_v29 = vmax.f32 %v11207_v30, 0.0 }
 0x330   :  { %8672 = vmatpush1.bf16.msra.mxu0 %v11089_v36  ;;  %8836 = vmatpush1.bf16.msra.mxu1 %v11091_v37  ;;  %v2312_v36 = vld [vmem:[%s15650_s7 + $0x50] sm:$0xff]  ;;  %v2305_v37 = vld [vmem:[%s15650_s7 + $0x18] sm:$0xff]  ;;  %v13264_v51 = vpack.c.bf16 %v2292_v29, %v2292_v29 }
 0x331   :  { %8673 = vmatprep.subr.bf16.mxu0 %v11106_v59  ;;  %8837 = vmatprep.subr.bf16.mxu1 %v11108_v38  ;;  %v11185_v59 = vcombine.low %v3310_v25, %v3318_v26  ;;  %v11187_v38 = vcombine.low %v3311_v33, %v3319_v27  ;;  %v10182_v41 = vcombine.high %v2304_v35, %v2312_v36  ;;  %v2384_v33 = vld [vmem:[%s15650_s7 + $0x290] sm:$0xff] }
 0x332   :  { %v10184_v42 = vcombine.high %v2305_v37, %v2313_v39  ;;  %v10183_v52 = vcombine.low %v2305_v37, %v2313_v39  ;;  %v10248_v26 = vcombine.high %v2369_v19, %v2377_v20  ;;  %v2392_v27 = vld [vmem:[%s15650_s7 + $0x2d0] sm:$0xff]  ;;  %v2401_v39 = vld [vmem:[%s15650_s7 + $0x318] sm:$0xff] }
 0x333   :  { %v2408_v37 = vld [vmem:[%s15650_s7 + $0x350] sm:$0xff] }
 0x334   :  { %8674 = vmatpush1.bf16.msra.mxu0 %v11105_v44  ;;  %8838 = vmatpush1.bf16.msra.mxu1 %v11107_v15  ;;  %v2328_v44 = vld [vmem:[%s15650_s7 + $0xd0] sm:$0xff]  ;;  %v2321_v15 = vld [vmem:[%s15650_s7 + $0x98] sm:$0xff] }
 0x335   :  { %8675 = vmatprep.subr.bf16.mxu0 %v11122_v49  ;;  %8839 = vmatprep.subr.bf16.mxu1 %v11124_v50  ;;  %v2329_v49 = vld [vmem:[%s15650_s7 + $0xd8] sm:$0xff]  ;;  %v10181_v50 = vcombine.low %v2304_v35, %v2312_v36  ;;  %v10198_v53 = vcombine.high %v2320_v43, %v2328_v44  ;;  %v10197_v62 = vcombine.low %v2320_v43, %v2328_v44  ;;  %v2400_v36 = vld [vmem:[%s15650_s7 + $0x310] sm:$0xff] }
 0x336   :  { %v10200_v54 = vcombine.high %v2321_v15, %v2329_v49  ;;  %v10199_v63 = vcombine.low %v2321_v15, %v2329_v49  ;;  %v2416_v43 = vld [vmem:[%s15650_s7 + $0x390] sm:$0xff]  ;;  %v2417_v15 = vld [vmem:[%s15650_s7 + $0x398] sm:$0xff] }
 0x337   :  { %v2424_v44 = vld [vmem:[%s15650_s7 + $0x3d0] sm:$0xff]  ;;  %v2425_v49 = vld [vmem:[%s15650_s7 + $0x3d8] sm:$0xff] }
 0x338   :  { %8676 = vmatpush1.bf16.msra.mxu0 %v11121_v56  ;;  %8840 = vmatpush1.bf16.msra.mxu1 %v11123_v57  ;;  %v2336_v56 = vld [vmem:[%s15650_s7 + $0x110] sm:$0xff] }
 0x339   :  { %8677 = vmatprep.subr.bf16.mxu0 %v11138_v60  ;;  %8841 = vmatprep.subr.bf16.mxu1 %v11140_v61  ;;  %v2344_v57 = vld [vmem:[%s15650_s7 + $0x150] sm:$0xff]  ;;  %v2337_v60 = vld [vmem:[%s15650_s7 + $0x118] sm:$0xff] }
 0x33a   :  { %v2345_v61 = vld [vmem:[%s15650_s7 + $0x158] sm:$0xff]  ;;  %v10214_v0 = vcombine.high %v2336_v56, %v2344_v57  ;;  %v10213_v11 = vcombine.low %v2336_v56, %v2344_v57  ;;  %v2432_v56 = vld [vmem:[%s15650_s7 + $0x410] sm:$0xff] }
 0x33b   :  { %v10216_v1 = vcombine.high %v2337_v60, %v2345_v61  ;;  %v10215_v32 = vcombine.low %v2337_v60, %v2345_v61  ;;  %v2440_v57 = vld [vmem:[%s15650_s7 + $0x450] sm:$0xff]  ;;  %v2433_v60 = vld [vmem:[%s15650_s7 + $0x418] sm:$0xff] }
 0x33c   :  { %8678 = vmatpush1.bf16.msra.mxu0 %v11137_v4  ;;  %8842 = vmatpush1.bf16.msra.mxu1 %v11139_v5  ;;  %v2352_v4 = vld [vmem:[%s15650_s7 + $0x190] sm:$0xff]  ;;  %v2441_v61 = vld [vmem:[%s15650_s7 + $0x458] sm:$0xff] }
 0x33d   :  { %8679 = vmatprep.subr.bf16.mxu0 %v11154_v9  ;;  %8843 = vmatprep.subr.bf16.mxu1 %v11156_v8  ;;  %v2360_v5 = vld [vmem:[%s15650_s7 + $0x1d0] sm:$0xff]  ;;  %v2353_v9 = vld [vmem:[%s15650_s7 + $0x198] sm:$0xff] }
 0x33e   :  { %v2361_v8 = vld [vmem:[%s15650_s7 + $0x1d8] sm:$0xff]  ;;  %v10230_v12 = vcombine.high %v2352_v4, %v2360_v5 }
 0x33f   :  { %v10232_v45 = vcombine.high %v2353_v9, %v2361_v8 }
 0x340   :  { %8680 = vmatpush1.bf16.msra.mxu0 %v11153_v16  ;;  %8844 = vmatpush1.bf16.msra.mxu1 %v11155_v17  ;;  %v2368_v16 = vld [vmem:[%s15650_s7 + $0x210] sm:$0xff] }
 0x341   :  { %8681 = vmatprep.subr.bf16.mxu0 %v11170_v23  ;;  %8845 = vmatprep.subr.bf16.mxu1 %v11172_v24  ;;  %v2376_v17 = vld [vmem:[%s15650_s7 + $0x250] sm:$0xff]  ;;  %v10229_v23 = vcombine.low %v2352_v4, %v2360_v5  ;;  %v10231_v24 = vcombine.low %v2353_v9, %v2361_v8  ;;  %v2449_v9 = vld [vmem:[%s15650_s7 + $0x498] sm:$0xff] }
 0x342   :  { %v10246_v25 = vcombine.high %v2368_v16, %v2376_v17  ;;  %v10245_v30 = vcombine.low %v2368_v16, %v2376_v17  ;;  %v2448_v4 = vld [vmem:[%s15650_s7 + $0x490] sm:$0xff]  ;;  %v2457_v8 = vld [vmem:[%s15650_s7 + $0x4d8] sm:$0xff] }
 0x343   :  { %v2456_v5 = vld [vmem:[%s15650_s7 + $0x4d0] sm:$0xff] }
 0x344   :  { %8682 = vmatpush1.bf16.msra.mxu0 %v11169_v40  ;;  %8846 = vmatpush1.bf16.msra.mxu1 %v11171_v28  ;;  %v2385_v40 = vld [vmem:[%s15650_s7 + $0x298] sm:$0xff]  ;;  %v2464_v16 = vld [vmem:[%s15650_s7 + $0x510] sm:$0xff] }
 0x345   :  { %8683 = vmatprep.subr.bf16.mxu0 %v11186_v31  ;;  %8847 = vmatprep.subr.bf16.mxu1 %v11188_v34  ;;  %v2393_v28 = vld [vmem:[%s15650_s7 + $0x2d8] sm:$0xff]  ;;  %v10247_v31 = vcombine.low %v2369_v19, %v2377_v20  ;;  %v10262_v34 = vcombine.high %v2384_v33, %v2392_v27  ;;  %v2472_v17 = vld [vmem:[%s15650_s7 + $0x550] sm:$0xff] }
 0x346   :  { %v10264_v35 = vcombine.high %v2385_v40, %v2393_v28  ;;  %v10263_v29 = vcombine.low %v2385_v40, %v2393_v28  ;;  %v2465_v19 = vld [vmem:[%s15650_s7 + $0x518] sm:$0xff] }
 0x347   :  { %v2473_v20 = vld [vmem:[%s15650_s7 + $0x558] sm:$0xff] }
 0x348   :  { %8684 = vmatpush1.bf16.msra.mxu0 %v11185_v59  ;;  %8848 = vmatpush1.bf16.msra.mxu1 %v11187_v38  ;;  %v2409_v59 = vld [vmem:[%s15650_s7 + $0x358] sm:$0xff]  ;;  %v10261_v38 = vcombine.low %v2384_v33, %v2392_v27  ;;  %v2480_v33 = vld [vmem:[%s15650_s7 + $0x590] sm:$0xff] }
 0x349   :  { %8858 = vmatprep.subr.bf16.mxu0 %v10182_v41  ;;  %9022 = vmatprep.subr.bf16.mxu1 %v10184_v42  ;;  %v10278_v41 = vcombine.high %v2400_v36, %v2408_v37  ;;  %v10280_v42 = vcombine.high %v2401_v39, %v2409_v59  ;;  %v2488_v27 = vld [vmem:[%s15650_s7 + $0x5d0] sm:$0xff]  ;;  %v2481_v40 = vld [vmem:[%s15650_s7 + $0x598] sm:$0xff] }
 0x34a   :  { %v2489_v28 = vld [vmem:[%s15650_s7 + $0x5d8] sm:$0xff] }
 0x34b   :  { %8686 = vmatmul.mubr.bf16.vlgmr.msra.gmra.mrb[12].mxu0 %v13264_v51  ;;  %8850 = vmatmul.mubr.bf16.vlgmr.msra.gmra.mrb[12].mxu1 %v13264_v51 }
 0x34c   :  { %8859 = vmatpush1.bf16.msra.mxu0 %v10181_v50  ;;  %8890 = vmatprep.mubr.bf16.mxu0 %v12632_v55  ;;  %v10277_v50 = vcombine.low %v2400_v36, %v2408_v37  ;;  %v2496_v36 = vld [vmem:[%s15650_s7 + $0x610] sm:$0xff] }
 0x34d   :  { %9023 = vmatpush1.bf16.msra.mxu1 %v10183_v52  ;;  %9054 = vmatprep.mubr.bf16.mxu1 %v12632_v55  ;;  %v10279_v52 = vcombine.low %v2401_v39, %v2409_v59  ;;  %v2504_v37 = vld [vmem:[%s15650_s7 + $0x650] sm:$0xff]  ;;  %v2497_v39 = vld [vmem:[%s15650_s7 + $0x618] sm:$0xff] }
 0x34e   :  { %8860 = vmatprep.subr.bf16.mxu0 %v10198_v53  ;;  %9024 = vmatprep.subr.bf16.mxu1 %v10200_v54  ;;  %v10294_v53 = vcombine.high %v2416_v43, %v2424_v44  ;;  %v10296_v54 = vcombine.high %v2417_v15, %v2425_v49  ;;  %v2505_v59 = vld [vmem:[%s15650_s7 + $0x658] sm:$0xff] }
 0x350   :  { %8861 = vmatpush1.bf16.msra.mxu0 %v10197_v62  ;;  %v10293_v62 = vcombine.low %v2416_v43, %v2424_v44  ;;  %v2512_v43 = vld [vmem:[%s15650_s7 + $0x690] sm:$0xff] }
 0x351   :  { %9025 = vmatpush1.bf16.msra.mxu1 %v10199_v63  ;;  %8862 = vmatprep.subr.bf16.mxu0 %v10214_v0  ;;  %v10295_v63 = vcombine.low %v2417_v15, %v2425_v49  ;;  %v10310_v0 = vcombine.high %v2432_v56, %v2440_v57  ;;  %v2520_v44 = vld [vmem:[%s15650_s7 + $0x6d0] sm:$0xff]  ;;  %v2513_v15 = vld [vmem:[%s15650_s7 + $0x698] sm:$0xff] }
 0x352   :  { %9026 = vmatprep.subr.bf16.mxu1 %v10216_v1  ;;  %v10312_v1 = vcombine.high %v2433_v60, %v2441_v61  ;;  %v2521_v49 = vld [vmem:[%s15650_s7 + $0x6d8] sm:$0xff] }
 0x354   :  { %8863 = vmatpush1.bf16.msra.mxu0 %v10213_v11  ;;  %v10309_v11 = vcombine.low %v2432_v56, %v2440_v57  ;;  %v2528_v56 = vld [vmem:[%s15650_s7 + $0x710] sm:$0xff] }
 0x355   :  { %9027 = vmatpush1.bf16.msra.mxu1 %v10215_v32  ;;  %8864 = vmatprep.subr.bf16.mxu0 %v10230_v12  ;;  %v10311_v32 = vcombine.low %v2433_v60, %v2441_v61  ;;  %v10326_v12 = vcombine.high %v2448_v4, %v2456_v5  ;;  %v2536_v57 = vld [vmem:[%s15650_s7 + $0x750] sm:$0xff]  ;;  %v2529_v60 = vld [vmem:[%s15650_s7 + $0x718] sm:$0xff] }
 0x356   :  { %9028 = vmatprep.subr.bf16.mxu1 %v10232_v45  ;;  %v10328_v45 = vcombine.high %v2449_v9, %v2457_v8  ;;  %v2537_v61 = vld [vmem:[%s15650_s7 + $0x758] sm:$0xff] }
 0x358   :  { %8865 = vmatpush1.bf16.msra.mxu0 %v10229_v23  ;;  %v10325_v23 = vcombine.low %v2448_v4, %v2456_v5  ;;  %v2544_v4 = vld [vmem:[%s15650_s7 + $0x790] sm:$0xff] }
 0x359   :  { %9029 = vmatpush1.bf16.msra.mxu1 %v10231_v24  ;;  %8866 = vmatprep.subr.bf16.mxu0 %v10246_v25  ;;  %v10327_v24 = vcombine.low %v2449_v9, %v2457_v8  ;;  %v10342_v25 = vcombine.high %v2464_v16, %v2472_v17  ;;  %v2552_v5 = vld [vmem:[%s15650_s7 + $0x7d0] sm:$0xff]  ;;  %v2545_v9 = vld [vmem:[%s15650_s7 + $0x798] sm:$0xff] }
 0x35a   :  { %9030 = vmatprep.subr.bf16.mxu1 %v10248_v26  ;;  %v10344_v26 = vcombine.high %v2465_v19, %v2473_v20  ;;  %v2553_v8 = vld [vmem:[%s15650_s7 + $0x7d8] sm:$0xff] }
 0x35c   :  { %8867 = vmatpush1.bf16.msra.mxu0 %v10245_v30  ;;  %v10341_v30 = vcombine.low %v2464_v16, %v2472_v17  ;;  %v2560_v16 = vld [vmem:[%s15650_s7 + $0x810] sm:$0xff] }
 0x35d   :  { %9031 = vmatpush1.bf16.msra.mxu1 %v10247_v31  ;;  %8868 = vmatprep.subr.bf16.mxu0 %v10262_v34  ;;  %v10343_v31 = vcombine.low %v2465_v19, %v2473_v20  ;;  %v10358_v34 = vcombine.high %v2480_v33, %v2488_v27  ;;  %v2568_v17 = vld [vmem:[%s15650_s7 + $0x850] sm:$0xff]  ;;  %v2561_v19 = vld [vmem:[%s15650_s7 + $0x818] sm:$0xff] }
 0x35e   :  { %9032 = vmatprep.subr.bf16.mxu1 %v10264_v35  ;;  %v10360_v35 = vcombine.high %v2481_v40, %v2489_v28  ;;  %v2569_v20 = vld [vmem:[%s15650_s7 + $0x858] sm:$0xff] }
 0x360   :  { %8869 = vmatpush1.bf16.msra.mxu0 %v10261_v38  ;;  %v10357_v38 = vcombine.low %v2480_v33, %v2488_v27  ;;  %v2576_v33 = vld [vmem:[%s15650_s7 + $0x890] sm:$0xff] }
 0x361   :  { %9033 = vmatpush1.bf16.msra.mxu1 %v10263_v29  ;;  %8870 = vmatprep.subr.bf16.mxu0 %v10278_v41  ;;  %v10359_v29 = vcombine.low %v2481_v40, %v2489_v28  ;;  %v10374_v41 = vcombine.high %v2496_v36, %v2504_v37  ;;  %v2584_v27 = vld [vmem:[%s15650_s7 + $0x8d0] sm:$0xff]  ;;  %v10437_v40 = vcombine.low %v2560_v16, %v2568_v17  ;;  %v2577_v28 = vld [vmem:[%s15650_s7 + $0x898] sm:$0xff] }
 0x362   :  { %9034 = vmatprep.subr.bf16.mxu1 %v10280_v42  ;;  %v10376_v42 = vcombine.high %v2497_v39, %v2505_v59 }
 0x364   :  { %8871 = vmatpush1.bf16.msra.mxu0 %v10277_v50  ;;  %v10373_v50 = vcombine.low %v2496_v36, %v2504_v37  ;;  %v2600_v36 = vld [vmem:[%s15650_s7 + $0x950] sm:$0xff] }
 0x365   :  { %9035 = vmatpush1.bf16.msra.mxu1 %v10279_v52  ;;  %8872 = vmatprep.subr.bf16.mxu0 %v10294_v53  ;;  %v10375_v52 = vcombine.low %v2497_v39, %v2505_v59  ;;  %v10390_v53 = vcombine.high %v2512_v43, %v2520_v44  ;;  %v2593_v39 = vld [vmem:[%s15650_s7 + $0x918] sm:$0xff] }
 0x366   :  { %9036 = vmatprep.subr.bf16.mxu1 %v10296_v54  ;;  %v10392_v54 = vcombine.high %v2513_v15, %v2521_v49  ;;  %v2601_v59 = vld [vmem:[%s15650_s7 + $0x958] sm:$0xff] }
 0x368   :  { %8873 = vmatpush1.bf16.msra.mxu0 %v10293_v62  ;;  %v10389_v62 = vcombine.low %v2512_v43, %v2520_v44  ;;  %v2608_v43 = vld [vmem:[%s15650_s7 + $0x990] sm:$0xff] }
 0x369   :  { %9037 = vmatpush1.bf16.msra.mxu1 %v10295_v63  ;;  %8874 = vmatprep.subr.bf16.mxu0 %v10310_v0  ;;  %v10391_v63 = vcombine.low %v2513_v15, %v2521_v49  ;;  %v10406_v0 = vcombine.high %v2528_v56, %v2536_v57  ;;  %v2616_v44 = vld [vmem:[%s15650_s7 + $0x9d0] sm:$0xff]  ;;  %v2609_v15 = vld [vmem:[%s15650_s7 + $0x998] sm:$0xff] }
 0x36a   :  { %9038 = vmatprep.subr.bf16.mxu1 %v10312_v1  ;;  %v10408_v1 = vcombine.high %v2529_v60, %v2537_v61  ;;  %v2617_v49 = vld [vmem:[%s15650_s7 + $0x9d8] sm:$0xff] }
 0x36c   :  { %8875 = vmatpush1.bf16.msra.mxu0 %v10309_v11  ;;  %v10405_v11 = vcombine.low %v2528_v56, %v2536_v57  ;;  %v2624_v56 = vld [vmem:[%s15650_s7 + $0xa10] sm:$0xff] }
 0x36d   :  { %9039 = vmatpush1.bf16.msra.mxu1 %v10311_v32  ;;  %8876 = vmatprep.subr.bf16.mxu0 %v10326_v12  ;;  %v10407_v32 = vcombine.low %v2529_v60, %v2537_v61  ;;  %v10422_v12 = vcombine.high %v2544_v4, %v2552_v5  ;;  %v2632_v57 = vld [vmem:[%s15650_s7 + $0xa50] sm:$0xff]  ;;  %v2625_v60 = vld [vmem:[%s15650_s7 + $0xa18] sm:$0xff] }
 0x36e   :  { %9040 = vmatprep.subr.bf16.mxu1 %v10328_v45  ;;  %v10424_v45 = vcombine.high %v2545_v9, %v2553_v8  ;;  %v2633_v61 = vld [vmem:[%s15650_s7 + $0xa58] sm:$0xff] }
 0x370   :  { %8877 = vmatpush1.bf16.msra.mxu0 %v10325_v23  ;;  %v10421_v23 = vcombine.low %v2544_v4, %v2552_v5  ;;  %v2640_v4 = vld [vmem:[%s15650_s7 + $0xa90] sm:$0xff] }
 0x371   :  { %9041 = vmatpush1.bf16.msra.mxu1 %v10327_v24  ;;  %8878 = vmatprep.subr.bf16.mxu0 %v10342_v25  ;;  %v10423_v24 = vcombine.low %v2545_v9, %v2553_v8  ;;  %v10438_v25 = vcombine.high %v2560_v16, %v2568_v17  ;;  %v2648_v5 = vld [vmem:[%s15650_s7 + $0xad0] sm:$0xff]  ;;  %v2641_v9 = vld [vmem:[%s15650_s7 + $0xa98] sm:$0xff] }
 0x372   :  { %9042 = vmatprep.subr.bf16.mxu1 %v10344_v26  ;;  %v10440_v26 = vcombine.high %v2561_v19, %v2569_v20  ;;  %v2649_v8 = vld [vmem:[%s15650_s7 + $0xad8] sm:$0xff]  ;;  %v2656_v16 = vld [vmem:[%s15650_s7 + $0xb10] sm:$0xff] }
 0x373   :  { %v2664_v17 = vld [vmem:[%s15650_s7 + $0xb50] sm:$0xff] }
 0x374   :  { %8879 = vmatpush1.bf16.msra.mxu0 %v10341_v30  ;;  %v2585_v30 = vld [vmem:[%s15650_s7 + $0x8d8] sm:$0xff] }
 0x375   :  { %9043 = vmatpush1.bf16.msra.mxu1 %v10343_v31  ;;  %8880 = vmatprep.subr.bf16.mxu0 %v10358_v34  ;;  %v10439_v31 = vcombine.low %v2561_v19, %v2569_v20  ;;  %v10454_v34 = vcombine.high %v2576_v33, %v2584_v27  ;;  %v10456_v37 = vcombine.high %v2577_v28, %v2585_v30  ;;  %v2657_v19 = vld [vmem:[%s15650_s7 + $0xb18] sm:$0xff] }
 0x376   :  { %9044 = vmatprep.subr.bf16.mxu1 %v10360_v35  ;;  %v2592_v35 = vld [vmem:[%s15650_s7 + $0x910] sm:$0xff]  ;;  %v2665_v20 = vld [vmem:[%s15650_s7 + $0xb58] sm:$0xff] }
 0x378   :  { %8881 = vmatpush1.bf16.msra.mxu0 %v10357_v38  ;;  %v10453_v38 = vcombine.low %v2576_v33, %v2584_v27  ;;  %v2672_v33 = vld [vmem:[%s15650_s7 + $0xb90] sm:$0xff] }
 0x379   :  { %9045 = vmatpush1.bf16.msra.mxu1 %v10359_v29  ;;  %8882 = vmatprep.subr.bf16.mxu0 %v10374_v41  ;;  %v10455_v29 = vcombine.low %v2577_v28, %v2585_v30  ;;  %v10470_v41 = vcombine.high %v2592_v35, %v2600_v36  ;;  %v2680_v27 = vld [vmem:[%s15650_s7 + $0xbd0] sm:$0xff]  ;;  %v2681_v28 = vld [vmem:[%s15650_s7 + $0xbd8] sm:$0xff]  ;;  %v10533_v30 = vcombine.low %v2656_v16, %v2664_v17 }
 0x37a   :  { %9046 = vmatprep.subr.bf16.mxu1 %v10376_v42  ;;  %v10472_v42 = vcombine.high %v2593_v39, %v2601_v59 }
 0x37c   :  { %8883 = vmatpush1.bf16.msra.mxu0 %v10373_v50  ;;  %v10469_v50 = vcombine.low %v2592_v35, %v2600_v36  ;;  %v2688_v36 = vld [vmem:[%s15650_s7 + $0xc10] sm:$0xff] }
 0x37d   :  { %9047 = vmatpush1.bf16.msra.mxu1 %v10375_v52  ;;  %8884 = vmatprep.subr.bf16.mxu0 %v10390_v53  ;;  %v10471_v52 = vcombine.low %v2593_v39, %v2601_v59  ;;  %v10486_v53 = vcombine.high %v2608_v43, %v2616_v44  ;;  %v2689_v39 = vld [vmem:[%s15650_s7 + $0xc18] sm:$0xff] }
 0x37e   :  { %9048 = vmatprep.subr.bf16.mxu1 %v10392_v54  ;;  %v10488_v54 = vcombine.high %v2609_v15, %v2617_v49  ;;  %v2697_v59 = vld [vmem:[%s15650_s7 + $0xc58] sm:$0xff] }
 0x380   :  { %8885 = vmatpush1.bf16.msra.mxu0 %v10389_v62  ;;  %v10485_v62 = vcombine.low %v2608_v43, %v2616_v44  ;;  %v2704_v43 = vld [vmem:[%s15650_s7 + $0xc90] sm:$0xff] }
 0x381   :  { %9049 = vmatpush1.bf16.msra.mxu1 %v10391_v63  ;;  %8886 = vmatprep.subr.bf16.mxu0 %v10406_v0  ;;  %v10487_v63 = vcombine.low %v2609_v15, %v2617_v49  ;;  %v10502_v0 = vcombine.high %v2624_v56, %v2632_v57  ;;  %v2712_v44 = vld [vmem:[%s15650_s7 + $0xcd0] sm:$0xff]  ;;  %v2705_v15 = vld [vmem:[%s15650_s7 + $0xc98] sm:$0xff] }
 0x382   :  { %9050 = vmatprep.subr.bf16.mxu1 %v10408_v1  ;;  %v10504_v1 = vcombine.high %v2625_v60, %v2633_v61  ;;  %v2713_v49 = vld [vmem:[%s15650_s7 + $0xcd8] sm:$0xff] }
 0x384   :  { %8887 = vmatpush1.bf16.msra.mxu0 %v10405_v11  ;;  %v10501_v11 = vcombine.low %v2624_v56, %v2632_v57  ;;  %v2720_v56 = vld [vmem:[%s15650_s7 + $0xd10] sm:$0xff] }
 0x385   :  { %9051 = vmatpush1.bf16.msra.mxu1 %v10407_v32  ;;  %8888 = vmatprep.subr.bf16.mxu0 %v10422_v12  ;;  %v10503_v32 = vcombine.low %v2625_v60, %v2633_v61  ;;  %v10518_v12 = vcombine.high %v2640_v4, %v2648_v5  ;;  %v2728_v57 = vld [vmem:[%s15650_s7 + $0xd50] sm:$0xff]  ;;  %v2721_v60 = vld [vmem:[%s15650_s7 + $0xd18] sm:$0xff] }
 0x386   :  { %9052 = vmatprep.subr.bf16.mxu1 %v10424_v45  ;;  %v10520_v45 = vcombine.high %v2641_v9, %v2649_v8  ;;  %v2729_v61 = vld [vmem:[%s15650_s7 + $0xd58] sm:$0xff] }
 0x388   :  { %8889 = vmatpush1.bf16.msra.mxu0 %v10421_v23  ;;  %v10517_v23 = vcombine.low %v2640_v4, %v2648_v5  ;;  %v2736_v4 = vld [vmem:[%s15650_s7 + $0xd90] sm:$0xff] }
 0x389   :  { %9053 = vmatpush1.bf16.msra.mxu1 %v10423_v24  ;;  %8899 = vmatprep.subr.bf16.mxu0 %v10438_v25  ;;  %v10519_v24 = vcombine.low %v2641_v9, %v2649_v8  ;;  %v10534_v25 = vcombine.high %v2656_v16, %v2664_v17  ;;  %v2744_v5 = vld [vmem:[%s15650_s7 + $0xdd0] sm:$0xff]  ;;  %v2737_v9 = vld [vmem:[%s15650_s7 + $0xd98] sm:$0xff] }
 0x38a   :  { %9063 = vmatprep.subr.bf16.mxu1 %v10440_v26  ;;  %v10536_v26 = vcombine.high %v2657_v19, %v2665_v20  ;;  %v2745_v8 = vld [vmem:[%s15650_s7 + $0xdd8] sm:$0xff]  ;;  %v2752_v16 = vld [vmem:[%s15650_s7 + $0xe10] sm:$0xff] }
 0x38b   :  { %8891 = vmatmul.mubr.bf16.vlgmr.msra.gmra.mrb[16].mxu0 %v12634_v58  ;;  %v2760_v17 = vld [vmem:[%s15650_s7 + $0xe50] sm:$0xff] }
 0x38c   :  { %9055 = vmatmul.mubr.bf16.vlgmr.msra.gmra.mrb[16].mxu1 %v12634_v58  ;;  %8900 = vmatpush1.bf16.msra.mxu0 %v10437_v40  ;;  %v2673_v40 = vld [vmem:[%s15650_s7 + $0xb98] sm:$0xff] }
 0x38d   :  { %8931 = vmatprep.mubr.bf16.mxu0 %v12650_v2  ;;  %9064 = vmatpush1.bf16.msra.mxu1 %v10439_v31  ;;  %v10535_v31 = vcombine.low %v2657_v19, %v2665_v20  ;;  %v10552_v35 = vcombine.high %v2673_v40, %v2681_v28  ;;  %v2753_v19 = vld [vmem:[%s15650_s7 + $0xe18] sm:$0xff] }
 0x38e   :  { %9095 = vmatprep.mubr.bf16.mxu1 %v12650_v2  ;;  %8901 = vmatprep.subr.bf16.mxu0 %v10454_v34  ;;  %v10550_v34 = vcombine.high %v2672_v33, %v2680_v27  ;;  %v2761_v20 = vld [vmem:[%s15650_s7 + $0xe58] sm:$0xff] }
 0x38f   :  { %9065 = vmatprep.subr.bf16.mxu1 %v10456_v37  ;;  %v2696_v37 = vld [vmem:[%s15650_s7 + $0xc50] sm:$0xff] }
 0x390   :  { %8902 = vmatpush1.bf16.msra.mxu0 %v10453_v38  ;;  %v10549_v38 = vcombine.low %v2672_v33, %v2680_v27  ;;  %v2768_v33 = vld [vmem:[%s15650_s7 + $0xe90] sm:$0xff] }
 0x391   :  { %9066 = vmatpush1.bf16.msra.mxu1 %v10455_v29  ;;  %8903 = vmatprep.subr.bf16.mxu0 %v10470_v41  ;;  %v10551_v29 = vcombine.low %v2673_v40, %v2681_v28  ;;  %v10566_v41 = vcombine.high %v2688_v36, %v2696_v37  ;;  %v2776_v27 = vld [vmem:[%s15650_s7 + $0xed0] sm:$0xff]  ;;  %v2769_v40 = vld [vmem:[%s15650_s7 + $0xe98] sm:$0xff] }
 0x392   :  { %9067 = vmatprep.subr.bf16.mxu1 %v10472_v42  ;;  %v10568_v42 = vcombine.high %v2689_v39, %v2697_v59  ;;  %v2777_v28 = vld [vmem:[%s15650_s7 + $0xed8] sm:$0xff] }
 0x394   :  { %8904 = vmatpush1.bf16.msra.mxu0 %v10469_v50  ;;  %v10565_v50 = vcombine.low %v2688_v36, %v2696_v37  ;;  %v2784_v36 = vld [vmem:[%s15650_s7 + $0xf10] sm:$0xff] }
 0x395   :  { %9068 = vmatpush1.bf16.msra.mxu1 %v10471_v52  ;;  %8905 = vmatprep.subr.bf16.mxu0 %v10486_v53  ;;  %v10567_v52 = vcombine.low %v2689_v39, %v2697_v59  ;;  %v10582_v53 = vcombine.high %v2704_v43, %v2712_v44  ;;  %v2792_v37 = vld [vmem:[%s15650_s7 + $0xf50] sm:$0xff]  ;;  %v2785_v39 = vld [vmem:[%s15650_s7 + $0xf18] sm:$0xff] }
 0x396   :  { %9069 = vmatprep.subr.bf16.mxu1 %v10488_v54  ;;  %v10584_v54 = vcombine.high %v2705_v15, %v2713_v49  ;;  %v2793_v59 = vld [vmem:[%s15650_s7 + $0xf58] sm:$0xff] }
 0x398   :  { %8906 = vmatpush1.bf16.msra.mxu0 %v10485_v62  ;;  %v10581_v62 = vcombine.low %v2704_v43, %v2712_v44  ;;  %v2800_v43 = vld [vmem:[%s15650_s7 + $0xf90] sm:$0xff] }
 0x399   :  { %9070 = vmatpush1.bf16.msra.mxu1 %v10487_v63  ;;  %8907 = vmatprep.subr.bf16.mxu0 %v10502_v0  ;;  %v10583_v63 = vcombine.low %v2705_v15, %v2713_v49  ;;  %v10598_v0 = vcombine.high %v2720_v56, %v2728_v57  ;;  %v2808_v44 = vld [vmem:[%s15650_s7 + $0xfd0] sm:$0xff]  ;;  %v2801_v15 = vld [vmem:[%s15650_s7 + $0xf98] sm:$0xff] }
 0x39a   :  { %9071 = vmatprep.subr.bf16.mxu1 %v10504_v1  ;;  %v10600_v1 = vcombine.high %v2721_v60, %v2729_v61  ;;  %v2809_v49 = vld [vmem:[%s15650_s7 + $0xfd8] sm:$0xff] }
 0x39c   :  { %8908 = vmatpush1.bf16.msra.mxu0 %v10501_v11  ;;  %v10597_v11 = vcombine.low %v2720_v56, %v2728_v57  ;;  %v2816_v56 = vld [vmem:[%s15650_s7 + $0x1010] sm:$0xff] }
 0x39d   :  { %9072 = vmatpush1.bf16.msra.mxu1 %v10503_v32  ;;  %8909 = vmatprep.subr.bf16.mxu0 %v10518_v12  ;;  %v10599_v32 = vcombine.low %v2721_v60, %v2729_v61  ;;  %v10614_v12 = vcombine.high %v2736_v4, %v2744_v5  ;;  %v2824_v57 = vld [vmem:[%s15650_s7 + $0x1050] sm:$0xff]  ;;  %v2817_v60 = vld [vmem:[%s15650_s7 + $0x1018] sm:$0xff] }
 0x39e   :  { %9073 = vmatprep.subr.bf16.mxu1 %v10520_v45  ;;  %v10616_v45 = vcombine.high %v2737_v9, %v2745_v8  ;;  %v2825_v61 = vld [vmem:[%s15650_s7 + $0x1058] sm:$0xff] }
 0x3a0   :  { %8910 = vmatpush1.bf16.msra.mxu0 %v10517_v23  ;;  %v10613_v23 = vcombine.low %v2736_v4, %v2744_v5  ;;  %v2832_v4 = vld [vmem:[%s15650_s7 + $0x1090] sm:$0xff] }
 0x3a1   :  { %9074 = vmatpush1.bf16.msra.mxu1 %v10519_v24  ;;  %8911 = vmatprep.subr.bf16.mxu0 %v10534_v25  ;;  %v10615_v24 = vcombine.low %v2737_v9, %v2745_v8  ;;  %v10630_v25 = vcombine.high %v2752_v16, %v2760_v17  ;;  %v2840_v5 = vld [vmem:[%s15650_s7 + $0x10d0] sm:$0xff]  ;;  %v10693_v9 = vcombine.low %v2816_v56, %v2824_v57  ;;  %v2833_v8 = vld [vmem:[%s15650_s7 + $0x1098] sm:$0xff] }
 0x3a2   :  { %9075 = vmatprep.subr.bf16.mxu1 %v10536_v26  ;;  %v10632_v26 = vcombine.high %v2753_v19, %v2761_v20 }
 0x3a4   :  { %8912 = vmatpush1.bf16.msra.mxu0 %v10533_v30  ;;  %v10629_v30 = vcombine.low %v2752_v16, %v2760_v17  ;;  %v2856_v16 = vld [vmem:[%s15650_s7 + $0x1150] sm:$0xff] }
 0x3a5   :  { %9076 = vmatpush1.bf16.msra.mxu1 %v10535_v31  ;;  %8913 = vmatprep.subr.bf16.mxu0 %v10550_v34  ;;  %v10631_v31 = vcombine.low %v2753_v19, %v2761_v20  ;;  %v10646_v34 = vcombine.high %v2768_v33, %v2776_v27  ;;  %v2849_v19 = vld [vmem:[%s15650_s7 + $0x1118] sm:$0xff] }
 0x3a6   :  { %9077 = vmatprep.subr.bf16.mxu1 %v10552_v35  ;;  %v10648_v35 = vcombine.high %v2769_v40, %v2777_v28  ;;  %v2857_v20 = vld [vmem:[%s15650_s7 + $0x1158] sm:$0xff] }
 0x3a8   :  { %8914 = vmatpush1.bf16.msra.mxu0 %v10549_v38  ;;  %v10645_v38 = vcombine.low %v2768_v33, %v2776_v27  ;;  %v2864_v33 = vld [vmem:[%s15650_s7 + $0x1190] sm:$0xff] }
 0x3a9   :  { %9078 = vmatpush1.bf16.msra.mxu1 %v10551_v29  ;;  %8915 = vmatprep.subr.bf16.mxu0 %v10566_v41  ;;  %v10647_v29 = vcombine.low %v2769_v40, %v2777_v28  ;;  %v10662_v41 = vcombine.high %v2784_v36, %v2792_v37  ;;  %v2872_v27 = vld [vmem:[%s15650_s7 + $0x11d0] sm:$0xff]  ;;  %v2865_v40 = vld [vmem:[%s15650_s7 + $0x1198] sm:$0xff] }
 0x3aa   :  { %9079 = vmatprep.subr.bf16.mxu1 %v10568_v42  ;;  %v10664_v42 = vcombine.high %v2785_v39, %v2793_v59  ;;  %v2873_v28 = vld [vmem:[%s15650_s7 + $0x11d8] sm:$0xff] }
 0x3ac   :  { %8916 = vmatpush1.bf16.msra.mxu0 %v10565_v50  ;;  %v10661_v50 = vcombine.low %v2784_v36, %v2792_v37  ;;  %v2880_v36 = vld [vmem:[%s15650_s7 + $0x1210] sm:$0xff] }
 0x3ad   :  { %9080 = vmatpush1.bf16.msra.mxu1 %v10567_v52  ;;  %8917 = vmatprep.subr.bf16.mxu0 %v10582_v53  ;;  %v10663_v52 = vcombine.low %v2785_v39, %v2793_v59  ;;  %v10678_v53 = vcombine.high %v2800_v43, %v2808_v44  ;;  %v2888_v37 = vld [vmem:[%s15650_s7 + $0x1250] sm:$0xff]  ;;  %v2881_v39 = vld [vmem:[%s15650_s7 + $0x1218] sm:$0xff] }
 0x3ae   :  { %9081 = vmatprep.subr.bf16.mxu1 %v10584_v54  ;;  %v10680_v54 = vcombine.high %v2801_v15, %v2809_v49  ;;  %v2889_v59 = vld [vmem:[%s15650_s7 + $0x1258] sm:$0xff] }
 0x3b0   :  { %8918 = vmatpush1.bf16.msra.mxu0 %v10581_v62  ;;  %v10677_v62 = vcombine.low %v2800_v43, %v2808_v44  ;;  %v2896_v43 = vld [vmem:[%s15650_s7 + $0x1290] sm:$0xff] }
 0x3b1   :  { %9082 = vmatpush1.bf16.msra.mxu1 %v10583_v63  ;;  %8919 = vmatprep.subr.bf16.mxu0 %v10598_v0  ;;  %v10679_v63 = vcombine.low %v2801_v15, %v2809_v49  ;;  %v10694_v0 = vcombine.high %v2816_v56, %v2824_v57  ;;  %v2904_v44 = vld [vmem:[%s15650_s7 + $0x12d0] sm:$0xff]  ;;  %v2897_v15 = vld [vmem:[%s15650_s7 + $0x1298] sm:$0xff] }
 0x3b2   :  { %9083 = vmatprep.subr.bf16.mxu1 %v10600_v1  ;;  %v10696_v1 = vcombine.high %v2817_v60, %v2825_v61  ;;  %v2905_v49 = vld [vmem:[%s15650_s7 + $0x12d8] sm:$0xff]  ;;  %v2912_v56 = vld [vmem:[%s15650_s7 + $0x1310] sm:$0xff] }
 0x3b3   :  { %v2920_v57 = vld [vmem:[%s15650_s7 + $0x1350] sm:$0xff] }
 0x3b4   :  { %8920 = vmatpush1.bf16.msra.mxu0 %v10597_v11  ;;  %v2841_v11 = vld [vmem:[%s15650_s7 + $0x10d8] sm:$0xff] }
 0x3b5   :  { %9084 = vmatpush1.bf16.msra.mxu1 %v10599_v32  ;;  %8921 = vmatprep.subr.bf16.mxu0 %v10614_v12  ;;  %v10695_v32 = vcombine.low %v2817_v60, %v2825_v61  ;;  %v10710_v12 = vcombine.high %v2832_v4, %v2840_v5  ;;  %v10712_v17 = vcombine.high %v2833_v8, %v2841_v11  ;;  %v2913_v60 = vld [vmem:[%s15650_s7 + $0x1318] sm:$0xff] }
 0x3b6   :  { %9085 = vmatprep.subr.bf16.mxu1 %v10616_v45  ;;  %v2848_v45 = vld [vmem:[%s15650_s7 + $0x1110] sm:$0xff]  ;;  %v2921_v61 = vld [vmem:[%s15650_s7 + $0x1358] sm:$0xff] }
 0x3b8   :  { %8922 = vmatpush1.bf16.msra.mxu0 %v10613_v23  ;;  %v10709_v23 = vcombine.low %v2832_v4, %v2840_v5  ;;  %v2928_v4 = vld [vmem:[%s15650_s7 + $0x1390] sm:$0xff] }
 0x3b9   :  { %9086 = vmatpush1.bf16.msra.mxu1 %v10615_v24  ;;  %8923 = vmatprep.subr.bf16.mxu0 %v10630_v25  ;;  %v10711_v24 = vcombine.low %v2833_v8, %v2841_v11  ;;  %v10726_v25 = vcombine.high %v2848_v45, %v2856_v16  ;;  %v2936_v5 = vld [vmem:[%s15650_s7 + $0x13d0] sm:$0xff]  ;;  %v2937_v8 = vld [vmem:[%s15650_s7 + $0x13d8] sm:$0xff]  ;;  %v10789_v11 = vcombine.low %v2912_v56, %v2920_v57 }
 0x3ba   :  { %9087 = vmatprep.subr.bf16.mxu1 %v10632_v26  ;;  %v10728_v26 = vcombine.high %v2849_v19, %v2857_v20 }
 0x3bc   :  { %8924 = vmatpush1.bf16.msra.mxu0 %v10629_v30  ;;  %v10725_v30 = vcombine.low %v2848_v45, %v2856_v16  ;;  %v2944_v16 = vld [vmem:[%s15650_s7 + $0x1410] sm:$0xff] }
 0x3bd   :  { %9088 = vmatpush1.bf16.msra.mxu1 %v10631_v31  ;;  %8925 = vmatprep.subr.bf16.mxu0 %v10646_v34  ;;  %v10727_v31 = vcombine.low %v2849_v19, %v2857_v20  ;;  %v10742_v34 = vcombine.high %v2864_v33, %v2872_v27  ;;  %v2945_v19 = vld [vmem:[%s15650_s7 + $0x1418] sm:$0xff] }
 0x3be   :  { %9089 = vmatprep.subr.bf16.mxu1 %v10648_v35  ;;  %v10744_v35 = vcombine.high %v2865_v40, %v2873_v28  ;;  %v2953_v20 = vld [vmem:[%s15650_s7 + $0x1458] sm:$0xff] }
 0x3c0   :  { %8926 = vmatpush1.bf16.msra.mxu0 %v10645_v38  ;;  %v10741_v38 = vcombine.low %v2864_v33, %v2872_v27  ;;  %v2960_v33 = vld [vmem:[%s15650_s7 + $0x1490] sm:$0xff] }
 0x3c1   :  { %9090 = vmatpush1.bf16.msra.mxu1 %v10647_v29  ;;  %8927 = vmatprep.subr.bf16.mxu0 %v10662_v41  ;;  %v10743_v29 = vcombine.low %v2865_v40, %v2873_v28  ;;  %v10758_v41 = vcombine.high %v2880_v36, %v2888_v37  ;;  %v2968_v27 = vld [vmem:[%s15650_s7 + $0x14d0] sm:$0xff]  ;;  %v2961_v40 = vld [vmem:[%s15650_s7 + $0x1498] sm:$0xff] }
 0x3c2   :  { %9091 = vmatprep.subr.bf16.mxu1 %v10664_v42  ;;  %v10760_v42 = vcombine.high %v2881_v39, %v2889_v59  ;;  %v2969_v28 = vld [vmem:[%s15650_s7 + $0x14d8] sm:$0xff] }
 0x3c4   :  { %8928 = vmatpush1.bf16.msra.mxu0 %v10661_v50  ;;  %v10757_v50 = vcombine.low %v2880_v36, %v2888_v37  ;;  %v2976_v36 = vld [vmem:[%s15650_s7 + $0x1510] sm:$0xff] }
 0x3c5   :  { %9092 = vmatpush1.bf16.msra.mxu1 %v10663_v52  ;;  %8929 = vmatprep.subr.bf16.mxu0 %v10678_v53  ;;  %v10759_v52 = vcombine.low %v2881_v39, %v2889_v59  ;;  %v10774_v53 = vcombine.high %v2896_v43, %v2904_v44  ;;  %v2984_v37 = vld [vmem:[%s15650_s7 + $0x1550] sm:$0xff]  ;;  %v2977_v39 = vld [vmem:[%s15650_s7 + $0x1518] sm:$0xff] }
 0x3c6   :  { %9093 = vmatprep.subr.bf16.mxu1 %v10680_v54  ;;  %v10776_v54 = vcombine.high %v2897_v15, %v2905_v49  ;;  %v2985_v59 = vld [vmem:[%s15650_s7 + $0x1558] sm:$0xff] }
 0x3c8   :  { %8930 = vmatpush1.bf16.msra.mxu0 %v10677_v62  ;;  %v10773_v62 = vcombine.low %v2896_v43, %v2904_v44  ;;  %v2992_v43 = vld [vmem:[%s15650_s7 + $0x1590] sm:$0xff] }
 0x3c9   :  { %9094 = vmatpush1.bf16.msra.mxu1 %v10679_v63  ;;  %8940 = vmatprep.subr.bf16.mxu0 %v10694_v0  ;;  %v10775_v63 = vcombine.low %v2897_v15, %v2905_v49  ;;  %v10790_v0 = vcombine.high %v2912_v56, %v2920_v57  ;;  %v3000_v44 = vld [vmem:[%s15650_s7 + $0x15d0] sm:$0xff]  ;;  %v2993_v15 = vld [vmem:[%s15650_s7 + $0x1598] sm:$0xff] }
 0x3ca   :  { %9104 = vmatprep.subr.bf16.mxu1 %v10696_v1  ;;  %v10792_v1 = vcombine.high %v2913_v60, %v2921_v61  ;;  %v3001_v49 = vld [vmem:[%s15650_s7 + $0x15d8] sm:$0xff]  ;;  %v3008_v56 = vld [vmem:[%s15650_s7 + $0x1610] sm:$0xff] }
 0x3cb   :  { %8932 = vmatmul.mubr.bf16.vlgmr.msra.gmra.mrb[16].mxu0 %v12839_v21  ;;  %v3016_v57 = vld [vmem:[%s15650_s7 + $0x1650] sm:$0xff] }
 0x3cc   :  { %9096 = vmatmul.mubr.bf16.vlgmr.msra.gmra.mrb[16].mxu1 %v12839_v21  ;;  %8941 = vmatpush1.bf16.msra.mxu0 %v10693_v9  ;;  %v2929_v9 = vld [vmem:[%s15650_s7 + $0x1398] sm:$0xff] }
 0x3cd   :  { %8972 = vmatprep.mubr.bf16.mxu0 %v13052_v3  ;;  %9105 = vmatpush1.bf16.msra.mxu1 %v10695_v32  ;;  %v10791_v32 = vcombine.low %v2913_v60, %v2921_v61  ;;  %v10808_v45 = vcombine.high %v2929_v9, %v2937_v8  ;;  %v3009_v60 = vld [vmem:[%s15650_s7 + $0x1618] sm:$0xff] }
 0x3ce   :  { %9136 = vmatprep.mubr.bf16.mxu1 %v13052_v3  ;;  %8942 = vmatprep.subr.bf16.mxu0 %v10710_v12  ;;  %v10806_v12 = vcombine.high %v2928_v4, %v2936_v5  ;;  %v3017_v61 = vld [vmem:[%s15650_s7 + $0x1658] sm:$0xff] }
 0x3cf   :  { %9106 = vmatprep.subr.bf16.mxu1 %v10712_v17  ;;  %v2952_v17 = vld [vmem:[%s15650_s7 + $0x1450] sm:$0xff] }
 0x3d0   :  { %8943 = vmatpush1.bf16.msra.mxu0 %v10709_v23  ;;  %v10805_v23 = vcombine.low %v2928_v4, %v2936_v5  ;;  %v3024_v4 = vld [vmem:[%s15650_s7 + $0x1690] sm:$0xff] }
 0x3d1   :  { %9107 = vmatpush1.bf16.msra.mxu1 %v10711_v24  ;;  %8944 = vmatprep.subr.bf16.mxu0 %v10726_v25  ;;  %v10807_v24 = vcombine.low %v2929_v9, %v2937_v8  ;;  %v10822_v25 = vcombine.high %v2944_v16, %v2952_v17  ;;  %v3032_v5 = vld [vmem:[%s15650_s7 + $0x16d0] sm:$0xff]  ;;  %v3025_v9 = vld [vmem:[%s15650_s7 + $0x1698] sm:$0xff] }
 0x3d2   :  { %9108 = vmatprep.subr.bf16.mxu1 %v10728_v26  ;;  %v10824_v26 = vcombine.high %v2945_v19, %v2953_v20  ;;  %v3033_v8 = vld [vmem:[%s15650_s7 + $0x16d8] sm:$0xff] }
 0x3d4   :  { %8945 = vmatpush1.bf16.msra.mxu0 %v10725_v30  ;;  %v10821_v30 = vcombine.low %v2944_v16, %v2952_v17  ;;  %v3040_v16 = vld [vmem:[%s15650_s7 + $0x1710] sm:$0xff] }
 0x3d5   :  { %9109 = vmatpush1.bf16.msra.mxu1 %v10727_v31  ;;  %8946 = vmatprep.subr.bf16.mxu0 %v10742_v34  ;;  %v10823_v31 = vcombine.low %v2945_v19, %v2953_v20  ;;  %v10838_v34 = vcombine.high %v2960_v33, %v2968_v27  ;;  %v3048_v17 = vld [vmem:[%s15650_s7 + $0x1750] sm:$0xff]  ;;  %v3041_v19 = vld [vmem:[%s15650_s7 + $0x1718] sm:$0xff] }
 0x3d6   :  { %9110 = vmatprep.subr.bf16.mxu1 %v10744_v35  ;;  %v10840_v35 = vcombine.high %v2961_v40, %v2969_v28  ;;  %v3049_v20 = vld [vmem:[%s15650_s7 + $0x1758] sm:$0xff] }
 0x3d8   :  { %8947 = vmatpush1.bf16.msra.mxu0 %v10741_v38  ;;  %v10837_v38 = vcombine.low %v2960_v33, %v2968_v27  ;;  %v3056_v33 = vld [vmem:[%s15650_s7 + $0x1790] sm:$0xff] }
 0x3d9   :  { %9111 = vmatpush1.bf16.msra.mxu1 %v10743_v29  ;;  %8948 = vmatprep.subr.bf16.mxu0 %v10758_v41  ;;  %v10839_v29 = vcombine.low %v2961_v40, %v2969_v28  ;;  %v10854_v41 = vcombine.high %v2976_v36, %v2984_v37  ;;  %v3064_v27 = vld [vmem:[%s15650_s7 + $0x17d0] sm:$0xff]  ;;  %v3057_v40 = vld [vmem:[%s15650_s7 + $0x1798] sm:$0xff] }
 0x3da   :  { %9112 = vmatprep.subr.bf16.mxu1 %v10760_v42  ;;  %v10856_v42 = vcombine.high %v2977_v39, %v2985_v59  ;;  %v3065_v28 = vld [vmem:[%s15650_s7 + $0x17d8] sm:$0xff] }
 0x3dc   :  { %8949 = vmatpush1.bf16.msra.mxu0 %v10757_v50  ;;  %v10853_v50 = vcombine.low %v2976_v36, %v2984_v37  ;;  %v3072_v36 = vld [vmem:[%s15650_s7 + $0x1810] sm:$0xff] }
 0x3dd   :  { %9113 = vmatpush1.bf16.msra.mxu1 %v10759_v52  ;;  %8950 = vmatprep.subr.bf16.mxu0 %v10774_v53  ;;  %v10855_v52 = vcombine.low %v2977_v39, %v2985_v59  ;;  %v10870_v53 = vcombine.high %v2992_v43, %v3000_v44  ;;  %v3080_v37 = vld [vmem:[%s15650_s7 + $0x1850] sm:$0xff]  ;;  %v3073_v39 = vld [vmem:[%s15650_s7 + $0x1818] sm:$0xff] }
 0x3de   :  { %9114 = vmatprep.subr.bf16.mxu1 %v10776_v54  ;;  %v10872_v54 = vcombine.high %v2993_v15, %v3001_v49  ;;  %v3081_v59 = vld [vmem:[%s15650_s7 + $0x1858] sm:$0xff] }
 0x3e0   :  { %8951 = vmatpush1.bf16.msra.mxu0 %v10773_v62  ;;  %v10869_v62 = vcombine.low %v2992_v43, %v3000_v44  ;;  %v3088_v43 = vld [vmem:[%s15650_s7 + $0x1890] sm:$0xff] }
 0x3e1   :  { %9115 = vmatpush1.bf16.msra.mxu1 %v10775_v63  ;;  %8952 = vmatprep.subr.bf16.mxu0 %v10790_v0  ;;  %v10871_v63 = vcombine.low %v2993_v15, %v3001_v49  ;;  %v10886_v0 = vcombine.high %v3008_v56, %v3016_v57  ;;  %v3096_v44 = vld [vmem:[%s15650_s7 + $0x18d0] sm:$0xff]  ;;  %v10949_v15 = vcombine.low %v3072_v36, %v3080_v37  ;;  %v3089_v49 = vld [vmem:[%s15650_s7 + $0x1898] sm:$0xff] }
 0x3e2   :  { %9116 = vmatprep.subr.bf16.mxu1 %v10792_v1  ;;  %v10888_v1 = vcombine.high %v3009_v60, %v3017_v61 }
 0x3e4   :  { %8953 = vmatpush1.bf16.msra.mxu0 %v10789_v11  ;;  %v10885_v11 = vcombine.low %v3008_v56, %v3016_v57  ;;  %v3112_v56 = vld [vmem:[%s15650_s7 + $0x1950] sm:$0xff] }
 0x3e5   :  { %9117 = vmatpush1.bf16.msra.mxu1 %v10791_v32  ;;  %8954 = vmatprep.subr.bf16.mxu0 %v10806_v12  ;;  %v10887_v32 = vcombine.low %v3009_v60, %v3017_v61  ;;  %v10902_v12 = vcombine.high %v3024_v4, %v3032_v5  ;;  %v3105_v60 = vld [vmem:[%s15650_s7 + $0x1918] sm:$0xff] }
 0x3e6   :  { %9118 = vmatprep.subr.bf16.mxu1 %v10808_v45  ;;  %v10904_v45 = vcombine.high %v3025_v9, %v3033_v8  ;;  %v3113_v61 = vld [vmem:[%s15650_s7 + $0x1958] sm:$0xff] }
 0x3e8   :  { %8955 = vmatpush1.bf16.msra.mxu0 %v10805_v23  ;;  %v10901_v23 = vcombine.low %v3024_v4, %v3032_v5  ;;  %v3120_v4 = vld [vmem:[%s15650_s7 + $0x1990] sm:$0xff] }
 0x3e9   :  { %9119 = vmatpush1.bf16.msra.mxu1 %v10807_v24  ;;  %8956 = vmatprep.subr.bf16.mxu0 %v10822_v25  ;;  %v10903_v24 = vcombine.low %v3025_v9, %v3033_v8  ;;  %v10918_v25 = vcombine.high %v3040_v16, %v3048_v17  ;;  %v3128_v5 = vld [vmem:[%s15650_s7 + $0x19d0] sm:$0xff]  ;;  %v3121_v9 = vld [vmem:[%s15650_s7 + $0x1998] sm:$0xff] }
 0x3ea   :  { %9120 = vmatprep.subr.bf16.mxu1 %v10824_v26  ;;  %v10920_v26 = vcombine.high %v3041_v19, %v3049_v20  ;;  %v3129_v8 = vld [vmem:[%s15650_s7 + $0x19d8] sm:$0xff] }
 0x3ec   :  { %8957 = vmatpush1.bf16.msra.mxu0 %v10821_v30  ;;  %v10917_v30 = vcombine.low %v3040_v16, %v3048_v17  ;;  %v3136_v16 = vld [vmem:[%s15650_s7 + $0x1a10] sm:$0xff] }
 0x3ed   :  { %9121 = vmatpush1.bf16.msra.mxu1 %v10823_v31  ;;  %8958 = vmatprep.subr.bf16.mxu0 %v10838_v34  ;;  %v10919_v31 = vcombine.low %v3041_v19, %v3049_v20  ;;  %v10934_v34 = vcombine.high %v3056_v33, %v3064_v27  ;;  %v3144_v17 = vld [vmem:[%s15650_s7 + $0x1a50] sm:$0xff]  ;;  %v3137_v19 = vld [vmem:[%s15650_s7 + $0x1a18] sm:$0xff] }
 0x3ee   :  { %9122 = vmatprep.subr.bf16.mxu1 %v10840_v35  ;;  %v10936_v35 = vcombine.high %v3057_v40, %v3065_v28  ;;  %v3145_v20 = vld [vmem:[%s15650_s7 + $0x1a58] sm:$0xff] }
 0x3f0   :  { %8959 = vmatpush1.bf16.msra.mxu0 %v10837_v38  ;;  %v10933_v38 = vcombine.low %v3056_v33, %v3064_v27  ;;  %v3152_v33 = vld [vmem:[%s15650_s7 + $0x1a90] sm:$0xff] }
 0x3f1   :  { %9123 = vmatpush1.bf16.msra.mxu1 %v10839_v29  ;;  %8960 = vmatprep.subr.bf16.mxu0 %v10854_v41  ;;  %v10935_v29 = vcombine.low %v3057_v40, %v3065_v28  ;;  %v10950_v41 = vcombine.high %v3072_v36, %v3080_v37  ;;  %v3160_v27 = vld [vmem:[%s15650_s7 + $0x1ad0] sm:$0xff]  ;;  %v3153_v40 = vld [vmem:[%s15650_s7 + $0x1a98] sm:$0xff] }
 0x3f2   :  { %9124 = vmatprep.subr.bf16.mxu1 %v10856_v42  ;;  %v10952_v42 = vcombine.high %v3073_v39, %v3081_v59  ;;  %v3161_v28 = vld [vmem:[%s15650_s7 + $0x1ad8] sm:$0xff]  ;;  %v3168_v37 = vld [vmem:[%s15650_s7 + $0x1b10] sm:$0xff] }
 0x3f3   :  { %v11032_v36 = vcombine.high %v3153_v40, %v3161_v28 }
 0x3f4   :  { %8961 = vmatpush1.bf16.msra.mxu0 %v10853_v50  ;;  %v3097_v50 = vld [vmem:[%s15650_s7 + $0x18d8] sm:$0xff] }
 0x3f5   :  { %9125 = vmatpush1.bf16.msra.mxu1 %v10855_v52  ;;  %8962 = vmatprep.subr.bf16.mxu0 %v10870_v53  ;;  %v10951_v52 = vcombine.low %v3073_v39, %v3081_v59  ;;  %v10966_v53 = vcombine.high %v3088_v43, %v3096_v44  ;;  %v10968_v57 = vcombine.high %v3089_v49, %v3097_v50  ;;  %v3176_v39 = vld [vmem:[%s15650_s7 + $0x1b50] sm:$0xff] }
 0x3f6   :  { %9126 = vmatprep.subr.bf16.mxu1 %v10872_v54  ;;  %v3104_v54 = vld [vmem:[%s15650_s7 + $0x1910] sm:$0xff] }
 0x3f8   :  { %8963 = vmatpush1.bf16.msra.mxu0 %v10869_v62  ;;  %v10965_v62 = vcombine.low %v3088_v43, %v3096_v44  ;;  %v11029_v44 = vcombine.low %v3152_v33, %v3160_v27 }
 0x3f9   :  { %9127 = vmatpush1.bf16.msra.mxu1 %v10871_v63  ;;  %8964 = vmatprep.subr.bf16.mxu0 %v10886_v0  ;;  %v10967_v63 = vcombine.low %v3089_v49, %v3097_v50  ;;  %v10982_v0 = vcombine.high %v3104_v54, %v3112_v56  ;;  %v11046_v49 = vcombine.high %v3168_v37, %v3176_v39 }
 0x3fa   :  { %9128 = vmatprep.subr.bf16.mxu1 %v10888_v1  ;;  %v10984_v1 = vcombine.high %v3105_v60, %v3113_v61 }
 0x3fc   :  { %8965 = vmatpush1.bf16.msra.mxu0 %v10885_v11  ;;  %v10981_v11 = vcombine.low %v3104_v54, %v3112_v56  ;;  %v3184_v54 = vld [vmem:[%s15650_s7 + $0x1b90] sm:$0xff] }
 0x3fd   :  { %9129 = vmatpush1.bf16.msra.mxu1 %v10887_v32  ;;  %8966 = vmatprep.subr.bf16.mxu0 %v10902_v12  ;;  %v10983_v32 = vcombine.low %v3105_v60, %v3113_v61  ;;  %v10998_v12 = vcombine.high %v3120_v4, %v3128_v5  ;;  %v3192_v56 = vld [vmem:[%s15650_s7 + $0x1bd0] sm:$0xff] }
 0x3fe   :  { %9130 = vmatprep.subr.bf16.mxu1 %v10904_v45  ;;  %v11000_v45 = vcombine.high %v3121_v9, %v3129_v8 }
 0x400   :  { %8967 = vmatpush1.bf16.msra.mxu0 %v10901_v23  ;;  %v10997_v23 = vcombine.low %v3120_v4, %v3128_v5 }
 0x401   :  { %9131 = vmatpush1.bf16.msra.mxu1 %v10903_v24  ;;  %8968 = vmatprep.subr.bf16.mxu0 %v10918_v25  ;;  %v10999_v24 = vcombine.low %v3121_v9, %v3129_v8  ;;  %v11014_v25 = vcombine.high %v3136_v16, %v3144_v17  ;;  %v11045_v8 = vcombine.low %v3168_v37, %v3176_v39 }
 0x402   :  { %9132 = vmatprep.subr.bf16.mxu1 %v10920_v26  ;;  %v11016_v26 = vcombine.high %v3137_v19, %v3145_v20 }
 0x404   :  { %8969 = vmatpush1.bf16.msra.mxu0 %v10917_v30  ;;  %v11013_v30 = vcombine.low %v3136_v16, %v3144_v17  ;;  %v11062_v17 = vcombine.high %v3184_v54, %v3192_v56 }
 0x405   :  { %9133 = vmatpush1.bf16.msra.mxu1 %v10919_v31  ;;  %8970 = vmatprep.subr.bf16.mxu0 %v10934_v34  ;;  %v3326_v31 = vld [vmem:[%s15651_s8] sm:$0xff]  ;;  %v11015_v34 = vcombine.low %v3137_v19, %v3145_v20 }
 0x406   :  { %9134 = vmatprep.subr.bf16.mxu1 %v10936_v35  ;;  %v11030_v35 = vcombine.high %v3152_v33, %v3160_v27  ;;  %v3333_v59 = vrot.slane %v3326_v31, %v11587_v46  ;;  %v3345_v43 = vrot.slane %v3326_v31, %v11802_v10  ;;  %v3209_v33 = vld [vmem:[%s15650_s7 + $0x1c58] sm:$0xff]  ;;  %v11061_v27 = vcombine.low %v3184_v54, %v3192_v56 }
 0x407   :  { %v3249_v54 = vld [vmem:[%s15650_s7 + $0x1d98] sm:$0xff] }
 0x408   :  { %8971 = vmatpush1.bf16.msra.mxu0 %v10933_v38  ;;  %v3341_v38 = vrot.slane %v3326_v31, %v11593_v48  ;;  %v3257_v56 = vld [vmem:[%s15650_s7 + $0x1dd8] sm:$0xff] }
 0x409   :  { %9135 = vmatpush1.bf16.msra.mxu1 %v10935_v29  ;;  %8981 = vmatprep.subr.bf16.mxu0 %v10950_v41  ;;  %v3169_v29 = vld [vmem:[%s15650_s7 + $0x1b18] sm:$0xff] }
 0x40a   :  { %9145 = vmatprep.subr.bf16.mxu1 %v10952_v42  ;;  %v3177_v41 = vld [vmem:[%s15650_s7 + $0x1b58] sm:$0xff]  ;;  %v3337_v42 = vrot.slane %v3326_v31, %v11590_v47  ;;  %v3216_v31 = vld [vmem:[%s15650_s7 + $0x1c90] sm:$0xff] }
 0x40b   :  { %8973 = vmatmul.mubr.bf16.vlgmr.msra.gmra.mrb[16].mxu0 %v13054_v6  ;;  %v11047_v16 = vcombine.low %v3169_v29, %v3177_v41 }
 0x40c   :  { %9137 = vmatmul.mubr.bf16.vlgmr.msra.gmra.mrb[16].mxu1 %v13054_v6  ;;  %8982 = vmatpush1.bf16.msra.mxu0 %v10949_v15  ;;  %v11031_v15 = vcombine.low %v3153_v40, %v3161_v28 }
 0x40d   :  { %9013 = vmatprep.mubr.bf16.mxu0 %v13070_v13  ;;  %9146 = vmatpush1.bf16.msra.mxu1 %v10951_v52 }
 0x40e   :  { %9177 = vmatprep.mubr.bf16.mxu1 %v13070_v13  ;;  %8983 = vmatprep.subr.bf16.mxu0 %v10966_v53  ;;  %v11048_v53 = vcombine.high %v3169_v29, %v3177_v41  ;;  %v3232_v29 = vld [vmem:[%s15650_s7 + $0x1d10] sm:$0xff] }
 0x40f   :  { %9147 = vmatprep.subr.bf16.mxu1 %v10968_v57  ;;  %v3240_v41 = vld [vmem:[%s15650_s7 + $0x1d50] sm:$0xff] }
 0x410   :  { %8984 = vmatpush1.bf16.msra.mxu0 %v10965_v62 }
 0x411   :  { %9148 = vmatpush1.bf16.msra.mxu1 %v10967_v63  ;;  %8985 = vmatprep.subr.bf16.mxu0 %v10982_v0  ;;  %v3185_v63 = vld [vmem:[%s15650_s7 + $0x1b98] sm:$0xff] }
 0x412   :  { %9149 = vmatprep.subr.bf16.mxu1 %v10984_v1  ;;  %v3193_v0 = vld [vmem:[%s15650_s7 + $0x1bd8] sm:$0xff] }
 0x413   :  { %v11063_v40 = vcombine.low %v3185_v63, %v3193_v0 }
 0x414   :  { %8986 = vmatpush1.bf16.msra.mxu0 %v10981_v11 }
 0x415   :  { %9150 = vmatpush1.bf16.msra.mxu1 %v10983_v32  ;;  %8987 = vmatprep.subr.bf16.mxu0 %v10998_v12 }
 0x416   :  { %9151 = vmatprep.subr.bf16.mxu1 %v11000_v45 }
 0x418   :  { %8988 = vmatpush1.bf16.msra.mxu0 %v10997_v23  ;;  %v11064_v23 = vcombine.high %v3185_v63, %v3193_v0  ;;  %v3264_v63 = vld [vmem:[%s15650_s7 + $0x1e10] sm:$0xff] }
 0x419   :  { %9152 = vmatpush1.bf16.msra.mxu1 %v10999_v24  ;;  %8989 = vmatprep.subr.bf16.mxu0 %v11014_v25  ;;  %v3200_v24 = vld [vmem:[%s15650_s7 + $0x1c10] sm:$0xff] }
 0x41a   :  { %9153 = vmatprep.subr.bf16.mxu1 %v11016_v26  ;;  %v3208_v25 = vld [vmem:[%s15650_s7 + $0x1c50] sm:$0xff]  ;;  %v3201_v26 = vld [vmem:[%s15650_s7 + $0x1c18] sm:$0xff] }
 0x41b   :  { %v11078_v28 = vcombine.high %v3200_v24, %v3208_v25  ;;  %v11077_v37 = vcombine.low %v3200_v24, %v3208_v25  ;;  %v11079_v39 = vcombine.low %v3201_v26, %v3209_v33  ;;  %v3272_v0 = vld [vmem:[%s15650_s7 + $0x1e50] sm:$0xff] }
 0x41c   :  { %8990 = vmatpush1.bf16.msra.mxu0 %v11013_v30  ;;  %v11080_v30 = vcombine.high %v3201_v26, %v3209_v33  ;;  %v3296_v24 = vld [vmem:[%s15650_s7 + $0x1f10] sm:$0xff]  ;;  %v3297_v26 = vld [vmem:[%s15650_s7 + $0x1f18] sm:$0xff] }
 0x41d   :  { %9154 = vmatpush1.bf16.msra.mxu1 %v11015_v34  ;;  %8991 = vmatprep.subr.bf16.mxu0 %v11030_v35  ;;  %v3224_v34 = vld [vmem:[%s15650_s7 + $0x1cd0] sm:$0xff]  ;;  %v3217_v35 = vld [vmem:[%s15650_s7 + $0x1c98] sm:$0xff] }
 0x41e   :  { %v8687_v50 = vpop.f32.mrb[12].mxu0  ;;  %v8851_v52 = vpop.f32.mrb[12].mxu1  ;;  %9155 = vmatprep.subr.bf16.mxu1 %v11032_v36  ;;  %v3225_v36 = vld [vmem:[%s15650_s7 + $0x1cd8] sm:$0xff]  ;;  %v3304_v25 = vld [vmem:[%s15650_s7 + $0x1f50] sm:$0xff] }
 0x41f   :  { %v11209_v57 = vadd.f32 %v8687_v50, %v3333_v59  ;;  %v11211_v60 = vadd.f32 %v8851_v52, %v3341_v38  ;;  %v8689_v61 = vpop.f32.mrb[13].mxu0  ;;  %v8853_v62 = vpop.f32.mrb[13].mxu1  ;;  %v11094_v59 = vcombine.high %v3216_v31, %v3224_v34  ;;  %v11096_v38 = vcombine.high %v3217_v35, %v3225_v36  ;;  %v3248_v52 = vld [vmem:[%s15650_s7 + $0x1d90] sm:$0xff]  ;;  %v3305_v33 = vld [vmem:[%s15650_s7 + $0x1f58] sm:$0xff] }
 0x420   :  { %v11210_v1 = vadd.f32 %v8689_v61, %v3337_v42  ;;  %v11212_v4 = vadd.f32 %v8853_v62, %v3345_v43  ;;  %v8691_v5 = vpop.f32.mrb[14].mxu0  ;;  %v8855_v9 = vpop.f32.mrb[14].mxu1  ;;  %8992 = vmatpush1.bf16.msra.mxu0 %v11029_v44  ;;  %v3233_v42 = vld [vmem:[%s15650_s7 + $0x1d18] sm:$0xff]  ;;  %v11093_v44 = vcombine.low %v3216_v31, %v3224_v34  ;;  %v11128_v62 = vcombine.high %v3249_v54, %v3257_v56  ;;  %v3312_v31 = vld [vmem:[%s15650_s7 + $0x1f90] sm:$0xff] }
 0x421   :  { %v9842_v11 = vmax.f32 %v11209_v57, 0.0  ;;  %v9844_v32 = vmax.f32 %v11211_v60, 0.0  ;;  %9156 = vmatpush1.bf16.msra.mxu1 %v11031_v15  ;;  %v8692_v12 = vpop.f32.mrb[15].mxu0  ;;  %v8856_v45 = vpop.f32.mrb[15].mxu1  ;;  %8993 = vmatprep.subr.bf16.mxu0 %v11046_v49  ;;  %v3241_v43 = vld [vmem:[%s15650_s7 + $0x1d58] sm:$0xff]  ;;  %v11095_v15 = vcombine.low %v3217_v35, %v3225_v36  ;;  %v11110_v49 = vcombine.high %v3232_v29, %v3240_v41  ;;  %v3320_v34 = vld [vmem:[%s15650_s7 + $0x1fd0] sm:$0xff] }
 0x422   :  { %v9843_v19 = vmax.f32 %v11210_v1, 0.0  ;;  %v9845_v20 = vmax.f32 %v11212_v4, 0.0  ;;  %9157 = vmatprep.subr.bf16.mxu1 %v11048_v53  ;;  %v11112_v50 = vcombine.high %v3233_v42, %v3241_v43  ;;  %v3256_v53 = vld [vmem:[%s15650_s7 + $0x1dd0] sm:$0xff]  ;;  %v11109_v57 = vcombine.low %v3232_v29, %v3240_v41  ;;  %v3265_v1 = vld [vmem:[%s15650_s7 + $0x1e18] sm:$0xff]  ;;  %v2306_v29 = vld [vmem:[%s15650_s7 + $0x20] sm:$0xff] }
 0x423   :  { %9858 = vst [vmem:[#allocation2] sm:$0xff] %v9842_v11  ;;  %9860 = vst [vmem:[#allocation2 + $0x10] sm:$0xff] %v9844_v32  ;;  %v11111_v60 = vcombine.low %v3233_v42, %v3241_v43  ;;  %v11126_v61 = vcombine.high %v3248_v52, %v3256_v53  ;;  %v3273_v4 = vld [vmem:[%s15650_s7 + $0x1e58] sm:$0xff]  ;;  %v11125_v5 = vcombine.low %v3248_v52, %v3256_v53  ;;  %v3280_v32 = vld [vmem:[%s15650_s7 + $0x1e90] sm:$0xff] }
 0x424   :  { %9859 = vst [vmem:[#allocation2 + $0x8] sm:$0xff] %v9843_v19  ;;  %9861 = vst [vmem:[#allocation2 + $0x18] sm:$0xff] %v9845_v20  ;;  %8994 = vmatpush1.bf16.msra.mxu0 %v11045_v8  ;;  %v11127_v9 = vcombine.low %v3249_v54, %v3257_v56  ;;  %v11142_v8 = vcombine.high %v3264_v63, %v3272_v0  ;;  %v11144_v11 = vcombine.high %v3265_v1, %v3273_v4  ;;  %v3288_v12 = vld [vmem:[%s15650_s7 + $0x1ed0] sm:$0xff]  ;;  %v3281_v45 = vld [vmem:[%s15650_s7 + $0x1e98] sm:$0xff] }
 0x425   :  { %9158 = vmatpush1.bf16.msra.mxu1 %v11047_v16  ;;  %8995 = vmatprep.subr.bf16.mxu0 %v11062_v17  ;;  %v3289_v16 = vld [vmem:[%s15650_s7 + $0x1ed8] sm:$0xff]  ;;  %v11141_v17 = vcombine.low %v3264_v63, %v3272_v0  ;;  %v11143_v19 = vcombine.low %v3265_v1, %v3273_v4  ;;  %v11158_v20 = vcombine.high %v3280_v32, %v3288_v12  ;;  %v2314_v41 = vld [vmem:[%s15650_s7 + $0x60] sm:$0xff]  ;;  %v2307_v42 = vld [vmem:[%s15650_s7 + $0x28] sm:$0xff] }
 0x426   :  { %9159 = vmatprep.subr.bf16.mxu1 %v11064_v23  ;;  %v11160_v23 = vcombine.high %v3281_v45, %v3289_v16  ;;  %v3313_v35 = vld [vmem:[%s15650_s7 + $0x1f98] sm:$0xff]  ;;  %v2315_v43 = vld [vmem:[%s15650_s7 + $0x68] sm:$0xff]  ;;  %v2322_v52 = vld [vmem:[%s15650_s7 + $0xa0] sm:$0xff]  ;;  %v10185_v54 = vcombine.low %v2306_v29, %v2314_v41 }
 0x427   :  { %v3321_v36 = vld [vmem:[%s15650_s7 + $0x1fd8] sm:$0xff]  ;;  %v2330_v53 = vld [vmem:[%s15650_s7 + $0xe0] sm:$0xff]  ;;  %v2323_v56 = vld [vmem:[%s15650_s7 + $0xa8] sm:$0xff] }
 0x428   :  { %8996 = vmatpush1.bf16.msra.mxu0 %v11061_v27  ;;  %v11157_v27 = vcombine.low %v3280_v32, %v3288_v12  ;;  %v2346_v63 = vld [vmem:[%s15650_s7 + $0x160] sm:$0xff]  ;;  %v2339_v1 = vld [vmem:[%s15650_s7 + $0x128] sm:$0xff] }
 0x429   :  { %9160 = vmatpush1.bf16.msra.mxu1 %v11063_v40  ;;  %8997 = vmatprep.subr.bf16.mxu0 %v11078_v28  ;;  %v11159_v40 = vcombine.low %v3281_v45, %v3289_v16  ;;  %v11174_v28 = vcombine.high %v3296_v24, %v3304_v25  ;;  %v2347_v4 = vld [vmem:[%s15650_s7 + $0x168] sm:$0xff]  ;;  %v2354_v32 = vld [vmem:[%s15650_s7 + $0x1a0] sm:$0xff] }
 0x42a   :  { %9161 = vmatprep.subr.bf16.mxu1 %v11080_v30  ;;  %v11176_v30 = vcombine.high %v3297_v26, %v3305_v33  ;;  %v2362_v12 = vld [vmem:[%s15650_s7 + $0x1e0] sm:$0xff]  ;;  %v2355_v45 = vld [vmem:[%s15650_s7 + $0x1a8] sm:$0xff] }
 0x42b   :  { %v2363_v16 = vld [vmem:[%s15650_s7 + $0x1e8] sm:$0xff] }
 0x42c   :  { %8998 = vmatpush1.bf16.msra.mxu0 %v11077_v37  ;;  %v11173_v37 = vcombine.low %v3296_v24, %v3304_v25  ;;  %v2370_v24 = vld [vmem:[%s15650_s7 + $0x220] sm:$0xff] }
 0x42d   :  { %9162 = vmatpush1.bf16.msra.mxu1 %v11079_v39  ;;  %8999 = vmatprep.subr.bf16.mxu0 %v11094_v59  ;;  %v11175_v39 = vcombine.low %v3297_v26, %v3305_v33  ;;  %v11190_v59 = vcombine.high %v3312_v31, %v3320_v34  ;;  %v2378_v25 = vld [vmem:[%s15650_s7 + $0x260] sm:$0xff]  ;;  %v2371_v26 = vld [vmem:[%s15650_s7 + $0x228] sm:$0xff] }
 0x42e   :  { %9163 = vmatprep.subr.bf16.mxu1 %v11096_v38  ;;  %v11192_v38 = vcombine.high %v3313_v35, %v3321_v36  ;;  %v2379_v33 = vld [vmem:[%s15650_s7 + $0x268] sm:$0xff] }
 0x430   :  { %9000 = vmatpush1.bf16.msra.mxu0 %v11093_v44  ;;  %v11189_v44 = vcombine.low %v3312_v31, %v3320_v34  ;;  %v2386_v31 = vld [vmem:[%s15650_s7 + $0x2a0] sm:$0xff] }
 0x431   :  { %9164 = vmatpush1.bf16.msra.mxu1 %v11095_v15  ;;  %9001 = vmatprep.subr.bf16.mxu0 %v11110_v49  ;;  %v11191_v15 = vcombine.low %v3313_v35, %v3321_v36  ;;  %v10186_v49 = vcombine.high %v2306_v29, %v2314_v41  ;;  %v2394_v34 = vld [vmem:[%s15650_s7 + $0x2e0] sm:$0xff]  ;;  %v2387_v35 = vld [vmem:[%s15650_s7 + $0x2a8] sm:$0xff] }
 0x432   :  { %9165 = vmatprep.subr.bf16.mxu1 %v11112_v50  ;;  %v10188_v50 = vcombine.high %v2307_v42, %v2315_v43  ;;  %v2395_v36 = vld [vmem:[%s15650_s7 + $0x2e8] sm:$0xff]  ;;  %v2402_v29 = vld [vmem:[%s15650_s7 + $0x320] sm:$0xff] }
 0x433   :  { %v2410_v41 = vld [vmem:[%s15650_s7 + $0x360] sm:$0xff] }
 0x434   :  { %9002 = vmatpush1.bf16.msra.mxu0 %v11109_v57  ;;  %v2331_v57 = vld [vmem:[%s15650_s7 + $0xe8] sm:$0xff] }
 0x435   :  { %9166 = vmatpush1.bf16.msra.mxu1 %v11111_v60  ;;  %9003 = vmatprep.subr.bf16.mxu0 %v11126_v61  ;;  %v10187_v60 = vcombine.low %v2307_v42, %v2315_v43  ;;  %v10202_v61 = vcombine.high %v2322_v52, %v2330_v53  ;;  %v10204_v0 = vcombine.high %v2323_v56, %v2331_v57  ;;  %v2403_v42 = vld [vmem:[%s15650_s7 + $0x328] sm:$0xff] }
 0x436   :  { %9167 = vmatprep.subr.bf16.mxu1 %v11128_v62  ;;  %v2338_v62 = vld [vmem:[%s15650_s7 + $0x120] sm:$0xff]  ;;  %v2411_v43 = vld [vmem:[%s15650_s7 + $0x368] sm:$0xff] }
 0x438   :  { %9004 = vmatpush1.bf16.msra.mxu0 %v11125_v5  ;;  %v10201_v5 = vcombine.low %v2322_v52, %v2330_v53  ;;  %v2418_v52 = vld [vmem:[%s15650_s7 + $0x3a0] sm:$0xff] }
 0x439   :  { %9168 = vmatpush1.bf16.msra.mxu1 %v11127_v9  ;;  %9005 = vmatprep.subr.bf16.mxu0 %v11142_v8  ;;  %v10203_v9 = vcombine.low %v2323_v56, %v2331_v57  ;;  %v10218_v8 = vcombine.high %v2338_v62, %v2346_v63  ;;  %v2426_v53 = vld [vmem:[%s15650_s7 + $0x3e0] sm:$0xff]  ;;  %v2427_v56 = vld [vmem:[%s15650_s7 + $0x3e8] sm:$0xff]  ;;  %v10281_v57 = vcombine.low %v2402_v29, %v2410_v41 }
 0x43a   :  { %9169 = vmatprep.subr.bf16.mxu1 %v11144_v11  ;;  %v10220_v11 = vcombine.high %v2339_v1, %v2347_v4 }
 0x43c   :  { %9006 = vmatpush1.bf16.msra.mxu0 %v11141_v17  ;;  %v10217_v17 = vcombine.low %v2338_v62, %v2346_v63  ;;  %v2434_v63 = vld [vmem:[%s15650_s7 + $0x420] sm:$0xff] }
 0x43d   :  { %9170 = vmatpush1.bf16.msra.mxu1 %v11143_v19  ;;  %9007 = vmatprep.subr.bf16.mxu0 %v11158_v20  ;;  %v10219_v19 = vcombine.low %v2339_v1, %v2347_v4  ;;  %v10234_v20 = vcombine.high %v2354_v32, %v2362_v12  ;;  %v2435_v1 = vld [vmem:[%s15650_s7 + $0x428] sm:$0xff] }
 0x43e   :  { %9171 = vmatprep.subr.bf16.mxu1 %v11160_v23  ;;  %v10236_v23 = vcombine.high %v2355_v45, %v2363_v16  ;;  %v2443_v4 = vld [vmem:[%s15650_s7 + $0x468] sm:$0xff] }
 0x440   :  { %9008 = vmatpush1.bf16.msra.mxu0 %v11157_v27  ;;  %v10233_v27 = vcombine.low %v2354_v32, %v2362_v12  ;;  %v2450_v32 = vld [vmem:[%s15650_s7 + $0x4a0] sm:$0xff] }
 0x441   :  { %9172 = vmatpush1.bf16.msra.mxu1 %v11159_v40  ;;  %9009 = vmatprep.subr.bf16.mxu0 %v11174_v28  ;;  %v10235_v40 = vcombine.low %v2355_v45, %v2363_v16  ;;  %v10250_v28 = vcombine.high %v2370_v24, %v2378_v25  ;;  %v2458_v12 = vld [vmem:[%s15650_s7 + $0x4e0] sm:$0xff]  ;;  %v2451_v45 = vld [vmem:[%s15650_s7 + $0x4a8] sm:$0xff] }
 0x442   :  { %9173 = vmatprep.subr.bf16.mxu1 %v11176_v30  ;;  %v10252_v30 = vcombine.high %v2371_v26, %v2379_v33  ;;  %v2459_v16 = vld [vmem:[%s15650_s7 + $0x4e8] sm:$0xff] }
 0x444   :  { %9010 = vmatpush1.bf16.msra.mxu0 %v11173_v37  ;;  %v10249_v37 = vcombine.low %v2370_v24, %v2378_v25  ;;  %v2466_v24 = vld [vmem:[%s15650_s7 + $0x520] sm:$0xff] }
 0x445   :  { %9174 = vmatpush1.bf16.msra.mxu1 %v11175_v39  ;;  %9011 = vmatprep.subr.bf16.mxu0 %v11190_v59  ;;  %v10251_v39 = vcombine.low %v2371_v26, %v2379_v33  ;;  %v10266_v59 = vcombine.high %v2386_v31, %v2394_v34  ;;  %v2474_v25 = vld [vmem:[%s15650_s7 + $0x560] sm:$0xff]  ;;  %v2467_v26 = vld [vmem:[%s15650_s7 + $0x528] sm:$0xff] }
 0x446   :  { %9175 = vmatprep.subr.bf16.mxu1 %v11192_v38  ;;  %v10268_v38 = vcombine.high %v2387_v35, %v2395_v36  ;;  %v2475_v33 = vld [vmem:[%s15650_s7 + $0x568] sm:$0xff] }
 0x448   :  { %9012 = vmatpush1.bf16.msra.mxu0 %v11189_v44  ;;  %v10265_v44 = vcombine.low %v2386_v31, %v2394_v34  ;;  %v2482_v31 = vld [vmem:[%s15650_s7 + $0x5a0] sm:$0xff] }
 0x449   :  { %9176 = vmatpush1.bf16.msra.mxu1 %v11191_v15  ;;  %9186 = vmatprep.subr.bf16.mxu0 %v10186_v49  ;;  %v10267_v15 = vcombine.low %v2387_v35, %v2395_v36  ;;  %v10282_v49 = vcombine.high %v2402_v29, %v2410_v41  ;;  %v2490_v34 = vld [vmem:[%s15650_s7 + $0x5e0] sm:$0xff]  ;;  %v2483_v35 = vld [vmem:[%s15650_s7 + $0x5a8] sm:$0xff] }
 0x44a   :  { %9350 = vmatprep.subr.bf16.mxu1 %v10188_v50  ;;  %v10284_v50 = vcombine.high %v2403_v42, %v2411_v43  ;;  %v2491_v36 = vld [vmem:[%s15650_s7 + $0x5e8] sm:$0xff]  ;;  %v2498_v29 = vld [vmem:[%s15650_s7 + $0x620] sm:$0xff] }
 0x44b   :  { %9014 = vmatmul.mubr.bf16.vlgmr.msra.gmra.mrb[16].mxu0 %v13264_v51  ;;  %v2506_v41 = vld [vmem:[%s15650_s7 + $0x660] sm:$0xff] }
 0x44c   :  { %9178 = vmatmul.mubr.bf16.vlgmr.msra.gmra.mrb[16].mxu1 %v13264_v51  ;;  %9187 = vmatpush1.bf16.msra.mxu0 %v10185_v54  ;;  %v2419_v54 = vld [vmem:[%s15650_s7 + $0x3a8] sm:$0xff] }
 0x44d   :  { %9218 = vmatprep.mubr.bf16.mxu0 %v12632_v55  ;;  %9351 = vmatpush1.bf16.msra.mxu1 %v10187_v60  ;;  %v10283_v60 = vcombine.low %v2403_v42, %v2411_v43  ;;  %v10300_v62 = vcombine.high %v2419_v54, %v2427_v56  ;;  %v2499_v42 = vld [vmem:[%s15650_s7 + $0x628] sm:$0xff] }
 0x44e   :  { %9382 = vmatprep.mubr.bf16.mxu1 %v12632_v55  ;;  %9188 = vmatprep.subr.bf16.mxu0 %v10202_v61  ;;  %v10298_v61 = vcombine.high %v2418_v52, %v2426_v53  ;;  %v2507_v43 = vld [vmem:[%s15650_s7 + $0x668] sm:$0xff] }
 0x44f   :  { %9352 = vmatprep.subr.bf16.mxu1 %v10204_v0  ;;  %v2442_v0 = vld [vmem:[%s15650_s7 + $0x460] sm:$0xff] }
 0x450   :  { %9189 = vmatpush1.bf16.msra.mxu0 %v10201_v5  ;;  %v10297_v5 = vcombine.low %v2418_v52, %v2426_v53  ;;  %v2514_v52 = vld [vmem:[%s15650_s7 + $0x6a0] sm:$0xff] }
 0x451   :  { %9353 = vmatpush1.bf16.msra.mxu1 %v10203_v9  ;;  %9190 = vmatprep.subr.bf16.mxu0 %v10218_v8  ;;  %v10299_v9 = vcombine.low %v2419_v54, %v2427_v56  ;;  %v10314_v8 = vcombine.high %v2434_v63, %v2442_v0  ;;  %v2522_v53 = vld [vmem:[%s15650_s7 + $0x6e0] sm:$0xff]  ;;  %v2515_v54 = vld [vmem:[%s15650_s7 + $0x6a8] sm:$0xff] }
 0x452   :  { %9354 = vmatprep.subr.bf16.mxu1 %v10220_v11  ;;  %v10316_v11 = vcombine.high %v2435_v1, %v2443_v4  ;;  %v2523_v56 = vld [vmem:[%s15650_s7 + $0x6e8] sm:$0xff] }
 0x454   :  { %9191 = vmatpush1.bf16.msra.mxu0 %v10217_v17  ;;  %v10313_v17 = vcombine.low %v2434_v63, %v2442_v0  ;;  %v2530_v63 = vld [vmem:[%s15650_s7 + $0x720] sm:$0xff] }
 0x455   :  { %9355 = vmatpush1.bf16.msra.mxu1 %v10219_v19  ;;  %9192 = vmatprep.subr.bf16.mxu0 %v10234_v20  ;;  %v10315_v19 = vcombine.low %v2435_v1, %v2443_v4  ;;  %v10330_v20 = vcombine.high %v2450_v32, %v2458_v12  ;;  %v2538_v0 = vld [vmem:[%s15650_s7 + $0x760] sm:$0xff]  ;;  %v2531_v1 = vld [vmem:[%s15650_s7 + $0x728] sm:$0xff] }
 0x456   :  { %9356 = vmatprep.subr.bf16.mxu1 %v10236_v23  ;;  %v10332_v23 = vcombine.high %v2451_v45, %v2459_v16  ;;  %v2539_v4 = vld [vmem:[%s15650_s7 + $0x768] sm:$0xff] }
 0x458   :  { %9193 = vmatpush1.bf16.msra.mxu0 %v10233_v27  ;;  %v10329_v27 = vcombine.low %v2450_v32, %v2458_v12  ;;  %v2546_v32 = vld [vmem:[%s15650_s7 + $0x7a0] sm:$0xff] }
 0x459   :  { %9357 = vmatpush1.bf16.msra.mxu1 %v10235_v40  ;;  %9194 = vmatprep.subr.bf16.mxu0 %v10250_v28  ;;  %v10331_v40 = vcombine.low %v2451_v45, %v2459_v16  ;;  %v10346_v28 = vcombine.high %v2466_v24, %v2474_v25  ;;  %v2554_v12 = vld [vmem:[%s15650_s7 + $0x7e0] sm:$0xff]  ;;  %v2547_v45 = vld [vmem:[%s15650_s7 + $0x7a8] sm:$0xff] }
 0x45a   :  { %9358 = vmatprep.subr.bf16.mxu1 %v10252_v30  ;;  %v10348_v30 = vcombine.high %v2467_v26, %v2475_v33  ;;  %v2555_v16 = vld [vmem:[%s15650_s7 + $0x7e8] sm:$0xff] }
 0x45c   :  { %9195 = vmatpush1.bf16.msra.mxu0 %v10249_v37  ;;  %v10345_v37 = vcombine.low %v2466_v24, %v2474_v25  ;;  %v2562_v24 = vld [vmem:[%s15650_s7 + $0x820] sm:$0xff] }
 0x45d   :  { %9359 = vmatpush1.bf16.msra.mxu1 %v10251_v39  ;;  %9196 = vmatprep.subr.bf16.mxu0 %v10266_v59  ;;  %v10347_v39 = vcombine.low %v2467_v26, %v2475_v33  ;;  %v10362_v59 = vcombine.high %v2482_v31, %v2490_v34  ;;  %v2570_v25 = vld [vmem:[%s15650_s7 + $0x860] sm:$0xff]  ;;  %v2563_v26 = vld [vmem:[%s15650_s7 + $0x828] sm:$0xff] }
 0x45e   :  { %9360 = vmatprep.subr.bf16.mxu1 %v10268_v38  ;;  %v10364_v38 = vcombine.high %v2483_v35, %v2491_v36  ;;  %v2571_v33 = vld [vmem:[%s15650_s7 + $0x868] sm:$0xff] }
 0x460   :  { %9197 = vmatpush1.bf16.msra.mxu0 %v10265_v44  ;;  %v10361_v44 = vcombine.low %v2482_v31, %v2490_v34  ;;  %v2578_v31 = vld [vmem:[%s15650_s7 + $0x8a0] sm:$0xff] }
 0x461   :  { %9361 = vmatpush1.bf16.msra.mxu1 %v10267_v15  ;;  %9198 = vmatprep.subr.bf16.mxu0 %v10282_v49  ;;  %v10363_v15 = vcombine.low %v2483_v35, %v2491_v36  ;;  %v10378_v49 = vcombine.high %v2498_v29, %v2506_v41  ;;  %v2586_v34 = vld [vmem:[%s15650_s7 + $0x8e0] sm:$0xff]  ;;  %v10441_v35 = vcombine.low %v2562_v24, %v2570_v25  ;;  %v2579_v36 = vld [vmem:[%s15650_s7 + $0x8a8] sm:$0xff] }
 0x462   :  { %9362 = vmatprep.subr.bf16.mxu1 %v10284_v50  ;;  %v10380_v50 = vcombine.high %v2499_v42, %v2507_v43 }
 0x464   :  { %9199 = vmatpush1.bf16.msra.mxu0 %v10281_v57  ;;  %v10377_v57 = vcombine.low %v2498_v29, %v2506_v41  ;;  %v2602_v29 = vld [vmem:[%s15650_s7 + $0x960] sm:$0xff] }
 0x465   :  { %9363 = vmatpush1.bf16.msra.mxu1 %v10283_v60  ;;  %9200 = vmatprep.subr.bf16.mxu0 %v10298_v61  ;;  %v10379_v60 = vcombine.low %v2499_v42, %v2507_v43  ;;  %v10394_v61 = vcombine.high %v2514_v52, %v2522_v53  ;;  %v2595_v42 = vld [vmem:[%s15650_s7 + $0x928] sm:$0xff] }
 0x466   :  { %9364 = vmatprep.subr.bf16.mxu1 %v10300_v62  ;;  %v10396_v62 = vcombine.high %v2515_v54, %v2523_v56  ;;  %v2603_v43 = vld [vmem:[%s15650_s7 + $0x968] sm:$0xff] }
 0x468   :  { %9201 = vmatpush1.bf16.msra.mxu0 %v10297_v5  ;;  %v10393_v5 = vcombine.low %v2514_v52, %v2522_v53  ;;  %v2610_v52 = vld [vmem:[%s15650_s7 + $0x9a0] sm:$0xff] }
 0x469   :  { %9365 = vmatpush1.bf16.msra.mxu1 %v10299_v9  ;;  %9202 = vmatprep.subr.bf16.mxu0 %v10314_v8  ;;  %v10395_v9 = vcombine.low %v2515_v54, %v2523_v56  ;;  %v10410_v8 = vcombine.high %v2530_v63, %v2538_v0  ;;  %v2618_v53 = vld [vmem:[%s15650_s7 + $0x9e0] sm:$0xff]  ;;  %v2611_v54 = vld [vmem:[%s15650_s7 + $0x9a8] sm:$0xff] }
 0x46a   :  { %9366 = vmatprep.subr.bf16.mxu1 %v10316_v11  ;;  %v10412_v11 = vcombine.high %v2531_v1, %v2539_v4  ;;  %v2619_v56 = vld [vmem:[%s15650_s7 + $0x9e8] sm:$0xff] }
 0x46c   :  { %9203 = vmatpush1.bf16.msra.mxu0 %v10313_v17  ;;  %v10409_v17 = vcombine.low %v2530_v63, %v2538_v0  ;;  %v2626_v63 = vld [vmem:[%s15650_s7 + $0xa20] sm:$0xff] }
 0x46d   :  { %9367 = vmatpush1.bf16.msra.mxu1 %v10315_v19  ;;  %9204 = vmatprep.subr.bf16.mxu0 %v10330_v20  ;;  %v10411_v19 = vcombine.low %v2531_v1, %v2539_v4  ;;  %v10426_v20 = vcombine.high %v2546_v32, %v2554_v12  ;;  %v2634_v0 = vld [vmem:[%s15650_s7 + $0xa60] sm:$0xff]  ;;  %v2627_v1 = vld [vmem:[%s15650_s7 + $0xa28] sm:$0xff] }
 0x46e   :  { %9368 = vmatprep.subr.bf16.mxu1 %v10332_v23  ;;  %v10428_v23 = vcombine.high %v2547_v45, %v2555_v16  ;;  %v2635_v4 = vld [vmem:[%s15650_s7 + $0xa68] sm:$0xff] }
 0x470   :  { %9205 = vmatpush1.bf16.msra.mxu0 %v10329_v27  ;;  %v10425_v27 = vcombine.low %v2546_v32, %v2554_v12  ;;  %v2642_v32 = vld [vmem:[%s15650_s7 + $0xaa0] sm:$0xff] }
 0x471   :  { %9369 = vmatpush1.bf16.msra.mxu1 %v10331_v40  ;;  %9206 = vmatprep.subr.bf16.mxu0 %v10346_v28  ;;  %v10427_v40 = vcombine.low %v2547_v45, %v2555_v16  ;;  %v10442_v28 = vcombine.high %v2562_v24, %v2570_v25  ;;  %v2650_v12 = vld [vmem:[%s15650_s7 + $0xae0] sm:$0xff]  ;;  %v2643_v45 = vld [vmem:[%s15650_s7 + $0xaa8] sm:$0xff] }
 0x472   :  { %9370 = vmatprep.subr.bf16.mxu1 %v10348_v30  ;;  %v10444_v30 = vcombine.high %v2563_v26, %v2571_v33  ;;  %v2651_v16 = vld [vmem:[%s15650_s7 + $0xae8] sm:$0xff]  ;;  %v2658_v24 = vld [vmem:[%s15650_s7 + $0xb20] sm:$0xff] }
 0x473   :  { %v2666_v25 = vld [vmem:[%s15650_s7 + $0xb60] sm:$0xff] }
 0x474   :  { %9207 = vmatpush1.bf16.msra.mxu0 %v10345_v37  ;;  %v2587_v37 = vld [vmem:[%s15650_s7 + $0x8e8] sm:$0xff] }
 0x475   :  { %9371 = vmatpush1.bf16.msra.mxu1 %v10347_v39  ;;  %9208 = vmatprep.subr.bf16.mxu0 %v10362_v59  ;;  %v10443_v39 = vcombine.low %v2563_v26, %v2571_v33  ;;  %v10458_v59 = vcombine.high %v2578_v31, %v2586_v34  ;;  %v10460_v41 = vcombine.high %v2579_v36, %v2587_v37  ;;  %v2659_v26 = vld [vmem:[%s15650_s7 + $0xb28] sm:$0xff] }
 0x476   :  { %9372 = vmatprep.subr.bf16.mxu1 %v10364_v38  ;;  %v2594_v38 = vld [vmem:[%s15650_s7 + $0x920] sm:$0xff]  ;;  %v2667_v33 = vld [vmem:[%s15650_s7 + $0xb68] sm:$0xff] }
 0x478   :  { %9209 = vmatpush1.bf16.msra.mxu0 %v10361_v44  ;;  %v10457_v44 = vcombine.low %v2578_v31, %v2586_v34  ;;  %v2674_v31 = vld [vmem:[%s15650_s7 + $0xba0] sm:$0xff] }
 0x479   :  { %9373 = vmatpush1.bf16.msra.mxu1 %v10363_v15  ;;  %9210 = vmatprep.subr.bf16.mxu0 %v10378_v49  ;;  %v10459_v15 = vcombine.low %v2579_v36, %v2587_v37  ;;  %v10474_v49 = vcombine.high %v2594_v38, %v2602_v29  ;;  %v2682_v34 = vld [vmem:[%s15650_s7 + $0xbe0] sm:$0xff]  ;;  %v2683_v36 = vld [vmem:[%s15650_s7 + $0xbe8] sm:$0xff]  ;;  %v10537_v37 = vcombine.low %v2658_v24, %v2666_v25 }
 0x47a   :  { %9374 = vmatprep.subr.bf16.mxu1 %v10380_v50  ;;  %v10476_v50 = vcombine.high %v2595_v42, %v2603_v43 }
 0x47c   :  { %9211 = vmatpush1.bf16.msra.mxu0 %v10377_v57  ;;  %v10473_v57 = vcombine.low %v2594_v38, %v2602_v29  ;;  %v2690_v29 = vld [vmem:[%s15650_s7 + $0xc20] sm:$0xff] }
 0x47d   :  { %9375 = vmatpush1.bf16.msra.mxu1 %v10379_v60  ;;  %9212 = vmatprep.subr.bf16.mxu0 %v10394_v61  ;;  %v10475_v60 = vcombine.low %v2595_v42, %v2603_v43  ;;  %v10490_v61 = vcombine.high %v2610_v52, %v2618_v53  ;;  %v2691_v42 = vld [vmem:[%s15650_s7 + $0xc28] sm:$0xff] }
 0x47e   :  { %9376 = vmatprep.subr.bf16.mxu1 %v10396_v62  ;;  %v10492_v62 = vcombine.high %v2611_v54, %v2619_v56  ;;  %v2699_v43 = vld [vmem:[%s15650_s7 + $0xc68] sm:$0xff] }
 0x480   :  { %9213 = vmatpush1.bf16.msra.mxu0 %v10393_v5  ;;  %v10489_v5 = vcombine.low %v2610_v52, %v2618_v53  ;;  %v2706_v52 = vld [vmem:[%s15650_s7 + $0xca0] sm:$0xff] }
 0x481   :  { %9377 = vmatpush1.bf16.msra.mxu1 %v10395_v9  ;;  %9214 = vmatprep.subr.bf16.mxu0 %v10410_v8  ;;  %v10491_v9 = vcombine.low %v2611_v54, %v2619_v56  ;;  %v10506_v8 = vcombine.high %v2626_v63, %v2634_v0  ;;  %v2714_v53 = vld [vmem:[%s15650_s7 + $0xce0] sm:$0xff]  ;;  %v2707_v54 = vld [vmem:[%s15650_s7 + $0xca8] sm:$0xff] }
 0x482   :  { %9378 = vmatprep.subr.bf16.mxu1 %v10412_v11  ;;  %v10508_v11 = vcombine.high %v2627_v1, %v2635_v4  ;;  %v2715_v56 = vld [vmem:[%s15650_s7 + $0xce8] sm:$0xff] }
 0x484   :  { %9215 = vmatpush1.bf16.msra.mxu0 %v10409_v17  ;;  %v10505_v17 = vcombine.low %v2626_v63, %v2634_v0  ;;  %v2722_v63 = vld [vmem:[%s15650_s7 + $0xd20] sm:$0xff] }
 0x485   :  { %9379 = vmatpush1.bf16.msra.mxu1 %v10411_v19  ;;  %9216 = vmatprep.subr.bf16.mxu0 %v10426_v20  ;;  %v10507_v19 = vcombine.low %v2627_v1, %v2635_v4  ;;  %v10522_v20 = vcombine.high %v2642_v32, %v2650_v12  ;;  %v2730_v0 = vld [vmem:[%s15650_s7 + $0xd60] sm:$0xff]  ;;  %v2723_v1 = vld [vmem:[%s15650_s7 + $0xd28] sm:$0xff] }
 0x486   :  { %9380 = vmatprep.subr.bf16.mxu1 %v10428_v23  ;;  %v10524_v23 = vcombine.high %v2643_v45, %v2651_v16  ;;  %v2731_v4 = vld [vmem:[%s15650_s7 + $0xd68] sm:$0xff] }
 0x488   :  { %9217 = vmatpush1.bf16.msra.mxu0 %v10425_v27  ;;  %v10521_v27 = vcombine.low %v2642_v32, %v2650_v12  ;;  %v2738_v32 = vld [vmem:[%s15650_s7 + $0xda0] sm:$0xff] }
 0x489   :  { %9381 = vmatpush1.bf16.msra.mxu1 %v10427_v40  ;;  %9227 = vmatprep.subr.bf16.mxu0 %v10442_v28  ;;  %v10523_v40 = vcombine.low %v2643_v45, %v2651_v16  ;;  %v10538_v28 = vcombine.high %v2658_v24, %v2666_v25  ;;  %v2746_v12 = vld [vmem:[%s15650_s7 + $0xde0] sm:$0xff]  ;;  %v2739_v45 = vld [vmem:[%s15650_s7 + $0xda8] sm:$0xff] }
 0x48a   :  { %9391 = vmatprep.subr.bf16.mxu1 %v10444_v30  ;;  %v10540_v30 = vcombine.high %v2659_v26, %v2667_v33  ;;  %v2747_v16 = vld [vmem:[%s15650_s7 + $0xde8] sm:$0xff]  ;;  %v2754_v24 = vld [vmem:[%s15650_s7 + $0xe20] sm:$0xff] }
 0x48b   :  { %9219 = vmatmul.mubr.bf16.vlgmr.msra.gmra.mrb[20].mxu0 %v12634_v58  ;;  %v2762_v25 = vld [vmem:[%s15650_s7 + $0xe60] sm:$0xff] }
 0x48c   :  { %9383 = vmatmul.mubr.bf16.vlgmr.msra.gmra.mrb[20].mxu1 %v12634_v58  ;;  %9228 = vmatpush1.bf16.msra.mxu0 %v10441_v35  ;;  %v2675_v35 = vld [vmem:[%s15650_s7 + $0xba8] sm:$0xff] }
 0x48d   :  { %9259 = vmatprep.mubr.bf16.mxu0 %v12650_v2  ;;  %9392 = vmatpush1.bf16.msra.mxu1 %v10443_v39  ;;  %v10539_v39 = vcombine.low %v2659_v26, %v2667_v33  ;;  %v10556_v38 = vcombine.high %v2675_v35, %v2683_v36  ;;  %v2755_v26 = vld [vmem:[%s15650_s7 + $0xe28] sm:$0xff] }
 0x48e   :  { %9423 = vmatprep.mubr.bf16.mxu1 %v12650_v2  ;;  %9229 = vmatprep.subr.bf16.mxu0 %v10458_v59  ;;  %v10554_v59 = vcombine.high %v2674_v31, %v2682_v34  ;;  %v2763_v33 = vld [vmem:[%s15650_s7 + $0xe68] sm:$0xff] }
 0x48f   :  { %9393 = vmatprep.subr.bf16.mxu1 %v10460_v41  ;;  %v2698_v41 = vld [vmem:[%s15650_s7 + $0xc60] sm:$0xff] }
 0x490   :  { %9230 = vmatpush1.bf16.msra.mxu0 %v10457_v44  ;;  %v10553_v44 = vcombine.low %v2674_v31, %v2682_v34  ;;  %v2770_v31 = vld [vmem:[%s15650_s7 + $0xea0] sm:$0xff] }
 0x491   :  { %9394 = vmatpush1.bf16.msra.mxu1 %v10459_v15  ;;  %9231 = vmatprep.subr.bf16.mxu0 %v10474_v49  ;;  %v10555_v15 = vcombine.low %v2675_v35, %v2683_v36  ;;  %v10570_v49 = vcombine.high %v2690_v29, %v2698_v41  ;;  %v2778_v34 = vld [vmem:[%s15650_s7 + $0xee0] sm:$0xff]  ;;  %v2771_v35 = vld [vmem:[%s15650_s7 + $0xea8] sm:$0xff] }
 0x492   :  { %9395 = vmatprep.subr.bf16.mxu1 %v10476_v50  ;;  %v10572_v50 = vcombine.high %v2691_v42, %v2699_v43  ;;  %v2779_v36 = vld [vmem:[%s15650_s7 + $0xee8] sm:$0xff] }
 0x494   :  { %9232 = vmatpush1.bf16.msra.mxu0 %v10473_v57  ;;  %v10569_v57 = vcombine.low %v2690_v29, %v2698_v41  ;;  %v2786_v29 = vld [vmem:[%s15650_s7 + $0xf20] sm:$0xff] }
 0x495   :  { %9396 = vmatpush1.bf16.msra.mxu1 %v10475_v60  ;;  %9233 = vmatprep.subr.bf16.mxu0 %v10490_v61  ;;  %v10571_v60 = vcombine.low %v2691_v42, %v2699_v43  ;;  %v10586_v61 = vcombine.high %v2706_v52, %v2714_v53  ;;  %v2794_v41 = vld [vmem:[%s15650_s7 + $0xf60] sm:$0xff]  ;;  %v2787_v42 = vld [vmem:[%s15650_s7 + $0xf28] sm:$0xff] }
 0x496   :  { %9397 = vmatprep.subr.bf16.mxu1 %v10492_v62  ;;  %v10588_v62 = vcombine.high %v2707_v54, %v2715_v56  ;;  %v2795_v43 = vld [vmem:[%s15650_s7 + $0xf68] sm:$0xff] }
 0x498   :  { %9234 = vmatpush1.bf16.msra.mxu0 %v10489_v5  ;;  %v10585_v5 = vcombine.low %v2706_v52, %v2714_v53  ;;  %v2802_v52 = vld [vmem:[%s15650_s7 + $0xfa0] sm:$0xff] }
 0x499   :  { %9398 = vmatpush1.bf16.msra.mxu1 %v10491_v9  ;;  %9235 = vmatprep.subr.bf16.mxu0 %v10506_v8  ;;  %v10587_v9 = vcombine.low %v2707_v54, %v2715_v56  ;;  %v10602_v8 = vcombine.high %v2722_v63, %v2730_v0  ;;  %v2810_v53 = vld [vmem:[%s15650_s7 + $0xfe0] sm:$0xff]  ;;  %v2803_v54 = vld [vmem:[%s15650_s7 + $0xfa8] sm:$0xff] }
 0x49a   :  { %9399 = vmatprep.subr.bf16.mxu1 %v10508_v11  ;;  %v10604_v11 = vcombine.high %v2723_v1, %v2731_v4  ;;  %v2811_v56 = vld [vmem:[%s15650_s7 + $0xfe8] sm:$0xff] }
 0x49c   :  { %9236 = vmatpush1.bf16.msra.mxu0 %v10505_v17  ;;  %v10601_v17 = vcombine.low %v2722_v63, %v2730_v0  ;;  %v2818_v63 = vld [vmem:[%s15650_s7 + $0x1020] sm:$0xff] }
 0x49d   :  { %9400 = vmatpush1.bf16.msra.mxu1 %v10507_v19  ;;  %9237 = vmatprep.subr.bf16.mxu0 %v10522_v20  ;;  %v10603_v19 = vcombine.low %v2723_v1, %v2731_v4  ;;  %v10618_v20 = vcombine.high %v2738_v32, %v2746_v12  ;;  %v2826_v0 = vld [vmem:[%s15650_s7 + $0x1060] sm:$0xff]  ;;  %v2819_v1 = vld [vmem:[%s15650_s7 + $0x1028] sm:$0xff] }
 0x49e   :  { %9401 = vmatprep.subr.bf16.mxu1 %v10524_v23  ;;  %v10620_v23 = vcombine.high %v2739_v45, %v2747_v16  ;;  %v2827_v4 = vld [vmem:[%s15650_s7 + $0x1068] sm:$0xff] }
 0x4a0   :  { %9238 = vmatpush1.bf16.msra.mxu0 %v10521_v27  ;;  %v10617_v27 = vcombine.low %v2738_v32, %v2746_v12  ;;  %v2834_v32 = vld [vmem:[%s15650_s7 + $0x10a0] sm:$0xff] }
 0x4a1   :  { %9402 = vmatpush1.bf16.msra.mxu1 %v10523_v40  ;;  %9239 = vmatprep.subr.bf16.mxu0 %v10538_v28  ;;  %v10619_v40 = vcombine.low %v2739_v45, %v2747_v16  ;;  %v10634_v28 = vcombine.high %v2754_v24, %v2762_v25  ;;  %v2842_v12 = vld [vmem:[%s15650_s7 + $0x10e0] sm:$0xff]  ;;  %v10697_v45 = vcombine.low %v2818_v63, %v2826_v0  ;;  %v2835_v16 = vld [vmem:[%s15650_s7 + $0x10a8] sm:$0xff] }
 0x4a2   :  { %9403 = vmatprep.subr.bf16.mxu1 %v10540_v30  ;;  %v10636_v30 = vcombine.high %v2755_v26, %v2763_v33 }
 0x4a4   :  { %9240 = vmatpush1.bf16.msra.mxu0 %v10537_v37  ;;  %v10633_v37 = vcombine.low %v2754_v24, %v2762_v25  ;;  %v2858_v24 = vld [vmem:[%s15650_s7 + $0x1160] sm:$0xff] }
 0x4a5   :  { %9404 = vmatpush1.bf16.msra.mxu1 %v10539_v39  ;;  %9241 = vmatprep.subr.bf16.mxu0 %v10554_v59  ;;  %v10635_v39 = vcombine.low %v2755_v26, %v2763_v33  ;;  %v10650_v59 = vcombine.high %v2770_v31, %v2778_v34  ;;  %v2851_v26 = vld [vmem:[%s15650_s7 + $0x1128] sm:$0xff] }
 0x4a6   :  { %9405 = vmatprep.subr.bf16.mxu1 %v10556_v38  ;;  %v10652_v38 = vcombine.high %v2771_v35, %v2779_v36  ;;  %v2859_v33 = vld [vmem:[%s15650_s7 + $0x1168] sm:$0xff] }
 0x4a8   :  { %9242 = vmatpush1.bf16.msra.mxu0 %v10553_v44  ;;  %v10649_v44 = vcombine.low %v2770_v31, %v2778_v34  ;;  %v2866_v31 = vld [vmem:[%s15650_s7 + $0x11a0] sm:$0xff] }
 0x4a9   :  { %9406 = vmatpush1.bf16.msra.mxu1 %v10555_v15  ;;  %9243 = vmatprep.subr.bf16.mxu0 %v10570_v49  ;;  %v10651_v15 = vcombine.low %v2771_v35, %v2779_v36  ;;  %v10666_v49 = vcombine.high %v2786_v29, %v2794_v41  ;;  %v2874_v34 = vld [vmem:[%s15650_s7 + $0x11e0] sm:$0xff]  ;;  %v2867_v35 = vld [vmem:[%s15650_s7 + $0x11a8] sm:$0xff] }
 0x4aa   :  { %9407 = vmatprep.subr.bf16.mxu1 %v10572_v50  ;;  %v10668_v50 = vcombine.high %v2787_v42, %v2795_v43  ;;  %v2875_v36 = vld [vmem:[%s15650_s7 + $0x11e8] sm:$0xff] }
 0x4ac   :  { %9244 = vmatpush1.bf16.msra.mxu0 %v10569_v57  ;;  %v10665_v57 = vcombine.low %v2786_v29, %v2794_v41  ;;  %v2882_v29 = vld [vmem:[%s15650_s7 + $0x1220] sm:$0xff] }
 0x4ad   :  { %9408 = vmatpush1.bf16.msra.mxu1 %v10571_v60  ;;  %9245 = vmatprep.subr.bf16.mxu0 %v10586_v61  ;;  %v10667_v60 = vcombine.low %v2787_v42, %v2795_v43  ;;  %v10682_v61 = vcombine.high %v2802_v52, %v2810_v53  ;;  %v2890_v41 = vld [vmem:[%s15650_s7 + $0x1260] sm:$0xff]  ;;  %v2883_v42 = vld [vmem:[%s15650_s7 + $0x1228] sm:$0xff] }
 0x4ae   :  { %9409 = vmatprep.subr.bf16.mxu1 %v10588_v62  ;;  %v10684_v62 = vcombine.high %v2803_v54, %v2811_v56  ;;  %v2891_v43 = vld [vmem:[%s15650_s7 + $0x1268] sm:$0xff] }
 0x4b0   :  { %9246 = vmatpush1.bf16.msra.mxu0 %v10585_v5  ;;  %v10681_v5 = vcombine.low %v2802_v52, %v2810_v53  ;;  %v2898_v52 = vld [vmem:[%s15650_s7 + $0x12a0] sm:$0xff] }
 0x4b1   :  { %9410 = vmatpush1.bf16.msra.mxu1 %v10587_v9  ;;  %9247 = vmatprep.subr.bf16.mxu0 %v10602_v8  ;;  %v10683_v9 = vcombine.low %v2803_v54, %v2811_v56  ;;  %v10698_v8 = vcombine.high %v2818_v63, %v2826_v0  ;;  %v2906_v53 = vld [vmem:[%s15650_s7 + $0x12e0] sm:$0xff]  ;;  %v2899_v54 = vld [vmem:[%s15650_s7 + $0x12a8] sm:$0xff] }
 0x4b2   :  { %9411 = vmatprep.subr.bf16.mxu1 %v10604_v11  ;;  %v10700_v11 = vcombine.high %v2819_v1, %v2827_v4  ;;  %v2907_v56 = vld [vmem:[%s15650_s7 + $0x12e8] sm:$0xff]  ;;  %v2914_v63 = vld [vmem:[%s15650_s7 + $0x1320] sm:$0xff] }
 0x4b3   :  { %v2922_v0 = vld [vmem:[%s15650_s7 + $0x1360] sm:$0xff] }
 0x4b4   :  { %9248 = vmatpush1.bf16.msra.mxu0 %v10601_v17  ;;  %v2843_v17 = vld [vmem:[%s15650_s7 + $0x10e8] sm:$0xff] }
 0x4b5   :  { %9412 = vmatpush1.bf16.msra.mxu1 %v10603_v19  ;;  %9249 = vmatprep.subr.bf16.mxu0 %v10618_v20  ;;  %v10699_v19 = vcombine.low %v2819_v1, %v2827_v4  ;;  %v10714_v20 = vcombine.high %v2834_v32, %v2842_v12  ;;  %v10716_v25 = vcombine.high %v2835_v16, %v2843_v17  ;;  %v2915_v1 = vld [vmem:[%s15650_s7 + $0x1328] sm:$0xff] }
 0x4b6   :  { %9413 = vmatprep.subr.bf16.mxu1 %v10620_v23  ;;  %v2850_v23 = vld [vmem:[%s15650_s7 + $0x1120] sm:$0xff]  ;;  %v2923_v4 = vld [vmem:[%s15650_s7 + $0x1368] sm:$0xff] }
 0x4b8   :  { %9250 = vmatpush1.bf16.msra.mxu0 %v10617_v27  ;;  %v10713_v27 = vcombine.low %v2834_v32, %v2842_v12  ;;  %v2930_v32 = vld [vmem:[%s15650_s7 + $0x13a0] sm:$0xff] }
 0x4b9   :  { %9414 = vmatpush1.bf16.msra.mxu1 %v10619_v40  ;;  %9251 = vmatprep.subr.bf16.mxu0 %v10634_v28  ;;  %v10715_v40 = vcombine.low %v2835_v16, %v2843_v17  ;;  %v10730_v28 = vcombine.high %v2850_v23, %v2858_v24  ;;  %v2938_v12 = vld [vmem:[%s15650_s7 + $0x13e0] sm:$0xff]  ;;  %v2939_v16 = vld [vmem:[%s15650_s7 + $0x13e8] sm:$0xff]  ;;  %v10793_v17 = vcombine.low %v2914_v63, %v2922_v0 }
 0x4ba   :  { %9415 = vmatprep.subr.bf16.mxu1 %v10636_v30  ;;  %v10732_v30 = vcombine.high %v2851_v26, %v2859_v33 }
 0x4bc   :  { %9252 = vmatpush1.bf16.msra.mxu0 %v10633_v37  ;;  %v10729_v37 = vcombine.low %v2850_v23, %v2858_v24  ;;  %v2946_v24 = vld [vmem:[%s15650_s7 + $0x1420] sm:$0xff] }
 0x4bd   :  { %9416 = vmatpush1.bf16.msra.mxu1 %v10635_v39  ;;  %9253 = vmatprep.subr.bf16.mxu0 %v10650_v59  ;;  %v10731_v39 = vcombine.low %v2851_v26, %v2859_v33  ;;  %v10746_v59 = vcombine.high %v2866_v31, %v2874_v34  ;;  %v2947_v26 = vld [vmem:[%s15650_s7 + $0x1428] sm:$0xff] }
 0x4be   :  { %9417 = vmatprep.subr.bf16.mxu1 %v10652_v38  ;;  %v10748_v38 = vcombine.high %v2867_v35, %v2875_v36  ;;  %v2955_v33 = vld [vmem:[%s15650_s7 + $0x1468] sm:$0xff] }
 0x4c0   :  { %9254 = vmatpush1.bf16.msra.mxu0 %v10649_v44  ;;  %v10745_v44 = vcombine.low %v2866_v31, %v2874_v34  ;;  %v2962_v31 = vld [vmem:[%s15650_s7 + $0x14a0] sm:$0xff] }
 0x4c1   :  { %9418 = vmatpush1.bf16.msra.mxu1 %v10651_v15  ;;  %9255 = vmatprep.subr.bf16.mxu0 %v10666_v49  ;;  %v10747_v15 = vcombine.low %v2867_v35, %v2875_v36  ;;  %v10762_v49 = vcombine.high %v2882_v29, %v2890_v41  ;;  %v2970_v34 = vld [vmem:[%s15650_s7 + $0x14e0] sm:$0xff]  ;;  %v2963_v35 = vld [vmem:[%s15650_s7 + $0x14a8] sm:$0xff] }
 0x4c2   :  { %9419 = vmatprep.subr.bf16.mxu1 %v10668_v50  ;;  %v10764_v50 = vcombine.high %v2883_v42, %v2891_v43  ;;  %v2971_v36 = vld [vmem:[%s15650_s7 + $0x14e8] sm:$0xff] }
 0x4c4   :  { %9256 = vmatpush1.bf16.msra.mxu0 %v10665_v57  ;;  %v10761_v57 = vcombine.low %v2882_v29, %v2890_v41  ;;  %v2978_v29 = vld [vmem:[%s15650_s7 + $0x1520] sm:$0xff] }
 0x4c5   :  { %9420 = vmatpush1.bf16.msra.mxu1 %v10667_v60  ;;  %9257 = vmatprep.subr.bf16.mxu0 %v10682_v61  ;;  %v10763_v60 = vcombine.low %v2883_v42, %v2891_v43  ;;  %v10778_v61 = vcombine.high %v2898_v52, %v2906_v53  ;;  %v2986_v41 = vld [vmem:[%s15650_s7 + $0x1560] sm:$0xff]  ;;  %v2979_v42 = vld [vmem:[%s15650_s7 + $0x1528] sm:$0xff] }
 0x4c6   :  { %9421 = vmatprep.subr.bf16.mxu1 %v10684_v62  ;;  %v10780_v62 = vcombine.high %v2899_v54, %v2907_v56  ;;  %v2987_v43 = vld [vmem:[%s15650_s7 + $0x1568] sm:$0xff] }
 0x4c8   :  { %9258 = vmatpush1.bf16.msra.mxu0 %v10681_v5  ;;  %v10777_v5 = vcombine.low %v2898_v52, %v2906_v53  ;;  %v2994_v52 = vld [vmem:[%s15650_s7 + $0x15a0] sm:$0xff] }
 0x4c9   :  { %9422 = vmatpush1.bf16.msra.mxu1 %v10683_v9  ;;  %9268 = vmatprep.subr.bf16.mxu0 %v10698_v8  ;;  %v10779_v9 = vcombine.low %v2899_v54, %v2907_v56  ;;  %v10794_v8 = vcombine.high %v2914_v63, %v2922_v0  ;;  %v3002_v53 = vld [vmem:[%s15650_s7 + $0x15e0] sm:$0xff]  ;;  %v2995_v54 = vld [vmem:[%s15650_s7 + $0x15a8] sm:$0xff] }
 0x4ca   :  { %9432 = vmatprep.subr.bf16.mxu1 %v10700_v11  ;;  %v10796_v11 = vcombine.high %v2915_v1, %v2923_v4  ;;  %v3003_v56 = vld [vmem:[%s15650_s7 + $0x15e8] sm:$0xff]  ;;  %v3010_v63 = vld [vmem:[%s15650_s7 + $0x1620] sm:$0xff] }
 0x4cb   :  { %9260 = vmatmul.mubr.bf16.vlgmr.msra.gmra.mrb[20].mxu0 %v12839_v21  ;;  %v3018_v0 = vld [vmem:[%s15650_s7 + $0x1660] sm:$0xff] }
 0x4cc   :  { %9424 = vmatmul.mubr.bf16.vlgmr.msra.gmra.mrb[20].mxu1 %v12839_v21  ;;  %9269 = vmatpush1.bf16.msra.mxu0 %v10697_v45  ;;  %v2931_v45 = vld [vmem:[%s15650_s7 + $0x13a8] sm:$0xff] }
 0x4cd   :  { %9300 = vmatprep.mubr.bf16.mxu0 %v13052_v3  ;;  %9433 = vmatpush1.bf16.msra.mxu1 %v10699_v19  ;;  %v10795_v19 = vcombine.low %v2915_v1, %v2923_v4  ;;  %v10812_v23 = vcombine.high %v2931_v45, %v2939_v16  ;;  %v3011_v1 = vld [vmem:[%s15650_s7 + $0x1628] sm:$0xff] }
 0x4ce   :  { %9464 = vmatprep.mubr.bf16.mxu1 %v13052_v3  ;;  %9270 = vmatprep.subr.bf16.mxu0 %v10714_v20  ;;  %v10810_v20 = vcombine.high %v2930_v32, %v2938_v12  ;;  %v3019_v4 = vld [vmem:[%s15650_s7 + $0x1668] sm:$0xff] }
 0x4cf   :  { %9434 = vmatprep.subr.bf16.mxu1 %v10716_v25  ;;  %v2954_v25 = vld [vmem:[%s15650_s7 + $0x1460] sm:$0xff] }
 0x4d0   :  { %9271 = vmatpush1.bf16.msra.mxu0 %v10713_v27  ;;  %v10809_v27 = vcombine.low %v2930_v32, %v2938_v12  ;;  %v3026_v32 = vld [vmem:[%s15650_s7 + $0x16a0] sm:$0xff] }
 0x4d1   :  { %9435 = vmatpush1.bf16.msra.mxu1 %v10715_v40  ;;  %9272 = vmatprep.subr.bf16.mxu0 %v10730_v28  ;;  %v10811_v40 = vcombine.low %v2931_v45, %v2939_v16  ;;  %v10826_v28 = vcombine.high %v2946_v24, %v2954_v25  ;;  %v3034_v12 = vld [vmem:[%s15650_s7 + $0x16e0] sm:$0xff]  ;;  %v3027_v45 = vld [vmem:[%s15650_s7 + $0x16a8] sm:$0xff] }
 0x4d2   :  { %9436 = vmatprep.subr.bf16.mxu1 %v10732_v30  ;;  %v10828_v30 = vcombine.high %v2947_v26, %v2955_v33  ;;  %v3035_v16 = vld [vmem:[%s15650_s7 + $0x16e8] sm:$0xff] }
 0x4d4   :  { %9273 = vmatpush1.bf16.msra.mxu0 %v10729_v37  ;;  %v10825_v37 = vcombine.low %v2946_v24, %v2954_v25  ;;  %v3042_v24 = vld [vmem:[%s15650_s7 + $0x1720] sm:$0xff] }
 0x4d5   :  { %9437 = vmatpush1.bf16.msra.mxu1 %v10731_v39  ;;  %9274 = vmatprep.subr.bf16.mxu0 %v10746_v59  ;;  %v10827_v39 = vcombine.low %v2947_v26, %v2955_v33  ;;  %v10842_v59 = vcombine.high %v2962_v31, %v2970_v34  ;;  %v3050_v25 = vld [vmem:[%s15650_s7 + $0x1760] sm:$0xff]  ;;  %v3043_v26 = vld [vmem:[%s15650_s7 + $0x1728] sm:$0xff] }
 0x4d6   :  { %9438 = vmatprep.subr.bf16.mxu1 %v10748_v38  ;;  %v10844_v38 = vcombine.high %v2963_v35, %v2971_v36  ;;  %v3051_v33 = vld [vmem:[%s15650_s7 + $0x1768] sm:$0xff] }
 0x4d8   :  { %9275 = vmatpush1.bf16.msra.mxu0 %v10745_v44  ;;  %v10841_v44 = vcombine.low %v2962_v31, %v2970_v34  ;;  %v3058_v31 = vld [vmem:[%s15650_s7 + $0x17a0] sm:$0xff] }
 0x4d9   :  { %9439 = vmatpush1.bf16.msra.mxu1 %v10747_v15  ;;  %9276 = vmatprep.subr.bf16.mxu0 %v10762_v49  ;;  %v10843_v15 = vcombine.low %v2963_v35, %v2971_v36  ;;  %v10858_v49 = vcombine.high %v2978_v29, %v2986_v41  ;;  %v3066_v34 = vld [vmem:[%s15650_s7 + $0x17e0] sm:$0xff]  ;;  %v3059_v35 = vld [vmem:[%s15650_s7 + $0x17a8] sm:$0xff] }
 0x4da   :  { %9440 = vmatprep.subr.bf16.mxu1 %v10764_v50  ;;  %v10860_v50 = vcombine.high %v2979_v42, %v2987_v43  ;;  %v3067_v36 = vld [vmem:[%s15650_s7 + $0x17e8] sm:$0xff] }
 0x4dc   :  { %9277 = vmatpush1.bf16.msra.mxu0 %v10761_v57  ;;  %v10857_v57 = vcombine.low %v2978_v29, %v2986_v41  ;;  %v3074_v29 = vld [vmem:[%s15650_s7 + $0x1820] sm:$0xff] }
 0x4dd   :  { %9441 = vmatpush1.bf16.msra.mxu1 %v10763_v60  ;;  %9278 = vmatprep.subr.bf16.mxu0 %v10778_v61  ;;  %v10859_v60 = vcombine.low %v2979_v42, %v2987_v43  ;;  %v10874_v61 = vcombine.high %v2994_v52, %v3002_v53  ;;  %v3082_v41 = vld [vmem:[%s15650_s7 + $0x1860] sm:$0xff]  ;;  %v3075_v42 = vld [vmem:[%s15650_s7 + $0x1828] sm:$0xff] }
 0x4de   :  { %9442 = vmatprep.subr.bf16.mxu1 %v10780_v62  ;;  %v10876_v62 = vcombine.high %v2995_v54, %v3003_v56  ;;  %v3083_v43 = vld [vmem:[%s15650_s7 + $0x1868] sm:$0xff] }
 0x4e0   :  { %9279 = vmatpush1.bf16.msra.mxu0 %v10777_v5  ;;  %v10873_v5 = vcombine.low %v2994_v52, %v3002_v53  ;;  %v3090_v52 = vld [vmem:[%s15650_s7 + $0x18a0] sm:$0xff] }
 0x4e1   :  { %9443 = vmatpush1.bf16.msra.mxu1 %v10779_v9  ;;  %9280 = vmatprep.subr.bf16.mxu0 %v10794_v8  ;;  %v10875_v9 = vcombine.low %v2995_v54, %v3003_v56  ;;  %v10890_v8 = vcombine.high %v3010_v63, %v3018_v0  ;;  %v3098_v53 = vld [vmem:[%s15650_s7 + $0x18e0] sm:$0xff]  ;;  %v10953_v54 = vcombine.low %v3074_v29, %v3082_v41  ;;  %v3091_v56 = vld [vmem:[%s15650_s7 + $0x18a8] sm:$0xff] }
 0x4e2   :  { %9444 = vmatprep.subr.bf16.mxu1 %v10796_v11  ;;  %v10892_v11 = vcombine.high %v3011_v1, %v3019_v4 }
 0x4e4   :  { %9281 = vmatpush1.bf16.msra.mxu0 %v10793_v17  ;;  %v10889_v17 = vcombine.low %v3010_v63, %v3018_v0  ;;  %v3114_v63 = vld [vmem:[%s15650_s7 + $0x1960] sm:$0xff] }
 0x4e5   :  { %9445 = vmatpush1.bf16.msra.mxu1 %v10795_v19  ;;  %9282 = vmatprep.subr.bf16.mxu0 %v10810_v20  ;;  %v10891_v19 = vcombine.low %v3011_v1, %v3019_v4  ;;  %v10906_v20 = vcombine.high %v3026_v32, %v3034_v12  ;;  %v3107_v1 = vld [vmem:[%s15650_s7 + $0x1928] sm:$0xff] }
 0x4e6   :  { %9446 = vmatprep.subr.bf16.mxu1 %v10812_v23  ;;  %v10908_v23 = vcombine.high %v3027_v45, %v3035_v16  ;;  %v3115_v4 = vld [vmem:[%s15650_s7 + $0x1968] sm:$0xff] }
 0x4e8   :  { %9283 = vmatpush1.bf16.msra.mxu0 %v10809_v27  ;;  %v10905_v27 = vcombine.low %v3026_v32, %v3034_v12  ;;  %v3122_v32 = vld [vmem:[%s15650_s7 + $0x19a0] sm:$0xff] }
 0x4e9   :  { %9447 = vmatpush1.bf16.msra.mxu1 %v10811_v40  ;;  %9284 = vmatprep.subr.bf16.mxu0 %v10826_v28  ;;  %v10907_v40 = vcombine.low %v3027_v45, %v3035_v16  ;;  %v10922_v28 = vcombine.high %v3042_v24, %v3050_v25  ;;  %v3130_v12 = vld [vmem:[%s15650_s7 + $0x19e0] sm:$0xff]  ;;  %v3123_v45 = vld [vmem:[%s15650_s7 + $0x19a8] sm:$0xff] }
 0x4ea   :  { %9448 = vmatprep.subr.bf16.mxu1 %v10828_v30  ;;  %v10924_v30 = vcombine.high %v3043_v26, %v3051_v33  ;;  %v3131_v16 = vld [vmem:[%s15650_s7 + $0x19e8] sm:$0xff] }
 0x4ec   :  { %9285 = vmatpush1.bf16.msra.mxu0 %v10825_v37  ;;  %v10921_v37 = vcombine.low %v3042_v24, %v3050_v25  ;;  %v3138_v24 = vld [vmem:[%s15650_s7 + $0x1a20] sm:$0xff] }
 0x4ed   :  { %9449 = vmatpush1.bf16.msra.mxu1 %v10827_v39  ;;  %9286 = vmatprep.subr.bf16.mxu0 %v10842_v59  ;;  %v10923_v39 = vcombine.low %v3043_v26, %v3051_v33  ;;  %v10938_v59 = vcombine.high %v3058_v31, %v3066_v34  ;;  %v3146_v25 = vld [vmem:[%s15650_s7 + $0x1a60] sm:$0xff]  ;;  %v3139_v26 = vld [vmem:[%s15650_s7 + $0x1a28] sm:$0xff] }
 0x4ee   :  { %9450 = vmatprep.subr.bf16.mxu1 %v10844_v38  ;;  %v10940_v38 = vcombine.high %v3059_v35, %v3067_v36  ;;  %v3147_v33 = vld [vmem:[%s15650_s7 + $0x1a68] sm:$0xff] }
 0x4f0   :  { %9287 = vmatpush1.bf16.msra.mxu0 %v10841_v44  ;;  %v10937_v44 = vcombine.low %v3058_v31, %v3066_v34  ;;  %v3154_v31 = vld [vmem:[%s15650_s7 + $0x1aa0] sm:$0xff] }
 0x4f1   :  { %9451 = vmatpush1.bf16.msra.mxu1 %v10843_v15  ;;  %9288 = vmatprep.subr.bf16.mxu0 %v10858_v49  ;;  %v10939_v15 = vcombine.low %v3059_v35, %v3067_v36  ;;  %v10954_v49 = vcombine.high %v3074_v29, %v3082_v41  ;;  %v3162_v34 = vld [vmem:[%s15650_s7 + $0x1ae0] sm:$0xff]  ;;  %v3155_v35 = vld [vmem:[%s15650_s7 + $0x1aa8] sm:$0xff] }
 0x4f2   :  { %9452 = vmatprep.subr.bf16.mxu1 %v10860_v50  ;;  %v10956_v50 = vcombine.high %v3075_v42, %v3083_v43  ;;  %v3163_v36 = vld [vmem:[%s15650_s7 + $0x1ae8] sm:$0xff]  ;;  %v3170_v29 = vld [vmem:[%s15650_s7 + $0x1b20] sm:$0xff] }
 0x4f3   :  { %v3178_v41 = vld [vmem:[%s15650_s7 + $0x1b60] sm:$0xff] }
 0x4f4   :  { %9289 = vmatpush1.bf16.msra.mxu0 %v10857_v57  ;;  %v3099_v57 = vld [vmem:[%s15650_s7 + $0x18e8] sm:$0xff] }
 0x4f5   :  { %9453 = vmatpush1.bf16.msra.mxu1 %v10859_v60  ;;  %9290 = vmatprep.subr.bf16.mxu0 %v10874_v61  ;;  %v10955_v60 = vcombine.low %v3075_v42, %v3083_v43  ;;  %v10970_v61 = vcombine.high %v3090_v52, %v3098_v53  ;;  %v10972_v0 = vcombine.high %v3091_v56, %v3099_v57  ;;  %v11394_v42 = vld [vmem:[%s15651_s8] sm:$0xff] }
 0x4f6   :  { %9454 = vmatprep.subr.bf16.mxu1 %v10876_v62  ;;  %v3106_v62 = vld [vmem:[%s15650_s7 + $0x1920] sm:$0xff]  ;;  %v3349_v43 = vrot.slane %v11394_v42, %v13000_v14 }
 0x4f8   :  { %9291 = vmatpush1.bf16.msra.mxu0 %v10873_v5  ;;  %v10969_v5 = vcombine.low %v3090_v52, %v3098_v53  ;;  %v11033_v52 = vcombine.low %v3154_v31, %v3162_v34  ;;  %v3361_v53 = vrot.slane %v11394_v42, %v13006_v22 }
 0x4f9   :  { %9455 = vmatpush1.bf16.msra.mxu1 %v10875_v9  ;;  %9292 = vmatprep.subr.bf16.mxu0 %v10890_v8  ;;  %v10971_v9 = vcombine.low %v3091_v56, %v3099_v57  ;;  %v10986_v8 = vcombine.high %v3106_v62, %v3114_v63  ;;  %v11050_v56 = vcombine.high %v3170_v29, %v3178_v41 }
 0x4fa   :  { %9456 = vmatprep.subr.bf16.mxu1 %v10892_v11  ;;  %v10988_v11 = vcombine.high %v3107_v1, %v3115_v4 }
 0x4fc   :  { %9293 = vmatpush1.bf16.msra.mxu0 %v10889_v17  ;;  %v10985_v17 = vcombine.low %v3106_v62, %v3114_v63  ;;  %v3194_v62 = vld [vmem:[%s15650_s7 + $0x1be0] sm:$0xff] }
 0x4fd   :  { %9457 = vmatpush1.bf16.msra.mxu1 %v10891_v19  ;;  %9294 = vmatprep.subr.bf16.mxu0 %v10906_v20  ;;  %v10987_v19 = vcombine.low %v3107_v1, %v3115_v4  ;;  %v11002_v20 = vcombine.high %v3122_v32, %v3130_v12  ;;  %v3187_v4 = vld [vmem:[%s15650_s7 + $0x1ba8] sm:$0xff] }
 0x4fe   :  { %9458 = vmatprep.subr.bf16.mxu1 %v10908_v23  ;;  %v11004_v23 = vcombine.high %v3123_v45, %v3131_v16 }
 0x500   :  { %9295 = vmatpush1.bf16.msra.mxu0 %v10905_v27  ;;  %v11001_v27 = vcombine.low %v3122_v32, %v3130_v12  ;;  %v11049_v12 = vcombine.low %v3170_v29, %v3178_v41  ;;  %v3227_v29 = vld [vmem:[%s15650_s7 + $0x1ce8] sm:$0xff] }
 0x501   :  { %9459 = vmatpush1.bf16.msra.mxu1 %v10907_v40  ;;  %9296 = vmatprep.subr.bf16.mxu0 %v10922_v28  ;;  %v11003_v40 = vcombine.low %v3123_v45, %v3131_v16  ;;  %v11018_v28 = vcombine.high %v3138_v24, %v3146_v25 }
 0x502   :  { %9460 = vmatprep.subr.bf16.mxu1 %v10924_v30  ;;  %v11020_v30 = vcombine.high %v3139_v26, %v3147_v33 }
 0x504   :  { %9297 = vmatpush1.bf16.msra.mxu0 %v10921_v37  ;;  %v11017_v37 = vcombine.low %v3138_v24, %v3146_v25 }
 0x505   :  { %9461 = vmatpush1.bf16.msra.mxu1 %v10923_v39  ;;  %9298 = vmatprep.subr.bf16.mxu0 %v10938_v59  ;;  %v11019_v39 = vcombine.low %v3139_v26, %v3147_v33  ;;  %v11034_v59 = vcombine.high %v3154_v31, %v3162_v34  ;;  %v3211_v31 = vld [vmem:[%s15650_s7 + $0x1c68] sm:$0xff] }
 0x506   :  { %9462 = vmatprep.subr.bf16.mxu1 %v10940_v38  ;;  %v11036_v38 = vcombine.high %v3155_v35, %v3163_v36 }
 0x508   :  { %9299 = vmatpush1.bf16.msra.mxu0 %v10937_v44  ;;  %v3171_v44 = vld [vmem:[%s15650_s7 + $0x1b28] sm:$0xff] }
 0x509   :  { %9463 = vmatpush1.bf16.msra.mxu1 %v10939_v15  ;;  %9309 = vmatprep.subr.bf16.mxu0 %v10954_v49  ;;  %v3179_v15 = vld [vmem:[%s15650_s7 + $0x1b68] sm:$0xff]  ;;  %v3357_v49 = vrot.slane %v11394_v42, %v13209_v7 }
 0x50a   :  { %9473 = vmatprep.subr.bf16.mxu1 %v10956_v50  ;;  %v3353_v50 = vrot.slane %v11394_v42, %v13003_v18 }
 0x50b   :  { %9301 = vmatmul.mubr.bf16.vlgmr.msra.gmra.mrb[20].mxu0 %v13054_v6 }
 0x50c   :  { %9465 = vmatmul.mubr.bf16.vlgmr.msra.gmra.mrb[20].mxu1 %v13054_v6  ;;  %9310 = vmatpush1.bf16.msra.mxu0 %v10953_v54  ;;  %v11035_v54 = vcombine.low %v3155_v35, %v3163_v36 }
 0x50d   :  { %9341 = vmatprep.mubr.bf16.mxu0 %v13070_v13  ;;  %9474 = vmatpush1.bf16.msra.mxu1 %v10955_v60  ;;  %v11052_v60 = vcombine.high %v3171_v44, %v3179_v15 }
 0x50e   :  { %9505 = vmatprep.mubr.bf16.mxu1 %v13070_v13  ;;  %9311 = vmatprep.subr.bf16.mxu0 %v10970_v61  ;;  %v3186_v61 = vld [vmem:[%s15650_s7 + $0x1ba0] sm:$0xff] }
 0x50f   :  { %9475 = vmatprep.subr.bf16.mxu1 %v10972_v0  ;;  %v11065_v34 = vcombine.low %v3186_v61, %v3194_v62 }
 0x510   :  { %9312 = vmatpush1.bf16.msra.mxu0 %v10969_v5  ;;  %v3195_v5 = vld [vmem:[%s15650_s7 + $0x1be8] sm:$0xff] }
 0x511   :  { %9476 = vmatpush1.bf16.msra.mxu1 %v10971_v9  ;;  %9313 = vmatprep.subr.bf16.mxu0 %v10986_v8  ;;  %v11068_v33 = vcombine.high %v3187_v4, %v3195_v5  ;;  %v11067_v35 = vcombine.low %v3187_v4, %v3195_v5 }
 0x512   :  { %9477 = vmatprep.subr.bf16.mxu1 %v10988_v11 }
 0x514   :  { %9314 = vmatpush1.bf16.msra.mxu0 %v10985_v17 }
 0x515   :  { %9478 = vmatpush1.bf16.msra.mxu1 %v10987_v19  ;;  %9315 = vmatprep.subr.bf16.mxu0 %v11002_v20  ;;  %v11051_v20 = vcombine.low %v3171_v44, %v3179_v15  ;;  %v3234_v15 = vld [vmem:[%s15650_s7 + $0x1d20] sm:$0xff] }
 0x516   :  { %9479 = vmatprep.subr.bf16.mxu1 %v11004_v23  ;;  %v11066_v23 = vcombine.high %v3186_v61, %v3194_v62  ;;  %v3258_v61 = vld [vmem:[%s15650_s7 + $0x1de0] sm:$0xff]  ;;  %v3251_v62 = vld [vmem:[%s15650_s7 + $0x1da8] sm:$0xff] }
 0x518   :  { %9316 = vmatpush1.bf16.msra.mxu0 %v11001_v27  ;;  %v3202_v27 = vld [vmem:[%s15650_s7 + $0x1c20] sm:$0xff] }
 0x519   :  { %9480 = vmatpush1.bf16.msra.mxu1 %v11003_v40  ;;  %9317 = vmatprep.subr.bf16.mxu0 %v11018_v28  ;;  %v3210_v40 = vld [vmem:[%s15650_s7 + $0x1c60] sm:$0xff] }
 0x51a   :  { %9481 = vmatprep.subr.bf16.mxu1 %v11020_v30  ;;  %v3203_v30 = vld [vmem:[%s15650_s7 + $0x1c28] sm:$0xff]  ;;  %v11082_v36 = vcombine.high %v3202_v27, %v3210_v40  ;;  %v11081_v41 = vcombine.low %v3202_v27, %v3210_v40  ;;  %v3298_v40 = vld [vmem:[%s15650_s7 + $0x1f20] sm:$0xff] }
 0x51b   :  { %v11083_v42 = vcombine.low %v3203_v30, %v3211_v31 }
 0x51c   :  { %9318 = vmatpush1.bf16.msra.mxu0 %v11017_v37  ;;  %v11084_v37 = vcombine.high %v3203_v30, %v3211_v31  ;;  %v3299_v30 = vld [vmem:[%s15650_s7 + $0x1f28] sm:$0xff] }
 0x51d   :  { %9482 = vmatpush1.bf16.msra.mxu1 %v11019_v39  ;;  %9319 = vmatprep.subr.bf16.mxu0 %v11034_v59  ;;  %v3218_v39 = vld [vmem:[%s15650_s7 + $0x1ca0] sm:$0xff]  ;;  %v3307_v31 = vld [vmem:[%s15650_s7 + $0x1f68] sm:$0xff] }
 0x51e   :  { %v9015_v57 = vpop.f32.mrb[16].mxu0  ;;  %9483 = vmatprep.subr.bf16.mxu1 %v11036_v38  ;;  %v3226_v59 = vld [vmem:[%s15650_s7 + $0x1ce0] sm:$0xff]  ;;  %v3219_v38 = vld [vmem:[%s15650_s7 + $0x1ca8] sm:$0xff] }
 0x51f   :  { %v11213_v63 = vadd.f32 %v9015_v57, %v3349_v43  ;;  %v9179_v0 = vpop.f32.mrb[16].mxu1  ;;  %v9017_v1 = vpop.f32.mrb[17].mxu0  ;;  %v11098_v43 = vcombine.high %v3218_v39, %v3226_v59  ;;  %v11100_v44 = vcombine.high %v3219_v38, %v3227_v29 }
 0x520   :  { %v11215_v9 = vadd.f32 %v9179_v0, %v3357_v49  ;;  %v11214_v8 = vadd.f32 %v9017_v1, %v3353_v50  ;;  %v9181_v11 = vpop.f32.mrb[17].mxu1  ;;  %v9019_v32 = vpop.f32.mrb[18].mxu0  ;;  %9320 = vmatpush1.bf16.msra.mxu0 %v11033_v52  ;;  %v3242_v49 = vld [vmem:[%s15650_s7 + $0x1d60] sm:$0xff]  ;;  %v3235_v50 = vld [vmem:[%s15650_s7 + $0x1d28] sm:$0xff] }
 0x521   :  { %v9846_v45 = vmax.f32 %v11213_v63, 0.0  ;;  %v11216_v16 = vadd.f32 %v9181_v11, %v3361_v53  ;;  %v9183_v17 = vpop.f32.mrb[18].mxu1  ;;  %9484 = vmatpush1.bf16.msra.mxu1 %v11035_v54  ;;  %v9020_v19 = vpop.f32.mrb[19].mxu0  ;;  %9321 = vmatprep.subr.bf16.mxu0 %v11050_v56  ;;  %v3243_v52 = vld [vmem:[%s15650_s7 + $0x1d68] sm:$0xff]  ;;  %v11097_v53 = vcombine.low %v3218_v39, %v3226_v59  ;;  %v11099_v54 = vcombine.low %v3219_v38, %v3227_v29  ;;  %v3314_v39 = vld [vmem:[%s15650_s7 + $0x1fa0] sm:$0xff] }
 0x522   :  { %v9848_v24 = vmax.f32 %v11215_v9, 0.0  ;;  %v9847_v25 = vmax.f32 %v11214_v8, 0.0  ;;  %v9184_v26 = vpop.f32.mrb[19].mxu1  ;;  %9485 = vmatprep.subr.bf16.mxu1 %v11052_v60  ;;  %v11114_v56 = vcombine.high %v3234_v15, %v3242_v49  ;;  %v11116_v57 = vcombine.high %v3235_v50, %v3243_v52  ;;  %v3250_v60 = vld [vmem:[%s15650_s7 + $0x1da0] sm:$0xff]  ;;  %v3259_v63 = vld [vmem:[%s15650_s7 + $0x1de8] sm:$0xff] }
 0x523   :  { %9862 = vst [vmem:[#allocation2 + $0x20] sm:$0xff] %v9846_v45  ;;  %v9849_v28 = vmax.f32 %v11216_v16, 0.0  ;;  %v11113_v0 = vcombine.low %v3234_v15, %v3242_v49  ;;  %v11115_v1 = vcombine.low %v3235_v50, %v3243_v52  ;;  %v11130_v4 = vcombine.high %v3250_v60, %v3258_v61  ;;  %v3266_v9 = vld [vmem:[%s15650_s7 + $0x1e20] sm:$0xff]  ;;  %v3267_v11 = vld [vmem:[%s15650_s7 + $0x1e28] sm:$0xff]  ;;  %v2308_v15 = vld [vmem:[%s15650_s7 + $0x30] sm:$0xff] }
 0x524   :  { %9864 = vst [vmem:[#allocation2 + $0x30] sm:$0xff] %v9848_v24  ;;  %9863 = vst [vmem:[#allocation2 + $0x28] sm:$0xff] %v9847_v25  ;;  %9322 = vmatpush1.bf16.msra.mxu0 %v11049_v12  ;;  %v11132_v5 = vcombine.high %v3251_v62, %v3259_v63  ;;  %v3274_v8 = vld [vmem:[%s15650_s7 + $0x1e60] sm:$0xff]  ;;  %v3275_v32 = vld [vmem:[%s15650_s7 + $0x1e68] sm:$0xff]  ;;  %v11129_v12 = vcombine.low %v3250_v60, %v3258_v61  ;;  %v11131_v45 = vcombine.low %v3251_v62, %v3259_v63 }
 0x525   :  { %9865 = vst [vmem:[#allocation2 + $0x38] sm:$0xff] %v9849_v28  ;;  %9486 = vmatpush1.bf16.msra.mxu1 %v11051_v20  ;;  %9323 = vmatprep.subr.bf16.mxu0 %v11066_v23  ;;  %v11146_v16 = vcombine.high %v3266_v9, %v3274_v8  ;;  %v11148_v17 = vcombine.high %v3267_v11, %v3275_v32  ;;  %v3282_v19 = vld [vmem:[%s15650_s7 + $0x1ea0] sm:$0xff]  ;;  %v3283_v23 = vld [vmem:[%s15650_s7 + $0x1ea8] sm:$0xff]  ;;  %v2316_v49 = vld [vmem:[%s15650_s7 + $0x70] sm:$0xff] }
 0x526   :  { %9487 = vmatprep.subr.bf16.mxu1 %v11068_v33  ;;  %v3290_v20 = vld [vmem:[%s15650_s7 + $0x1ee0] sm:$0xff]  ;;  %v3291_v24 = vld [vmem:[%s15650_s7 + $0x1ee8] sm:$0xff]  ;;  %v11145_v25 = vcombine.low %v3266_v9, %v3274_v8  ;;  %v11147_v26 = vcombine.low %v3267_v11, %v3275_v32  ;;  %v2309_v50 = vld [vmem:[%s15650_s7 + $0x38] sm:$0xff]  ;;  %v10189_v62 = vcombine.low %v2308_v15, %v2316_v49 }
 0x527   :  { %v11162_v33 = vcombine.high %v3282_v19, %v3290_v20  ;;  %v11164_v27 = vcombine.high %v3283_v23, %v3291_v24  ;;  %v3306_v28 = vld [vmem:[%s15650_s7 + $0x1f60] sm:$0xff]  ;;  %v3315_v38 = vld [vmem:[%s15650_s7 + $0x1fa8] sm:$0xff]  ;;  %v2317_v52 = vld [vmem:[%s15650_s7 + $0x78] sm:$0xff] }
 0x528   :  { %9324 = vmatpush1.bf16.msra.mxu0 %v11065_v34  ;;  %v11161_v34 = vcombine.low %v3282_v19, %v3290_v20  ;;  %v3322_v59 = vld [vmem:[%s15650_s7 + $0x1fe0] sm:$0xff]  ;;  %v3323_v29 = vld [vmem:[%s15650_s7 + $0x1fe8] sm:$0xff]  ;;  %v2324_v60 = vld [vmem:[%s15650_s7 + $0xb0] sm:$0xff] }
 0x529   :  { %9488 = vmatpush1.bf16.msra.mxu1 %v11067_v35  ;;  %9325 = vmatprep.subr.bf16.mxu0 %v11082_v36  ;;  %v11163_v35 = vcombine.low %v3283_v23, %v3291_v24  ;;  %v11178_v36 = vcombine.high %v3298_v40, %v3306_v28  ;;  %v2332_v61 = vld [vmem:[%s15650_s7 + $0xf0] sm:$0xff]  ;;  %v2325_v63 = vld [vmem:[%s15650_s7 + $0xb8] sm:$0xff] }
 0x52a   :  { %9489 = vmatprep.subr.bf16.mxu1 %v11084_v37  ;;  %v11180_v37 = vcombine.high %v3299_v30, %v3307_v31  ;;  %v2348_v9 = vld [vmem:[%s15650_s7 + $0x170] sm:$0xff]  ;;  %v2341_v11 = vld [vmem:[%s15650_s7 + $0x138] sm:$0xff] }
 0x52b   :  { %v2349_v32 = vld [vmem:[%s15650_s7 + $0x178] sm:$0xff]  ;;  %v2356_v19 = vld [vmem:[%s15650_s7 + $0x1b0] sm:$0xff] }
 0x52c   :  { %9326 = vmatpush1.bf16.msra.mxu0 %v11081_v41  ;;  %v11177_v41 = vcombine.low %v3298_v40, %v3306_v28  ;;  %v2364_v20 = vld [vmem:[%s15650_s7 + $0x1f0] sm:$0xff]  ;;  %v2357_v23 = vld [vmem:[%s15650_s7 + $0x1b8] sm:$0xff] }
 0x52d   :  { %9490 = vmatpush1.bf16.msra.mxu1 %v11083_v42  ;;  %9327 = vmatprep.subr.bf16.mxu0 %v11098_v43  ;;  %v11179_v42 = vcombine.low %v3299_v30, %v3307_v31  ;;  %v11194_v43 = vcombine.high %v3314_v39, %v3322_v59  ;;  %v2365_v24 = vld [vmem:[%s15650_s7 + $0x1f8] sm:$0xff]  ;;  %v2380_v40 = vld [vmem:[%s15650_s7 + $0x270] sm:$0xff]  ;;  %v10237_v31 = vcombine.low %v2356_v19, %v2364_v20 }
 0x52e   :  { %9491 = vmatprep.subr.bf16.mxu1 %v11100_v44  ;;  %v11196_v44 = vcombine.high %v3315_v38, %v3323_v29  ;;  %v2373_v28 = vld [vmem:[%s15650_s7 + $0x238] sm:$0xff] }
 0x52f   :  { %v2381_v30 = vld [vmem:[%s15650_s7 + $0x278] sm:$0xff] }
 0x530   :  { %9328 = vmatpush1.bf16.msra.mxu0 %v11097_v53  ;;  %v11193_v53 = vcombine.low %v3314_v39, %v3322_v59  ;;  %v2396_v39 = vld [vmem:[%s15650_s7 + $0x2f0] sm:$0xff]  ;;  %v2389_v59 = vld [vmem:[%s15650_s7 + $0x2b8] sm:$0xff] }
 0x531   :  { %9492 = vmatpush1.bf16.msra.mxu1 %v11099_v54  ;;  %9329 = vmatprep.subr.bf16.mxu0 %v11114_v56  ;;  %v11195_v54 = vcombine.low %v3315_v38, %v3323_v29  ;;  %v10190_v56 = vcombine.high %v2308_v15, %v2316_v49  ;;  %v2397_v38 = vld [vmem:[%s15650_s7 + $0x2f8] sm:$0xff]  ;;  %v2412_v15 = vld [vmem:[%s15650_s7 + $0x370] sm:$0xff] }
 0x532   :  { %9493 = vmatprep.subr.bf16.mxu1 %v11116_v57  ;;  %v10192_v57 = vcombine.high %v2309_v50, %v2317_v52  ;;  %v2405_v49 = vld [vmem:[%s15650_s7 + $0x338] sm:$0xff] }
 0x534   :  { %9330 = vmatpush1.bf16.msra.mxu0 %v11113_v0  ;;  %v2333_v0 = vld [vmem:[%s15650_s7 + $0xf8] sm:$0xff] }
 0x535   :  { %9494 = vmatpush1.bf16.msra.mxu1 %v11115_v1  ;;  %9331 = vmatprep.subr.bf16.mxu0 %v11130_v4  ;;  %v10191_v1 = vcombine.low %v2309_v50, %v2317_v52  ;;  %v10206_v4 = vcombine.high %v2324_v60, %v2332_v61  ;;  %v10208_v8 = vcombine.high %v2325_v63, %v2333_v0  ;;  %v2413_v50 = vld [vmem:[%s15650_s7 + $0x378] sm:$0xff] }
 0x536   :  { %9495 = vmatprep.subr.bf16.mxu1 %v11132_v5  ;;  %v2340_v5 = vld [vmem:[%s15650_s7 + $0x130] sm:$0xff] }
 0x538   :  { %9332 = vmatpush1.bf16.msra.mxu0 %v11129_v12  ;;  %v10205_v12 = vcombine.low %v2324_v60, %v2332_v61  ;;  %v2428_v60 = vld [vmem:[%s15650_s7 + $0x3f0] sm:$0xff]  ;;  %v2421_v61 = vld [vmem:[%s15650_s7 + $0x3b8] sm:$0xff] }
 0x539   :  { %9496 = vmatpush1.bf16.msra.mxu1 %v11131_v45  ;;  %9333 = vmatprep.subr.bf16.mxu0 %v11146_v16  ;;  %v10207_v45 = vcombine.low %v2325_v63, %v2333_v0  ;;  %v10222_v16 = vcombine.high %v2340_v5, %v2348_v9  ;;  %v10287_v0 = vcombine.low %v2405_v49, %v2413_v50 }
 0x53a   :  { %9497 = vmatprep.subr.bf16.mxu1 %v11148_v17  ;;  %v10224_v17 = vcombine.high %v2341_v11, %v2349_v32 }
 0x53c   :  { %9334 = vmatpush1.bf16.msra.mxu0 %v11145_v25  ;;  %v10223_v25 = vcombine.low %v2341_v11, %v2349_v32  ;;  %v2445_v11 = vld [vmem:[%s15650_s7 + $0x478] sm:$0xff] }
 0x53d   :  { %9498 = vmatpush1.bf16.msra.mxu1 %v11147_v26  ;;  %9335 = vmatprep.subr.bf16.mxu0 %v11162_v33  ;;  %v10238_v26 = vcombine.high %v2356_v19, %v2364_v20  ;;  %v10240_v33 = vcombine.high %v2357_v23, %v2365_v24  ;;  %v2460_v19 = vld [vmem:[%s15650_s7 + $0x4f0] sm:$0xff]  ;;  %v2453_v20 = vld [vmem:[%s15650_s7 + $0x4b8] sm:$0xff] }
 0x53e   :  { %9499 = vmatprep.subr.bf16.mxu1 %v11164_v27  ;;  %v2372_v27 = vld [vmem:[%s15650_s7 + $0x230] sm:$0xff] }
 0x53f   :  { %v10253_v29 = vcombine.low %v2372_v27, %v2380_v40 }
 0x540   :  { %9336 = vmatpush1.bf16.msra.mxu0 %v11161_v34  ;;  %v10239_v34 = vcombine.low %v2357_v23, %v2365_v24  ;;  %v2461_v23 = vld [vmem:[%s15650_s7 + $0x4f8] sm:$0xff] }
 0x541   :  { %9500 = vmatpush1.bf16.msra.mxu1 %v11163_v35  ;;  %9337 = vmatprep.subr.bf16.mxu0 %v11178_v36  ;;  %v10254_v35 = vcombine.high %v2372_v27, %v2380_v40  ;;  %v10256_v36 = vcombine.high %v2373_v28, %v2381_v30  ;;  %v2476_v27 = vld [vmem:[%s15650_s7 + $0x570] sm:$0xff]  ;;  %v2469_v40 = vld [vmem:[%s15650_s7 + $0x538] sm:$0xff] }
 0x542   :  { %9501 = vmatprep.subr.bf16.mxu1 %v11180_v37  ;;  %v2388_v37 = vld [vmem:[%s15650_s7 + $0x2b0] sm:$0xff] }
 0x543   :  { %v10269_v52 = vcombine.low %v2388_v37, %v2396_v39 }
 0x544   :  { %9338 = vmatpush1.bf16.msra.mxu0 %v11177_v41  ;;  %v10255_v41 = vcombine.low %v2373_v28, %v2381_v30  ;;  %v2477_v28 = vld [vmem:[%s15650_s7 + $0x578] sm:$0xff] }
 0x545   :  { %9502 = vmatpush1.bf16.msra.mxu1 %v11179_v42  ;;  %9339 = vmatprep.subr.bf16.mxu0 %v11194_v43  ;;  %v10270_v42 = vcombine.high %v2388_v37, %v2396_v39  ;;  %v10272_v43 = vcombine.high %v2389_v59, %v2397_v38  ;;  %v2492_v37 = vld [vmem:[%s15650_s7 + $0x5f0] sm:$0xff]  ;;  %v2485_v39 = vld [vmem:[%s15650_s7 + $0x5b8] sm:$0xff] }
 0x546   :  { %9503 = vmatprep.subr.bf16.mxu1 %v11196_v44  ;;  %v2404_v44 = vld [vmem:[%s15650_s7 + $0x330] sm:$0xff] }
 0x547   :  { %v10285_v63 = vcombine.low %v2404_v44, %v2412_v15 }
 0x548   :  { %9340 = vmatpush1.bf16.msra.mxu0 %v11193_v53  ;;  %v10271_v53 = vcombine.low %v2389_v59, %v2397_v38  ;;  %v2493_v59 = vld [vmem:[%s15650_s7 + $0x5f8] sm:$0xff] }
 0x549   :  { %9504 = vmatpush1.bf16.msra.mxu1 %v11195_v54  ;;  %9514 = vmatprep.subr.bf16.mxu0 %v10190_v56  ;;  %v10286_v54 = vcombine.high %v2404_v44, %v2412_v15  ;;  %v10288_v56 = vcombine.high %v2405_v49, %v2413_v50  ;;  %v2508_v44 = vld [vmem:[%s15650_s7 + $0x670] sm:$0xff]  ;;  %v2501_v15 = vld [vmem:[%s15650_s7 + $0x638] sm:$0xff] }
 0x54a   :  { %9678 = vmatprep.subr.bf16.mxu1 %v10192_v57  ;;  %v2420_v57 = vld [vmem:[%s15650_s7 + $0x3b0] sm:$0xff]  ;;  %v2509_v49 = vld [vmem:[%s15650_s7 + $0x678] sm:$0xff] }
 0x54b   :  { %9342 = vmatmul.mubr.bf16.vlgmr.msra.gmra.mrb[20].mxu0 %v13264_v51  ;;  %v10301_v32 = vcombine.low %v2420_v57, %v2428_v60 }
 0x54c   :  { %9506 = vmatmul.mubr.bf16.vlgmr.msra.gmra.mrb[20].mxu1 %v13264_v51  ;;  %9515 = vmatpush1.bf16.msra.mxu0 %v10189_v62  ;;  %v2429_v62 = vld [vmem:[%s15650_s7 + $0x3f8] sm:$0xff] }
 0x54d   :  { %9546 = vmatprep.mubr.bf16.mxu0 %v12632_v55  ;;  %9679 = vmatpush1.bf16.msra.mxu1 %v10191_v1  ;;  %v10302_v1 = vcombine.high %v2420_v57, %v2428_v60  ;;  %v2524_v57 = vld [vmem:[%s15650_s7 + $0x6f0] sm:$0xff]  ;;  %v2517_v60 = vld [vmem:[%s15650_s7 + $0x6b8] sm:$0xff] }
 0x54e   :  { %9710 = vmatprep.mubr.bf16.mxu1 %v12632_v55  ;;  %9516 = vmatprep.subr.bf16.mxu0 %v10206_v4  ;;  %v10221_v55 = vcombine.low %v2340_v5, %v2348_v9  ;;  %v10304_v4 = vcombine.high %v2421_v61, %v2429_v62  ;;  %v2436_v5 = vld [vmem:[%s15650_s7 + $0x430] sm:$0xff] }
 0x54f   :  { %9680 = vmatprep.subr.bf16.mxu1 %v10208_v8  ;;  %v2444_v9 = vld [vmem:[%s15650_s7 + $0x470] sm:$0xff]  ;;  %v2437_v8 = vld [vmem:[%s15650_s7 + $0x438] sm:$0xff] }
 0x550   :  { %9517 = vmatpush1.bf16.msra.mxu0 %v10205_v12  ;;  %v10303_v12 = vcombine.low %v2421_v61, %v2429_v62  ;;  %v10317_v24 = vcombine.low %v2436_v5, %v2444_v9  ;;  %v2525_v61 = vld [vmem:[%s15650_s7 + $0x6f8] sm:$0xff] }
 0x551   :  { %9681 = vmatpush1.bf16.msra.mxu1 %v10207_v45  ;;  %9518 = vmatprep.subr.bf16.mxu0 %v10222_v16  ;;  %v10318_v45 = vcombine.high %v2436_v5, %v2444_v9  ;;  %v10320_v16 = vcombine.high %v2437_v8, %v2445_v11  ;;  %v2540_v5 = vld [vmem:[%s15650_s7 + $0x770] sm:$0xff]  ;;  %v2533_v9 = vld [vmem:[%s15650_s7 + $0x738] sm:$0xff] }
 0x552   :  { %9682 = vmatprep.subr.bf16.mxu1 %v10224_v17  ;;  %v2452_v17 = vld [vmem:[%s15650_s7 + $0x4b0] sm:$0xff] }
 0x553   :  { %v10333_v30 = vcombine.low %v2452_v17, %v2460_v19 }
 0x554   :  { %9519 = vmatpush1.bf16.msra.mxu0 %v10221_v55  ;;  %v10319_v55 = vcombine.low %v2437_v8, %v2445_v11  ;;  %v2541_v8 = vld [vmem:[%s15650_s7 + $0x778] sm:$0xff] }
 0x555   :  { %9683 = vmatpush1.bf16.msra.mxu1 %v10223_v25  ;;  %9520 = vmatprep.subr.bf16.mxu0 %v10238_v26  ;;  %v10334_v25 = vcombine.high %v2452_v17, %v2460_v19  ;;  %v10336_v26 = vcombine.high %v2453_v20, %v2461_v23  ;;  %v2556_v17 = vld [vmem:[%s15650_s7 + $0x7f0] sm:$0xff]  ;;  %v2549_v19 = vld [vmem:[%s15650_s7 + $0x7b8] sm:$0xff] }
 0x556   :  { %9684 = vmatprep.subr.bf16.mxu1 %v10240_v33  ;;  %v2468_v33 = vld [vmem:[%s15650_s7 + $0x530] sm:$0xff] }
 0x557   :  { %v10349_v38 = vcombine.low %v2468_v33, %v2476_v27 }
 0x558   :  { %9521 = vmatpush1.bf16.msra.mxu0 %v10237_v31  ;;  %v10335_v31 = vcombine.low %v2453_v20, %v2461_v23  ;;  %v2557_v20 = vld [vmem:[%s15650_s7 + $0x7f8] sm:$0xff] }
 0x559   :  { %9685 = vmatpush1.bf16.msra.mxu1 %v10239_v34  ;;  %9522 = vmatprep.subr.bf16.mxu0 %v10254_v35  ;;  %v10350_v34 = vcombine.high %v2468_v33, %v2476_v27  ;;  %v10352_v35 = vcombine.high %v2469_v40, %v2477_v28  ;;  %v2572_v33 = vld [vmem:[%s15650_s7 + $0x870] sm:$0xff]  ;;  %v2565_v27 = vld [vmem:[%s15650_s7 + $0x838] sm:$0xff] }
 0x55a   :  { %9686 = vmatprep.subr.bf16.mxu1 %v10256_v36  ;;  %v2484_v36 = vld [vmem:[%s15650_s7 + $0x5b0] sm:$0xff] }
 0x55b   :  { %v10365_v50 = vcombine.low %v2484_v36, %v2492_v37 }
 0x55c   :  { %9523 = vmatpush1.bf16.msra.mxu0 %v10253_v29  ;;  %v10351_v29 = vcombine.low %v2469_v40, %v2477_v28  ;;  %v2573_v40 = vld [vmem:[%s15650_s7 + $0x878] sm:$0xff] }
 0x55d   :  { %9687 = vmatpush1.bf16.msra.mxu1 %v10255_v41  ;;  %9524 = vmatprep.subr.bf16.mxu0 %v10270_v42  ;;  %v10366_v41 = vcombine.high %v2484_v36, %v2492_v37  ;;  %v10368_v42 = vcombine.high %v2485_v39, %v2493_v59  ;;  %v2588_v36 = vld [vmem:[%s15650_s7 + $0x8f0] sm:$0xff] }
 0x55e   :  { %9688 = vmatprep.subr.bf16.mxu1 %v10272_v43  ;;  %v2500_v43 = vld [vmem:[%s15650_s7 + $0x630] sm:$0xff] }
 0x55f   :  { %v10381_v62 = vcombine.low %v2500_v43, %v2508_v44 }
 0x560   :  { %9525 = vmatpush1.bf16.msra.mxu0 %v10269_v52  ;;  %v10367_v52 = vcombine.low %v2485_v39, %v2493_v59  ;;  %v2581_v39 = vld [vmem:[%s15650_s7 + $0x8b8] sm:$0xff] }
 0x561   :  { %9689 = vmatpush1.bf16.msra.mxu1 %v10271_v53  ;;  %9526 = vmatprep.subr.bf16.mxu0 %v10286_v54  ;;  %v10382_v53 = vcombine.high %v2500_v43, %v2508_v44  ;;  %v10384_v54 = vcombine.high %v2501_v15, %v2509_v49  ;;  %v2589_v59 = vld [vmem:[%s15650_s7 + $0x8f8] sm:$0xff] }
 0x562   :  { %9690 = vmatprep.subr.bf16.mxu1 %v10288_v56  ;;  %v2516_v56 = vld [vmem:[%s15650_s7 + $0x6b0] sm:$0xff]  ;;  %v10464_v43 = vcombine.high %v2581_v39, %v2589_v59  ;;  %v2597_v44 = vld [vmem:[%s15650_s7 + $0x938] sm:$0xff] }
 0x563   :  { %v10397_v11 = vcombine.low %v2516_v56, %v2524_v57 }
 0x564   :  { %9527 = vmatpush1.bf16.msra.mxu0 %v10285_v63  ;;  %v10383_v63 = vcombine.low %v2501_v15, %v2509_v49  ;;  %v2605_v15 = vld [vmem:[%s15650_s7 + $0x978] sm:$0xff] }
 0x565   :  { %9691 = vmatpush1.bf16.msra.mxu1 %v10287_v0  ;;  %9528 = vmatprep.subr.bf16.mxu0 %v10302_v1  ;;  %v10398_v0 = vcombine.high %v2516_v56, %v2524_v57  ;;  %v10400_v1 = vcombine.high %v2517_v60, %v2525_v61  ;;  %v2620_v56 = vld [vmem:[%s15650_s7 + $0x9f0] sm:$0xff]  ;;  %v2621_v57 = vld [vmem:[%s15650_s7 + $0x9f8] sm:$0xff] }
 0x566   :  { %9692 = vmatprep.subr.bf16.mxu1 %v10304_v4  ;;  %v2532_v4 = vld [vmem:[%s15650_s7 + $0x730] sm:$0xff] }
 0x567   :  { %v10413_v23 = vcombine.low %v2532_v4, %v2540_v5 }
 0x568   :  { %9529 = vmatpush1.bf16.msra.mxu0 %v10301_v32  ;;  %v10399_v32 = vcombine.low %v2517_v60, %v2525_v61  ;;  %v10479_v60 = vcombine.low %v2597_v44, %v2605_v15 }
 0x569   :  { %9693 = vmatpush1.bf16.msra.mxu1 %v10303_v12  ;;  %9530 = vmatprep.subr.bf16.mxu0 %v10318_v45  ;;  %v10414_v12 = vcombine.high %v2532_v4, %v2540_v5  ;;  %v10416_v45 = vcombine.high %v2533_v9, %v2541_v8  ;;  %v2637_v4 = vld [vmem:[%s15650_s7 + $0xa78] sm:$0xff] }
 0x56a   :  { %9694 = vmatprep.subr.bf16.mxu1 %v10320_v16  ;;  %v2548_v16 = vld [vmem:[%s15650_s7 + $0x7b0] sm:$0xff] }
 0x56b   :  { %v10429_v28 = vcombine.low %v2548_v16, %v2556_v17 }
 0x56c   :  { %9531 = vmatpush1.bf16.msra.mxu0 %v10317_v24  ;;  %v10415_v24 = vcombine.low %v2533_v9, %v2541_v8 }
 0x56d   :  { %9695 = vmatpush1.bf16.msra.mxu1 %v10319_v55  ;;  %9532 = vmatprep.subr.bf16.mxu0 %v10334_v25  ;;  %v10430_v55 = vcombine.high %v2548_v16, %v2556_v17  ;;  %v10432_v25 = vcombine.high %v2549_v19, %v2557_v20  ;;  %v2653_v16 = vld [vmem:[%s15650_s7 + $0xaf8] sm:$0xff] }
 0x56e   :  { %9696 = vmatprep.subr.bf16.mxu1 %v10336_v26  ;;  %v2564_v26 = vld [vmem:[%s15650_s7 + $0x830] sm:$0xff] }
 0x56f   :  { %v10445_v37 = vcombine.low %v2564_v26, %v2572_v33 }
 0x570   :  { %9533 = vmatpush1.bf16.msra.mxu0 %v10333_v30  ;;  %v10431_v30 = vcombine.low %v2549_v19, %v2557_v20 }
 0x571   :  { %9697 = vmatpush1.bf16.msra.mxu1 %v10335_v31  ;;  %9534 = vmatprep.subr.bf16.mxu0 %v10350_v34  ;;  %v10446_v31 = vcombine.high %v2564_v26, %v2572_v33  ;;  %v10448_v34 = vcombine.high %v2565_v27, %v2573_v40  ;;  %v2669_v26 = vld [vmem:[%s15650_s7 + $0xb78] sm:$0xff] }
 0x572   :  { %9698 = vmatprep.subr.bf16.mxu1 %v10352_v35  ;;  %v2580_v35 = vld [vmem:[%s15650_s7 + $0x8b0] sm:$0xff] }
 0x573   :  { %v10461_v49 = vcombine.low %v2580_v35, %v2588_v36 }
 0x574   :  { %9535 = vmatpush1.bf16.msra.mxu0 %v10349_v38  ;;  %v10447_v38 = vcombine.low %v2565_v27, %v2573_v40 }
 0x575   :  { %9699 = vmatpush1.bf16.msra.mxu1 %v10351_v29  ;;  %9536 = vmatprep.subr.bf16.mxu0 %v10366_v41  ;;  %v10462_v29 = vcombine.high %v2580_v35, %v2588_v36  ;;  %v2596_v41 = vld [vmem:[%s15650_s7 + $0x930] sm:$0xff]  ;;  %v2685_v35 = vld [vmem:[%s15650_s7 + $0xbf8] sm:$0xff] }
 0x576   :  { %9700 = vmatprep.subr.bf16.mxu1 %v10368_v42  ;;  %v2604_v42 = vld [vmem:[%s15650_s7 + $0x970] sm:$0xff] }
 0x578   :  { %9537 = vmatpush1.bf16.msra.mxu0 %v10365_v50  ;;  %v10463_v50 = vcombine.low %v2581_v39, %v2589_v59 }
 0x579   :  { %9701 = vmatpush1.bf16.msra.mxu1 %v10367_v52  ;;  %9538 = vmatprep.subr.bf16.mxu0 %v10382_v53  ;;  %v10478_v52 = vcombine.high %v2596_v41, %v2604_v42  ;;  %v10480_v53 = vcombine.high %v2597_v44, %v2605_v15 }
 0x57a   :  { %9702 = vmatprep.subr.bf16.mxu1 %v10384_v54  ;;  %v2612_v54 = vld [vmem:[%s15650_s7 + $0x9b0] sm:$0xff] }
 0x57b   :  { %v10494_v61 = vcombine.high %v2612_v54, %v2620_v56  ;;  %v10493_v5 = vcombine.low %v2612_v54, %v2620_v56  ;;  %v2717_v54 = vld [vmem:[%s15650_s7 + $0xcf8] sm:$0xff] }
 0x57c   :  { %9539 = vmatpush1.bf16.msra.mxu0 %v10381_v62 }
 0x57d   :  { %9703 = vmatpush1.bf16.msra.mxu1 %v10383_v63  ;;  %9540 = vmatprep.subr.bf16.mxu0 %v10398_v0  ;;  %v2628_v63 = vld [vmem:[%s15650_s7 + $0xa30] sm:$0xff] }
 0x57e   :  { %9704 = vmatprep.subr.bf16.mxu1 %v10400_v1  ;;  %v2636_v0 = vld [vmem:[%s15650_s7 + $0xa70] sm:$0xff]  ;;  %v2629_v1 = vld [vmem:[%s15650_s7 + $0xa38] sm:$0xff] }
 0x57f   :  { %v10510_v8 = vcombine.high %v2628_v63, %v2636_v0  ;;  %v10509_v17 = vcombine.low %v2628_v63, %v2636_v0  ;;  %v10511_v19 = vcombine.low %v2629_v1, %v2637_v4  ;;  %v2733_v63 = vld [vmem:[%s15650_s7 + $0xd78] sm:$0xff] }
 0x580   :  { %9541 = vmatpush1.bf16.msra.mxu0 %v10397_v11  ;;  %v10512_v11 = vcombine.high %v2629_v1, %v2637_v4 }
 0x581   :  { %9705 = vmatpush1.bf16.msra.mxu1 %v10399_v32  ;;  %9542 = vmatprep.subr.bf16.mxu0 %v10414_v12  ;;  %v2644_v32 = vld [vmem:[%s15650_s7 + $0xab0] sm:$0xff] }
 0x582   :  { %9706 = vmatprep.subr.bf16.mxu1 %v10416_v45  ;;  %v2652_v12 = vld [vmem:[%s15650_s7 + $0xaf0] sm:$0xff]  ;;  %v2645_v45 = vld [vmem:[%s15650_s7 + $0xab8] sm:$0xff] }
 0x583   :  { %v10526_v20 = vcombine.high %v2644_v32, %v2652_v12  ;;  %v10525_v33 = vcombine.low %v2644_v32, %v2652_v12  ;;  %v10527_v27 = vcombine.low %v2645_v45, %v2653_v16  ;;  %v2749_v32 = vld [vmem:[%s15650_s7 + $0xdf8] sm:$0xff] }
 0x584   :  { %9543 = vmatpush1.bf16.msra.mxu0 %v10413_v23  ;;  %v10528_v23 = vcombine.high %v2645_v45, %v2653_v16 }
 0x585   :  { %9707 = vmatpush1.bf16.msra.mxu1 %v10415_v24  ;;  %9544 = vmatprep.subr.bf16.mxu0 %v10430_v55  ;;  %v2660_v24 = vld [vmem:[%s15650_s7 + $0xb30] sm:$0xff] }
 0x586   :  { %9708 = vmatprep.subr.bf16.mxu1 %v10432_v25  ;;  %v2668_v55 = vld [vmem:[%s15650_s7 + $0xb70] sm:$0xff]  ;;  %v2661_v25 = vld [vmem:[%s15650_s7 + $0xb38] sm:$0xff] }
 0x587   :  { %v10542_v40 = vcombine.high %v2660_v24, %v2668_v55  ;;  %v10541_v36 = vcombine.low %v2660_v24, %v2668_v55  ;;  %v2765_v24 = vld [vmem:[%s15650_s7 + $0xe78] sm:$0xff] }
 0x588   :  { %9545 = vmatpush1.bf16.msra.mxu0 %v10429_v28  ;;  %v10544_v28 = vcombine.high %v2661_v25, %v2669_v26 }
 0x589   :  { %9709 = vmatpush1.bf16.msra.mxu1 %v10431_v30  ;;  %9555 = vmatprep.subr.bf16.mxu0 %v10446_v31  ;;  %v2676_v30 = vld [vmem:[%s15650_s7 + $0xbb0] sm:$0xff] }
 0x58a   :  { %9719 = vmatprep.subr.bf16.mxu1 %v10448_v34  ;;  %v2684_v31 = vld [vmem:[%s15650_s7 + $0xbf0] sm:$0xff]  ;;  %v2677_v34 = vld [vmem:[%s15650_s7 + $0xbb8] sm:$0xff] }
 0x58b   :  { %9547 = vmatmul.mubr.bf16.vlgmr.msra.gmra.mrb[24].mxu0 %v12634_v58  ;;  %v10558_v39 = vcombine.high %v2676_v30, %v2684_v31  ;;  %v10560_v59 = vcombine.high %v2677_v34, %v2685_v35  ;;  %v10559_v44 = vcombine.low %v2677_v34, %v2685_v35 }
 0x58c   :  { %9711 = vmatmul.mubr.bf16.vlgmr.msra.gmra.mrb[24].mxu1 %v12634_v58  ;;  %9556 = vmatpush1.bf16.msra.mxu0 %v10445_v37  ;;  %v2613_v58 = vld [vmem:[%s15650_s7 + $0x9b8] sm:$0xff]  ;;  %v10543_v37 = vcombine.low %v2661_v25, %v2669_v26 }
 0x58d   :  { %9587 = vmatprep.mubr.bf16.mxu0 %v12650_v2  ;;  %9720 = vmatpush1.bf16.msra.mxu1 %v10447_v38  ;;  %v10496_v62 = vcombine.high %v2613_v58, %v2621_v57  ;;  %v10495_v9 = vcombine.low %v2613_v58, %v2621_v57  ;;  %v2692_v38 = vld [vmem:[%s15650_s7 + $0xc30] sm:$0xff] }
 0x58e   :  { %9751 = vmatprep.mubr.bf16.mxu1 %v12650_v2  ;;  %9557 = vmatprep.subr.bf16.mxu0 %v10462_v29  ;;  %v10477_v2 = vcombine.low %v2596_v41, %v2604_v42  ;;  %v2700_v29 = vld [vmem:[%s15650_s7 + $0xc70] sm:$0xff]  ;;  %v2693_v41 = vld [vmem:[%s15650_s7 + $0xc38] sm:$0xff] }
 0x58f   :  { %9721 = vmatprep.subr.bf16.mxu1 %v10464_v43  ;;  %v2701_v42 = vld [vmem:[%s15650_s7 + $0xc78] sm:$0xff]  ;;  %v10557_v43 = vcombine.low %v2676_v30, %v2684_v31  ;;  %v10574_v15 = vcombine.high %v2692_v38, %v2700_v29  ;;  %v10573_v56 = vcombine.low %v2692_v38, %v2700_v29 }
 0x590   :  { %9558 = vmatpush1.bf16.msra.mxu0 %v10461_v49  ;;  %v10576_v49 = vcombine.high %v2693_v41, %v2701_v42  ;;  %v10575_v58 = vcombine.low %v2693_v41, %v2701_v42  ;;  %v2781_v30 = vld [vmem:[%s15650_s7 + $0xef8] sm:$0xff] }
 0x591   :  { %9722 = vmatpush1.bf16.msra.mxu1 %v10463_v50  ;;  %9559 = vmatprep.subr.bf16.mxu0 %v10478_v52  ;;  %v2708_v50 = vld [vmem:[%s15650_s7 + $0xcb0] sm:$0xff]  ;;  %v2797_v38 = vld [vmem:[%s15650_s7 + $0xf78] sm:$0xff] }
 0x592   :  { %9723 = vmatprep.subr.bf16.mxu1 %v10480_v53  ;;  %v2716_v52 = vld [vmem:[%s15650_s7 + $0xcf0] sm:$0xff]  ;;  %v2709_v53 = vld [vmem:[%s15650_s7 + $0xcb8] sm:$0xff] }
 0x593   :  { %v10590_v57 = vcombine.high %v2708_v50, %v2716_v52  ;;  %v10589_v0 = vcombine.low %v2708_v50, %v2716_v52  ;;  %v10591_v1 = vcombine.low %v2709_v53, %v2717_v54  ;;  %v2813_v50 = vld [vmem:[%s15650_s7 + $0xff8] sm:$0xff] }
 0x594   :  { %9560 = vmatpush1.bf16.msra.mxu0 %v10477_v2  ;;  %v10592_v2 = vcombine.high %v2709_v53, %v2717_v54 }
 0x595   :  { %9724 = vmatpush1.bf16.msra.mxu1 %v10479_v60  ;;  %9561 = vmatprep.subr.bf16.mxu0 %v10494_v61  ;;  %v2724_v60 = vld [vmem:[%s15650_s7 + $0xd30] sm:$0xff] }
 0x596   :  { %9725 = vmatprep.subr.bf16.mxu1 %v10496_v62  ;;  %v2732_v61 = vld [vmem:[%s15650_s7 + $0xd70] sm:$0xff]  ;;  %v2725_v62 = vld [vmem:[%s15650_s7 + $0xd38] sm:$0xff] }
 0x597   :  { %v10606_v4 = vcombine.high %v2724_v60, %v2732_v61  ;;  %v10605_v12 = vcombine.low %v2724_v60, %v2732_v61  ;;  %v10607_v45 = vcombine.low %v2725_v62, %v2733_v63  ;;  %v2829_v60 = vld [vmem:[%s15650_s7 + $0x1078] sm:$0xff] }
 0x598   :  { %9562 = vmatpush1.bf16.msra.mxu0 %v10493_v5  ;;  %v10608_v5 = vcombine.high %v2725_v62, %v2733_v63 }
 0x599   :  { %9726 = vmatpush1.bf16.msra.mxu1 %v10495_v9  ;;  %9563 = vmatprep.subr.bf16.mxu0 %v10510_v8  ;;  %v2740_v9 = vld [vmem:[%s15650_s7 + $0xdb0] sm:$0xff] }
 0x59a   :  { %9727 = vmatprep.subr.bf16.mxu1 %v10512_v11  ;;  %v2748_v8 = vld [vmem:[%s15650_s7 + $0xdf0] sm:$0xff]  ;;  %v2741_v11 = vld [vmem:[%s15650_s7 + $0xdb8] sm:$0xff] }
 0x59b   :  { %v10622_v16 = vcombine.high %v2740_v9, %v2748_v8  ;;  %v10621_v55 = vcombine.low %v2740_v9, %v2748_v8  ;;  %v10623_v25 = vcombine.low %v2741_v11, %v2749_v32  ;;  %v2837_v9 = vld [vmem:[%s15650_s7 + $0x10b8] sm:$0xff] }
 0x59c   :  { %9564 = vmatpush1.bf16.msra.mxu0 %v10509_v17  ;;  %v10624_v17 = vcombine.high %v2741_v11, %v2749_v32  ;;  %v2845_v8 = vld [vmem:[%s15650_s7 + $0x10f8] sm:$0xff] }
 0x59d   :  { %9728 = vmatpush1.bf16.msra.mxu1 %v10511_v19  ;;  %9565 = vmatprep.subr.bf16.mxu0 %v10526_v20  ;;  %v2756_v19 = vld [vmem:[%s15650_s7 + $0xe30] sm:$0xff] }
 0x59e   :  { %9729 = vmatprep.subr.bf16.mxu1 %v10528_v23  ;;  %v2764_v20 = vld [vmem:[%s15650_s7 + $0xe70] sm:$0xff]  ;;  %v2757_v23 = vld [vmem:[%s15650_s7 + $0xe38] sm:$0xff] }
 0x59f   :  { %v10638_v26 = vcombine.high %v2756_v19, %v2764_v20  ;;  %v10637_v31 = vcombine.low %v2756_v19, %v2764_v20  ;;  %v10639_v34 = vcombine.low %v2757_v23, %v2765_v24  ;;  %v2861_v19 = vld [vmem:[%s15650_s7 + $0x1178] sm:$0xff] }
 0x5a0   :  { %9566 = vmatpush1.bf16.msra.mxu0 %v10525_v33  ;;  %v10640_v33 = vcombine.high %v2757_v23, %v2765_v24  ;;  %v10719_v23 = vcombine.low %v2837_v9, %v2845_v8 }
 0x5a1   :  { %9730 = vmatpush1.bf16.msra.mxu1 %v10527_v27  ;;  %9567 = vmatprep.subr.bf16.mxu0 %v10542_v40  ;;  %v2772_v27 = vld [vmem:[%s15650_s7 + $0xeb0] sm:$0xff] }
 0x5a2   :  { %9731 = vmatprep.subr.bf16.mxu1 %v10544_v28  ;;  %v2780_v40 = vld [vmem:[%s15650_s7 + $0xef0] sm:$0xff]  ;;  %v2773_v28 = vld [vmem:[%s15650_s7 + $0xeb8] sm:$0xff] }
 0x5a3   :  { %v10654_v35 = vcombine.high %v2772_v27, %v2780_v40  ;;  %v10653_v29 = vcombine.low %v2772_v27, %v2780_v40  ;;  %v10655_v41 = vcombine.low %v2773_v28, %v2781_v30 }
 0x5a4   :  { %9568 = vmatpush1.bf16.msra.mxu0 %v10541_v36  ;;  %v10656_v36 = vcombine.high %v2773_v28, %v2781_v30  ;;  %v2884_v30 = vld [vmem:[%s15650_s7 + $0x1230] sm:$0xff] }
 0x5a5   :  { %9732 = vmatpush1.bf16.msra.mxu1 %v10543_v37  ;;  %9569 = vmatprep.subr.bf16.mxu0 %v10558_v39  ;;  %v2788_v37 = vld [vmem:[%s15650_s7 + $0xf30] sm:$0xff] }
 0x5a6   :  { %9733 = vmatprep.subr.bf16.mxu1 %v10560_v59  ;;  %v2796_v39 = vld [vmem:[%s15650_s7 + $0xf70] sm:$0xff]  ;;  %v2789_v59 = vld [vmem:[%s15650_s7 + $0xf38] sm:$0xff] }
 0x5a7   :  { %v10670_v42 = vcombine.high %v2788_v37, %v2796_v39  ;;  %v10669_v52 = vcombine.low %v2788_v37, %v2796_v39  ;;  %v10671_v53 = vcombine.low %v2789_v59, %v2797_v38 }
 0x5a8   :  { %9570 = vmatpush1.bf16.msra.mxu0 %v10557_v43  ;;  %v10672_v43 = vcombine.high %v2789_v59, %v2797_v38  ;;  %v2900_v38 = vld [vmem:[%s15650_s7 + $0x12b0] sm:$0xff] }
 0x5a9   :  { %9734 = vmatpush1.bf16.msra.mxu1 %v10559_v44  ;;  %9571 = vmatprep.subr.bf16.mxu0 %v10574_v15  ;;  %v2804_v44 = vld [vmem:[%s15650_s7 + $0xfb0] sm:$0xff] }
 0x5aa   :  { %9735 = vmatprep.subr.bf16.mxu1 %v10576_v49  ;;  %v2812_v15 = vld [vmem:[%s15650_s7 + $0xff0] sm:$0xff]  ;;  %v2805_v49 = vld [vmem:[%s15650_s7 + $0xfb8] sm:$0xff] }
 0x5ab   :  { %v10686_v54 = vcombine.high %v2804_v44, %v2812_v15  ;;  %v10685_v61 = vcombine.low %v2804_v44, %v2812_v15  ;;  %v10687_v62 = vcombine.low %v2805_v49, %v2813_v50 }
 0x5ac   :  { %9572 = vmatpush1.bf16.msra.mxu0 %v10573_v56  ;;  %v10688_v56 = vcombine.high %v2805_v49, %v2813_v50  ;;  %v2916_v50 = vld [vmem:[%s15650_s7 + $0x1330] sm:$0xff] }
 0x5ad   :  { %9736 = vmatpush1.bf16.msra.mxu1 %v10575_v58  ;;  %9573 = vmatprep.subr.bf16.mxu0 %v10590_v57  ;;  %v2820_v58 = vld [vmem:[%s15650_s7 + $0x1030] sm:$0xff] }
 0x5ae   :  { %9737 = vmatprep.subr.bf16.mxu1 %v10592_v2  ;;  %v2828_v57 = vld [vmem:[%s15650_s7 + $0x1070] sm:$0xff]  ;;  %v2821_v2 = vld [vmem:[%s15650_s7 + $0x1038] sm:$0xff] }
 0x5af   :  { %v10702_v63 = vcombine.high %v2820_v58, %v2828_v57  ;;  %v10703_v11 = vcombine.low %v2821_v2, %v2829_v60 }
 0x5b0   :  { %9574 = vmatpush1.bf16.msra.mxu0 %v10589_v0  ;;  %v10704_v0 = vcombine.high %v2821_v2, %v2829_v60  ;;  %v2932_v60 = vld [vmem:[%s15650_s7 + $0x13b0] sm:$0xff] }
 0x5b1   :  { %9738 = vmatpush1.bf16.msra.mxu1 %v10591_v1  ;;  %9575 = vmatprep.subr.bf16.mxu0 %v10606_v4  ;;  %v2836_v1 = vld [vmem:[%s15650_s7 + $0x10b0] sm:$0xff] }
 0x5b2   :  { %9739 = vmatprep.subr.bf16.mxu1 %v10608_v5  ;;  %v2844_v4 = vld [vmem:[%s15650_s7 + $0x10f0] sm:$0xff]  ;;  %v10701_v5 = vcombine.low %v2820_v58, %v2828_v57 }
 0x5b3   :  { %v10718_v32 = vcombine.high %v2836_v1, %v2844_v4  ;;  %v10717_v20 = vcombine.low %v2836_v1, %v2844_v4 }
 0x5b4   :  { %9576 = vmatpush1.bf16.msra.mxu0 %v10605_v12  ;;  %v2852_v12 = vld [vmem:[%s15650_s7 + $0x1130] sm:$0xff] }
 0x5b5   :  { %9740 = vmatpush1.bf16.msra.mxu1 %v10607_v45  ;;  %9577 = vmatprep.subr.bf16.mxu0 %v10622_v16  ;;  %v2860_v45 = vld [vmem:[%s15650_s7 + $0x1170] sm:$0xff]  ;;  %v10720_v16 = vcombine.high %v2837_v9, %v2845_v8 }
 0x5b6   :  { %9741 = vmatprep.subr.bf16.mxu1 %v10624_v17  ;;  %v2853_v17 = vld [vmem:[%s15650_s7 + $0x1138] sm:$0xff]  ;;  %v10734_v24 = vcombine.high %v2852_v12, %v2860_v45  ;;  %v2948_v9 = vld [vmem:[%s15650_s7 + $0x1430] sm:$0xff] }
 0x5b7   :  { %v10735_v27 = vcombine.low %v2853_v17, %v2861_v19  ;;  %v2956_v8 = vld [vmem:[%s15650_s7 + $0x1470] sm:$0xff] }
 0x5b8   :  { %9578 = vmatpush1.bf16.msra.mxu0 %v10621_v55  ;;  %v10736_v55 = vcombine.high %v2853_v17, %v2861_v19  ;;  %v2964_v19 = vld [vmem:[%s15650_s7 + $0x14b0] sm:$0xff] }
 0x5b9   :  { %9742 = vmatpush1.bf16.msra.mxu1 %v10623_v25  ;;  %9579 = vmatprep.subr.bf16.mxu0 %v10638_v26  ;;  %v2868_v25 = vld [vmem:[%s15650_s7 + $0x11b0] sm:$0xff] }
 0x5ba   :  { %9743 = vmatprep.subr.bf16.mxu1 %v10640_v33  ;;  %v2876_v26 = vld [vmem:[%s15650_s7 + $0x11f0] sm:$0xff]  ;;  %v2877_v33 = vld [vmem:[%s15650_s7 + $0x11f8] sm:$0xff] }
 0x5bb   :  { %v10750_v40 = vcombine.high %v2868_v25, %v2876_v26 }
 0x5bc   :  { %9580 = vmatpush1.bf16.msra.mxu0 %v10637_v31  ;;  %v2892_v31 = vld [vmem:[%s15650_s7 + $0x1270] sm:$0xff] }
 0x5bd   :  { %9744 = vmatpush1.bf16.msra.mxu1 %v10639_v34  ;;  %9581 = vmatprep.subr.bf16.mxu0 %v10654_v35  ;;  %v2885_v34 = vld [vmem:[%s15650_s7 + $0x1238] sm:$0xff]  ;;  %v10766_v39 = vcombine.high %v2884_v30, %v2892_v31 }
 0x5be   :  { %9745 = vmatprep.subr.bf16.mxu1 %v10656_v36  ;;  %v2893_v35 = vld [vmem:[%s15650_s7 + $0x1278] sm:$0xff]  ;;  %v10749_v36 = vcombine.low %v2868_v25, %v2876_v26 }
 0x5bf   :  { %v10768_v59 = vcombine.high %v2885_v34, %v2893_v35  ;;  %v10767_v44 = vcombine.low %v2885_v34, %v2893_v35  ;;  %v2996_v35 = vld [vmem:[%s15650_s7 + $0x15b0] sm:$0xff] }
 0x5c0   :  { %9582 = vmatpush1.bf16.msra.mxu0 %v10653_v29  ;;  %v2908_v29 = vld [vmem:[%s15650_s7 + $0x12f0] sm:$0xff] }
 0x5c1   :  { %9746 = vmatpush1.bf16.msra.mxu1 %v10655_v41  ;;  %9583 = vmatprep.subr.bf16.mxu0 %v10670_v42  ;;  %v2901_v41 = vld [vmem:[%s15650_s7 + $0x12b8] sm:$0xff]  ;;  %v10782_v15 = vcombine.high %v2900_v38, %v2908_v29 }
 0x5c2   :  { %9747 = vmatprep.subr.bf16.mxu1 %v10672_v43  ;;  %v2909_v42 = vld [vmem:[%s15650_s7 + $0x12f8] sm:$0xff]  ;;  %v10765_v43 = vcombine.low %v2884_v30, %v2892_v31 }
 0x5c3   :  { %v10784_v49 = vcombine.high %v2901_v41, %v2909_v42  ;;  %v10783_v58 = vcombine.low %v2901_v41, %v2909_v42  ;;  %v3012_v42 = vld [vmem:[%s15650_s7 + $0x1630] sm:$0xff] }
 0x5c4   :  { %9584 = vmatpush1.bf16.msra.mxu0 %v10669_v52  ;;  %v2924_v52 = vld [vmem:[%s15650_s7 + $0x1370] sm:$0xff] }
 0x5c5   :  { %9748 = vmatpush1.bf16.msra.mxu1 %v10671_v53  ;;  %9585 = vmatprep.subr.bf16.mxu0 %v10686_v54  ;;  %v2917_v53 = vld [vmem:[%s15650_s7 + $0x1338] sm:$0xff]  ;;  %v10798_v57 = vcombine.high %v2916_v50, %v2924_v52 }
 0x5c6   :  { %9749 = vmatprep.subr.bf16.mxu1 %v10688_v56  ;;  %v2925_v54 = vld [vmem:[%s15650_s7 + $0x1378] sm:$0xff]  ;;  %v10781_v56 = vcombine.low %v2900_v38, %v2908_v29 }
 0x5c7   :  { %v10800_v2 = vcombine.high %v2917_v53, %v2925_v54  ;;  %v10799_v1 = vcombine.low %v2917_v53, %v2925_v54  ;;  %v3028_v54 = vld [vmem:[%s15650_s7 + $0x16b0] sm:$0xff] }
 0x5c8   :  { %9586 = vmatpush1.bf16.msra.mxu0 %v10685_v61  ;;  %v2940_v61 = vld [vmem:[%s15650_s7 + $0x13f0] sm:$0xff] }
 0x5c9   :  { %9750 = vmatpush1.bf16.msra.mxu1 %v10687_v62  ;;  %9596 = vmatprep.subr.bf16.mxu0 %v10702_v63  ;;  %v2933_v62 = vld [vmem:[%s15650_s7 + $0x13b8] sm:$0xff]  ;;  %v10814_v4 = vcombine.high %v2932_v60, %v2940_v61 }
 0x5ca   :  { %9760 = vmatprep.subr.bf16.mxu1 %v10704_v0  ;;  %v2941_v63 = vld [vmem:[%s15650_s7 + $0x13f8] sm:$0xff]  ;;  %v10797_v0 = vcombine.low %v2916_v50, %v2924_v52 }
 0x5cb   :  { %9588 = vmatmul.mubr.bf16.vlgmr.msra.gmra.mrb[24].mxu0 %v12839_v21 }
 0x5cc   :  { %9752 = vmatmul.mubr.bf16.vlgmr.msra.gmra.mrb[24].mxu1 %v12839_v21  ;;  %9597 = vmatpush1.bf16.msra.mxu0 %v10701_v5  ;;  %v2869_v21 = vld [vmem:[%s15650_s7 + $0x11b8] sm:$0xff]  ;;  %v10816_v5 = vcombine.high %v2933_v62, %v2941_v63 }
 0x5cd   :  { %9628 = vmatprep.mubr.bf16.mxu0 %v13052_v3  ;;  %9761 = vmatpush1.bf16.msra.mxu1 %v10703_v11  ;;  %v10752_v28 = vcombine.high %v2869_v21, %v2877_v33  ;;  %v10751_v37 = vcombine.low %v2869_v21, %v2877_v33  ;;  %v2949_v11 = vld [vmem:[%s15650_s7 + $0x1438] sm:$0xff]  ;;  %v2980_v33 = vld [vmem:[%s15650_s7 + $0x1530] sm:$0xff] }
 0x5ce   :  { %9792 = vmatprep.mubr.bf16.mxu1 %v13052_v3  ;;  %9598 = vmatprep.subr.bf16.mxu0 %v10718_v32  ;;  %v10733_v3 = vcombine.low %v2852_v12, %v2860_v45  ;;  %v2957_v32 = vld [vmem:[%s15650_s7 + $0x1478] sm:$0xff]  ;;  %v10813_v12 = vcombine.low %v2932_v60, %v2940_v61  ;;  %v10815_v45 = vcombine.low %v2933_v62, %v2941_v63  ;;  %v3044_v63 = vld [vmem:[%s15650_s7 + $0x1730] sm:$0xff] }
 0x5cf   :  { %9762 = vmatprep.subr.bf16.mxu1 %v10720_v16  ;;  %v10830_v16 = vcombine.high %v2948_v9, %v2956_v8  ;;  %v10832_v17 = vcombine.high %v2949_v11, %v2957_v32  ;;  %v10831_v25 = vcombine.low %v2949_v11, %v2957_v32  ;;  %v3060_v32 = vld [vmem:[%s15650_s7 + $0x17b0] sm:$0xff] }
 0x5d0   :  { %9599 = vmatpush1.bf16.msra.mxu0 %v10717_v20  ;;  %v2972_v20 = vld [vmem:[%s15650_s7 + $0x14f0] sm:$0xff] }
 0x5d1   :  { %9763 = vmatpush1.bf16.msra.mxu1 %v10719_v23  ;;  %9600 = vmatprep.subr.bf16.mxu0 %v10734_v24  ;;  %v2965_v23 = vld [vmem:[%s15650_s7 + $0x14b8] sm:$0xff]  ;;  %v10846_v26 = vcombine.high %v2964_v19, %v2972_v20 }
 0x5d2   :  { %9764 = vmatprep.subr.bf16.mxu1 %v10736_v55  ;;  %v2973_v24 = vld [vmem:[%s15650_s7 + $0x14f8] sm:$0xff]  ;;  %v10829_v55 = vcombine.low %v2948_v9, %v2956_v8 }
 0x5d3   :  { %v10848_v21 = vcombine.high %v2965_v23, %v2973_v24  ;;  %v10847_v30 = vcombine.low %v2965_v23, %v2973_v24  ;;  %v3076_v24 = vld [vmem:[%s15650_s7 + $0x1830] sm:$0xff] }
 0x5d4   :  { %9601 = vmatpush1.bf16.msra.mxu0 %v10733_v3  ;;  %v2988_v3 = vld [vmem:[%s15650_s7 + $0x1570] sm:$0xff] }
 0x5d5   :  { %9765 = vmatpush1.bf16.msra.mxu1 %v10735_v27  ;;  %9602 = vmatprep.subr.bf16.mxu0 %v10750_v40  ;;  %v2981_v27 = vld [vmem:[%s15650_s7 + $0x1538] sm:$0xff]  ;;  %v10862_v31 = vcombine.high %v2980_v33, %v2988_v3 }
 0x5d6   :  { %9766 = vmatprep.subr.bf16.mxu1 %v10752_v28  ;;  %v2989_v40 = vld [vmem:[%s15650_s7 + $0x1578] sm:$0xff]  ;;  %v10845_v28 = vcombine.low %v2964_v19, %v2972_v20 }
 0x5d7   :  { %v10864_v34 = vcombine.high %v2981_v27, %v2989_v40  ;;  %v10863_v38 = vcombine.low %v2981_v27, %v2989_v40  ;;  %v3092_v40 = vld [vmem:[%s15650_s7 + $0x18b0] sm:$0xff] }
 0x5d8   :  { %9603 = vmatpush1.bf16.msra.mxu0 %v10749_v36  ;;  %v3004_v36 = vld [vmem:[%s15650_s7 + $0x15f0] sm:$0xff] }
 0x5d9   :  { %9767 = vmatpush1.bf16.msra.mxu1 %v10751_v37  ;;  %9604 = vmatprep.subr.bf16.mxu0 %v10766_v39  ;;  %v2997_v37 = vld [vmem:[%s15650_s7 + $0x15b8] sm:$0xff]  ;;  %v10878_v29 = vcombine.high %v2996_v35, %v3004_v36 }
 0x5da   :  { %9768 = vmatprep.subr.bf16.mxu1 %v10768_v59  ;;  %v3005_v39 = vld [vmem:[%s15650_s7 + $0x15f8] sm:$0xff]  ;;  %v10861_v59 = vcombine.low %v2980_v33, %v2988_v3 }
 0x5db   :  { %v10880_v41 = vcombine.high %v2997_v37, %v3005_v39  ;;  %v10879_v50 = vcombine.low %v2997_v37, %v3005_v39  ;;  %v3108_v37 = vld [vmem:[%s15650_s7 + $0x1930] sm:$0xff] }
 0x5dc   :  { %9605 = vmatpush1.bf16.msra.mxu0 %v10765_v43  ;;  %v3020_v43 = vld [vmem:[%s15650_s7 + $0x1670] sm:$0xff] }
 0x5dd   :  { %9769 = vmatpush1.bf16.msra.mxu1 %v10767_v44  ;;  %9606 = vmatprep.subr.bf16.mxu0 %v10782_v15  ;;  %v3013_v44 = vld [vmem:[%s15650_s7 + $0x1638] sm:$0xff]  ;;  %v10894_v52 = vcombine.high %v3012_v42, %v3020_v43  ;;  %v3116_v39 = vld [vmem:[%s15650_s7 + $0x1970] sm:$0xff] }
 0x5de   :  { %9770 = vmatprep.subr.bf16.mxu1 %v10784_v49  ;;  %v3021_v15 = vld [vmem:[%s15650_s7 + $0x1678] sm:$0xff]  ;;  %v10877_v49 = vcombine.low %v2996_v35, %v3004_v36 }
 0x5df   :  { %v10896_v53 = vcombine.high %v3013_v44, %v3021_v15  ;;  %v10895_v60 = vcombine.low %v3013_v44, %v3021_v15  ;;  %v3124_v15 = vld [vmem:[%s15650_s7 + $0x19b0] sm:$0xff] }
 0x5e0   :  { %9607 = vmatpush1.bf16.msra.mxu0 %v10781_v56  ;;  %v3036_v56 = vld [vmem:[%s15650_s7 + $0x16f0] sm:$0xff] }
 0x5e1   :  { %9771 = vmatpush1.bf16.msra.mxu1 %v10783_v58  ;;  %9608 = vmatprep.subr.bf16.mxu0 %v10798_v57  ;;  %v3029_v58 = vld [vmem:[%s15650_s7 + $0x16b8] sm:$0xff]  ;;  %v10910_v61 = vcombine.high %v3028_v54, %v3036_v56 }
 0x5e2   :  { %9772 = vmatprep.subr.bf16.mxu1 %v10800_v2  ;;  %v3037_v57 = vld [vmem:[%s15650_s7 + $0x16f8] sm:$0xff]  ;;  %v10893_v2 = vcombine.low %v3012_v42, %v3020_v43  ;;  %v10990_v43 = vcombine.high %v3108_v37, %v3116_v39 }
 0x5e3   :  { %v10912_v62 = vcombine.high %v3029_v58, %v3037_v57  ;;  %v10911_v9 = vcombine.low %v3029_v58, %v3037_v57  ;;  %v3148_v58 = vld [vmem:[%s15650_s7 + $0x1a70] sm:$0xff]  ;;  %v3141_v57 = vld [vmem:[%s15650_s7 + $0x1a38] sm:$0xff] }
 0x5e4   :  { %9609 = vmatpush1.bf16.msra.mxu0 %v10797_v0  ;;  %v3052_v0 = vld [vmem:[%s15650_s7 + $0x1770] sm:$0xff] }
 0x5e5   :  { %9773 = vmatpush1.bf16.msra.mxu1 %v10799_v1  ;;  %9610 = vmatprep.subr.bf16.mxu0 %v10814_v4  ;;  %v3045_v1 = vld [vmem:[%s15650_s7 + $0x1738] sm:$0xff]  ;;  %v10926_v8 = vcombine.high %v3044_v63, %v3052_v0 }
 0x5e6   :  { %9774 = vmatprep.subr.bf16.mxu1 %v10816_v5  ;;  %v3053_v4 = vld [vmem:[%s15650_s7 + $0x1778] sm:$0xff]  ;;  %v10909_v5 = vcombine.low %v3028_v54, %v3036_v56  ;;  %v3140_v56 = vld [vmem:[%s15650_s7 + $0x1a30] sm:$0xff] }
 0x5e7   :  { %v10928_v11 = vcombine.high %v3045_v1, %v3053_v4  ;;  %v10927_v19 = vcombine.low %v3045_v1, %v3053_v4  ;;  %v3164_v1 = vld [vmem:[%s15650_s7 + $0x1af0] sm:$0xff]  ;;  %v3157_v4 = vld [vmem:[%s15650_s7 + $0x1ab8] sm:$0xff] }
 0x5e8   :  { %9611 = vmatpush1.bf16.msra.mxu0 %v10813_v12  ;;  %v3068_v12 = vld [vmem:[%s15650_s7 + $0x17f0] sm:$0xff] }
 0x5e9   :  { %9775 = vmatpush1.bf16.msra.mxu1 %v10815_v45  ;;  %9612 = vmatprep.subr.bf16.mxu0 %v10830_v16  ;;  %v3061_v45 = vld [vmem:[%s15650_s7 + $0x17b8] sm:$0xff]  ;;  %v10942_v20 = vcombine.high %v3060_v32, %v3068_v12 }
 0x5ea   :  { %9776 = vmatprep.subr.bf16.mxu1 %v10832_v17  ;;  %v3069_v16 = vld [vmem:[%s15650_s7 + $0x17f8] sm:$0xff]  ;;  %v10925_v17 = vcombine.low %v3044_v63, %v3052_v0  ;;  %v3156_v0 = vld [vmem:[%s15650_s7 + $0x1ab0] sm:$0xff] }
 0x5eb   :  { %v10944_v23 = vcombine.high %v3061_v45, %v3069_v16  ;;  %v10943_v33 = vcombine.low %v3061_v45, %v3069_v16  ;;  %v3172_v45 = vld [vmem:[%s15650_s7 + $0x1b30] sm:$0xff] }
 0x5ec   :  { %9613 = vmatpush1.bf16.msra.mxu0 %v10829_v55  ;;  %v3084_v55 = vld [vmem:[%s15650_s7 + $0x1870] sm:$0xff] }
 0x5ed   :  { %9777 = vmatpush1.bf16.msra.mxu1 %v10831_v25  ;;  %9614 = vmatprep.subr.bf16.mxu0 %v10846_v26  ;;  %v3077_v25 = vld [vmem:[%s15650_s7 + $0x1838] sm:$0xff]  ;;  %v10958_v3 = vcombine.high %v3076_v24, %v3084_v55  ;;  %v3180_v16 = vld [vmem:[%s15650_s7 + $0x1b70] sm:$0xff] }
 0x5ee   :  { %9778 = vmatprep.subr.bf16.mxu1 %v10848_v21  ;;  %v3085_v26 = vld [vmem:[%s15650_s7 + $0x1878] sm:$0xff]  ;;  %v10941_v21 = vcombine.low %v3060_v32, %v3068_v12  ;;  %v11038_v32 = vcombine.high %v3156_v0, %v3164_v1 }
 0x5ef   :  { %v10960_v27 = vcombine.high %v3077_v25, %v3085_v26  ;;  %v10959_v35 = vcombine.low %v3077_v25, %v3085_v26  ;;  %v11054_v26 = vcombine.high %v3172_v45, %v3180_v16 }
 0x5f0   :  { %9615 = vmatpush1.bf16.msra.mxu0 %v10845_v28  ;;  %v3100_v28 = vld [vmem:[%s15650_s7 + $0x18f0] sm:$0xff] }
 0x5f1   :  { %9779 = vmatpush1.bf16.msra.mxu1 %v10847_v30  ;;  %9616 = vmatprep.subr.bf16.mxu0 %v10862_v31  ;;  %v10957_v30 = vcombine.low %v3076_v24, %v3084_v55  ;;  %v3093_v31 = vld [vmem:[%s15650_s7 + $0x18b8] sm:$0xff]  ;;  %v10974_v36 = vcombine.high %v3092_v40, %v3100_v28  ;;  %v11037_v55 = vcombine.low %v3156_v0, %v3164_v1 }
 0x5f2   :  { %9780 = vmatprep.subr.bf16.mxu1 %v10864_v34  ;;  %v3101_v34 = vld [vmem:[%s15650_s7 + $0x18f8] sm:$0xff] }
 0x5f3   :  { %v10975_v42 = vcombine.low %v3093_v31, %v3101_v34 }
 0x5f4   :  { %9617 = vmatpush1.bf16.msra.mxu0 %v10861_v59  ;;  %v10976_v59 = vcombine.high %v3093_v31, %v3101_v34 }
 0x5f5   :  { %9781 = vmatpush1.bf16.msra.mxu1 %v10863_v38  ;;  %9618 = vmatprep.subr.bf16.mxu0 %v10878_v29  ;;  %v3109_v38 = vld [vmem:[%s15650_s7 + $0x1938] sm:$0xff] }
 0x5f6   :  { %9782 = vmatprep.subr.bf16.mxu1 %v10880_v41  ;;  %v3117_v29 = vld [vmem:[%s15650_s7 + $0x1978] sm:$0xff]  ;;  %v10973_v41 = vcombine.low %v3092_v40, %v3100_v28 }
 0x5f7   :  { %v10992_v44 = vcombine.high %v3109_v38, %v3117_v29  ;;  %v3197_v28 = vld [vmem:[%s15650_s7 + $0x1bf8] sm:$0xff] }
 0x5f8   :  { %9619 = vmatpush1.bf16.msra.mxu0 %v10877_v49  ;;  %v3132_v49 = vld [vmem:[%s15650_s7 + $0x19f0] sm:$0xff] }
 0x5f9   :  { %9783 = vmatpush1.bf16.msra.mxu1 %v10879_v50  ;;  %9620 = vmatprep.subr.bf16.mxu0 %v10894_v52  ;;  %v3133_v50 = vld [vmem:[%s15650_s7 + $0x19f8] sm:$0xff]  ;;  %v10991_v52 = vcombine.low %v3109_v38, %v3117_v29 }
 0x5fa   :  { %9784 = vmatprep.subr.bf16.mxu1 %v10896_v53  ;;  %v11006_v53 = vcombine.high %v3124_v15, %v3132_v49 }
 0x5fc   :  { %9621 = vmatpush1.bf16.msra.mxu0 %v10893_v2  ;;  %v3149_v2 = vld [vmem:[%s15650_s7 + $0x1a78] sm:$0xff] }
 0x5fd   :  { %9785 = vmatpush1.bf16.msra.mxu1 %v10895_v60  ;;  %9622 = vmatprep.subr.bf16.mxu0 %v10910_v61  ;;  %v11005_v60 = vcombine.low %v3124_v15, %v3132_v49  ;;  %v11024_v63 = vcombine.high %v3141_v57, %v3149_v2  ;;  %v3204_v49 = vld [vmem:[%s15650_s7 + $0x1c30] sm:$0xff] }
 0x5fe   :  { %9786 = vmatprep.subr.bf16.mxu1 %v10912_v62  ;;  %v11022_v62 = vcombine.high %v3140_v56, %v3148_v58 }
 0x600   :  { %9623 = vmatpush1.bf16.msra.mxu0 %v10909_v5  ;;  %v3165_v5 = vld [vmem:[%s15650_s7 + $0x1af8] sm:$0xff] }
 0x601   :  { %9787 = vmatpush1.bf16.msra.mxu1 %v10911_v9  ;;  %9624 = vmatprep.subr.bf16.mxu0 %v10926_v8  ;;  %v11021_v9 = vcombine.low %v3140_v56, %v3148_v58  ;;  %v15491_v8 = vld [vmem:[%s15651_s8 + $0x8] sm:$0xff]  ;;  %v11040_v12 = vcombine.high %v3157_v4, %v3165_v5  ;;  %v11039_v25 = vcombine.low %v3157_v4, %v3165_v5  ;;  %v3236_v4 = vld [vmem:[%s15650_s7 + $0x1d30] sm:$0xff] }
 0x602   :  { %9788 = vmatprep.subr.bf16.mxu1 %v10928_v11  ;;  %v11023_v11 = vcombine.low %v3141_v57, %v3149_v2  ;;  %v3369_v24 = vrot.slane %v15491_v8, %v11590_v47  ;;  %v3220_v57 = vld [vmem:[%s15650_s7 + $0x1cb0] sm:$0xff] }
 0x603   :  { %v3228_v2 = vld [vmem:[%s15650_s7 + $0x1cf0] sm:$0xff] }
 0x604   :  { %9625 = vmatpush1.bf16.msra.mxu0 %v10925_v17  ;;  %v3365_v17 = vrot.slane %v15491_v8, %v11587_v46  ;;  %v3377_v46 = vrot.slane %v15491_v8, %v11802_v10  ;;  %v3189_v10 = vld [vmem:[%s15650_s7 + $0x1bb8] sm:$0xff]  ;;  %v11102_v0 = vcombine.high %v3220_v57, %v3228_v2  ;;  %v3244_v5 = vld [vmem:[%s15650_s7 + $0x1d70] sm:$0xff] }
 0x605   :  { %9789 = vmatpush1.bf16.msra.mxu1 %v10927_v19  ;;  %9626 = vmatprep.subr.bf16.mxu0 %v10942_v20  ;;  %v3173_v19 = vld [vmem:[%s15650_s7 + $0x1b38] sm:$0xff]  ;;  %v11072_v15 = vcombine.high %v3189_v10, %v3197_v28 }
 0x606   :  { %9790 = vmatprep.subr.bf16.mxu1 %v10944_v23  ;;  %v3181_v20 = vld [vmem:[%s15650_s7 + $0x1b78] sm:$0xff]  ;;  %v3373_v23 = vrot.slane %v15491_v8, %v11593_v48  ;;  %v3196_v48 = vld [vmem:[%s15650_s7 + $0x1bf0] sm:$0xff] }
 0x607   :  { %v11055_v29 = vcombine.low %v3173_v19, %v3181_v20 }
 0x608   :  { %9627 = vmatpush1.bf16.msra.mxu0 %v10941_v21 }
 0x609   :  { %9791 = vmatpush1.bf16.msra.mxu1 %v10943_v33  ;;  %9637 = vmatprep.subr.bf16.mxu0 %v10958_v3  ;;  %v11056_v33 = vcombine.high %v3173_v19, %v3181_v20  ;;  %v3188_v3 = vld [vmem:[%s15650_s7 + $0x1bb0] sm:$0xff]  ;;  %v3253_v20 = vld [vmem:[%s15650_s7 + $0x1db8] sm:$0xff] }
 0x60a   :  { %9801 = vmatprep.subr.bf16.mxu1 %v10960_v27  ;;  %v3260_v19 = vld [vmem:[%s15650_s7 + $0x1df0] sm:$0xff] }
 0x60b   :  { %9629 = vmatmul.mubr.bf16.vlgmr.msra.gmra.mrb[24].mxu0 %v13054_v6 }
 0x60c   :  { %9793 = vmatmul.mubr.bf16.vlgmr.msra.gmra.mrb[24].mxu1 %v13054_v6  ;;  %9638 = vmatpush1.bf16.msra.mxu0 %v10957_v30  ;;  %v3125_v6 = vld [vmem:[%s15650_s7 + $0x19b8] sm:$0xff] }
 0x60d   :  { %9669 = vmatprep.mubr.bf16.mxu0 %v13070_v13  ;;  %9802 = vmatpush1.bf16.msra.mxu1 %v10959_v35  ;;  %v11008_v54 = vcombine.high %v3125_v6, %v3133_v50  ;;  %v11007_v61 = vcombine.low %v3125_v6, %v3133_v50  ;;  %v3212_v6 = vld [vmem:[%s15650_s7 + $0x1c70] sm:$0xff] }
 0x60e   :  { %9833 = vmatprep.mubr.bf16.mxu1 %v13070_v13  ;;  %9639 = vmatprep.subr.bf16.mxu0 %v10974_v36  ;;  %v10989_v13 = vcombine.low %v3108_v37, %v3116_v39  ;;  %v11053_v36 = vcombine.low %v3172_v45, %v3180_v16  ;;  %v11086_v56 = vcombine.high %v3204_v49, %v3212_v6 }
 0x60f   :  { %9803 = vmatprep.subr.bf16.mxu1 %v10976_v59  ;;  %v11118_v45 = vcombine.high %v3236_v4, %v3244_v5 }
 0x610   :  { %9640 = vmatpush1.bf16.msra.mxu0 %v10973_v41  ;;  %v11070_v41 = vcombine.high %v3188_v3, %v3196_v48 }
 0x611   :  { %9804 = vmatpush1.bf16.msra.mxu1 %v10975_v42  ;;  %9641 = vmatprep.subr.bf16.mxu0 %v10990_v43 }
 0x612   :  { %9805 = vmatprep.subr.bf16.mxu1 %v10992_v44 }
 0x614   :  { %9642 = vmatpush1.bf16.msra.mxu0 %v10989_v13  ;;  %v3205_v13 = vld [vmem:[%s15650_s7 + $0x1c38] sm:$0xff] }
 0x615   :  { %9806 = vmatpush1.bf16.msra.mxu1 %v10991_v52  ;;  %9643 = vmatprep.subr.bf16.mxu0 %v11006_v53  ;;  %v3213_v52 = vld [vmem:[%s15650_s7 + $0x1c78] sm:$0xff]  ;;  %v11069_v53 = vcombine.low %v3188_v3, %v3196_v48 }
 0x616   :  { %9807 = vmatprep.subr.bf16.mxu1 %v11008_v54  ;;  %v11071_v54 = vcombine.low %v3189_v10, %v3197_v28  ;;  %v11088_v58 = vcombine.high %v3205_v13, %v3213_v52  ;;  %v3277_v3 = vld [vmem:[%s15650_s7 + $0x1e78] sm:$0xff]  ;;  %v3284_v10 = vld [vmem:[%s15650_s7 + $0x1eb0] sm:$0xff] }
 0x617   :  { %v3292_v28 = vld [vmem:[%s15650_s7 + $0x1ef0] sm:$0xff] }
 0x618   :  { %9644 = vmatpush1.bf16.msra.mxu0 %v11005_v60  ;;  %v3221_v60 = vld [vmem:[%s15650_s7 + $0x1cb8] sm:$0xff] }
 0x619   :  { %9808 = vmatpush1.bf16.msra.mxu1 %v11007_v61  ;;  %9645 = vmatprep.subr.bf16.mxu0 %v11022_v62  ;;  %v3229_v61 = vld [vmem:[%s15650_s7 + $0x1cf8] sm:$0xff]  ;;  %v11085_v62 = vcombine.low %v3204_v49, %v3212_v6  ;;  %v3324_v49 = vld [vmem:[%s15650_s7 + $0x1ff0] sm:$0xff] }
 0x61a   :  { %9809 = vmatprep.subr.bf16.mxu1 %v11024_v63  ;;  %v11087_v63 = vcombine.low %v3205_v13, %v3213_v52  ;;  %v11104_v1 = vcombine.high %v3221_v60, %v3229_v61  ;;  %v3317_v6 = vld [vmem:[%s15650_s7 + $0x1fb8] sm:$0xff] }
 0x61c   :  { %9646 = vmatpush1.bf16.msra.mxu0 %v11021_v9  ;;  %v3237_v9 = vld [vmem:[%s15650_s7 + $0x1d38] sm:$0xff] }
 0x61d   :  { %9810 = vmatpush1.bf16.msra.mxu1 %v11023_v11  ;;  %9647 = vmatprep.subr.bf16.mxu0 %v11038_v32  ;;  %v3245_v11 = vld [vmem:[%s15650_s7 + $0x1d78] sm:$0xff]  ;;  %v11101_v32 = vcombine.low %v3220_v57, %v3228_v2  ;;  %v3381_v57 = vrot.slane %v15491_v8, %v13000_v14  ;;  %v3389_v2 = vrot.slane %v15491_v8, %v13209_v7 }
 0x61e   :  { %v9343_v21 = vpop.f32.mrb[20].mxu0  ;;  %9811 = vmatprep.subr.bf16.mxu1 %v11040_v12  ;;  %v11103_v12 = vcombine.low %v3221_v60, %v3229_v61  ;;  %v11120_v16 = vcombine.high %v3237_v9, %v3245_v11  ;;  %v3385_v60 = vrot.slane %v15491_v8, %v13003_v18  ;;  %v3393_v61 = vrot.slane %v15491_v8, %v13006_v22 }
 0x61f   :  { %v11217_v47 = vadd.f32 %v9343_v21, %v3365_v17  ;;  %v9507_v27 = vpop.f32.mrb[20].mxu1  ;;  %v9345_v40 = vpop.f32.mrb[21].mxu0  ;;  %v3252_v17 = vld [vmem:[%s15650_s7 + $0x1db0] sm:$0xff] }
 0x620   :  { %v11219_v30 = vadd.f32 %v9507_v27, %v3373_v23  ;;  %v11218_v31 = vadd.f32 %v9345_v40, %v3369_v24  ;;  %v9509_v34 = vpop.f32.mrb[21].mxu1  ;;  %v9347_v35 = vpop.f32.mrb[22].mxu0  ;;  %9648 = vmatpush1.bf16.msra.mxu0 %v11037_v55  ;;  %v3261_v23 = vld [vmem:[%s15650_s7 + $0x1df8] sm:$0xff]  ;;  %v11117_v24 = vcombine.low %v3236_v4, %v3244_v5  ;;  %v11119_v55 = vcombine.low %v3237_v9, %v3245_v11  ;;  %v3276_v21 = vld [vmem:[%s15650_s7 + $0x1e70] sm:$0xff] }
 0x621   :  { %v9850_v37 = vmax.f32 %v11217_v47, 0.0  ;;  %v11220_v39 = vadd.f32 %v9509_v34, %v3377_v46  ;;  %v9511_v59 = vpop.f32.mrb[22].mxu1  ;;  %9812 = vmatpush1.bf16.msra.mxu1 %v11039_v25  ;;  %v9348_v38 = vpop.f32.mrb[23].mxu0  ;;  %9649 = vmatprep.subr.bf16.mxu0 %v11054_v26  ;;  %v11134_v46 = vcombine.high %v3252_v17, %v3260_v19  ;;  %v11136_v25 = vcombine.high %v3253_v20, %v3261_v23  ;;  %v3268_v26 = vld [vmem:[%s15650_s7 + $0x1e30] sm:$0xff] }
 0x622   :  { %v9852_v42 = vmax.f32 %v11219_v30, 0.0  ;;  %v9851_v43 = vmax.f32 %v11218_v31, 0.0  ;;  %v9512_v44 = vpop.f32.mrb[23].mxu1  ;;  %9813 = vmatprep.subr.bf16.mxu1 %v11056_v33  ;;  %v3269_v33 = vld [vmem:[%s15650_s7 + $0x1e38] sm:$0xff]  ;;  %v11133_v48 = vcombine.low %v3252_v17, %v3260_v19  ;;  %v11135_v47 = vcombine.low %v3253_v20, %v3261_v23  ;;  %v3308_v59 = vld [vmem:[%s15650_s7 + $0x1f70] sm:$0xff] }
 0x623   :  { %9866 = vst [vmem:[#allocation2 + $0x40] sm:$0xff] %v9850_v37  ;;  %v9853_v50 = vmax.f32 %v11220_v39, 0.0  ;;  %v11150_v27 = vcombine.high %v3268_v26, %v3276_v21  ;;  %v11152_v40 = vcombine.high %v3269_v33, %v3277_v3  ;;  %v3285_v30 = vld [vmem:[%s15650_s7 + $0x1eb8] sm:$0xff]  ;;  %v11149_v34 = vcombine.low %v3268_v26, %v3276_v21  ;;  %v3300_v39 = vld [vmem:[%s15650_s7 + $0x1f30] sm:$0xff] }
 0x624   :  { %9868 = vst [vmem:[#allocation2 + $0x50] sm:$0xff] %v9852_v42  ;;  %9867 = vst [vmem:[#allocation2 + $0x48] sm:$0xff] %v9851_v43  ;;  %9650 = vmatpush1.bf16.msra.mxu0 %v11053_v36  ;;  %v3293_v31 = vld [vmem:[%s15650_s7 + $0x1ef8] sm:$0xff]  ;;  %v11151_v35 = vcombine.low %v3269_v33, %v3277_v3  ;;  %v11166_v36 = vcombine.high %v3284_v10, %v3292_v28  ;;  %v11182_v43 = vcombine.high %v3300_v39, %v3308_v59 }
 0x625   :  { %9869 = vst [vmem:[#allocation2 + $0x58] sm:$0xff] %v9853_v50  ;;  %9814 = vmatpush1.bf16.msra.mxu1 %v11055_v29  ;;  %9651 = vmatprep.subr.bf16.mxu0 %v11070_v41  ;;  %v11168_v37 = vcombine.high %v3285_v30, %v3293_v31  ;;  %v3301_v38 = vld [vmem:[%s15650_s7 + $0x1f38] sm:$0xff]  ;;  %v11165_v41 = vcombine.low %v3284_v10, %v3292_v28 }
 0x626   :  { %9815 = vmatprep.subr.bf16.mxu1 %v11072_v15  ;;  %v3309_v29 = vld [vmem:[%s15650_s7 + $0x1f78] sm:$0xff]  ;;  %v11167_v42 = vcombine.low %v3285_v30, %v3293_v31  ;;  %v3316_v15 = vld [vmem:[%s15650_s7 + $0x1fb0] sm:$0xff]  ;;  %v11181_v13 = vcombine.low %v3300_v39, %v3308_v59 }
 0x627   :  { %v11184_v44 = vcombine.high %v3301_v38, %v3309_v29  ;;  %v3325_v50 = vld [vmem:[%s15650_s7 + $0x1ff8] sm:$0xff]  ;;  %v11183_v52 = vcombine.low %v3301_v38, %v3309_v29  ;;  %s11422_s7 = smov [#allocation2]  }
 0x628   :  { %9652 = vmatpush1.bf16.msra.mxu0 %v11069_v53  ;;  %v11198_v53 = vcombine.high %v3316_v15, %v3324_v49  ;;  %s9880_s6 = sshll.u32 %s11422_s7, 4  ;;  %s9881_s6 = int_to_ptr.vmem [resolvable:$true] %s9880_s6 }
 0x629   :  { %9816 = vmatpush1.bf16.msra.mxu1 %v11071_v54  ;;  %9653 = vmatprep.subr.bf16.mxu0 %v11086_v56  ;;  %v11200_v54 = vcombine.high %v3317_v6, %v3325_v50  ;;  %v11197_v56 = vcombine.low %v3316_v15, %v3324_v49  ;;  %s11395_s14 = scalar_lea.vmem %s9881_s6, 2048  ;;  %p11400_p1 = scmp.lt.s32.totalorder %s9881_s6, %s9881_s6 }
 0x62a   :  { %9817 = vmatprep.subr.bf16.mxu1 %v11088_v58  ;;  %v11199_v58 = vcombine.low %v3317_v6, %v3325_v50  ;;  %p11396_p0 = scmp.ne.s32.totalorder %s9881_s6, %s11395_s14  ;;  %p11401_p2 = scmp.lt.s32.totalorder %s11395_s14, %s11395_s14 }
 0x62c   :  { %9654 = vmatpush1.bf16.msra.mxu0 %v11085_v62  ;;  %p11402_p3 = por %p11401_p2, %p11400_p1 }
 0x62d   :  { %9818 = vmatpush1.bf16.msra.mxu1 %v11087_v63  ;;  %9655 = vmatprep.subr.bf16.mxu0 %v11102_v0 }
 0x62e   :  { %9819 = vmatprep.subr.bf16.mxu1 %v11104_v1  ;;  %p11403_p4 = pnand %p11402_p3, %p11396_p0 }
 0x630   :  { %9656 = vmatpush1.bf16.msra.mxu0 %v11101_v32 }
 0x631   :  { %9820 = vmatpush1.bf16.msra.mxu1 %v11103_v12  ;;  %9657 = vmatprep.subr.bf16.mxu0 %v11118_v45 }
 0x632   :  { %9821 = vmatprep.subr.bf16.mxu1 %v11120_v16 }
 0x634   :  { %9658 = vmatpush1.bf16.msra.mxu0 %v11117_v24 }
 0x635   :  { %9822 = vmatpush1.bf16.msra.mxu1 %v11119_v55  ;;  %9659 = vmatprep.subr.bf16.mxu0 %v11134_v46 }
 0x636   :  { %9823 = vmatprep.subr.bf16.mxu1 %v11136_v25 }
 0x638   :  { %9660 = vmatpush1.bf16.msra.mxu0 %v11133_v48 }
 0x639   :  { %9824 = vmatpush1.bf16.msra.mxu1 %v11135_v47  ;;  %9661 = vmatprep.subr.bf16.mxu0 %v11150_v27 }
 0x63a   :  { %9825 = vmatprep.subr.bf16.mxu1 %v11152_v40 }
 0x63c   :  { %9662 = vmatpush1.bf16.msra.mxu0 %v11149_v34 }
 0x63d   :  { %9826 = vmatpush1.bf16.msra.mxu1 %v11151_v35  ;;  %9663 = vmatprep.subr.bf16.mxu0 %v11166_v36 }
 0x63e   :  { %9827 = vmatprep.subr.bf16.mxu1 %v11168_v37 }
 0x640   :  { %9664 = vmatpush1.bf16.msra.mxu0 %v11165_v41 }
 0x641   :  { %9828 = vmatpush1.bf16.msra.mxu1 %v11167_v42  ;;  %9665 = vmatprep.subr.bf16.mxu0 %v11182_v43 }
 0x642   :  { %9829 = vmatprep.subr.bf16.mxu1 %v11184_v44 }
 0x644   :  { %9666 = vmatpush1.bf16.msra.mxu0 %v11181_v13 }
 0x645   :  { %9830 = vmatpush1.bf16.msra.mxu1 %v11183_v52  ;;  %9667 = vmatprep.subr.bf16.mxu0 %v11198_v53 }
 0x646   :  { %9831 = vmatprep.subr.bf16.mxu1 %v11200_v54 }
 0x648   :  { %9668 = vmatpush1.bf16.msra.mxu0 %v11197_v56 }
 0x649   :  { %9832 = vmatpush1.bf16.msra.mxu1 %v11199_v58 }
 0x64b   :  { %9670 = vmatmul.mubr.bf16.vlgmr.msra.gmra.mrb[24].mxu0 %v13264_v51 }
 0x64c   :  { %9834 = vmatmul.mubr.bf16.vlgmr.msra.gmra.mrb[24].mxu1 %v13264_v51 }
 0x71e   :  { %v9671_v62 = vpop.f32.mrb[24].mxu0 }
 0x71f   :  { %v11221_v63 = vadd.f32 %v9671_v62, %v3381_v57  ;;  %v9835_v0 = vpop.f32.mrb[24].mxu1  ;;  %v9673_v1 = vpop.f32.mrb[25].mxu0 }
 0x720   :  { %v11223_v4 = vadd.f32 %v9835_v0, %v3389_v2  ;;  %v11222_v5 = vadd.f32 %v9673_v1, %v3385_v60  ;;  %v9837_v9 = vpop.f32.mrb[25].mxu1  ;;  %v9675_v51 = vpop.f32.mrb[26].mxu0 }
 0x721   :  { %v9854_v14 = vmax.f32 %v11221_v63, 0.0  ;;  %v11224_v11 = vadd.f32 %v9837_v9, %v3393_v61  ;;  %v9839_v32 = vpop.f32.mrb[26].mxu1  ;;  %v9676_v7 = vpop.f32.mrb[27].mxu0 }
 0x722   :  { %v9856_v12 = vmax.f32 %v11223_v4, 0.0  ;;  %v9855_v45 = vmax.f32 %v11222_v5, 0.0  ;;  %v9840_v18 = vpop.f32.mrb[27].mxu1 }
 0x723   :  { %9870 = vst [vmem:[#allocation2 + $0x60] sm:$0xff] %v9854_v14  ;;  %v9857_v16 = vmax.f32 %v11224_v11, 0.0 }
 0x724   :  { %9872 = vst [vmem:[#allocation2 + $0x70] sm:$0xff] %v9856_v12  ;;  %9871 = vst [vmem:[#allocation2 + $0x68] sm:$0xff] %v9855_v45 }
 0x725   :  { %9873 = vst [vmem:[#allocation2 + $0x78] sm:$0xff] %v9857_v16 }
 0x726   :  { %11406 = shalt.err (!%p11403_p4)
}
 0x727   :  { %s11407_s3 = scalar_lea.hbm %s15652_s9, 2048 }
 0x728   :  { %p11408_p5 = scmp.ne.s32.totalorder %s15652_s9, %s11407_s3  ;;  %p11411_p6 = scmp.lt.u32.totalorder %s11407_s3, %s15652_s9 }
 0x72a   :  { %p11413_p7 = pnand %p11411_p6, %p11408_p5 }
 0x72c   :  { %11416 = shalt.err (!%p11413_p7)
}
 0x72d   :  { %9883 = dma.vmem_to_hbm [thread:$0]  %s9881_s6, 2048, %s15652_s9, [#allocation3]  }
 0x72e   :  { %11417 = dma.done.wait [#allocation3], 2048  }
 0x72f   :  { %11418 = vsyncadd [#allocation3], 4294965248 }
 0x730   :  { %9887 = vsyncpa [#allocation3], 1 }

</bundles_post_ra>
